<compile_context>
chip_gen: v5e
topology: v5e:2x2
jax: 0.10.0
libtpu: 0.0.40
codegen_flags: <defaults>
</compile_context>

<pallas_src>
import functools
import math

import numpy as np
import jax
import jax.numpy as jnp
from jax.experimental import pallas as pl
from jax.experimental.pallas import tpu as pltpu


# -----------------------------------------------------------------------------
# Fused kernel: input projections + relative attention + output projection,
# one batch element per grid step, all heads processed on the packed (T, D)
# lane-dense layout.
# -----------------------------------------------------------------------------
def _rel_mha_kernel(q_in_ref, k_in_ref, v_in_ref, p_in_ref,
                    wq_ref, bq_ref, wk_ref, bk_ref, wv_ref, bv_ref,
                    wp_ref, u_ref, vb_ref, mask_ref, wo_ref, bo_ref,
                    o_ref, *, num_heads, d_head, seq_len, inv_sqrt_d):
    T, H, Dh = seq_len, num_heads, d_head
    f32 = jnp.float32

    # --- fused input projections (MXU matmuls on the packed (T, D) layout) ----
    q = jnp.dot(q_in_ref[0], wq_ref[...], preferred_element_type=f32) + bq_ref[...]
    k = jnp.dot(k_in_ref[0], wk_ref[...], preferred_element_type=f32) + bk_ref[...]
    v = jnp.dot(v_in_ref[0], wv_ref[...], preferred_element_type=f32) + bv_ref[...]
    p = jnp.dot(p_in_ref[0], wp_ref[...], preferred_element_type=f32)   # no bias

    # Fold 1/sqrt(d_model) into the matmul LHS (T*Dh multiplies, not T*T).
    scale = f32(inv_sqrt_d)
    qc = (q + u_ref[...]) * scale          # content queries, (T, D)
    qp = (q + vb_ref[...]) * scale         # position queries, (T, D)

    # Mask: (1, T) padding mask or (T, T) full mask; any nonzero == masked.
    masked = jnp.broadcast_to(mask_ref[0], (T, T)) != f32(0.0)

    # Hoisted iota masks for the relative shift / selection (computed once).
    row = jax.lax.broadcasted_iota(jnp.int32, (T, T), 0)
    col = jax.lax.broadcasted_iota(jnp.int32, (T, T), 1)
    lower = col <= row            # j <= i   -> ps[i, j - i + T - 1]
    zero_diag = col == row + 1    # j == i+1 -> 0

    contract_last = (((1,), (1,)), ((), ()))  # contract Dh of both operands
    ctx_heads = []
    for h in range(H):                        # H is small; static unroll
        sl = slice(h * Dh, (h + 1) * Dh)
        k_h, p_h, v_h = k[:, sl], p[:, sl], v[:, sl]

        content = jax.lax.dot_general(qc[:, sl], k_h, contract_last,
                                      preferred_element_type=f32)       # (T, T)
        ps = jax.lax.dot_general(qp[:, sl], p_h, contract_last,
                                 preferred_element_type=f32)            # (T, T)

        # Transformer-XL relative shift (pad zero column -> view (T+1,T) ->
        # drop first row -> view (T,T)), vectorized with XLU rolls:
        #   shifted[i, j] = ps[i, j-i+T-1]   if j <= i
        #                 = 0                if j == i+1
        #                 = ps[i+1, j-i-2]   if j >  i+1
        # r1[i, j] = ps[i, (j - i - 1) mod T]   (per-row roll amount i+1)
        # r2[i, j] = r1[i+1, j] = ps[i+1, (j - i - 2) mod T]
        r1 = pltpu.roll(ps, shift=1, axis=1, stride=1, stride_axis=0)
        r2 = pltpu.roll(r1, shift=T - 1, axis=0)
        shifted = jnp.where(lower, r1, jnp.where(zero_diag, f32(0.0), r2))

        score = content + shifted            # already scaled via qc/qp
        score = jnp.where(masked, f32(-1000000000.0), score)

        # softmax over keys; divide moved to the EUP via approx reciprocal
        score = score - jnp.max(score, axis=-1, keepdims=True)
        e = jnp.exp(score)
        attn = e * pl.reciprocal(jnp.sum(e, axis=-1, keepdims=True), approx=True)

        ctx_heads.append(jnp.dot(attn, v_h, preferred_element_type=f32))  # (T, Dh)

    ctx = jnp.concatenate(ctx_heads, axis=1)             # (T, D), lane-dense
    out = jnp.dot(ctx, wo_ref[...], preferred_element_type=f32) + bo_ref[...]
    o_ref[0] = out.astype(o_ref.dtype)


# -----------------------------------------------------------------------------
# Module wrapper (parameter plumbing only; no head transposes, no reshapes of
# activations outside the kernel)
# -----------------------------------------------------------------------------
def relative_mha_forward(params, query, key, value, pos_embedding, mask=None):
    B, T, D = query.shape
    H = params["num_heads"]
    Dh = D // H

    if mask is None:
        mask_f = jnp.zeros((B, 1, T), jnp.float32)
    else:
        mask_f = mask.astype(bool).astype(jnp.float32)     # any nonzero = masked
        if mask_f.ndim == 2:
            mask_f = mask_f[:, None, :]                    # (B, T) -> (B, 1, T)
    Tm = mask_f.shape[1]

    u_row = params["u_bias"].reshape(1, D).astype(query.dtype)
    v_row = params["v_bias"].reshape(1, D).astype(query.dtype)

    kernel = functools.partial(
        _rel_mha_kernel, num_heads=H, d_head=Dh, seq_len=T,
        inv_sqrt_d=1.0 / math.sqrt(D))

    act_spec = pl.BlockSpec((1, T, D), lambda b: (b, 0, 0))
    row_spec = pl.BlockSpec((1, D), lambda b: (0, 0))
    w_spec = pl.BlockSpec((D, D), lambda b: (0, 0))
    mask_spec = pl.BlockSpec((1, Tm, T), lambda b: (b, 0, 0))

    return pl.pallas_call(
        kernel,
        grid=(B,),
        in_specs=[act_spec, act_spec, act_spec, act_spec,
                  w_spec, row_spec,            # wq, bq
                  w_spec, row_spec,            # wk, bk
                  w_spec, row_spec,            # wv, bv
                  w_spec,                      # wp (no bias)
                  row_spec, row_spec,          # u_bias, v_bias (packed rows)
                  mask_spec,
                  w_spec, row_spec],           # wo, bo
        out_specs=act_spec,
        out_shape=jax.ShapeDtypeStruct((B, T, D), query.dtype),
        compiler_params=pltpu.CompilerParams(
            dimension_semantics=("parallel",)),
    )(query, key, value, pos_embedding,
      params["wq"], params["bq"], params["wk"], params["bk"],
      params["wv"], params["bv"], params["wp"], u_row, v_row,
      mask_f, params["wo"], params["bo"])


# -----------------------------------------------------------------------------
# Pure-JAX reference (mirrors the PyTorch forward, incl. pad/view relative shift)
# -----------------------------------------------------------------------------
def relative_mha_reference(params, query, key, value, pos_embedding, mask=None):
    B, T, D = query.shape
    H = params["num_heads"]
    Dh = D // H
    hp = jax.lax.Precision.HIGHEST

    def lin(x, w, b):
        return jnp.einsum("btd,de->bte", x, w, precision=hp) + b

    q = lin(query, params["wq"], params["bq"]).reshape(B, T, H, Dh)
    k = lin(key, params["wk"], params["bk"]).reshape(B, T, H, Dh).transpose(0, 2, 1, 3)
    v = lin(value, params["wv"], params["bv"]).reshape(B, T, H, Dh).transpose(0, 2, 1, 3)
    p = jnp.einsum("btd,de->bte", pos_embedding, params["wp"],
                   precision=hp).reshape(B, T, H, Dh)

    content = jnp.einsum("bthd,bhsd->bhts", q + params["u_bias"], k, precision=hp)
    pos_score = jnp.einsum("bthd,bshd->bhts", q + params["v_bias"], p, precision=hp)

    zeros = jnp.zeros((B, H, T, 1), pos_score.dtype)
    padded = jnp.concatenate([zeros, pos_score], axis=-1).reshape(B, H, T + 1, T)
    pos_score = padded[:, :, 1:].reshape(B, H, T, T)

    score = (content + pos_score) / math.sqrt(D)
    if mask is not None:
        m = mask.astype(bool)[:, None]                 # (B, 1, 1, T) or (B, 1, T, T)
        score = jnp.where(m, -1000000000.0, score)
    attn = jax.nn.softmax(score, axis=-1)
    ctx = jnp.einsum("bhts,bhsd->bhtd", attn, v, precision=hp)
    ctx = ctx.transpose(0, 2, 1, 3).reshape(B, T, D)
    return jnp.einsum("btd,de->bte", ctx, params["wo"], precision=hp) + params["bo"]


# -----------------------------------------------------------------------------
# Deterministic parameter init
# -----------------------------------------------------------------------------
def init_params(key, d_model, num_heads):
    assert d_model % num_heads == 0
    d_head = d_model // num_heads
    ks = jax.random.split(key, 11)

    def xavier(k, shape, fan_in, fan_out):
        lim = math.sqrt(6.0 / (fan_in + fan_out))
        return jax.random.uniform(k, shape, jnp.float32, -lim, lim)

    D = d_model
    return dict(
        num_heads=num_heads,
        wq=xavier(ks[0], (D, D), D, D), bq=xavier(ks[1], (1, D), D, D),
        wk=xavier(ks[2], (D, D), D, D), bk=xavier(ks[3], (1, D), D, D),
        wv=xavier(ks[4], (D, D), D, D), bv=xavier(ks[5], (1, D), D, D),
        wp=xavier(ks[6], (D, D), D, D),
        wo=xavier(ks[7], (D, D), D, D), bo=xavier(ks[8], (1, D), D, D),
        u_bias=xavier(ks[9], (num_heads, d_head), num_heads, d_head),
        v_bias=xavier(ks[10], (num_heads, d_head), num_heads, d_head),
    )


if __name__ == "__main__":
    # Small but TPU-friendly shapes: (8,128)-aligned so the lane-dense layout
    # and the XLU roll-based relative shift run on their fast paths.
    B, T, D, H = 2, 128, 128, 4

    root = jax.random.PRNGKey(0)
    kp, kq, kk, kv, kpe = jax.random.split(root, 5)
    params = init_params(kp, D, H)

    query = jax.random.normal(kq, (B, T, D), jnp.float32)
    key_t = jax.random.normal(kk, (B, T, D), jnp.float32)
    value = jax.random.normal(kv, (B, T, D), jnp.float32)
    pos_emb = jax.random.normal(kpe, (B, T, D), jnp.float32)
    # padding mask: (B, 1, T), True = masked (last 3 key positions of batch 1)
    mask = jnp.zeros((B, 1, T), dtype=bool).at[1, 0, T - 3:].set(True)

    out = relative_mha_forward(params, query, key_t, value, pos_emb, mask)
    out = jax.block_until_ready(out)

    ref = relative_mha_reference(params, query, key_t, value, pos_emb, mask)
    np.testing.assert_allclose(np.asarray(out), np.asarray(ref),
                               rtol=5e-3, atol=5e-3)

    print("KERNEL_OK")
</pallas_src>

<mosaic_0001>
module attributes {stable_mosaic.version = 11 : i64} {
  func.func @_rel_mha_kernel(%arg0: i32, %arg1: memref<1x128x128xf32, #tpu.memory_space<vmem>>, %arg2: memref<1x128x128xf32, #tpu.memory_space<vmem>>, %arg3: memref<1x128x128xf32, #tpu.memory_space<vmem>>, %arg4: memref<1x128x128xf32, #tpu.memory_space<vmem>>, %arg5: memref<128x128xf32, #tpu.memory_space<vmem>>, %arg6: memref<1x128xf32, #tpu.memory_space<vmem>>, %arg7: memref<128x128xf32, #tpu.memory_space<vmem>>, %arg8: memref<1x128xf32, #tpu.memory_space<vmem>>, %arg9: memref<128x128xf32, #tpu.memory_space<vmem>>, %arg10: memref<1x128xf32, #tpu.memory_space<vmem>>, %arg11: memref<128x128xf32, #tpu.memory_space<vmem>>, %arg12: memref<1x128xf32, #tpu.memory_space<vmem>>, %arg13: memref<1x128xf32, #tpu.memory_space<vmem>>, %arg14: memref<1x1x128xf32, #tpu.memory_space<vmem>>, %arg15: memref<128x128xf32, #tpu.memory_space<vmem>>, %arg16: memref<1x128xf32, #tpu.memory_space<vmem>>, %arg17: memref<1x128x128xf32, #tpu.memory_space<vmem>>) attributes {dimension_semantics = [#tpu.dimension_semantics<parallel>], iteration_bounds = array<i64: 2>, scalar_prefetch = 0 : i64, scratch_operands = 0 : i64, tpu.core_type = #tpu.core_type<tc>, window_params = [{transform_indices = @transform_0, window_bounds = array<i64: 1, 128, 128>}, {transform_indices = @transform_1, window_bounds = array<i64: 1, 128, 128>}, {transform_indices = @transform_2, window_bounds = array<i64: 1, 128, 128>}, {transform_indices = @transform_3, window_bounds = array<i64: 1, 128, 128>}, {pipeline_mode = #tpu.pipeline_mode<synchronous>, transform_indices = @transform_4, window_bounds = array<i64: 128, 128>}, {pipeline_mode = #tpu.pipeline_mode<synchronous>, transform_indices = @transform_5, window_bounds = array<i64: 1, 128>}, {pipeline_mode = #tpu.pipeline_mode<synchronous>, transform_indices = @transform_6, window_bounds = array<i64: 128, 128>}, {pipeline_mode = #tpu.pipeline_mode<synchronous>, transform_indices = @transform_7, window_bounds = array<i64: 1, 128>}, {pipeline_mode = #tpu.pipeline_mode<synchronous>, transform_indices = @transform_8, window_bounds = array<i64: 128, 128>}, {pipeline_mode = #tpu.pipeline_mode<synchronous>, transform_indices = @transform_9, window_bounds = array<i64: 1, 128>}, {pipeline_mode = #tpu.pipeline_mode<synchronous>, transform_indices = @transform_10, window_bounds = array<i64: 128, 128>}, {pipeline_mode = #tpu.pipeline_mode<synchronous>, transform_indices = @transform_11, window_bounds = array<i64: 1, 128>}, {pipeline_mode = #tpu.pipeline_mode<synchronous>, transform_indices = @transform_12, window_bounds = array<i64: 1, 128>}, {transform_indices = @transform_13, window_bounds = array<i64: 1, 1, 128>}, {pipeline_mode = #tpu.pipeline_mode<synchronous>, transform_indices = @transform_14, window_bounds = array<i64: 128, 128>}, {pipeline_mode = #tpu.pipeline_mode<synchronous>, transform_indices = @transform_15, window_bounds = array<i64: 1, 128>}, {transform_indices = @transform_16, window_bounds = array<i64: 1, 128, 128>}]} {
    %c0 = arith.constant 0 : index
    %c0_0 = arith.constant 0 : index
    %c0_1 = arith.constant 0 : index
    %0 = vector.load %arg1[%c0, %c0_0, %c0_1] : memref<1x128x128xf32, #tpu.memory_space<vmem>>, vector<1x128x128xf32>
    %1 = vector.shape_cast %0 : vector<1x128x128xf32> to vector<128x128xf32>
    %c0_2 = arith.constant 0 : index
    %c0_3 = arith.constant 0 : index
    %2 = vector.load %arg5[%c0_2, %c0_3] : memref<128x128xf32, #tpu.memory_space<vmem>>, vector<128x128xf32>
    %cst = arith.constant dense<0.000000e+00> : vector<128x128xf32>
    %3 = tpu.matmul %1, %2, %cst {dimension_numbers = #tpu.dot_dimension_numbers<[1], [0], [0], [1], [0, 0, 1, 1], [], []>} : vector<128x128xf32>, vector<128x128xf32>, vector<128x128xf32> -> vector<128x128xf32>
    %c0_4 = arith.constant 0 : index
    %c0_5 = arith.constant 0 : index
    %4 = vector.load %arg6[%c0_4, %c0_5] : memref<1x128xf32, #tpu.memory_space<vmem>>, vector<1x128xf32>
    %5 = vector.broadcast %4 : vector<1x128xf32> to vector<128x128xf32>
    %6 = arith.addf %3, %5 : vector<128x128xf32>
    %c0_6 = arith.constant 0 : index
    %c0_7 = arith.constant 0 : index
    %c0_8 = arith.constant 0 : index
    %7 = vector.load %arg2[%c0_6, %c0_7, %c0_8] : memref<1x128x128xf32, #tpu.memory_space<vmem>>, vector<1x128x128xf32>
    %8 = vector.shape_cast %7 : vector<1x128x128xf32> to vector<128x128xf32>
    %c0_9 = arith.constant 0 : index
    %c0_10 = arith.constant 0 : index
    %9 = vector.load %arg7[%c0_9, %c0_10] : memref<128x128xf32, #tpu.memory_space<vmem>>, vector<128x128xf32>
    %cst_11 = arith.constant dense<0.000000e+00> : vector<128x128xf32>
    %10 = tpu.matmul %8, %9, %cst_11 {dimension_numbers = #tpu.dot_dimension_numbers<[1], [0], [0], [1], [0, 0, 1, 1], [], []>} : vector<128x128xf32>, vector<128x128xf32>, vector<128x128xf32> -> vector<128x128xf32>
    %c0_12 = arith.constant 0 : index
    %c0_13 = arith.constant 0 : index
    %11 = vector.load %arg8[%c0_12, %c0_13] : memref<1x128xf32, #tpu.memory_space<vmem>>, vector<1x128xf32>
    %12 = vector.broadcast %11 : vector<1x128xf32> to vector<128x128xf32>
    %13 = arith.addf %10, %12 : vector<128x128xf32>
    %c0_14 = arith.constant 0 : index
    %c0_15 = arith.constant 0 : index
    %c0_16 = arith.constant 0 : index
    %14 = vector.load %arg3[%c0_14, %c0_15, %c0_16] : memref<1x128x128xf32, #tpu.memory_space<vmem>>, vector<1x128x128xf32>
    %15 = vector.shape_cast %14 : vector<1x128x128xf32> to vector<128x128xf32>
    %c0_17 = arith.constant 0 : index
    %c0_18 = arith.constant 0 : index
    %16 = vector.load %arg9[%c0_17, %c0_18] : memref<128x128xf32, #tpu.memory_space<vmem>>, vector<128x128xf32>
    %cst_19 = arith.constant dense<0.000000e+00> : vector<128x128xf32>
    %17 = tpu.matmul %15, %16, %cst_19 {dimension_numbers = #tpu.dot_dimension_numbers<[1], [0], [0], [1], [0, 0, 1, 1], [], []>} : vector<128x128xf32>, vector<128x128xf32>, vector<128x128xf32> -> vector<128x128xf32>
    %c0_20 = arith.constant 0 : index
    %c0_21 = arith.constant 0 : index
    %18 = vector.load %arg10[%c0_20, %c0_21] : memref<1x128xf32, #tpu.memory_space<vmem>>, vector<1x128xf32>
    %19 = vector.broadcast %18 : vector<1x128xf32> to vector<128x128xf32>
    %20 = arith.addf %17, %19 : vector<128x128xf32>
    %c0_22 = arith.constant 0 : index
    %c0_23 = arith.constant 0 : index
    %c0_24 = arith.constant 0 : index
    %21 = vector.load %arg4[%c0_22, %c0_23, %c0_24] : memref<1x128x128xf32, #tpu.memory_space<vmem>>, vector<1x128x128xf32>
    %22 = vector.shape_cast %21 : vector<1x128x128xf32> to vector<128x128xf32>
    %c0_25 = arith.constant 0 : index
    %c0_26 = arith.constant 0 : index
    %23 = vector.load %arg11[%c0_25, %c0_26] : memref<128x128xf32, #tpu.memory_space<vmem>>, vector<128x128xf32>
    %cst_27 = arith.constant dense<0.000000e+00> : vector<128x128xf32>
    %24 = tpu.matmul %22, %23, %cst_27 {dimension_numbers = #tpu.dot_dimension_numbers<[1], [0], [0], [1], [0, 0, 1, 1], [], []>} : vector<128x128xf32>, vector<128x128xf32>, vector<128x128xf32> -> vector<128x128xf32>
    %c0_28 = arith.constant 0 : index
    %c0_29 = arith.constant 0 : index
    %25 = vector.load %arg12[%c0_28, %c0_29] : memref<1x128xf32, #tpu.memory_space<vmem>>, vector<1x128xf32>
    %26 = vector.broadcast %25 : vector<1x128xf32> to vector<128x128xf32>
    %27 = arith.addf %6, %26 : vector<128x128xf32>
    %cst_30 = arith.constant 0.0883883461 : f32
    %28 = vector.broadcast %cst_30 : f32 to vector<128x128xf32>
    %29 = arith.mulf %27, %28 : vector<128x128xf32>
    %c0_31 = arith.constant 0 : index
    %c0_32 = arith.constant 0 : index
    %30 = vector.load %arg13[%c0_31, %c0_32] : memref<1x128xf32, #tpu.memory_space<vmem>>, vector<1x128xf32>
    %31 = vector.broadcast %30 : vector<1x128xf32> to vector<128x128xf32>
    %32 = arith.addf %6, %31 : vector<128x128xf32>
    %cst_33 = arith.constant 0.0883883461 : f32
    %33 = vector.broadcast %cst_33 : f32 to vector<128x128xf32>
    %34 = arith.mulf %32, %33 : vector<128x128xf32>
    %c0_34 = arith.constant 0 : index
    %c0_35 = arith.constant 0 : index
    %c0_36 = arith.constant 0 : index
    %35 = vector.load %arg14[%c0_34, %c0_35, %c0_36] : memref<1x1x128xf32, #tpu.memory_space<vmem>>, vector<1x1x128xf32>
    %36 = vector.shape_cast %35 : vector<1x1x128xf32> to vector<1x128xf32>
    %37 = vector.shape_cast %36 : vector<1x128xf32> to vector<1x128xf32>
    %38 = vector.broadcast %37 : vector<1x128xf32> to vector<128x128xf32>
    %cst_37 = arith.constant 0.000000e+00 : f32
    %39 = vector.broadcast %cst_37 : f32 to vector<128x128xf32>
    %40 = arith.cmpf one, %38, %39 : vector<128x128xf32>
    %41 = tpu.iota {dimensions = array<i32: 0>} : vector<128x128xi32>
    %42 = tpu.iota {dimensions = array<i32: 1>} : vector<128x128xi32>
    %43 = arith.cmpi sle, %42, %41 : vector<128x128xi32>
    %c1_i32 = arith.constant 1 : i32
    %44 = vector.broadcast %c1_i32 : i32 to vector<128x128xi32>
    %45 = arith.addi %41, %44 : vector<128x128xi32>
    %46 = arith.cmpi eq, %42, %45 : vector<128x128xi32>
    %47 = vector.extract_strided_slice %13 {offsets = [0, 0], sizes = [128, 32], strides = [1, 1]} : vector<128x128xf32> to vector<128x32xf32>
    %48 = vector.extract_strided_slice %24 {offsets = [0, 0], sizes = [128, 32], strides = [1, 1]} : vector<128x128xf32> to vector<128x32xf32>
    %49 = vector.extract_strided_slice %20 {offsets = [0, 0], sizes = [128, 32], strides = [1, 1]} : vector<128x128xf32> to vector<128x32xf32>
    %50 = vector.extract_strided_slice %29 {offsets = [0, 0], sizes = [128, 32], strides = [1, 1]} : vector<128x128xf32> to vector<128x32xf32>
    %cst_38 = arith.constant dense<0.000000e+00> : vector<128x128xf32>
    %51 = tpu.matmul %50, %47, %cst_38 {dimension_numbers = #tpu.dot_dimension_numbers<[1], [1], [0], [0], [0, 0, 1, 0], [], []>} : vector<128x32xf32>, vector<128x32xf32>, vector<128x128xf32> -> vector<128x128xf32>
    %52 = vector.extract_strided_slice %34 {offsets = [0, 0], sizes = [128, 32], strides = [1, 1]} : vector<128x128xf32> to vector<128x32xf32>
    %cst_39 = arith.constant dense<0.000000e+00> : vector<128x128xf32>
    %53 = tpu.matmul %52, %48, %cst_39 {dimension_numbers = #tpu.dot_dimension_numbers<[1], [1], [0], [0], [0, 0, 1, 0], [], []>} : vector<128x32xf32>, vector<128x32xf32>, vector<128x128xf32> -> vector<128x128xf32>
    %c1_i32_40 = arith.constant 1 : i32
    %54 = tpu.dynamic_rotate %53 by %c1_i32_40 dim 1 {stride = 1 : si32, stride_dimension = 0 : si32} : vector<128x128xf32>, i32 -> vector<128x128xf32>
    %c127_i32 = arith.constant 127 : i32
    %55 = tpu.dynamic_rotate %54 by %c127_i32 dim 0 : vector<128x128xf32>, i32 -> vector<128x128xf32>
    %cst_41 = arith.constant 0.000000e+00 : f32
    %56 = vector.broadcast %cst_41 : f32 to vector<128x128xf32>
    %57 = arith.select %46, %56, %55 : vector<128x128xi1>, vector<128x128xf32>
    %58 = arith.select %43, %54, %57 : vector<128x128xi1>, vector<128x128xf32>
    %59 = arith.addf %51, %58 : vector<128x128xf32>
    %cst_42 = arith.constant -1.000000e+09 : f32
    %60 = vector.broadcast %cst_42 : f32 to vector<128x128xf32>
    %61 = arith.select %40, %60, %59 : vector<128x128xi1>, vector<128x128xf32>
    %cst_43 = arith.constant dense<0xFF800000> : vector<128xf32>
    %62 = vector.multi_reduction <maximumf>, %61, %cst_43 [1] : vector<128x128xf32> to vector<128xf32>
    %63 = vector.shape_cast %62 : vector<128xf32> to vector<128x1xf32>
    %64 = vector.broadcast %63 : vector<128x1xf32> to vector<128x128xf32>
    %65 = arith.subf %61, %64 : vector<128x128xf32>
    %66 = math.exp %65 : vector<128x128xf32>
    %cst_44 = arith.constant dense<0.000000e+00> : vector<128xf32>
    %67 = vector.multi_reduction <add>, %66, %cst_44 [1] : vector<128x128xf32> to vector<128xf32>
    %68 = vector.shape_cast %67 : vector<128xf32> to vector<128x1xf32>
    %69 = tpu.reciprocal %68 {approx = true} : vector<128x1xf32> -> vector<128x1xf32>
    %70 = vector.broadcast %69 : vector<128x1xf32> to vector<128x128xf32>
    %71 = arith.mulf %66, %70 : vector<128x128xf32>
    %cst_45 = arith.constant dense<0.000000e+00> : vector<128x32xf32>
    %72 = tpu.matmul %71, %49, %cst_45 {dimension_numbers = #tpu.dot_dimension_numbers<[1], [0], [0], [1], [0, 0, 1, 1], [], []>} : vector<128x128xf32>, vector<128x32xf32>, vector<128x32xf32> -> vector<128x32xf32>
    %73 = vector.extract_strided_slice %13 {offsets = [0, 32], sizes = [128, 32], strides = [1, 1]} : vector<128x128xf32> to vector<128x32xf32>
    %74 = vector.extract_strided_slice %24 {offsets = [0, 32], sizes = [128, 32], strides = [1, 1]} : vector<128x128xf32> to vector<128x32xf32>
    %75 = vector.extract_strided_slice %20 {offsets = [0, 32], sizes = [128, 32], strides = [1, 1]} : vector<128x128xf32> to vector<128x32xf32>
    %76 = vector.extract_strided_slice %29 {offsets = [0, 32], sizes = [128, 32], strides = [1, 1]} : vector<128x128xf32> to vector<128x32xf32>
    %cst_46 = arith.constant dense<0.000000e+00> : vector<128x128xf32>
    %77 = tpu.matmul %76, %73, %cst_46 {dimension_numbers = #tpu.dot_dimension_numbers<[1], [1], [0], [0], [0, 0, 1, 0], [], []>} : vector<128x32xf32>, vector<128x32xf32>, vector<128x128xf32> -> vector<128x128xf32>
    %78 = vector.extract_strided_slice %34 {offsets = [0, 32], sizes = [128, 32], strides = [1, 1]} : vector<128x128xf32> to vector<128x32xf32>
    %cst_47 = arith.constant dense<0.000000e+00> : vector<128x128xf32>
    %79 = tpu.matmul %78, %74, %cst_47 {dimension_numbers = #tpu.dot_dimension_numbers<[1], [1], [0], [0], [0, 0, 1, 0], [], []>} : vector<128x32xf32>, vector<128x32xf32>, vector<128x128xf32> -> vector<128x128xf32>
    %c1_i32_48 = arith.constant 1 : i32
    %80 = tpu.dynamic_rotate %79 by %c1_i32_48 dim 1 {stride = 1 : si32, stride_dimension = 0 : si32} : vector<128x128xf32>, i32 -> vector<128x128xf32>
    %c127_i32_49 = arith.constant 127 : i32
    %81 = tpu.dynamic_rotate %80 by %c127_i32_49 dim 0 : vector<128x128xf32>, i32 -> vector<128x128xf32>
    %cst_50 = arith.constant 0.000000e+00 : f32
    %82 = vector.broadcast %cst_50 : f32 to vector<128x128xf32>
    %83 = arith.select %46, %82, %81 : vector<128x128xi1>, vector<128x128xf32>
    %84 = arith.select %43, %80, %83 : vector<128x128xi1>, vector<128x128xf32>
    %85 = arith.addf %77, %84 : vector<128x128xf32>
    %cst_51 = arith.constant -1.000000e+09 : f32
    %86 = vector.broadcast %cst_51 : f32 to vector<128x128xf32>
    %87 = arith.select %40, %86, %85 : vector<128x128xi1>, vector<128x128xf32>
    %cst_52 = arith.constant dense<0xFF800000> : vector<128xf32>
    %88 = vector.multi_reduction <maximumf>, %87, %cst_52 [1] : vector<128x128xf32> to vector<128xf32>
    %89 = vector.shape_cast %88 : vector<128xf32> to vector<128x1xf32>
    %90 = vector.broadcast %89 : vector<128x1xf32> to vector<128x128xf32>
    %91 = arith.subf %87, %90 : vector<128x128xf32>
    %92 = math.exp %91 : vector<128x128xf32>
    %cst_53 = arith.constant dense<0.000000e+00> : vector<128xf32>
    %93 = vector.multi_reduction <add>, %92, %cst_53 [1] : vector<128x128xf32> to vector<128xf32>
    %94 = vector.shape_cast %93 : vector<128xf32> to vector<128x1xf32>
    %95 = tpu.reciprocal %94 {approx = true} : vector<128x1xf32> -> vector<128x1xf32>
    %96 = vector.broadcast %95 : vector<128x1xf32> to vector<128x128xf32>
    %97 = arith.mulf %92, %96 : vector<128x128xf32>
    %cst_54 = arith.constant dense<0.000000e+00> : vector<128x32xf32>
    %98 = tpu.matmul %97, %75, %cst_54 {dimension_numbers = #tpu.dot_dimension_numbers<[1], [0], [0], [1], [0, 0, 1, 1], [], []>} : vector<128x128xf32>, vector<128x32xf32>, vector<128x32xf32> -> vector<128x32xf32>
    %99 = vector.extract_strided_slice %13 {offsets = [0, 64], sizes = [128, 32], strides = [1, 1]} : vector<128x128xf32> to vector<128x32xf32>
    %100 = vector.extract_strided_slice %24 {offsets = [0, 64], sizes = [128, 32], strides = [1, 1]} : vector<128x128xf32> to vector<128x32xf32>
    %101 = vector.extract_strided_slice %20 {offsets = [0, 64], sizes = [128, 32], strides = [1, 1]} : vector<128x128xf32> to vector<128x32xf32>
    %102 = vector.extract_strided_slice %29 {offsets = [0, 64], sizes = [128, 32], strides = [1, 1]} : vector<128x128xf32> to vector<128x32xf32>
    %cst_55 = arith.constant dense<0.000000e+00> : vector<128x128xf32>
    %103 = tpu.matmul %102, %99, %cst_55 {dimension_numbers = #tpu.dot_dimension_numbers<[1], [1], [0], [0], [0, 0, 1, 0], [], []>} : vector<128x32xf32>, vector<128x32xf32>, vector<128x128xf32> -> vector<128x128xf32>
    %104 = vector.extract_strided_slice %34 {offsets = [0, 64], sizes = [128, 32], strides = [1, 1]} : vector<128x128xf32> to vector<128x32xf32>
    %cst_56 = arith.constant dense<0.000000e+00> : vector<128x128xf32>
    %105 = tpu.matmul %104, %100, %cst_56 {dimension_numbers = #tpu.dot_dimension_numbers<[1], [1], [0], [0], [0, 0, 1, 0], [], []>} : vector<128x32xf32>, vector<128x32xf32>, vector<128x128xf32> -> vector<128x128xf32>
    %c1_i32_57 = arith.constant 1 : i32
    %106 = tpu.dynamic_rotate %105 by %c1_i32_57 dim 1 {stride = 1 : si32, stride_dimension = 0 : si32} : vector<128x128xf32>, i32 -> vector<128x128xf32>
    %c127_i32_58 = arith.constant 127 : i32
    %107 = tpu.dynamic_rotate %106 by %c127_i32_58 dim 0 : vector<128x128xf32>, i32 -> vector<128x128xf32>
    %cst_59 = arith.constant 0.000000e+00 : f32
    %108 = vector.broadcast %cst_59 : f32 to vector<128x128xf32>
    %109 = arith.select %46, %108, %107 : vector<128x128xi1>, vector<128x128xf32>
    %110 = arith.select %43, %106, %109 : vector<128x128xi1>, vector<128x128xf32>
    %111 = arith.addf %103, %110 : vector<128x128xf32>
    %cst_60 = arith.constant -1.000000e+09 : f32
    %112 = vector.broadcast %cst_60 : f32 to vector<128x128xf32>
    %113 = arith.select %40, %112, %111 : vector<128x128xi1>, vector<128x128xf32>
    %cst_61 = arith.constant dense<0xFF800000> : vector<128xf32>
    %114 = vector.multi_reduction <maximumf>, %113, %cst_61 [1] : vector<128x128xf32> to vector<128xf32>
    %115 = vector.shape_cast %114 : vector<128xf32> to vector<128x1xf32>
    %116 = vector.broadcast %115 : vector<128x1xf32> to vector<128x128xf32>
    %117 = arith.subf %113, %116 : vector<128x128xf32>
    %118 = math.exp %117 : vector<128x128xf32>
    %cst_62 = arith.constant dense<0.000000e+00> : vector<128xf32>
    %119 = vector.multi_reduction <add>, %118, %cst_62 [1] : vector<128x128xf32> to vector<128xf32>
    %120 = vector.shape_cast %119 : vector<128xf32> to vector<128x1xf32>
    %121 = tpu.reciprocal %120 {approx = true} : vector<128x1xf32> -> vector<128x1xf32>
    %122 = vector.broadcast %121 : vector<128x1xf32> to vector<128x128xf32>
    %123 = arith.mulf %118, %122 : vector<128x128xf32>
    %cst_63 = arith.constant dense<0.000000e+00> : vector<128x32xf32>
    %124 = tpu.matmul %123, %101, %cst_63 {dimension_numbers = #tpu.dot_dimension_numbers<[1], [0], [0], [1], [0, 0, 1, 1], [], []>} : vector<128x128xf32>, vector<128x32xf32>, vector<128x32xf32> -> vector<128x32xf32>
    %125 = vector.extract_strided_slice %13 {offsets = [0, 96], sizes = [128, 32], strides = [1, 1]} : vector<128x128xf32> to vector<128x32xf32>
    %126 = vector.extract_strided_slice %24 {offsets = [0, 96], sizes = [128, 32], strides = [1, 1]} : vector<128x128xf32> to vector<128x32xf32>
    %127 = vector.extract_strided_slice %20 {offsets = [0, 96], sizes = [128, 32], strides = [1, 1]} : vector<128x128xf32> to vector<128x32xf32>
    %128 = vector.extract_strided_slice %29 {offsets = [0, 96], sizes = [128, 32], strides = [1, 1]} : vector<128x128xf32> to vector<128x32xf32>
    %cst_64 = arith.constant dense<0.000000e+00> : vector<128x128xf32>
    %129 = tpu.matmul %128, %125, %cst_64 {dimension_numbers = #tpu.dot_dimension_numbers<[1], [1], [0], [0], [0, 0, 1, 0], [], []>} : vector<128x32xf32>, vector<128x32xf32>, vector<128x128xf32> -> vector<128x128xf32>
    %130 = vector.extract_strided_slice %34 {offsets = [0, 96], sizes = [128, 32], strides = [1, 1]} : vector<128x128xf32> to vector<128x32xf32>
    %cst_65 = arith.constant dense<0.000000e+00> : vector<128x128xf32>
    %131 = tpu.matmul %130, %126, %cst_65 {dimension_numbers = #tpu.dot_dimension_numbers<[1], [1], [0], [0], [0, 0, 1, 0], [], []>} : vector<128x32xf32>, vector<128x32xf32>, vector<128x128xf32> -> vector<128x128xf32>
    %c1_i32_66 = arith.constant 1 : i32
    %132 = tpu.dynamic_rotate %131 by %c1_i32_66 dim 1 {stride = 1 : si32, stride_dimension = 0 : si32} : vector<128x128xf32>, i32 -> vector<128x128xf32>
    %c127_i32_67 = arith.constant 127 : i32
    %133 = tpu.dynamic_rotate %132 by %c127_i32_67 dim 0 : vector<128x128xf32>, i32 -> vector<128x128xf32>
    %cst_68 = arith.constant 0.000000e+00 : f32
    %134 = vector.broadcast %cst_68 : f32 to vector<128x128xf32>
    %135 = arith.select %46, %134, %133 : vector<128x128xi1>, vector<128x128xf32>
    %136 = arith.select %43, %132, %135 : vector<128x128xi1>, vector<128x128xf32>
    %137 = arith.addf %129, %136 : vector<128x128xf32>
    %cst_69 = arith.constant -1.000000e+09 : f32
    %138 = vector.broadcast %cst_69 : f32 to vector<128x128xf32>
    %139 = arith.select %40, %138, %137 : vector<128x128xi1>, vector<128x128xf32>
    %cst_70 = arith.constant dense<0xFF800000> : vector<128xf32>
    %140 = vector.multi_reduction <maximumf>, %139, %cst_70 [1] : vector<128x128xf32> to vector<128xf32>
    %141 = vector.shape_cast %140 : vector<128xf32> to vector<128x1xf32>
    %142 = vector.broadcast %141 : vector<128x1xf32> to vector<128x128xf32>
    %143 = arith.subf %139, %142 : vector<128x128xf32>
    %144 = math.exp %143 : vector<128x128xf32>
    %cst_71 = arith.constant dense<0.000000e+00> : vector<128xf32>
    %145 = vector.multi_reduction <add>, %144, %cst_71 [1] : vector<128x128xf32> to vector<128xf32>
    %146 = vector.shape_cast %145 : vector<128xf32> to vector<128x1xf32>
    %147 = tpu.reciprocal %146 {approx = true} : vector<128x1xf32> -> vector<128x1xf32>
    %148 = vector.broadcast %147 : vector<128x1xf32> to vector<128x128xf32>
    %149 = arith.mulf %144, %148 : vector<128x128xf32>
    %cst_72 = arith.constant dense<0.000000e+00> : vector<128x32xf32>
    %150 = tpu.matmul %149, %127, %cst_72 {dimension_numbers = #tpu.dot_dimension_numbers<[1], [0], [0], [1], [0, 0, 1, 1], [], []>} : vector<128x128xf32>, vector<128x32xf32>, vector<128x32xf32> -> vector<128x32xf32>
    %151 = tpu.concatenate %72, %98, %124, %150 in 1 : vector<128x32xf32>, vector<128x32xf32>, vector<128x32xf32>, vector<128x32xf32> -> vector<128x128xf32>
    %c0_73 = arith.constant 0 : index
    %c0_74 = arith.constant 0 : index
    %152 = vector.load %arg15[%c0_73, %c0_74] : memref<128x128xf32, #tpu.memory_space<vmem>>, vector<128x128xf32>
    %cst_75 = arith.constant dense<0.000000e+00> : vector<128x128xf32>
    %153 = tpu.matmul %151, %152, %cst_75 {dimension_numbers = #tpu.dot_dimension_numbers<[1], [0], [0], [1], [0, 0, 1, 1], [], []>} : vector<128x128xf32>, vector<128x128xf32>, vector<128x128xf32> -> vector<128x128xf32>
    %c0_76 = arith.constant 0 : index
    %c0_77 = arith.constant 0 : index
    %154 = vector.load %arg16[%c0_76, %c0_77] : memref<1x128xf32, #tpu.memory_space<vmem>>, vector<1x128xf32>
    %155 = vector.broadcast %154 : vector<1x128xf32> to vector<128x128xf32>
    %156 = arith.addf %153, %155 : vector<128x128xf32>
    %c0_78 = arith.constant 0 : index
    %c0_79 = arith.constant 0 : index
    %c0_80 = arith.constant 0 : index
    %157 = vector.load %arg17[%c0_78, %c0_79, %c0_80] : memref<1x128x128xf32, #tpu.memory_space<vmem>>, vector<1x128x128xf32>
    %158 = vector.shape_cast %157 : vector<1x128x128xf32> to vector<128x128xf32>
    %159 = vector.shape_cast %156 : vector<128x128xf32> to vector<1x128x128xf32>
    tpu.vector_store %arg17[%c0_78, %c0_79, %c0_80], %159 {strides = array<i32>} : memref<1x128x128xf32, #tpu.memory_space<vmem>>, vector<1x128x128xf32>,
    return
  }
  func.func @transform_0(%arg0: i32) -> (i32, i32, i32) {
    %c0_i32 = arith.constant 0 : i32
    %c0_i32_0 = arith.constant 0 : i32
    %c0_i32_1 = arith.constant 0 : i32
    return %arg0, %c0_i32, %c0_i32_0 : i32, i32, i32
  }
  func.func @transform_1(%arg0: i32) -> (i32, i32, i32) {
    %c0_i32 = arith.constant 0 : i32
    %c0_i32_0 = arith.constant 0 : i32
    %c0_i32_1 = arith.constant 0 : i32
    return %arg0, %c0_i32, %c0_i32_0 : i32, i32, i32
  }
  func.func @transform_2(%arg0: i32) -> (i32, i32, i32) {
    %c0_i32 = arith.constant 0 : i32
    %c0_i32_0 = arith.constant 0 : i32
    %c0_i32_1 = arith.constant 0 : i32
    return %arg0, %c0_i32, %c0_i32_0 : i32, i32, i32
  }
  func.func @transform_3(%arg0: i32) -> (i32, i32, i32) {
    %c0_i32 = arith.constant 0 : i32
    %c0_i32_0 = arith.constant 0 : i32
    %c0_i32_1 = arith.constant 0 : i32
    return %arg0, %c0_i32, %c0_i32_0 : i32, i32, i32
  }
  func.func @transform_4(%arg0: i32) -> (i32, i32) {
    %c0_i32 = arith.constant 0 : i32
    %c0_i32_0 = arith.constant 0 : i32
    %c0_i32_1 = arith.constant 0 : i32
    return %c0_i32, %c0_i32_0 : i32, i32
  }
  func.func @transform_5(%arg0: i32) -> (i32, i32) {
    %c0_i32 = arith.constant 0 : i32
    %c0_i32_0 = arith.constant 0 : i32
    %c0_i32_1 = arith.constant 0 : i32
    return %c0_i32, %c0_i32_0 : i32, i32
  }
  func.func @transform_6(%arg0: i32) -> (i32, i32) {
    %c0_i32 = arith.constant 0 : i32
    %c0_i32_0 = arith.constant 0 : i32
    %c0_i32_1 = arith.constant 0 : i32
    return %c0_i32, %c0_i32_0 : i32, i32
  }
  func.func @transform_7(%arg0: i32) -> (i32, i32) {
    %c0_i32 = arith.constant 0 : i32
    %c0_i32_0 = arith.constant 0 : i32
    %c0_i32_1 = arith.constant 0 : i32
    return %c0_i32, %c0_i32_0 : i32, i32
  }
  func.func @transform_8(%arg0: i32) -> (i32, i32) {
    %c0_i32 = arith.constant 0 : i32
    %c0_i32_0 = arith.constant 0 : i32
    %c0_i32_1 = arith.constant 0 : i32
    return %c0_i32, %c0_i32_0 : i32, i32
  }
  func.func @transform_9(%arg0: i32) -> (i32, i32) {
    %c0_i32 = arith.constant 0 : i32
    %c0_i32_0 = arith.constant 0 : i32
    %c0_i32_1 = arith.constant 0 : i32
    return %c0_i32, %c0_i32_0 : i32, i32
  }
  func.func @transform_10(%arg0: i32) -> (i32, i32) {
    %c0_i32 = arith.constant 0 : i32
    %c0_i32_0 = arith.constant 0 : i32
    %c0_i32_1 = arith.constant 0 : i32
    return %c0_i32, %c0_i32_0 : i32, i32
  }
  func.func @transform_11(%arg0: i32) -> (i32, i32) {
    %c0_i32 = arith.constant 0 : i32
    %c0_i32_0 = arith.constant 0 : i32
    %c0_i32_1 = arith.constant 0 : i32
    return %c0_i32, %c0_i32_0 : i32, i32
  }
  func.func @transform_12(%arg0: i32) -> (i32, i32) {
    %c0_i32 = arith.constant 0 : i32
    %c0_i32_0 = arith.constant 0 : i32
    %c0_i32_1 = arith.constant 0 : i32
    return %c0_i32, %c0_i32_0 : i32, i32
  }
  func.func @transform_13(%arg0: i32) -> (i32, i32, i32) {
    %c0_i32 = arith.constant 0 : i32
    %c0_i32_0 = arith.constant 0 : i32
    %c0_i32_1 = arith.constant 0 : i32
    return %arg0, %c0_i32, %c0_i32_0 : i32, i32, i32
  }
  func.func @transform_14(%arg0: i32) -> (i32, i32) {
    %c0_i32 = arith.constant 0 : i32
    %c0_i32_0 = arith.constant 0 : i32
    %c0_i32_1 = arith.constant 0 : i32
    return %c0_i32, %c0_i32_0 : i32, i32
  }
  func.func @transform_15(%arg0: i32) -> (i32, i32) {
    %c0_i32 = arith.constant 0 : i32
    %c0_i32_0 = arith.constant 0 : i32
    %c0_i32_1 = arith.constant 0 : i32
    return %c0_i32, %c0_i32_0 : i32, i32
  }
  func.func @transform_16(%arg0: i32) -> (i32, i32, i32) {
    %c0_i32 = arith.constant 0 : i32
    %c0_i32_0 = arith.constant 0 : i32
    %c0_i32_1 = arith.constant 0 : i32
    return %arg0, %c0_i32, %c0_i32_0 : i32, i32, i32
  }
}

</mosaic_0001>

<bundles_post_ra>
// kernel: tpu_custom_call.1
= control target key start
LH: loop header
LB: loop body
LE: loop exit
PB: predicated region body
PF: predicated region fallthrough
CT: control target
= control target key end

     0   :  { %s10462_s0 = inlined_call_operand.hbm [shape: f32[2,128,128], index: 0, kind: input, shape index: {}]   ;;  %s10463_s1 = inlined_call_operand.hbm [shape: f32[2,128,128], index: 1, kind: input, shape index: {}]   ;;  %s10464_s2 = inlined_call_operand.hbm [shape: f32[2,128,128], index: 2, kind: input, shape index: {}]   ;;  %s10465_s3 = inlined_call_operand.hbm [shape: f32[2,128,128], index: 3, kind: input, shape index: {}]   ;;  %s10466_s4 = inlined_call_operand.hbm [shape: f32[128,128], index: 4, kind: input, shape index: {}]   ;;  %s10467_s5 = inlined_call_operand.vmem [shape: f32[1,128], index: 5, kind: input, shape index: {}]   ;;  %s10468_s6 = inlined_call_operand.hbm [shape: f32[128,128], index: 6, kind: input, shape index: {}]   ;;  %s10469_s7 = inlined_call_operand.vmem [shape: f32[1,128], index: 7, kind: input, shape index: {}]   ;;  %s10470_s8 = inlined_call_operand.hbm [shape: f32[128,128], index: 8, kind: input, shape index: {}]   ;;  %s10471_s9 = inlined_call_operand.vmem [shape: f32[1,128], index: 9, kind: input, shape index: {}]   ;;  %s10472_s10 = inlined_call_operand.hbm [shape: f32[128,128], index: 10, kind: input, shape index: {}]   ;;  %s10473_s11 = inlined_call_operand.vmem [shape: f32[1,128], index: 11, kind: input, shape index: {}]   ;;  %s10474_s12 = inlined_call_operand.vmem [shape: f32[1,128], index: 12, kind: input, shape index: {}]   ;;  %s10475_s13 = inlined_call_operand.vmem [shape: f32[2,1,128], index: 13, kind: input, shape index: {}]   ;;  %s10476_s14 = inlined_call_operand.hbm [shape: f32[128,128], index: 14, kind: input, shape index: {}]   ;;  %s10477_s15 = inlined_call_operand.vmem [shape: f32[1,128], index: 15, kind: input, shape index: {}]   ;;  %s10478_s16 = inlined_call_operand.hbm [shape: f32[2,128,128], index: 16, kind: output, shape index: {}]  }
   0x1   :  { %10695 = sst [smem:[#allocation135_spill]] %s10462_s0 }
   0x2   :  { %10696 = sst [smem:[#allocation136_spill]] %s10463_s1 }
   0x3   :  { %10697 = sst [smem:[#allocation137_spill]] %s10466_s4 }
   0x4   :  { %10698 = sst [smem:[#allocation138_spill]] %s10468_s6 }
   0x5   :  { %10699 = sst [smem:[#allocation139_spill]] %s10469_s7 }
   0x6   :  { %10700 = sst [smem:[#allocation140_spill]] %s10470_s8 }
   0x7   :  { %10701 = sst [smem:[#allocation141_spill]] %s10471_s9 }
   0x8   :  { %10702 = sst [smem:[#allocation142_spill]] %s10472_s10 }
   0x9   :  { %10703 = sst [smem:[#allocation143_spill]] %s10475_s13 }
   0xa   :  { %10704 = sst [smem:[#allocation144_spill]] %s10476_s14 }
   0xb   :  { %10705 = sst [smem:[#allocation145_spill]] %s10477_s15 }
   0xc   :  { %10706 = sst [smem:[#allocation146_spill]] %s10478_s16 }
   0xd   :  { %21 = vsyncpa [#allocation3], 0 }
   0xe   :  { %23 = vsyncpa [#allocation3 + $0x1], 0 }
   0xf   :  { %24 = vsyncpa [#allocation6], 0 }
  0x10   :  { %26 = vsyncpa [#allocation6 + $0x1], 0 }
  0x11   :  { %27 = vsyncpa [#allocation9], 0 }
  0x12   :  { %29 = vsyncpa [#allocation9 + $0x1], 0 }
  0x13   :  { %30 = vsyncpa [#allocation12], 0 }
  0x14   :  { %31 = vsyncpa [#allocation15], 0 }
  0x15   :  { %32 = vsyncpa [#allocation4], 0 }
  0x16   :  { %34 = vsyncpa [#allocation4 + $0x1], 0  ;;  %s6337_s21 = smov 0   ;;  %s6339_s22 = smov 0  }
  0x17   :  { %s6341_s23 = smov 0   ;;  %s6343_s24 = smov 0  }
  0x18 LB: > { %10707 = sst [smem:[#allocation25_spill]] %s6210_s21  ;;  %s6358_s25 = sadd.s32 4294967295, %s6222_s24   ;;  %s6222_s24 = sphi %s6343_s24, %s11374_s24   ;;  %s6218_s23 = sphi %s6341_s23, %s11378_s23   ;;  %s6214_s22 = sphi %s6339_s22, %s11377_s22   ;;  %s6210_s21 = sphi %s6337_s21, %s11376_s21  }
  0x19   : > { %s4913_s26 = sadd.s32 4294967294, %s6222_s24   ;;  %p60_p0 = scmp.ne.s32.totalorder %s6214_s22, %s6210_s21 }
  0x1a   : > { %p10493_p1 = scmp.eq.s32.totalorder %s6358_s25, 0  ;;  %p419_p2 = scmp.eq.s32.totalorder %s6358_s25, 1 }
  0x1b   : > { %p425_p3 = scmp.eq.s32.totalorder %s4913_s26, 1  ;;  %p4914_p5 = scmp.ge.s32.totalorder %s6222_s24, 1 }
  0x1c   : > { %p6367_p4 = por %p10493_p1, %p60_p0  ;;  %p432_p7 = scmp.lt.s32.totalorder %s6222_s24, 3 }
  0x1d   : > { %p6372_p6 = por %p425_p3, %p60_p0  ;;  %s10711_s4 = sld [smem:[#allocation137_spill]] }
  0x1e   : > { %p6380_p8 = pnand %p4914_p5, %p432_p7  ;;  %s6224_s18 = smov [#allocation10]  }
  0x1f   : > { %s10709_s28 = scalar_select %p6372_p6, 1, 0 }
  0x20   : > { %p5288_p9 = pneg %p6380_p8  ;;  %s445_s19 = sshll.u32 %s6224_s18, 4  ;;  %s446_s19 = int_to_ptr.vmem [resolvable:$true] %s445_s19 }
  0x21   : > { %10710 = sst [smem:[#allocation26_spill]] %s10709_s28  ;;  %s10485_s18 = smov 8  }
  0x22   : > { %p6388_p10 = pnand %p5288_p9, %p10493_p1  ;;  %s10714_s6 = sld [smem:[#allocation138_spill]] }
  0x23   : > { %s443_s0 = sshll.u32 %s10711_s4, 4  ;;  %s10483_s4 = smov 128   ;;  %s444_s0 = int_to_ptr.hbm [resolvable:$true] %s443_s0 }
  0x24   : > { %5291 = dma.hbm_to_vmem [thread:$0]  (!%p6388_p10), %s444_s0, 2048, %s446_s19, [#allocation9], %s10483_s4, %s10483_s4, %s10485_s18  }
  0x25   : > { %s6227_s28 = smov [#allocation11]   ;;  %s10715_s10 = sld [smem:[#allocation142_spill]] }
  0x26   : > { %s462_s21 = sshll.u32 %s6227_s28, 4  ;;  %s6228_s0 = smov [#allocation14]   ;;  %s463_s21 = int_to_ptr.vmem [resolvable:$true] %s462_s21 }
  0x27   : > { %s496_s19 = sshll.u32 %s6228_s0, 4  ;;  %s6410_s28 = sadd.s32 1, %s6222_s24   ;;  %s497_s19 = int_to_ptr.vmem [resolvable:$true] %s496_s19 }
  0x28   : > { %s460_s30 = sshll.u32 %s10714_s6, 4  ;;  %10716 = sst [smem:[#allocation27_spill]] %s6410_s28  ;;  %s461_s30 = int_to_ptr.hbm [resolvable:$true] %s460_s30 }
  0x29   : > { %5294 = dma.hbm_to_vmem [thread:$0]  (!%p6388_p10), %s461_s30, 2048, %s463_s21, [#allocation12], %s10483_s4, %s10483_s4, %s10485_s18  }
  0x2a   : > { %s44_s16 = ssub.s32 %s6222_s24, %s6410_s28  ;;  %s47_s26 = sadd.s32 1, %s6218_s23 }
  0x2b   : > { %s494_s29 = sshll.u32 %s10715_s10, 4  ;;  %p45_p12 = scmp.eq.s32.totalorder %s44_s16, 0  ;;  %s495_s29 = int_to_ptr.hbm [resolvable:$true] %s494_s29 }
  0x2c   : > { %5300 = dma.hbm_to_vmem [thread:$0]  (!%p6388_p10), %s495_s29, 2048, %s497_s19, [#allocation15], %s10483_s4, %s10483_s4, %s10485_s18  }
  0x2d   : > { %p54_p13 = scmp.ne.s32.totalorder %s6218_s23, %s6214_s22  ;;  %p55_p0 = scmp.eq.s32.totalorder %s6222_s24, 0 }
  0x2e   : > { %p5326_p3 = scmp.lt.s32.totalorder %s6222_s24, 2  ;;  %s10489_s0 = sand.u32 1, %s6218_s23  }
  0x2f   : > { %s6425_s21 = scalar_select %p45_p12, %s6218_s23, %s47_s26  }
  0x30   : > { %p56_p5 = por %p55_p0, %p54_p13  ;;  %p6429_p7 = por %p419_p2, %p54_p13 }
  0x31   : > { %10717 = sst [smem:[#allocation28_spill]] %s6425_s21  ;;  %s6435_s6 = sshll.u32 %s6222_s24, 7 }
  0x32   : > { %s10718_s30 = scalar_select %p6429_p7, 1, 0 }
  0x33   : > { %s6439_s29 = sshll.u32 %s10489_s0, 7  ;;  %p6441_p9 = pnand %p5326_p3, %p56_p5 }
  0x34   : > { %10719 = sst [smem:[#allocation29_spill]] %s10718_s30  ;;  %s10494_s16 = sand.u32 1, %s6222_s24  }
  0x35   : > { %s10721_s1 = sld [smem:[#allocation136_spill]]  ;;  %s559_s10 = scalar_lea.vmem [#allocation5], %s6439_s29 }
  0x36   : > { %s567_s21 = sshll.u32 %s559_s10, 4  ;;  %s6453_s0 = scalar_lea.sflag [#allocation6], %s10494_s16  ;;  %s568_s21 = int_to_ptr.vmem [resolvable:$true] %s567_s21 }
  0x37   : > { %p5960_p12 = pneg %p6441_p9 }
  0x3b   : > { %s564_s18 = scalar_lea.hbm %s10721_s1, %s6435_s6  ;;  %s5963_s10 = scalar_lea.hbm %s10721_s1, 256 }
  0x3c   : > { %s565_s28 = sshll.u32 %s564_s18, 4  ;;  %s566_s28 = int_to_ptr.hbm [resolvable:$true] %s565_s28 }
  0x3d   : > { %s5956_s30 = sshra.s32 %s566_s28, 4  ;;  %s5957_s30 = int_to_ptr.hbm [resolvable:$true] %s5956_s30 }
  0x3e   : > { %s5958_s15 = scalar_lea.hbm %s5957_s30, 128  ;;  %p5964_p3 = scmp.lt.s32.totalorder %s5957_s30, %s10721_s1 }
  0x3f   : > { %p5959_p2 = scmp.ne.s32.totalorder %s5957_s30, %s5958_s15  ;;  %p5965_p5 = scmp.lt.s32.totalorder %s5963_s10, %s5958_s15 }
  0x41   : > { %p5961_p13 = pnand %p5960_p12, %p5959_p2  ;;  %p5966_p11 = por %p5965_p5, %p5964_p3 }
  0x43   : > { %p5962_p0 = pneg %p5961_p13 }
  0x45   : > { %p5967_p1 = pnand %p5966_p11, %p5962_p0 }
  0x47   : > { %5970 = shalt.err (!%p5967_p1)
}
  0x48   : > { %s10722_s16 = smov 8   ;;  %s10723_s7 = smov 128  }
  0x49   : > { %5310 = dma.hbm_to_vmem [thread:$0]  (!%p6441_p9), %s566_s28, 2048, %s568_s21, %s6453_s0, %s10723_s7, %s10723_s7, %s10722_s16  }
  0x4a   : > { %s10724_s8 = sld [smem:[#allocation140_spill]]  ;;  %s6229_s15 = smov [#allocation13]  }
  0x4b   : > { %s479_s30 = sshll.u32 %s6229_s15, 4  ;;  %s10725_s14 = sld [smem:[#allocation144_spill]]  ;;  %s480_s30 = int_to_ptr.vmem [resolvable:$true] %s479_s30 }
  0x4c   : > { %s6230_s28 = smov [#allocation16]   ;;  %s10726_s15 = sld [smem:[#allocation135_spill]] }
  0x4d   : > { %s516_s21 = sshll.u32 %s6230_s28, 4  ;;  %s537_s18 = scalar_lea.vmem [#allocation2], %s6439_s29  ;;  %s517_s21 = int_to_ptr.vmem [resolvable:$true] %s516_s21 }
  0x50   : > { %s477_s13 = sshll.u32 %s10724_s8, 4  ;;  %s545_s8 = sshll.u32 %s537_s18, 4  ;;  %s478_s13 = int_to_ptr.hbm [resolvable:$true] %s477_s13  ;;  %s546_s8 = int_to_ptr.vmem [resolvable:$true] %s545_s8 }
  0x51   : > { %s514_s1 = sshll.u32 %s10725_s14, 4  ;;  %s515_s1 = int_to_ptr.hbm [resolvable:$true] %s514_s1 }
  0x52   : > { %5297 = dma.hbm_to_vmem [thread:$0]  (!%p6388_p10), %s478_s13, 2048, %s480_s30, [#allocation12], %s10723_s7, %s10723_s7, %s10722_s16  }
  0x53   : > { %5303 = dma.hbm_to_vmem [thread:$0]  (!%p6388_p10), %s515_s1, 2048, %s517_s21, [#allocation15], %s10723_s7, %s10723_s7, %s10722_s16  }
  0x54   : > { %s542_s10 = scalar_lea.hbm %s10726_s15, %s6435_s6  ;;  %s10727_s13 = sand.u32 1, %s6218_s23  }
  0x55   : > { %s543_s14 = sshll.u32 %s542_s10, 4  ;;  %s534_s30 = scalar_lea.sflag [#allocation3], %s10727_s13  ;;  %s544_s14 = int_to_ptr.hbm [resolvable:$true] %s543_s14 }
  0x56   : > { %s6046_s9 = sshra.s32 %s544_s14, 4  ;;  %s6053_s21 = scalar_lea.hbm %s10726_s15, 256  ;;  %s6047_s9 = int_to_ptr.hbm [resolvable:$true] %s6046_s9 }
  0x57   : > { %s6048_s28 = scalar_lea.hbm %s6047_s9, 128  ;;  %p6054_p10 = scmp.lt.s32.totalorder %s6047_s9, %s10726_s15 }
  0x58   : > { %p6049_p1 = scmp.ne.s32.totalorder %s6047_s9, %s6048_s28  ;;  %p6055_p13 = scmp.lt.s32.totalorder %s6053_s21, %s6048_s28 }
  0x5a   : > { %p6051_p11 = pnand %p6049_p1, %p5960_p12  ;;  %p6056_p0 = por %p6055_p13, %p6054_p10 }
  0x5c   : > { %p6052_p2 = pneg %p6051_p11 }
  0x5e   : > { %p6057_p3 = pnand %p6056_p0, %p6052_p2 }
  0x60   : > { %6060 = shalt.err (!%p6057_p3)
}
  0x61   : > { %5307 = dma.hbm_to_vmem [thread:$0]  (!%p6441_p9), %s544_s14, 2048, %s546_s8, %s534_s30, %s10723_s7, %s10723_s7, %s10722_s16  }
  0x62   : > { %s586_s13 = scalar_lea.hbm %s10464_s2, %s6435_s6  ;;  %s581_s1 = scalar_lea.vmem [#allocation7], %s6439_s29 }
  0x63   : > { %s589_s20 = sshll.u32 %s581_s1, 4  ;;  %s587_s9 = sshll.u32 %s586_s13, 4  ;;  %s590_s20 = int_to_ptr.vmem [resolvable:$true] %s589_s20  ;;  %s588_s9 = int_to_ptr.hbm [resolvable:$true] %s587_s9 }
  0x64   : > { %s6076_s28 = sshra.s32 %s588_s9, 4  ;;  %s6083_s8 = scalar_lea.hbm %s10464_s2, 256  ;;  %s6077_s28 = int_to_ptr.hbm [resolvable:$true] %s6076_s28 }
  0x65   : > { %s6078_s21 = scalar_lea.hbm %s6077_s28, 128  ;;  %p6084_p2 = scmp.lt.s32.totalorder %s6077_s28, %s10464_s2 }
  0x66   : > { %p6079_p5 = scmp.ne.s32.totalorder %s6077_s28, %s6078_s21  ;;  %p6085_p10 = scmp.lt.s32.totalorder %s6083_s8, %s6078_s21 }
  0x68   : > { %p6081_p1 = pnand %p6079_p5, %p5960_p12  ;;  %p6086_p13 = por %p6085_p10, %p6084_p2 }
  0x6a   : > { %p6082_p11 = pneg %p6081_p1 }
  0x6c   : > { %p6087_p0 = pnand %p6086_p13, %p6082_p11 }
  0x6e   : > { %6090 = shalt.err (!%p6087_p0)
}
  0x6f   : > { %5313 = dma.hbm_to_vmem [thread:$0]  (!%p6441_p9), %s588_s9, 2048, %s590_s20, %s6453_s0, %s10723_s7, %s10723_s7, %s10722_s16  }
  0x70   : > { %s608_s13 = scalar_lea.hbm %s10465_s3, %s6435_s6  ;;  %s603_s1 = scalar_lea.vmem [#allocation8], %s6439_s29 }
  0x71   : > { %s611_s28 = sshll.u32 %s603_s1, 4  ;;  %s609_s21 = sshll.u32 %s608_s13, 4  ;;  %s612_s28 = int_to_ptr.vmem [resolvable:$true] %s611_s28  ;;  %s610_s21 = int_to_ptr.hbm [resolvable:$true] %s609_s21 }
  0x72   : > { %s10728_s4 = sand.u32 1, %s6222_s24   ;;  %s6106_s8 = sshra.s32 %s610_s21, 4  ;;  %s6107_s8 = int_to_ptr.hbm [resolvable:$true] %s6106_s8 }
  0x73   : > { %s600_s26 = scalar_lea.sflag [#allocation9], %s10728_s4  ;;  %s6108_s14 = scalar_lea.hbm %s6107_s8, 128 }
  0x74   : > { %p6109_p3 = scmp.ne.s32.totalorder %s6107_s8, %s6108_s14  ;;  %s6113_s9 = scalar_lea.hbm %s10465_s3, 256 }
  0x75   : > { %p6114_p11 = scmp.lt.s32.totalorder %s6107_s8, %s10465_s3  ;;  %p6115_p2 = scmp.lt.s32.totalorder %s6113_s9, %s6108_s14 }
  0x76   : > { %p6111_p5 = pnand %p6109_p3, %p5960_p12 }
  0x77   : > { %p6116_p10 = por %p6115_p2, %p6114_p11 }
  0x78   : > { %p6112_p1 = pneg %p6111_p5 }
  0x7a   : > { %p6117_p13 = pnand %p6116_p10, %p6112_p1 }
  0x7c   : > { %6120 = shalt.err (!%p6117_p13)
}
  0x7d   : > { %5316 = dma.hbm_to_vmem [thread:$0]  (!%p6441_p9), %s610_s21, 2048, %s612_s28, %s600_s26, %s10723_s7, %s10723_s7, %s10722_s16  }
  0x7e   : > { %629 = sbr.rel (%p6380_p8) target bundleno = 3039 (0xbdf), region = 84 }
  0x83   : > { %s6553_s30 = sand.u32 1, %s6214_s22  }
  0x84   : > { %s6556_s10 = sshll.u32 %s6553_s30, 7  ;;  %s632_s18 = scalar_lea.sflag [#allocation3], %s6553_s30 }
  0x85   : > { %s6560_s13 = scalar_lea.vmem [#allocation2], %s6556_s10 }
  0x86   : > { %6181 = dma.done.wait (%p6367_p4), %s632_s18, 2048  }
  0x87   : > { %6183 = vsyncadd (%p6367_p4), %s632_s18, 4294965248  ;;  %s641_s7 = sand.u32 1, %s6358_s25   ;;  %s6568_s19 = scalar_lea.vmem [#allocation5], %s6556_s10 }
  0x88   : > { %s642_s17 = scalar_lea.sflag [#allocation6], %s641_s7 }
  0x89   : > { %6185 = dma.done.wait (%p6367_p4), %s642_s17, 4096  }
  0x8a   : > { %6187 = vsyncadd (%p6367_p4), %s642_s17, 4294963200  ;;  %s6575_s16 = scalar_lea.vmem [#allocation7], %s6556_s10  ;;  %s662_s1 = scalar_lea.sflag [#allocation9], %s641_s7 }
  0x8b   : > { %s6578_s28 = scalar_lea.vmem [#allocation8], %s6556_s10 }
  0x8c   : > { %6189 = dma.done.wait (%p6367_p4), %s662_s1, 2048  }
  0x8d   : > { %6191 = vsyncadd (%p6367_p4), %s662_s1, 4294965248  ;;  %p10729_p8 = scmp.eq.s32.totalorder %s6358_s25, 0 }
  0x8f   : > { %6193 = dma.done.wait (%p10729_p8), [#allocation9], 2048   ;;  %p10730_p9 = pmov %p10729_p8 }
  0x90   : > { %p10731_p12 = pmov %p10729_p8 }
  0x91   : > { %6195 = vsyncadd (%p10730_p9), [#allocation9], 4294965248 }
  0x92   : > { %6197 = dma.done.wait (%p10731_p12), [#allocation12], 4096   ;;  %p10732_p0 = pmov %p10729_p8 }
  0x94   : > { %6199 = vsyncadd (%p10732_p0), [#allocation12], 4294963200  ;;  %p10733_p3 = pmov %p10732_p0 }
  0x95   : > { %p10734_p5 = pmov %p10732_p0 }
  0x96   : > { %6201 = dma.done.wait (%p10733_p3), [#allocation15], 4096  }
  0x97   : > { %6203 = vsyncadd (%p10734_p5), [#allocation15], 4294963200  ;;  %v792_v0 = vld [vmem:[#allocation10 + $0x78] sm:$0xff]  ;;  %v791_v1 = vld [vmem:[#allocation10 + $0x70] sm:$0xff]  ;;  %s10563_s0 = smov 96   ;;  %s10567_s20 = smov 64  }
  0x98   : > { %797 = vmatpush.msra.mxu0 %v792_v0  ;;  %5210 = vmatpush.msra.mxu1 %v792_v0  ;;  %v790_v2 = vld [vmem:[#allocation10 + $0x68] sm:$0xff]  ;;  %v994_v3 = vld [vmem:[#allocation13 + $0x78] sm:$0xff]  ;;  %v993_v4 = vld [vmem:[#allocation13 + $0x70] sm:$0xff]  ;;  %s10741_s29 = sld [smem:[#allocation141_spill]]  ;;  %vm10591_vm0 = vcmask 261120   ;;  %s6233_s17 = smov 32  }
  0x99   : > { %5211 = vmatpush.msra.mxu3 %v792_v0  ;;  %v789_v5 = vld [vmem:[#allocation10 + $0x60] sm:$0xff]  ;;  %999 = vmatpush.msra.mxu2 %v994_v3  ;;  %v992_v6 = vld [vmem:[#allocation13 + $0x68] sm:$0xff]  ;;  %v788_v7 = vld [vmem:[#allocation10 + $0x58] sm:$0xff]  ;;  %s10760_s7 = sld [smem:[#allocation139_spill]]  ;;  %p758_p4 = scmp.lt.s32.totalorder %s6358_s25, 1 }
  0x9a   : > { %798 = vmatpush.msra.mxu0 %v791_v1  ;;  %5212 = vmatpush.msra.mxu1 %v791_v1  ;;  %v991_v8 = vld [vmem:[#allocation13 + $0x60] sm:$0xff]  ;;  %v787_v9 = vld [vmem:[#allocation10 + $0x50] sm:$0xff]  ;;  %v990_v10 = vld [vmem:[#allocation13 + $0x58] sm:$0xff]  ;;  %s6234_s21 = smov 361   ;;  %s10570_s4 = smov 273  }
  0x9b   : > { %5213 = vmatpush.msra.mxu3 %v791_v1  ;;  %1000 = vmatpush.msra.mxu2 %v993_v4  ;;  %v786_v11 = vld [vmem:[#allocation10 + $0x48] sm:$0xff]  ;;  %v989_v12 = vld [vmem:[#allocation13 + $0x50] sm:$0xff]  ;;  %v785_v13 = vld [vmem:[#allocation10 + $0x40] sm:$0xff]  ;;  %s6236_s26 = smov 257   ;;  %s6237_s8 = smov 353  }
  0x9c   : > { %799 = vmatpush.msra.mxu0 %v790_v2  ;;  %5214 = vmatpush.msra.mxu1 %v790_v2  ;;  %v988_v14 = vld [vmem:[#allocation13 + $0x48] sm:$0xff]  ;;  %v784_v15 = vld [vmem:[#allocation10 + $0x38] sm:$0xff]  ;;  %v987_v16 = vld [vmem:[#allocation13 + $0x40] sm:$0xff]  ;;  %s10565_s14 = smov 369   ;;  %s6239_s9 = smov 281  }
  0x9d   : > { %5215 = vmatpush.msra.mxu3 %v790_v2  ;;  %1001 = vmatpush.msra.mxu2 %v992_v6  ;;  %v783_v17 = vld [vmem:[#allocation10 + $0x30] sm:$0xff]  ;;  %v986_v18 = vld [vmem:[#allocation13 + $0x38] sm:$0xff]  ;;  %v782_v19 = vld [vmem:[#allocation10 + $0x28] sm:$0xff]  ;;  %s10572_s6 = smov 265   ;;  %s6242_s18 = smov 313  }
  0x9e   : > { %800 = vmatpush.msra.mxu0 %v789_v5  ;;  %5216 = vmatpush.msra.mxu1 %v789_v5  ;;  %v985_v20 = vld [vmem:[#allocation13 + $0x30] sm:$0xff]  ;;  %v781_v21 = vld [vmem:[#allocation10 + $0x20] sm:$0xff]  ;;  %v984_v22 = vld [vmem:[#allocation13 + $0x28] sm:$0xff]  ;;  %s6246_s1 = smov 305  }
  0x9f   : > { %5217 = vmatpush.msra.mxu3 %v789_v5  ;;  %1002 = vmatpush.msra.mxu2 %v991_v8  ;;  %v780_v23 = vld [vmem:[#allocation10 + $0x18] sm:$0xff]  ;;  %v983_v24 = vld [vmem:[#allocation13 + $0x20] sm:$0xff]  ;;  %v779_v25 = vld [vmem:[#allocation10 + $0x10] sm:$0xff] }
  0xa0   : > { %801 = vmatpush.msra.mxu0 %v788_v7  ;;  %5218 = vmatpush.msra.mxu1 %v788_v7  ;;  %v982_v26 = vld [vmem:[#allocation13 + $0x18] sm:$0xff]  ;;  %v778_v27 = vld [vmem:[#allocation10 + $0x8] sm:$0xff]  ;;  %v981_v28 = vld [vmem:[#allocation13 + $0x10] sm:$0xff] }
  0xa1   : > { %5219 = vmatpush.msra.mxu3 %v788_v7  ;;  %1003 = vmatpush.msra.mxu2 %v990_v10  ;;  %v777_v29 = vld [vmem:[#allocation10] sm:$0xff]  ;;  %v893_v33 = vld [vmem:[#allocation11 + $0x78] sm:$0xff]  ;;  %v980_v35 = vld [vmem:[#allocation13 + $0x8] sm:$0xff] }
  0xa2   : > { %802 = vmatpush.msra.mxu0 %v787_v9  ;;  %5220 = vmatpush.msra.mxu1 %v787_v9  ;;  %v761_v30 = vld [vmem:[%s6560_s13] sm:$0xff]  ;;  %v1095_v34 = vld [vmem:[#allocation14 + $0x78] sm:$0xff]  ;;  %v892_v36 = vld [vmem:[#allocation11 + $0x70] sm:$0xff] }
  0xa3   : > { %5221 = vmatpush.msra.mxu3 %v787_v9  ;;  %1004 = vmatpush.msra.mxu2 %v989_v12  ;;  %v769_v31 = vld [vmem:[%s6560_s13 + $0x40] sm:$0xff]  ;;  %v1094_v37 = vld [vmem:[#allocation14 + $0x70] sm:$0xff]  ;;  %v891_v39 = vld [vmem:[#allocation11 + $0x68] sm:$0xff] }
  0xa4   : > { %803 = vmatpush.msra.mxu0 %v786_v11  ;;  %5222 = vmatpush.msra.mxu1 %v786_v11  ;;  %v773_v32 = vld [vmem:[%s6560_s13 + $0x60] sm:$0xff]  ;;  %v1093_v40 = vld [vmem:[#allocation14 + $0x68] sm:$0xff]  ;;  %v889_v46 = vld [vmem:[#allocation11 + $0x58] sm:$0xff] }
  0xa5   : > { %5223 = vmatpush.msra.mxu3 %v786_v11  ;;  %1005 = vmatpush.msra.mxu2 %v988_v14  ;;  %v979_v38 = vld [vmem:[#allocation13] sm:$0xff]  ;;  %v770_v44 = vld [vmem:[%s6560_s13 + $0x48] sm:$0xff]  ;;  %v1091_v47 = vld [vmem:[#allocation14 + $0x58] sm:$0xff] }
  0xa6   : > { %804 = vmatpush.msra.mxu0 %v785_v13  ;;  %5224 = vmatpush.msra.mxu1 %v785_v13  ;;  %v963_v41 = vld [vmem:[%s6575_s16] sm:$0xff]  ;;  %v774_v45 = vld [vmem:[%s6560_s13 + $0x68] sm:$0xff]  ;;  %v888_v49 = vld [vmem:[#allocation11 + $0x50] sm:$0xff] }
  0xa7   : > { %5225 = vmatpush.msra.mxu3 %v785_v13  ;;  %1006 = vmatpush.msra.mxu2 %v987_v16  ;;  %v890_v42 = vld [vmem:[#allocation11 + $0x60] sm:$0xff]  ;;  %v762_v48 = vld [vmem:[%s6560_s13 + $0x8] sm:$0xff]  ;;  %v1090_v50 = vld [vmem:[#allocation14 + $0x50] sm:$0xff] }
  0xa8   : > { %805 = vmatpush.msra.mxu0 %v784_v15  ;;  %5226 = vmatpush.msra.mxu1 %v784_v15  ;;  %v1092_v43 = vld [vmem:[#allocation14 + $0x60] sm:$0xff]  ;;  %v887_v51 = vld [vmem:[#allocation11 + $0x48] sm:$0xff]  ;;  %v771_v56 = vld [vmem:[%s6560_s13 + $0x50] sm:$0xff] }
  0xa9   : > { %5227 = vmatpush.msra.mxu3 %v784_v15  ;;  %1007 = vmatpush.msra.mxu2 %v986_v18  ;;  %v1089_v52 = vld [vmem:[#allocation14 + $0x48] sm:$0xff]  ;;  %v886_v54 = vld [vmem:[#allocation11 + $0x40] sm:$0xff]  ;;  %v775_v57 = vld [vmem:[%s6560_s13 + $0x70] sm:$0xff] }
  0xaa   : > { %806 = vmatpush.msra.mxu0 %v783_v17  ;;  %5228 = vmatpush.msra.mxu1 %v783_v17  ;;  %v964_v53 = vld [vmem:[%s6575_s16 + $0x8] sm:$0xff]  ;;  %v1088_v55 = vld [vmem:[#allocation14 + $0x40] sm:$0xff]  ;;  %v885_v58 = vld [vmem:[#allocation11 + $0x38] sm:$0xff] }
  0xab   : > { %5229 = vmatpush.msra.mxu3 %v783_v17  ;;  %1008 = vmatpush.msra.mxu2 %v985_v20  ;;  %v1087_v59 = vld [vmem:[#allocation14 + $0x38] sm:$0xff]  ;;  %v763_v60 = vld [vmem:[%s6560_s13 + $0x10] sm:$0xff]  ;;  %v883_v63 = vld [vmem:[#allocation11 + $0x28] sm:$0xff] }
  0xac   : > { %807 = vmatpush.msra.mxu0 %v782_v19  ;;  %5230 = vmatpush.msra.mxu1 %v782_v19  ;;  %v884_v61 = vld [vmem:[#allocation11 + $0x30] sm:$0xff]  ;;  %v1085_v0 = vld [vmem:[#allocation14 + $0x28] sm:$0xff]  ;;  %v882_v1 = vld [vmem:[#allocation11 + $0x20] sm:$0xff] }
  0xad   : > { %5231 = vmatpush.msra.mxu3 %v782_v19  ;;  %1009 = vmatpush.msra.mxu2 %v984_v22  ;;  %v1086_v62 = vld [vmem:[#allocation14 + $0x30] sm:$0xff]  ;;  %v1084_v2 = vld [vmem:[#allocation14 + $0x20] sm:$0xff]  ;;  %v772_v3 = vld [vmem:[%s6560_s13 + $0x58] sm:$0xff] }
  0xae   : > { %808 = vmatpush.msra.mxu0 %v781_v21  ;;  %5232 = vmatpush.msra.mxu1 %v781_v21  ;;  %v776_v4 = vld [vmem:[%s6560_s13 + $0x78] sm:$0xff]  ;;  %v880_v7 = vld [vmem:[#allocation11 + $0x10] sm:$0xff]  ;;  %v879_v9 = vld [vmem:[#allocation11 + $0x8] sm:$0xff] }
  0xaf   : > { %5233 = vmatpush.msra.mxu3 %v781_v21  ;;  %1010 = vmatpush.msra.mxu2 %v983_v24  ;;  %v881_v5 = vld [vmem:[#allocation11 + $0x18] sm:$0xff]  ;;  %v1082_v8 = vld [vmem:[#allocation14 + $0x10] sm:$0xff]  ;;  %v1081_v10 = vld [vmem:[#allocation14 + $0x8] sm:$0xff] }
  0xb0   : > { %809 = vmatpush.msra.mxu0 %v780_v23  ;;  %5234 = vmatpush.msra.mxu1 %v780_v23  ;;  %v1083_v6 = vld [vmem:[#allocation14 + $0x18] sm:$0xff]  ;;  %v878_v11 = vld [vmem:[#allocation11] sm:$0xff]  ;;  %v863_v16 = vld [vmem:[%s6568_s19 + $0x8] sm:$0xff] }
  0xb1   : > { %5235 = vmatpush.msra.mxu3 %v780_v23  ;;  %1011 = vmatpush.msra.mxu2 %v982_v26  ;;  %v1080_v12 = vld [vmem:[#allocation14] sm:$0xff]  ;;  %v764_v15 = vld [vmem:[%s6560_s13 + $0x18] sm:$0xff]  ;;  %v1065_v17 = vld [vmem:[%s6578_s28 + $0x8] sm:$0xff] }
  0xb2   : > { %810 = vmatpush.msra.mxu0 %v779_v25  ;;  %5236 = vmatpush.msra.mxu1 %v779_v25  ;;  %v862_v13 = vld [vmem:[%s6568_s19] sm:$0xff]  ;;  %v864_v18 = vld [vmem:[%s6568_s19 + $0x10] sm:$0xff]  ;;  %v865_v22 = vld [vmem:[%s6568_s19 + $0x18] sm:$0xff] }
  0xb3   : > { %5237 = vmatpush.msra.mxu3 %v779_v25  ;;  %1012 = vmatpush.msra.mxu2 %v981_v28  ;;  %v1064_v14 = vld [vmem:[%s6578_s28] sm:$0xff]  ;;  %v1066_v19 = vld [vmem:[%s6578_s28 + $0x10] sm:$0xff]  ;;  %v1067_v23 = vld [vmem:[%s6578_s28 + $0x18] sm:$0xff] }
  0xb4   : > { %811 = vmatpush.msra.mxu0 %v778_v27  ;;  %5238 = vmatpush.msra.mxu1 %v778_v27  ;;  %v965_v20 = vld [vmem:[%s6575_s16 + $0x10] sm:$0xff]  ;;  %v765_v21 = vld [vmem:[%s6560_s13 + $0x20] sm:$0xff]  ;;  %v966_v24 = vld [vmem:[%s6575_s16 + $0x18] sm:$0xff] }
  0xb5   : > { %5239 = vmatpush.msra.mxu3 %v778_v27  ;;  %1013 = vmatpush.msra.mxu2 %v980_v35  ;;  %v866_v25 = vld [vmem:[%s6568_s19 + $0x20] sm:$0xff]  ;;  %v766_v28 = vld [vmem:[%s6560_s13 + $0x28] sm:$0xff]  ;;  %v1071_v35 = vld [vmem:[%s6578_s28 + $0x38] sm:$0xff] }
  0xb6   : > { %812 = vmatpush.msra.mxu0 %v777_v29  ;;  %5240 = vmatpush.msra.mxu1 %v777_v29  ;;  %v1068_v26 = vld [vmem:[%s6578_s28 + $0x20] sm:$0xff] }
  0xb7   : > { %5241 = vmatpush.msra.mxu3 %v777_v29  ;;  %813 = vmatmul.f32.vlgmr.msra.gmra.mxu0 %v761_v30  ;;  %v967_v27 = vld [vmem:[%s6575_s16 + $0x20] sm:$0xff]  ;;  %v867_v29 = vld [vmem:[%s6568_s19 + $0x28] sm:$0xff] }
  0xb8   : > { %837 = vmatmul.f32.vlgmr.msra.gmra.mxu1 %v769_v31  ;;  %849 = vmatmul.f32.vlgmr.msra.gmra.mxu3 %v773_v32  ;;  %v1069_v30 = vld [vmem:[%s6578_s28 + $0x28] sm:$0xff]  ;;  %v868_v32 = vld [vmem:[%s6568_s19 + $0x30] sm:$0xff] }
  0xb9   : > { %898 = vmatpush.msrb.mxu1 %v893_v33  ;;  %1096 = vmatpush.msrb.mxu3 %v1095_v34  ;;  %v968_v31 = vld [vmem:[%s6575_s16 + $0x28] sm:$0xff]  ;;  %v1070_v33 = vld [vmem:[%s6578_s28 + $0x30] sm:$0xff]  ;;  %v869_v34 = vld [vmem:[%s6568_s19 + $0x38] sm:$0xff] }
  0xba   : > { %1014 = vmatpush.msra.mxu2 %v979_v38  ;;  %v871_v38 = vld [vmem:[%s6568_s19 + $0x48] sm:$0xff] }
  0xbb   : > { %899 = vmatpush.msrb.mxu1 %v892_v36  ;;  %1097 = vmatpush.msrb.mxu3 %v1094_v37  ;;  %v870_v36 = vld [vmem:[%s6568_s19 + $0x40] sm:$0xff] }
  0xbc   : > { %1015 = vmatmul.f32.vlgmr.msra.gmra.mxu2 %v963_v41  ;;  %v1072_v37 = vld [vmem:[%s6578_s28 + $0x40] sm:$0xff]  ;;  %v969_v41 = vld [vmem:[%s6575_s16 + $0x30] sm:$0xff] }
  0xbd   : > { %900 = vmatpush.msrb.mxu1 %v891_v39  ;;  %1098 = vmatpush.msrb.mxu3 %v1093_v40  ;;  %v1073_v39 = vld [vmem:[%s6578_s28 + $0x48] sm:$0xff]  ;;  %v767_v40 = vld [vmem:[%s6560_s13 + $0x30] sm:$0xff] }
  0xbf   : > { %901 = vmatpush.msrb.mxu1 %v890_v42  ;;  %1099 = vmatpush.msrb.mxu3 %v1092_v43  ;;  %v872_v42 = vld [vmem:[%s6568_s19 + $0x50] sm:$0xff] }
  0xc0   : > { %840 = vmatmul.f32.gmra.mxu1 %v770_v44  ;;  %852 = vmatmul.f32.gmra.mxu3 %v774_v45  ;;  %v1074_v43 = vld [vmem:[%s6578_s28 + $0x50] sm:$0xff]  ;;  %v768_v44 = vld [vmem:[%s6560_s13 + $0x38] sm:$0xff]  ;;  %s6243_s13 = smov 377  }
  0xc1   : > { %902 = vmatpush.msrb.mxu1 %v889_v46  ;;  %1100 = vmatpush.msrb.mxu3 %v1091_v47  ;;  %v970_v45 = vld [vmem:[%s6575_s16 + $0x38] sm:$0xff] }
  0xc2   : > { %816 = vmatmul.f32.gmra.mxu0 %v762_v48  ;;  %v873_v46 = vld [vmem:[%s6568_s19 + $0x58] sm:$0xff]  ;;  %v6647_v48 = vld [vmem:[%s10467_s5] ss:$0 sm:$0xff] }
  0xc3   : > { %903 = vmatpush.msrb.mxu1 %v888_v49  ;;  %1101 = vmatpush.msrb.mxu3 %v1090_v50  ;;  %v1075_v47 = vld [vmem:[%s6578_s28 + $0x58] sm:$0xff]  ;;  %v971_v49 = vld [vmem:[%s6575_s16 + $0x40] sm:$0xff] }
  0xc4   : > { %1018 = vmatmul.f32.gmra.mxu2 %v964_v53  ;;  %v6653_v50 = vld [vmem:[%s10473_s11] ss:$0 sm:$0xff] }
  0xc5   : > { %904 = vmatpush.msrb.mxu1 %v887_v51  ;;  %1102 = vmatpush.msrb.mxu3 %v1089_v52  ;;  %v6658_v51 = vld [vmem:[%s10474_s12] ss:$0 sm:$0xff] }
  0xc7   : > { %905 = vmatpush.msrb.mxu1 %v886_v54  ;;  %1103 = vmatpush.msrb.mxu3 %v1088_v55  ;;  %v874_v55 = vld [vmem:[%s6568_s19 + $0x60] sm:$0xff] }
  0xc8   : > { %843 = vmatmul.f32.gmra.mxu1 %v771_v56  ;;  %855 = vmatmul.f32.gmra.mxu3 %v775_v57  ;;  %v1076_v56 = vld [vmem:[%s6578_s28 + $0x60] sm:$0xff] }
  0xc9   : > { %906 = vmatpush.msrb.mxu1 %v885_v58  ;;  %1104 = vmatpush.msrb.mxu3 %v1087_v59 }
  0xca   : > { %819 = vmatmul.f32.gmra.mxu0 %v763_v60 }
  0xcb   : > { %907 = vmatpush.msrb.mxu1 %v884_v61  ;;  %1105 = vmatpush.msrb.mxu3 %v1086_v62 }
  0xcc   : > { %1021 = vmatmul.f32.gmra.mxu2 %v965_v20 }
  0xcd   : > { %908 = vmatpush.msrb.mxu1 %v883_v63  ;;  %1106 = vmatpush.msrb.mxu3 %v1085_v0  ;;  %v972_v63 = vld [vmem:[%s6575_s16 + $0x48] sm:$0xff] }
  0xcf   : > { %909 = vmatpush.msrb.mxu1 %v882_v1  ;;  %1107 = vmatpush.msrb.mxu3 %v1084_v2 }
  0xd0   : > { %846 = vmatmul.f32.gmra.mxu1 %v772_v3  ;;  %858 = vmatmul.f32.gmra.mxu3 %v776_v4 }
  0xd1   : > { %910 = vmatpush.msrb.mxu1 %v881_v5  ;;  %1108 = vmatpush.msrb.mxu3 %v1083_v6  ;;  %v875_v5 = vld [vmem:[%s6568_s19 + $0x68] sm:$0xff] }
  0xd2   : > { %822 = vmatmul.f32.gmra.mxu0 %v764_v15  ;;  %v1077_v6 = vld [vmem:[%s6578_s28 + $0x68] sm:$0xff] }
  0xd3   : > { %911 = vmatpush.msrb.mxu1 %v880_v7  ;;  %1109 = vmatpush.msrb.mxu3 %v1082_v8 }
  0xd4   : > { %1024 = vmatmul.f32.gmra.mxu2 %v966_v24 }
  0xd5   : > { %912 = vmatpush.msrb.mxu1 %v879_v9  ;;  %1110 = vmatpush.msrb.mxu3 %v1081_v10 }
  0xd7   : > { %913 = vmatpush.msrb.mxu1 %v878_v11  ;;  %1111 = vmatpush.msrb.mxu3 %v1080_v12  ;;  %v973_v12 = vld [vmem:[%s6575_s16 + $0x50] sm:$0xff] }
  0xd8   : > { %914 = vmatmul.f32.vlgmr.msrb.gmra.mxu1 %v862_v13  ;;  %1112 = vmatmul.f32.vlgmr.msrb.gmra.mxu3 %v1064_v14 }
  0xda   : > { %825 = vmatmul.f32.gmra.mxu0 %v765_v21 }
  0xdc   : > { %1027 = vmatmul.f32.gmra.mxu2 %v967_v27  ;;  %v1079_v27 = vld [vmem:[%s6578_s28 + $0x78] sm:$0xff] }
  0xe0   : > { %917 = vmatmul.f32.gmra.mxu1 %v863_v16  ;;  %1115 = vmatmul.f32.gmra.mxu3 %v1065_v17  ;;  %v876_v17 = vld [vmem:[%s6568_s19 + $0x70] sm:$0xff] }
  0xe2   : > { %828 = vmatmul.f32.gmra.mxu0 %v766_v28 }
  0xe4   : > { %1030 = vmatmul.f32.gmra.mxu2 %v968_v31 }
  0xe8   : > { %920 = vmatmul.f32.gmra.mxu1 %v864_v18  ;;  %1118 = vmatmul.f32.gmra.mxu3 %v1066_v19  ;;  %v1078_v18 = vld [vmem:[%s6578_s28 + $0x70] sm:$0xff]  ;;  %s10884_s28 = sld [smem:[#allocation143_spill]] }
  0xea   : > { %831 = vmatmul.f32.gmra.mxu0 %v767_v40 }
  0xec   : > { %1033 = vmatmul.f32.gmra.mxu2 %v969_v41  ;;  %v976_v41 = vld [vmem:[%s6575_s16 + $0x68] sm:$0xff] }
  0xf0   : > { %923 = vmatmul.f32.gmra.mxu1 %v865_v22  ;;  %1121 = vmatmul.f32.gmra.mxu3 %v1067_v23  ;;  %v974_v22 = vld [vmem:[%s6575_s16 + $0x58] sm:$0xff] }
  0xf2   : > { %834 = vmatmul.f32.gmra.mxu0 %v768_v44 }
  0xf4   : > { %1036 = vmatmul.f32.gmra.mxu2 %v970_v45 }
  0xf8   : > { %926 = vmatmul.f32.gmra.mxu1 %v866_v25  ;;  %1124 = vmatmul.f32.gmra.mxu3 %v1068_v26  ;;  %v877_v26 = vld [vmem:[%s6568_s19 + $0x78] sm:$0xff]  ;;  %s7846_s19 = scalar_select %p758_p4, %s6358_s25, 1 }
  0xfa   : > { %s760_s27 = scalar_lea.vmem %s10884_s28, %s7846_s19  ;;  %s10999_s19 = smov 369  }
  0xfc   : > { %1039 = vmatmul.f32.gmra.mxu2 %v971_v49 }
 0x100   : > { %929 = vmatmul.f32.gmra.mxu1 %v867_v29  ;;  %1127 = vmatmul.f32.gmra.mxu3 %v1069_v30  ;;  %v6723_v30 = vld [vmem:[%s10741_s29] ss:$0 sm:$0xff]  ;;  %s6241_s29 = smov 289  }
 0x104   : > { %1042 = vmatmul.f32.gmra.mxu2 %v972_v63 }
 0x108   : > { %932 = vmatmul.f32.gmra.mxu1 %v868_v32  ;;  %1130 = vmatmul.f32.gmra.mxu3 %v1070_v33  ;;  %v975_v32 = vld [vmem:[%s6575_s16 + $0x60] sm:$0xff] }
 0x10c   : > { %1045 = vmatmul.f32.gmra.mxu2 %v973_v12 }
 0x110   : > { %935 = vmatmul.f32.gmra.mxu1 %v869_v34  ;;  %1133 = vmatmul.f32.gmra.mxu3 %v1071_v35 }
 0x114   : > { %1048 = vmatmul.f32.gmra.mxu2 %v974_v22 }
 0x118   : > { %938 = vmatmul.f32.gmra.mxu1 %v870_v36  ;;  %1136 = vmatmul.f32.gmra.mxu3 %v1072_v37 }
 0x11c   : > { %1051 = vmatmul.f32.gmra.mxu2 %v975_v32 }
 0x120   : > { %941 = vmatmul.f32.gmra.mxu1 %v871_v38  ;;  %1139 = vmatmul.f32.gmra.mxu3 %v1073_v39 }
 0x124   : > { %1054 = vmatmul.f32.gmra.mxu2 %v976_v41 }
 0x128   : > { %944 = vmatmul.f32.gmra.mxu1 %v872_v42  ;;  %1142 = vmatmul.f32.gmra.mxu3 %v1074_v43 }
 0x130   : > { %947 = vmatmul.f32.gmra.mxu1 %v873_v46  ;;  %1145 = vmatmul.f32.gmra.mxu3 %v1075_v47 }
 0x134   : > { %v814_v52 = vpop.f32.mrf.mxu0 }
 0x135   : > { %v815_v53 = vadd.f32 %v6647_v48, %v814_v52  ;;  %v838_v54 = vpop.f32.mrf.mxu1 }
 0x136   : > { %v839_v57 = vadd.f32 %v6647_v48, %v838_v54 }
 0x137   : > { %v1165_v58 = vadd.f32 %v6653_v50, %v815_v53  ;;  %v1201_v59 = vadd.f32 %v6658_v51, %v815_v53 }
 0x138   : > { %v1209_v60 = vadd.f32 %v6658_v51, %v839_v57  ;;  %950 = vmatmul.f32.gmra.mxu1 %v874_v55  ;;  %1148 = vmatmul.f32.gmra.mxu3 %v1076_v56  ;;  %v1173_v2 = vadd.f32 %v6653_v50, %v839_v57  ;;  %v977_v55 = vld [vmem:[%s6575_s16 + $0x70] sm:$0xff] }
 0x139   : > { %v6667_v61 = vmul.f32 0.088388346, %v1165_v58  ;;  %v6669_v62 = vmul.f32 0.088388346, %v1201_v59  ;;  %1057 = vmatmul.f32.gmra.mxu2 %v977_v55 }
 0x13a   : > { %v6672_v0 = vmul.f32 0.088388346, %v1209_v60  ;;  %v6685_v9 = vmul.f32 0.088388346, %v1173_v2 }
 0x13b   : > { %10735 = vst [vmem:[#allocation30_spill] sm:$0xff] %v6667_v61  ;;  %v850_v1 = vpop.f32.mrf.mxu3  ;;  %1982 = vrot.lane.b32.xlu2 %v6669_v62, %s10563_s0  ;;  %2303 = vrot.lane.b32.xlu0 %v6667_v61, %s10563_s0 }
 0x13c   : > { %10736 = vst [vmem:[#allocation31_spill] sm:$0xff] %v6672_v0  ;;  %v851_v3 = vadd.f32 %v6647_v48, %v850_v1  ;;  %1998 = vrot.lane.b32.xlu1 %v6672_v0, %s10563_s0  ;;  %v978_v1 = vld [vmem:[%s6575_s16 + $0x78] sm:$0xff]  ;;  %s6245_s16 = smov 337  }
 0x13d   : > { %v841_v4 = vpop.f32.mrf.mxu1  ;;  %10737 = vst [vmem:[#allocation32_spill] sm:$0xff] %v6685_v9 }
 0x13e   : > { %v1177_v7 = vadd.f32 %v6653_v50, %v851_v3  ;;  %v1213_v13 = vadd.f32 %v6658_v51, %v851_v3  ;;  %v842_v28 = vadd.f32 %v6647_v48, %v841_v4 }
 0x13f   : > { %v817_v8 = vpop.f32.mrf.mxu0  ;;  %v1016_v19 = vpop.f32.mrf.mxu2 }
 0x140   : > { %v6687_v10 = vmul.f32 0.088388346, %v1177_v7  ;;  %953 = vmatmul.f32.gmra.mxu1 %v875_v5  ;;  %1151 = vmatmul.f32.gmra.mxu3 %v1077_v6  ;;  %v818_v11 = vadd.f32 %v6647_v48, %v817_v8  ;;  %v6701_v20 = vmul.f32 0.088388346, %v1213_v13  ;;  %v1210_v33 = vadd.f32 %v6658_v51, %v842_v28 }
 0x141   : > { %v6728_v34 = vadd.f32 %v6723_v30, %v1016_v19  ;;  %v1174_v46 = vadd.f32 %v6653_v50, %v842_v28  ;;  %1060 = vmatmul.f32.gmra.mxu2 %v978_v1 }
 0x142   : > { %10738 = vst [vmem:[#allocation33_spill] sm:$0xff] %v6687_v10  ;;  %v1166_v15 = vadd.f32 %v6653_v50, %v818_v11  ;;  %v1202_v23 = vadd.f32 %v6658_v51, %v818_v11  ;;  %v6743_v38 = vmul.f32 0.088388346, %v1210_v33 }
 0x143   : > { %v853_v14 = vpop.f32.mrf.mxu3  ;;  %2327 = vrot.lane.b32.xlu2 %v6687_v10, %s10563_s0  ;;  %2801 = vrot.lane.b32.xlu0 %v6672_v0, %s10567_s20  ;;  %10739 = vst [vmem:[#allocation34_spill] sm:$0xff] %v6701_v20  ;;  %v6766_v54 = vmul.f32 0.088388346, %v1174_v46 }
 0x144   : > { %2319 = vrot.lane.b32.xlu1 %v6685_v9, %s10563_s0  ;;  %v6703_v21 = vmul.f32 0.088388346, %v1166_v15  ;;  %v6718_v29 = vmul.f32 0.088388346, %v1202_v23  ;;  %10742 = vst [vmem:[#allocation36_spill] sm:$0xff] %v6728_v34  ;;  %v854_v39 = vadd.f32 %v6647_v48, %v853_v14 }
 0x145   : > { %v844_v16 = vpop.f32.mrf.mxu1  ;;  %10744 = vst [vmem:[#allocation38_spill] sm:$0xff] %v6743_v38 }
 0x146   : > { %10740 = vst [vmem:[#allocation35_spill] sm:$0xff] %v6703_v21  ;;  %v1214_v42 = vadd.f32 %v6658_v51, %v854_v39  ;;  %v1178_v44 = vadd.f32 %v6653_v50, %v854_v39  ;;  %v845_v59 = vadd.f32 %v6647_v48, %v844_v16 }
 0x147   : > { %v1019_v31 = vpop.f32.mrf.mxu2  ;;  %v820_v45 = vpop.f32.mrf.mxu0  ;;  %10747 = vst [vmem:[#allocation41_spill] sm:$0xff] %v6766_v54 }
 0x148   : > { %956 = vmatmul.f32.gmra.mxu1 %v876_v17  ;;  %1154 = vmatmul.f32.gmra.mxu3 %v1078_v18  ;;  %v6731_v35 = vadd.f32 %v6723_v30, %v1019_v31  ;;  %v6761_v49 = vmul.f32 0.088388346, %v1214_v42  ;;  %v821_v52 = vadd.f32 %v6647_v48, %v820_v45  ;;  %v6764_v53 = vmul.f32 0.088388346, %v1178_v44 }
 0x149   : > { %v1211_v2 = vadd.f32 %v6658_v51, %v845_v59  ;;  %v1175_v12 = vadd.f32 %v6653_v50, %v845_v59 }
 0x14a   : > { %10743 = vst [vmem:[#allocation37_spill] sm:$0xff] %v6731_v35  ;;  %v5393_v40 = vpack.i.bf16 %v6731_v35, %v6728_v34  ;;  %v1203_v57 = vadd.f32 %v6658_v51, %v821_v52  ;;  %v1167_v6 = vadd.f32 %v6653_v50, %v821_v52 }
 0x14b   : > { %v856_v24 = vpop.f32.mrf.mxu3  ;;  %2305 = vrot.lane.b32.xlu2 %v6703_v21, %s10563_s0  ;;  %2006 = vrot.lane.b32.xlu0 %v6701_v20, %s10563_s0  ;;  %10745 = vst [vmem:[#allocation39_spill] sm:$0xff] %v6761_v49  ;;  %v6798_v7 = vmul.f32 0.088388346, %v1211_v2  ;;  %v6816_v17 = vmul.f32 0.088388346, %v1175_v12 }
 0x14c   : > { %2785 = vrot.lane.b32.xlu1 %v6669_v62, %s10567_s20  ;;  %10746 = vst [vmem:[#allocation40_spill] sm:$0xff] %v6764_v53  ;;  %v857_v60 = vadd.f32 %v6647_v48, %v856_v24  ;;  %v6782_v63 = vmul.f32 0.088388346, %v1203_v57  ;;  %v6802_v11 = vmul.f32 0.088388346, %v1167_v6 }
 0x14d   : > { %v6713_v25 = vpop.f32.mrf.mxu1  ;;  %10748 = vst [vmem:[#allocation42_spill] sm:$0xff] %v6798_v7 }
 0x14e   : > { %v1179_v3 = vadd.f32 %v6653_v50, %v857_v60  ;;  %v1215_v15 = vadd.f32 %v6658_v51, %v857_v60  ;;  %10750 = vst [vmem:[#allocation44_spill] sm:$0xff] %v6816_v17  ;;  %v848_v19 = vadd.f32 %v6647_v48, %v6713_v25 }
 0x14f   : > { %v823_v14 = vpop.f32.mrf.mxu0  ;;  %v1022_v32 = vpop.f32.mrf.mxu2 }
 0x150   : > { %959 = vmatmul.f32.gmra.mxu1 %v877_v26  ;;  %1157 = vmatmul.f32.gmra.mxu3 %v1079_v27  ;;  %v6800_v8 = vmul.f32 0.088388346, %v1179_v3  ;;  %v824_v18 = vadd.f32 %v6647_v48, %v823_v14  ;;  %v6821_v22 = vmul.f32 0.088388346, %v1215_v15  ;;  %v1212_v26 = vadd.f32 %v6658_v51, %v848_v19 }
 0x151   : > { %v6881_v3 = vadd.f32 %v6723_v30, %v1022_v32 }
 0x152   : > { %10749 = vst [vmem:[#allocation43_spill] sm:$0xff] %v6800_v8  ;;  %v1204_v24 = vadd.f32 %v6658_v51, %v824_v18  ;;  %v6839_v31 = vmul.f32 0.088388346, %v1212_v26  ;;  %v1168_v41 = vadd.f32 %v6653_v50, %v824_v18 }
 0x153   : > { %v6733_v36 = vpop.f32.mrf.mxu3  ;;  %2787 = vrot.lane.b32.xlu2 %v6718_v29, %s10567_s20  ;;  %1984 = vrot.lane.b32.xlu0 %v6718_v29, %s10563_s0  ;;  %10751 = vst [vmem:[#allocation45_spill] sm:$0xff] %v6821_v22 }
 0x154   : > { %2809 = vrot.lane.b32.xlu1 %v6701_v20, %s10567_s20  ;;  %v860_v25 = vadd.f32 %v6647_v48, %v6733_v36  ;;  %v6837_v28 = vmul.f32 0.088388346, %v1204_v24  ;;  %10752 = vst [vmem:[#allocation46_spill] sm:$0xff] %v6839_v31  ;;  %v6859_v52 = vmul.f32 0.088388346, %v1168_v41 }
 0x155   : > { %v6741_v37 = vpop.f32.mrf.mxu1  ;;  %10756 = vst [vmem:[#allocation50_spill] sm:$0xff] %v6881_v3 }
 0x156   : > { %v1180_v33 = vadd.f32 %v6653_v50, %v860_v25  ;;  %v1216_v15 = vadd.f32 %v6658_v51, %v860_v25 }
 0x157   : > { %v826_v36 = vpop.f32.mrf.mxu0  ;;  %v1025_v55 = vpop.f32.mrf.mxu2 }
 0x158   : > { %v6854_v44 = vmul.f32 0.088388346, %v1180_v33  ;;  %v827_v45 = vadd.f32 %v6647_v48, %v826_v36  ;;  %v6886_v6 = vadd.f32 %v6723_v30, %v1025_v55  ;;  %v6896_v32 = vmul.f32 0.088388346, %v1216_v15 }
 0x15a   : > { %10753 = vst [vmem:[#allocation47_spill] sm:$0xff] %v6854_v44  ;;  %v1205_v59 = vadd.f32 %v6658_v51, %v827_v45  ;;  %v5398_v26 = vpack.i.bf16 %v6886_v6, %v6881_v3  ;;  %v1169_v36 = vadd.f32 %v6653_v50, %v827_v45 }
 0x15b   : > { %v6750_v43 = vpop.f32.mrf.mxu3  ;;  %5394 = vrot.lane.b32.xlu2 %v5393_v40, %s10563_s0  ;;  %2000 = vrot.lane.b32.xlu0 %v6743_v38, %s10563_s0  ;;  %v1176_v40 = vadd.f32 %v6653_v50, %v848_v19  ;;  %10757 = vst [vmem:[#allocation51_spill] sm:$0xff] %v6886_v6 }
 0x15c   : > { %2803 = vrot.lane.b32.xlu1 %v6743_v38, %s10567_s20  ;;  %v6872_v1 = vmul.f32 0.088388346, %v1205_v59  ;;  %10759 = vst [vmem:[#allocation53_spill] sm:$0xff] %v6896_v32 }
 0x15d   : > { %v6759_v47 = vpop.f32.mrf.mxu1  ;;  %v6857_v46 = vmul.f32 0.088388346, %v1176_v40  ;;  %v6908_v40 = vld [vmem:[%s10760_s7] ss:$0 sm:$0xff]  ;;  %s6244_s7 = smov 297  }
 0x15e   : > { %10755 = vst [vmem:[#allocation49_spill] sm:$0xff] %v6872_v1  ;;  %v6920_v15 = vadd.f32 %v6908_v40, %v6741_v37 }
 0x15f   : > { %10754 = vst [vmem:[#allocation48_spill] sm:$0xff] %v6857_v46  ;;  %v829_v12 = vpop.f32.mrf.mxu0  ;;  %v1028_v14 = vpop.f32.mrf.mxu2 }
 0x160   : > { %v830_v24 = vadd.f32 %v6647_v48, %v829_v12 }
 0x162   : > { %v1206_v25 = vadd.f32 %v6658_v51, %v830_v24 }
 0x163   : > { %v6769_v56 = vpop.f32.mrf.mxu3  ;;  %2008 = vrot.lane.b32.xlu2 %v6761_v49, %s10563_s0  ;;  %2321 = vrot.lane.b32.xlu0 %v6766_v54, %s10563_s0 }
 0x164   : > { %2329 = vrot.lane.b32.xlu1 %v6764_v53, %s10563_s0  ;;  %v6916_v12 = vmul.f32 0.088388346, %v1206_v25 }
 0x165   : > { %v6778_v58 = vpop.f32.mrf.mxu1 }
 0x166   : > { %10762 = vst [vmem:[#allocation55_spill] sm:$0xff] %v6916_v12 }
 0x167   : > { %v1031_v59 = vpop.f32.mrf.mxu2 }
 0x16b   : > { %v6787_v4 = vpop.f32.mrf.mxu3  ;;  %2811 = vrot.lane.b32.xlu2 %v6761_v49, %s10567_s20  ;;  %2789 = vrot.lane.b32.xlu0 %v6782_v63, %s10567_s20 }
 0x16c   : > { %1986 = vrot.lane.b32.xlu1 %v6782_v63, %s10563_s0 }
 0x16d   : > { %v6795_v5 = vpop.f32.mrf.mxu1 }
 0x16f   : > { %v6936_v25 = vpop.f32.mrf.mxu2 }
 0x173   : > { %v6805_v13 = vpop.f32.mrf.mxu3  ;;  %2002 = vrot.lane.b32.xlu2 %v6798_v7, %s10563_s0  ;;  %2331 = vrot.lane.b32.xlu0 %v6800_v8, %s10563_s0 }
 0x174   : > { %2307 = vrot.lane.b32.xlu1 %v6802_v11, %s10563_s0 }
 0x175   : > { %v6814_v16 = vpop.f32.mrf.mxu1 }
 0x17b   : > { %v6823_v23 = vpop.f32.mrf.mxu3  ;;  %2323 = vrot.lane.b32.xlu2 %v6816_v17, %s10563_s0  ;;  %2813 = vrot.lane.b32.xlu0 %v6821_v22, %s10567_s20 }
 0x17c   : > { %2010 = vrot.lane.b32.xlu1 %v6821_v22, %s10563_s0 }
 0x17d   : > { %v6833_v27 = vpop.f32.mrf.mxu1 }
 0x183   : > { %v6842_v39 = vpop.f32.mrf.mxu3  ;;  %2805 = vrot.lane.b32.xlu2 %v6798_v7, %s10567_s20  ;;  %1988 = vrot.lane.b32.xlu0 %v6837_v28, %s10563_s0  ;;  %v832_v7 = vpop.f32.mrf.mxu0 }
 0x184   : > { %2004 = vrot.lane.b32.xlu1 %v6839_v31, %s10563_s0  ;;  %v833_v38 = vadd.f32 %v6647_v48, %v832_v7 }
 0x185   : > { %v6852_v42 = vpop.f32.mrf.mxu1 }
 0x18b   : > { %v6861_v57 = vpop.f32.mrf.mxu3  ;;  %2333 = vrot.lane.b32.xlu2 %v6854_v44, %s10563_s0  ;;  %2309 = vrot.lane.b32.xlu0 %v6859_v52, %s10563_s0 }
 0x18c   : > { %2325 = vrot.lane.b32.xlu1 %v6857_v46, %s10563_s0 }
 0x18d   : > { %v6870_v60 = vpop.f32.mrf.mxu1 }
 0x193   : > { %v6874_v2 = vpop.f32.mrf.mxu3  ;;  %1990 = vrot.lane.b32.xlu2 %v6872_v1, %s10563_s0  ;;  %2807 = vrot.lane.b32.xlu0 %v6839_v31, %s10567_s20  ;;  %v6960_v31 = vpop.f32.mrf.mxu2 }
 0x194   : > { %2791 = vrot.lane.b32.xlu1 %v6837_v28, %s10567_s20 }
 0x195   : > { %v6889_v18 = vpop.f32.mrf.mxu1  ;;  %v6891_v19 = vpop.permute.xlu2 %1982 }
 0x196   : > { %10758 = vst [vmem:[#allocation52_spill] sm:$0xff] %v6891_v19  ;;  %v6922_v19 = vmul.f32 0.088388346, %v1169_v36  ;;  %v6947_v36 = vadd.f32 %v6723_v30, %v1028_v14 }
 0x198   : > { %10763 = vst [vmem:[#allocation56_spill] sm:$0xff] %v6922_v19 }
 0x199   : > { %10765 = vst [vmem:[#allocation58_spill] sm:$0xff] %v6947_v36 }
 0x19b   : > { %v6898_v33 = vpop.f32.mrf.mxu3  ;;  %2014 = vrot.lane.b32.xlu2 %v6750_v43, %s10563_s0  ;;  %2012 = vrot.lane.b32.xlu0 %v6896_v32, %s10563_s0  ;;  %v6984_v54 = vpop.f32.mrf.mxu2 }
 0x19c   : > { %5399 = vrot.lane.b32.xlu1 %v5398_v26, %s10563_s0 }
 0x19d   : > { %v6912_v41 = vpop.f32.mrf.mxu1  ;;  %v6914_v55 = vpop.permute.xlu2 %2327 }
 0x19e   : > { %10761 = vst [vmem:[#allocation54_spill] sm:$0xff] %v6914_v55  ;;  %v6950_v55 = vadd.f32 %v6723_v30, %v1031_v59 }
 0x1a0   : > { %10766 = vst [vmem:[#allocation59_spill] sm:$0xff] %v6950_v55  ;;  %v5403_v46 = vpack.i.bf16 %v6950_v55, %v6947_v36 }
 0x1a3   : > { %v6924_v44 = vpop.f32.mrf.mxu3  ;;  %2311 = vrot.lane.b32.xlu2 %v6922_v19, %s10563_s0  ;;  %2795 = vrot.lane.b32.xlu0 %v6916_v12, %s10567_s20  ;;  %v7013_v19 = vpop.f32.mrf.mxu2 }
 0x1a4   : > { %2335 = vrot.lane.b32.xlu1 %v6920_v15, %s10563_s0 }
 0x1a5   : > { %v6932_v45 = vpop.f32.mrf.mxu1  ;;  %v6934_v26 = vpop.permute.xlu2 %2305 }
 0x1a6   : > { %10764 = vst [vmem:[#allocation57_spill] sm:$0xff] %v6934_v26 }
 0x1ab   : > { %v6938_v37 = vpop.f32.mrf.mxu3  ;;  %2793 = vrot.lane.b32.xlu2 %v6872_v1, %s10567_s20  ;;  %2819 = vrot.lane.b32.xlu0 %v6769_v56, %s10567_s20 }
 0x1ac   : > { %2815 = vrot.lane.b32.xlu1 %v6896_v32, %s10567_s20 }
 0x1ad   : > { %v6952_v26 = vpop.f32.mrf.mxu1  ;;  %v6954_v8 = vpop.permute.xlu2 %2787 }
 0x1ae   : > { %10767 = vst [vmem:[#allocation60_spill] sm:$0xff] %v6954_v8  ;;  %v6956_v53 = vpop.permute.xlu1 %1998  ;;  %v6958_v10 = vpop.permute.xlu0 %2303 }
 0x1af   : > { %10768 = vst [vmem:[#allocation61_spill] sm:$0xff] %v6956_v53 }
 0x1b0   : > { %10769 = vst [vmem:[#allocation62_spill] sm:$0xff] %v6958_v10  ;;  %v6981_v10 = vadd.f32 %v6908_v40, %v6778_v58  ;;  %v835_v58 = vpop.f32.mrf.mxu0 }
 0x1b1   : > { %v836_v34 = vadd.f32 %v6647_v48, %v835_v58 }
 0x1b3   : > { %v6964_v17 = vpop.f32.mrf.mxu3  ;;  %2817 = vrot.lane.b32.xlu2 %v6750_v43, %s10567_s20  ;;  %5404 = vrot.lane.b32.xlu0 %v5403_v46, %s10563_s0  ;;  %v6988_v46 = vadd.f32 %v6908_v40, %v6759_v47  ;;  %v1170_v47 = vadd.f32 %v6653_v50, %v830_v24  ;;  %v1208_v24 = vadd.f32 %v6658_v51, %v836_v34 }
 0x1b4   : > { %1992 = vrot.lane.b32.xlu1 %v6916_v12, %s10563_s0  ;;  %v7008_v12 = vadd.f32 %v6908_v40, %v6795_v5 }
 0x1b5   : > { %v6971_v14 = vpop.f32.mrf.mxu1  ;;  %v6973_v59 = vpop.permute.xlu2 %5394  ;;  %v7015_v35 = vmul.f32 0.088388346, %v1170_v47  ;;  %v7032_v47 = vmul.f32 0.088388346, %v1208_v24 }
 0x1b6   : > { %10770 = vst [vmem:[#allocation63_spill] sm:$0xff] %v6973_v59  ;;  %v6975_v8 = vpop.permute.xlu1 %2319  ;;  %v6977_v53 = vpop.permute.xlu0 %2801 }
 0x1b7   : > { %10771 = vst [vmem:[#allocation64_spill] sm:$0xff] %v6975_v8 }
 0x1b8   : > { %10772 = vst [vmem:[#allocation65_spill] sm:$0xff] %v6977_v53  ;;  %v1207_v53 = vadd.f32 %v6658_v51, %v833_v38  ;;  %v1171_v51 = vadd.f32 %v6653_v50, %v833_v38 }
 0x1b9   : > { %10777 = vst [vmem:[#allocation70_spill] sm:$0xff] %v7015_v35 }
 0x1ba   : > { %v7010_v1 = vmul.f32 0.088388346, %v1207_v53  ;;  %10781 = vst [vmem:[#allocation74_spill] sm:$0xff] %v7032_v47 }
 0x1bb   : > { %v6990_v0 = vpop.f32.mrf.mxu3  ;;  %2337 = vrot.lane.b32.xlu2 %v6988_v46, %s10563_s0  ;;  %2339 = vrot.lane.b32.xlu0 %v6981_v10, %s10563_s0 }
 0x1bc   : > { %2016 = vrot.lane.b32.xlu1 %v6769_v56, %s10563_s0  ;;  %10776 = vst [vmem:[#allocation69_spill] sm:$0xff] %v7010_v1 }
 0x1bd   : > { %v954_v7 = vpop.f32.mrf.mxu1  ;;  %v6999_v8 = vpop.permute.xlu2 %2008 }
 0x1be   : > { %10773 = vst [vmem:[#allocation66_spill] sm:$0xff] %v6999_v8  ;;  %v7002_v59 = vpop.permute.xlu1 %2785  ;;  %v7004_v9 = vpop.permute.xlu0 %2006 }
 0x1bf   : > { %10774 = vst [vmem:[#allocation67_spill] sm:$0xff] %v7002_v59  ;;  %v7034_v59 = vpop.f32.mrf.mxu2 }
 0x1c0   : > { %10775 = vst [vmem:[#allocation68_spill] sm:$0xff] %v7004_v9 }
 0x1c3   : > { %v7017_v3 = vpop.f32.mrf.mxu3  ;;  %2341 = vrot.lane.b32.xlu2 %v7008_v12, %s10563_s0  ;;  %1994 = vrot.lane.b32.xlu0 %v7010_v1, %s10563_s0 }
 0x1c4   : > { %2313 = vrot.lane.b32.xlu1 %v7015_v35, %s10563_s0  ;;  %v7056_v35 = vmul.f32 0.088388346, %v1171_v51 }
 0x1c5   : > { %v957_v53 = vpop.f32.mrf.mxu1  ;;  %v7026_v5 = vpop.permute.xlu2 %2811 }
 0x1c6   : > { %10778 = vst [vmem:[#allocation71_spill] sm:$0xff] %v7026_v5  ;;  %v7028_v48 = vpop.permute.xlu1 %2809  ;;  %v7030_v58 = vpop.permute.xlu0 %1984 }
 0x1c7   : > { %10779 = vst [vmem:[#allocation72_spill] sm:$0xff] %v7028_v48  ;;  %v7061_v38 = vpop.f32.mrf.mxu2 }
 0x1c8   : > { %10780 = vst [vmem:[#allocation73_spill] sm:$0xff] %v7030_v58 }
 0x1c9   : > { %10786 = vst [vmem:[#allocation79_spill] sm:$0xff] %v7056_v35 }
 0x1cb   : > { %v7036_v8 = vpop.f32.mrf.mxu3  ;;  %1996 = vrot.lane.b32.xlu2 %v7032_v47, %s10563_s0  ;;  %2018 = vrot.lane.b32.xlu0 %v6787_v4, %s10563_s0 }
 0x1cc   : > { %2797 = vrot.lane.b32.xlu1 %v7010_v1, %s10567_s20  ;;  %v7059_v1 = vadd.f32 %v6908_v40, %v957_v53  ;;  %v1172_v53 = vadd.f32 %v6653_v50, %v836_v34  ;;  %v7097_v50 = vadd.f32 %v6908_v40, %v6971_v14  ;;  %v7113_v14 = vadd.f32 %v6908_v40, %v6952_v26 }
 0x1cd   : > { %v960_v5 = vpop.f32.mrf.mxu1  ;;  %v7045_v48 = vpop.permute.xlu2 %2002  ;;  %v7131_v26 = vadd.f32 %v6908_v40, %v6932_v45  ;;  %v7149_v45 = vadd.f32 %v6723_v30, %v6936_v25 }
 0x1ce   : > { %10782 = vst [vmem:[#allocation75_spill] sm:$0xff] %v7045_v48  ;;  %v7048_v24 = vadd.f32 %v6908_v40, %v960_v5  ;;  %v7050_v9 = vpop.permute.xlu1 %2803  ;;  %v7052_v58 = vpop.permute.xlu0 %2000  ;;  %v7074_v5 = vadd.f32 %v6908_v40, %v954_v7  ;;  %v7099_v34 = vmul.f32 0.088388346, %v1172_v53 }
 0x1cf   : > { %10784 = vst [vmem:[#allocation77_spill] sm:$0xff] %v7050_v9 }
 0x1d0   : > { %10783 = vst [vmem:[#allocation76_spill] sm:$0xff] %v7048_v24  ;;  %4976 = vmatpush.xpose.msk.msra.mxu1 %vm10591_vm0, %v7048_v24 }
 0x1d1   : > { %10785 = vst [vmem:[#allocation78_spill] sm:$0xff] %v7052_v58  ;;  %v7089_v58 = vadd.f32 %v6908_v40, %v6814_v16  ;;  %v1052_v16 = vpop.f32.mrf.mxu2 }
 0x1d2   : > { %10790 = vst [vmem:[#allocation83_spill] sm:$0xff] %v7099_v34 }
 0x1d3   : > { %v7063_v32 = vpop.f32.mrf.mxu3  ;;  %2020 = vrot.lane.b32.xlu2 %v6805_v13, %s10563_s0  ;;  %2315 = vrot.lane.b32.xlu0 %v7056_v35, %s10563_s0  ;;  %10794 = vst [vmem:[#allocation87_spill] sm:$0xff] %v7149_v45 }
 0x1d4   : > { %4944 = vmatpush.xpose.msk.msrb.mxu0 %vm10591_vm0, %v7063_v32  ;;  %5242 = vmatpush.xpose.msk.msrb.mxu2 %vm10591_vm0, %v7063_v32 }
 0x1d5   : > { %4977 = vmatpush.xpose.msk.msra.mxu1 %vm10591_vm0, %v7059_v1  ;;  %2821 = vrot.lane.b32.xlu1 %v6787_v4, %s10567_s20  ;;  %v7081_v51 = vpop.permute.xlu2 %2323 }
 0x1d6   : > { %10787 = vst [vmem:[#allocation80_spill] sm:$0xff] %v7081_v51  ;;  %v7083_v9 = vpop.permute.xlu1 %2329  ;;  %v7085_v48 = vpop.permute.xlu0 %2321 }
 0x1d7   : > { %10788 = vst [vmem:[#allocation81_spill] sm:$0xff] %v7083_v9 }
 0x1d8   : > { %10789 = vst [vmem:[#allocation82_spill] sm:$0xff] %v7085_v48  ;;  %4945 = vmatpush.xpose.msk.msrb.mxu0 %vm10591_vm0, %v7036_v8  ;;  %5243 = vmatpush.xpose.msk.msrb.mxu2 %vm10591_vm0, %v7036_v8 }
 0x1d9   : > { %4978 = vmatpush.xpose.msk.msra.mxu1 %vm10591_vm0, %v7074_v5  ;;  %v1055_v48 = vpop.f32.mrf.mxu2 }
 0x1db   : > { %2317 = vrot.lane.b32.xlu2 %v7099_v34, %s10563_s0  ;;  %2343 = vrot.lane.b32.xlu0 %v7089_v58, %s10563_s0 }
 0x1dc   : > { %4946 = vmatpush.xpose.msk.msrb.mxu0 %vm10591_vm0, %v7017_v3  ;;  %5244 = vmatpush.xpose.msk.msrb.mxu2 %vm10591_vm0, %v7017_v3 }
 0x1dd   : > { %4979 = vmatpush.xpose.msk.msra.mxu1 %vm10591_vm0, %v7097_v50  ;;  %2823 = vrot.lane.b32.xlu1 %v6805_v13, %s10567_s20  ;;  %v7119_v7 = vpop.permute.xlu2 %2805 }
 0x1de   : > { %10791 = vst [vmem:[#allocation84_spill] sm:$0xff] %v7119_v7  ;;  %v7121_v53 = vpop.permute.xlu1 %1986  ;;  %v7123_v9 = vpop.permute.xlu0 %2789  ;;  %v7145_v7 = vadd.f32 %v6908_v40, %v6912_v41 }
 0x1df   : > { %10792 = vst [vmem:[#allocation85_spill] sm:$0xff] %v7121_v53 }
 0x1e0   : > { %10793 = vst [vmem:[#allocation86_spill] sm:$0xff] %v7123_v9  ;;  %4947 = vmatpush.xpose.msk.msrb.mxu0 %vm10591_vm0, %v6990_v0  ;;  %5245 = vmatpush.xpose.msk.msrb.mxu2 %vm10591_vm0, %v6990_v0  ;;  %v7153_v9 = vadd.f32 %v6723_v30, %v6960_v31  ;;  %v7171_v31 = vadd.f32 %v6908_v40, %v6889_v18 }
 0x1e1   : > { %4980 = vmatpush.xpose.msk.msra.mxu1 %vm10591_vm0, %v7113_v14  ;;  %v7196_v18 = vadd.f32 %v6908_v40, %v6870_v60  ;;  %v1058_v24 = vpop.f32.mrf.mxu2 }
 0x1e2   : > { %10795 = vst [vmem:[#allocation88_spill] sm:$0xff] %v7153_v9  ;;  %v5408_v25 = vpack.i.bf16 %v7153_v9, %v7149_v45 }
 0x1e3   : > { %2799 = vrot.lane.b32.xlu2 %v7032_v47, %s10567_s20  ;;  %2024 = vrot.lane.b32.xlu0 %v6842_v39, %s10563_s0 }
 0x1e4   : > { %4948 = vmatpush.xpose.msk.msrb.mxu0 %vm10591_vm0, %v6964_v17  ;;  %5246 = vmatpush.xpose.msk.msrb.mxu2 %vm10591_vm0, %v6964_v17 }
 0x1e5   : > { %4981 = vmatpush.xpose.msk.msra.mxu1 %vm10591_vm0, %v7131_v26  ;;  %2022 = vrot.lane.b32.xlu1 %v6823_v23, %s10563_s0  ;;  %v7159_v51 = vpop.permute.xlu2 %2333 }
 0x1e6   : > { %10796 = vst [vmem:[#allocation89_spill] sm:$0xff] %v7159_v51  ;;  %v7161_v53 = vpop.permute.xlu1 %2307  ;;  %v7163_v41 = vpop.permute.xlu0 %2331  ;;  %v7178_v51 = vadd.f32 %v6723_v30, %v1052_v16 }
 0x1e7   : > { %10797 = vst [vmem:[#allocation90_spill] sm:$0xff] %v7161_v53  ;;  %v7185_v53 = vadd.f32 %v6908_v40, %v6833_v27  ;;  %v7204_v27 = vadd.f32 %v6723_v30, %v7013_v19 }
 0x1e8   : > { %10798 = vst [vmem:[#allocation91_spill] sm:$0xff] %v7163_v41  ;;  %4949 = vmatpush.xpose.msk.msrb.mxu0 %vm10591_vm0, %v6938_v37  ;;  %5247 = vmatpush.xpose.msk.msrb.mxu2 %vm10591_vm0, %v6938_v37  ;;  %v7181_v41 = vadd.f32 %v6723_v30, %v1055_v48  ;;  %v7200_v48 = vadd.f32 %v6723_v30, %v6984_v54 }
 0x1e9   : > { %4982 = vmatpush.xpose.msk.msra.mxu1 %vm10591_vm0, %v7145_v7  ;;  %10799 = vst [vmem:[#allocation92_spill] sm:$0xff] %v7185_v53 }
 0x1ea   : > { %10800 = vst [vmem:[#allocation93_spill] sm:$0xff] %v7200_v48  ;;  %v7218_v54 = vpack.i.bf16 %v7178_v51, %v7181_v41  ;;  %v5413_v19 = vpack.i.bf16 %v7204_v27, %v7200_v48 }
 0x1eb   : > { %5409 = vrot.lane.b32.xlu2 %v5408_v25, %s10563_s0  ;;  %2827 = vrot.lane.b32.xlu0 %v6842_v39, %s10567_s20  ;;  %10801 = vst [vmem:[#allocation94_spill] sm:$0xff] %v7204_v27 }
 0x1ec   : > { %4950 = vmatpush.xpose.msk.msrb.mxu0 %vm10591_vm0, %v6924_v44  ;;  %5248 = vmatpush.xpose.msk.msrb.mxu2 %vm10591_vm0, %v6924_v44  ;;  %10805 = vst [vmem:[#allocation98_spill] sm:$0xff] %v7218_v54 }
 0x1ed   : > { %4983 = vmatpush.xpose.msk.msra.mxu1 %vm10591_vm0, %v7171_v31  ;;  %2345 = vrot.lane.b32.xlu1 %v7185_v53, %s10563_s0  ;;  %v7210_v16 = vpop.permute.xlu2 %1990 }
 0x1ee   : > { %10802 = vst [vmem:[#allocation95_spill] sm:$0xff] %v7210_v16  ;;  %v7212_v25 = vpop.permute.xlu1 %2010  ;;  %v7214_v60 = vpop.permute.xlu0 %2813 }
 0x1ef   : > { %10803 = vst [vmem:[#allocation96_spill] sm:$0xff] %v7212_v25  ;;  %v7264_v25 = vadd.f32 %v6723_v30, %v1058_v24 }
 0x1f0   : > { %10804 = vst [vmem:[#allocation97_spill] sm:$0xff] %v7214_v60  ;;  %4951 = vmatpush.xpose.msk.msrb.mxu0 %vm10591_vm0, %v6898_v33  ;;  %5249 = vmatpush.xpose.msk.msrb.mxu2 %vm10591_vm0, %v6898_v33  ;;  %v7230_v60 = vadd.f32 %v6908_v40, %v6852_v42 }
 0x1f1   : > { %4984 = vmatpush.xpose.msk.msra.mxu1 %vm10591_vm0, %v7196_v18 }
 0x1f3   : > { %2825 = vrot.lane.b32.xlu2 %v6823_v23, %s10567_s20  ;;  %5414 = vrot.lane.b32.xlu0 %v5413_v19, %s10563_s0  ;;  %v1061_v19 = vpop.f32.mrf.mxu2 }
 0x1f4   : > { %4952 = vmatpush.xpose.msk.msrb.mxu0 %vm10591_vm0, %v6874_v2  ;;  %5250 = vmatpush.xpose.msk.msrb.mxu2 %vm10591_vm0, %v6874_v2 }
 0x1f5   : > { %4985 = vmatpush.xpose.msk.msra.mxu1 %vm10591_vm0, %v7230_v60  ;;  %2349 = vrot.lane.b32.xlu1 %v7196_v18, %s10563_s0  ;;  %v7243_v54 = vpop.permute.xlu2 %2014 }
 0x1f6   : > { %10806 = vst [vmem:[#allocation99_spill] sm:$0xff] %v7243_v54  ;;  %v7245_v42 = vpop.permute.xlu1 %2004  ;;  %v7247_v40 = vpop.permute.xlu0 %1988 }
 0x1f7   : > { %10807 = vst [vmem:[#allocation100_spill] sm:$0xff] %v7245_v42  ;;  %v7267_v42 = vadd.f32 %v6723_v30, %v1061_v19 }
 0x1f8   : > { %10808 = vst [vmem:[#allocation101_spill] sm:$0xff] %v7247_v40  ;;  %4953 = vmatpush.xpose.msk.msrb.mxu0 %vm10591_vm0, %v6861_v57  ;;  %5251 = vmatpush.xpose.msk.msrb.mxu2 %vm10591_vm0, %v6861_v57 }
 0x1f9   : > { %4986 = vmatpush.xpose.msk.msra.mxu1 %vm10591_vm0, %v7185_v53  ;;  %v7281_v53 = vpack.i.bf16 %v7264_v25, %v7267_v42 }
 0x1fb   : > { %2026 = vrot.lane.b32.xlu2 %v6861_v57, %s10563_s0  ;;  %2347 = vrot.lane.b32.xlu0 %v7230_v60, %s10563_s0  ;;  %10812 = vst [vmem:[#allocation105_spill] sm:$0xff] %v7281_v53 }
 0x1fc   : > { %4954 = vmatpush.xpose.msk.msrb.mxu0 %vm10591_vm0, %v6842_v39  ;;  %5252 = vmatpush.xpose.msk.msrb.mxu2 %vm10591_vm0, %v6842_v39 }
 0x1fd   : > { %4987 = vmatpush.xpose.msk.msra.mxu1 %vm10591_vm0, %v7089_v58  ;;  %2028 = vrot.lane.b32.xlu1 %v6874_v2, %s10563_s0  ;;  %v7273_v16 = vpop.permute.xlu2 %2311 }
 0x1fe   : > { %10809 = vst [vmem:[#allocation102_spill] sm:$0xff] %v7273_v16  ;;  %v7275_v40 = vpop.permute.xlu1 %2325  ;;  %v7277_v54 = vpop.permute.xlu0 %2309  ;;  %v7313_v16 = vadd.f32 %v6723_v30, %v7061_v38 }
 0x1ff   : > { %10810 = vst [vmem:[#allocation103_spill] sm:$0xff] %v7275_v40  ;;  %v7309_v40 = vadd.f32 %v6723_v30, %v7034_v59 }
 0x200   : > { %10811 = vst [vmem:[#allocation104_spill] sm:$0xff] %v7277_v54  ;;  %4955 = vmatpush.xpose.msk.msrb.mxu0 %vm10591_vm0, %v6823_v23  ;;  %5253 = vmatpush.xpose.msk.msrb.mxu2 %vm10591_vm0, %v6823_v23  ;;  %v10846_v54 = vld [vmem:[#allocation32_spill] sm:$0xff] }
 0x201   : > { %4988 = vmatpush.xpose.msk.msra.mxu1 %vm10591_vm0, %v7008_v12  ;;  %10816 = vst [vmem:[#allocation109_spill] sm:$0xff] %v7309_v40 }
 0x202   : > { %10817 = vst [vmem:[#allocation110_spill] sm:$0xff] %v7313_v16 }
 0x203   : > { %2351 = vrot.lane.b32.xlu2 %v7171_v31, %s10563_s0  ;;  %2030 = vrot.lane.b32.xlu0 %v6898_v33, %s10563_s0 }
 0x204   : > { %4956 = vmatpush.xpose.msk.msrb.mxu0 %vm10591_vm0, %v6805_v13  ;;  %5254 = vmatpush.xpose.msk.msrb.mxu2 %vm10591_vm0, %v6805_v13 }
 0x205   : > { %4989 = vmatpush.xpose.msk.msra.mxu1 %vm10591_vm0, %v6981_v10  ;;  %2831 = vrot.lane.b32.xlu1 %v6874_v2, %s10567_s20  ;;  %v7301_v24 = vpop.permute.xlu2 %2793 }
 0x206   : > { %10813 = vst [vmem:[#allocation106_spill] sm:$0xff] %v7301_v24  ;;  %v7303_v19 = vpop.permute.xlu1 %2791  ;;  %v7305_v53 = vpop.permute.xlu0 %2807 }
 0x207   : > { %10814 = vst [vmem:[#allocation107_spill] sm:$0xff] %v7303_v19 }
 0x208   : > { %10815 = vst [vmem:[#allocation108_spill] sm:$0xff] %v7305_v53  ;;  %4957 = vmatpush.xpose.msk.msrb.mxu0 %vm10591_vm0, %v6787_v4  ;;  %5255 = vmatpush.xpose.msk.msrb.mxu2 %vm10591_vm0, %v6787_v4  ;;  %v5418_v53 = vpack.i.bf16 %v7313_v16, %v7309_v40 }
 0x209   : > { %4990 = vmatpush.xpose.msk.msra.mxu1 %vm10591_vm0, %v6988_v46 }
 0x20b   : > { %2833 = vrot.lane.b32.xlu2 %v6898_v33, %s10567_s20  ;;  %2837 = vrot.lane.b32.xlu0 %v6938_v37, %s10567_s20 }
 0x20c   : > { %4958 = vmatpush.xpose.msk.msrb.mxu0 %vm10591_vm0, %v6769_v56  ;;  %5256 = vmatpush.xpose.msk.msrb.mxu2 %vm10591_vm0, %v6769_v56 }
 0x20d   : > { %4991 = vmatpush.xpose.msk.msra.mxu1 %vm10591_vm0, %v6920_v15  ;;  %5419 = vrot.lane.b32.xlu1 %v5418_v53, %s10563_s0  ;;  %v7334_v30 = vpop.permute.xlu2 %2817 }
 0x20e   : > { %10818 = vst [vmem:[#allocation111_spill] sm:$0xff] %v7334_v30  ;;  %v7336_v59 = vpop.permute.xlu1 %5399  ;;  %v7338_v38 = vpop.permute.xlu0 %2012 }
 0x20f   : > { %10819 = vst [vmem:[#allocation112_spill] sm:$0xff] %v7338_v38  ;;  %v5423_v38 = vpack.i.bf16 %v7181_v41, %v7178_v51 }
 0x210   : > { %4992 = vmatmul.msk.f32.vlgmr.msra.gmra.mxu1 %vm10591_vm0, %v6667_v61  ;;  %4959 = vmatpush.xpose.msk.msrb.mxu0 %vm10591_vm0, %v6750_v43 }
 0x211   : > { %5257 = vmatpush.xpose.msk.msrb.mxu2 %vm10591_vm0, %v6750_v43 }
 0x213   : > { %4960 = vmatmul.msk.f32.vlgmr.msrb.gmra.mxu0 %vm10591_vm0, %v6669_v62  ;;  %2032 = vrot.lane.b32.xlu2 %v6924_v44, %s10563_s0 }
 0x214   : > { %4972 = vmatmul.msk.f32.vlgmr.msrb.gmra.mxu2 %vm10591_vm0, %v6701_v20  ;;  %2357 = vrot.lane.b32.xlu0 %v7113_v14, %s10563_s0  ;;  %v10842_v20 = vld [vmem:[#allocation69_spill] sm:$0xff] }
 0x215   : > { %1917 = vmatpush.msra.mxu2 %v7267_v42  ;;  %2353 = vrot.lane.b32.xlu1 %v7145_v7, %s10563_s0  ;;  %v7358_v53 = vpop.permute.xlu2 %2337 }
 0x216   : > { %10820 = vst [vmem:[#allocation113_spill] sm:$0xff] %v7358_v53  ;;  %v7360_v24 = vpop.permute.xlu1 %2335  ;;  %v7362_v19 = vpop.permute.xlu0 %2795  ;;  %v10850_v53 = vld [vmem:[#allocation44_spill] sm:$0xff] }
 0x217   : > { %1918 = vmatpush.msra.mxu2 %v7264_v25  ;;  %10821 = vst [vmem:[#allocation114_spill] sm:$0xff] %v7360_v24  ;;  %v10848_v24 = vld [vmem:[#allocation41_spill] sm:$0xff] }
 0x218   : > { %10822 = vst [vmem:[#allocation115_spill] sm:$0xff] %v7362_v19  ;;  %4993 = vmatmul.msk.f32.gmra.mxu1 %vm10591_vm0, %v6703_v21 }
 0x219   : > { %1919 = vmatpush.msra.mxu2 %v7181_v41 }
 0x21b   : > { %1920 = vmatpush.msra.mxu2 %v7178_v51  ;;  %4961 = vmatmul.msk.f32.gmra.mxu0 %vm10591_vm0, %v6718_v29 }
 0x21c   : > { %4973 = vmatmul.msk.f32.gmra.mxu2 %vm10591_vm0, %v6761_v49  ;;  %5424 = vrot.lane.b32.xlu2 %v5423_v38, %s10563_s0  ;;  %v5428_v38 = vpack.i.bf16 %v7267_v42, %v7264_v25  ;;  %v10828_v25 = vld [vmem:[#allocation53_spill] sm:$0xff]  ;;  %v10829_v42 = vld [vmem:[#allocation50_spill] sm:$0xff] }
 0x21d   : > { %1921 = vmatpush.msra.mxu2 %v7313_v16  ;;  %2835 = vrot.lane.b32.xlu1 %v6924_v44, %s10567_s20  ;;  %v7379_v19 = vpop.permute.xlu2 %2341 }
 0x21e   : > { %10823 = vst [vmem:[#allocation116_spill] sm:$0xff] %v7379_v19  ;;  %2036 = vrot.lane.b32.xlu0 %v6964_v17, %s10563_s0  ;;  %v7383_v51 = vpop.permute.xlu1 %2815  ;;  %v7385_v41 = vpop.permute.xlu0 %2819 }
 0x21f   : > { %1922 = vmatpush.msra.mxu2 %v7309_v40  ;;  %10824 = vst [vmem:[#allocation117_spill] sm:$0xff] %v7383_v51 }
 0x220   : > { %10825 = vst [vmem:[#allocation118_spill] sm:$0xff] %v7385_v41  ;;  %4994 = vmatmul.msk.f32.gmra.mxu1 %vm10591_vm0, %v6802_v11 }
 0x221   : > { %1923 = vmatpush.msra.mxu2 %v7204_v27  ;;  %v10833_v27 = vld [vmem:[#allocation36_spill] sm:$0xff] }
 0x223   : > { %1924 = vmatpush.msra.mxu2 %v7200_v48  ;;  %4962 = vmatmul.msk.f32.gmra.mxu0 %vm10591_vm0, %v6782_v63 }
 0x224   : > { %4974 = vmatmul.msk.f32.gmra.mxu2 %vm10591_vm0, %v6821_v22  ;;  %2355 = vrot.lane.b32.xlu2 %v7131_v26, %s10563_s0 }
 0x225   : > { %1925 = vmatpush.msra.mxu2 %v7153_v9  ;;  %2034 = vrot.lane.b32.xlu1 %v6938_v37, %s10563_s0  ;;  %v7403_v51 = vpop.permute.xlu2 %1996 }
 0x226   : > { %10826 = vst [vmem:[#allocation119_spill] sm:$0xff] %v7403_v51  ;;  %5429 = vrot.lane.b32.xlu0 %v5428_v38, %s10563_s0  ;;  %v7406_v9 = vpop.permute.xlu1 %1992  ;;  %v7408_v48 = vpop.permute.xlu0 %5404 }
 0x227   : > { %1926 = vmatpush.msra.mxu2 %v7149_v45  ;;  %10827 = vst [vmem:[#allocation120_spill] sm:$0xff] %v7406_v9 }
 0x228   : > { %4995 = vmatmul.msk.f32.gmra.mxu1 %vm10591_vm0, %v6859_v52 }
 0x229   : > { %1927 = vmatpush.msra.mxu2 %v6950_v55  ;;  %v10832_v55 = vld [vmem:[#allocation56_spill] sm:$0xff] }
 0x22b   : > { %1928 = vmatpush.msra.mxu2 %v6947_v36  ;;  %4963 = vmatmul.msk.f32.gmra.mxu0 %vm10591_vm0, %v6837_v28  ;;  %v10831_v36 = vld [vmem:[#allocation37_spill] sm:$0xff] }
 0x22c   : > { %4975 = vmatmul.msk.f32.gmra.mxu2 %vm10591_vm0, %v10828_v25  ;;  %2829 = vrot.lane.b32.xlu2 %v6861_v57, %s10567_s20  ;;  %v10838_v25 = vld [vmem:[#allocation70_spill] sm:$0xff] }
 0x22d   : > { %1929 = vmatpush.msra.mxu2 %v6886_v6  ;;  %2839 = vrot.lane.b32.xlu1 %v6964_v17, %s10567_s20  ;;  %v7424_v38 = vpop.permute.xlu2 %2020 }
 0x22e   : > { %2841 = vrot.lane.b32.xlu0 %v6990_v0, %s10567_s20  ;;  %v7428_v45 = vpop.permute.xlu1 %2016  ;;  %v7430_v6 = vpop.permute.xlu0 %2339 }
 0x22f   : > { %1930 = vmatpush.msra.mxu2 %v10829_v42  ;;  %10830 = vst [vmem:[#allocation121_spill] sm:$0xff] %v7430_v6  ;;  %v10834_v42 = vld [vmem:[#allocation49_spill] sm:$0xff] }
 0x230   : > { %4996 = vmatmul.msk.f32.gmra.mxu1 %vm10591_vm0, %v10832_v55 }
 0x231   : > { %1931 = vmatpush.msra.mxu2 %v10831_v36 }
 0x233   : > { %1932 = vmatpush.msra.mxu2 %v10833_v27  ;;  %4964 = vmatmul.msk.f32.gmra.mxu0 %vm10591_vm0, %v10834_v42  ;;  %v10839_v27 = vld [vmem:[#allocation55_spill] sm:$0xff] }
 0x234   : > { %2359 = vrot.lane.b32.xlu2 %v7097_v50, %s10563_s0 }
 0x235   : > { %2040 = vrot.lane.b32.xlu1 %v7017_v3, %s10563_s0  ;;  %v7442_v40 = vpop.permute.xlu2 %2317 }
 0x236   : > { %10835 = vst [vmem:[#allocation49_spill] sm:$0xff] %v7442_v40  ;;  %2361 = vrot.lane.b32.xlu0 %v7074_v5, %s10563_s0  ;;  %v7446_v36 = vpop.permute.xlu1 %2313  ;;  %v7448_v16 = vpop.permute.xlu0 %1994 }
 0x237   : > { %10836 = vst [vmem:[#allocation122_spill] sm:$0xff] %v7446_v36 }
 0x238   : > { %10837 = vst [vmem:[#allocation123_spill] sm:$0xff] %v7448_v16  ;;  %4997 = vmatmul.msk.f32.gmra.mxu1 %vm10591_vm0, %v10838_v25  ;;  %v10856_v25 = vld [vmem:[#allocation43_spill] sm:$0xff] }
 0x23b   : > { %4965 = vmatmul.msk.f32.gmra.mxu0 %vm10591_vm0, %v10839_v27 }
 0x23c   : > { %2038 = vrot.lane.b32.xlu2 %v6990_v0, %s10563_s0 }
 0x23d   : > { %2363 = vrot.lane.b32.xlu1 %v7059_v1, %s10563_s0  ;;  %v7458_v22 = vpop.permute.xlu2 %2799 }
 0x23e   : > { %10840 = vst [vmem:[#allocation55_spill] sm:$0xff] %v7458_v22  ;;  %2042 = vrot.lane.b32.xlu0 %v7036_v8, %s10563_s0  ;;  %v7462_v40 = vpop.permute.xlu1 %2797  ;;  %v7464_v49 = vpop.permute.xlu0 %2018 }
 0x23f   : > { %10841 = vst [vmem:[#allocation124_spill] sm:$0xff] %v7462_v40 }
 0x240   : > { %4998 = vmatmul.msk.f32.gmra.mxu1 %vm10591_vm0, %v7056_v35 }
 0x243   : > { %4966 = vmatmul.msk.f32.gmra.mxu0 %vm10591_vm0, %v10842_v20 }
 0x244   : > { %2843 = vrot.lane.b32.xlu2 %v7017_v3, %s10567_s20 }
 0x245   : > { %3632 = vrot.lane.b32.xlu1 %v7036_v8, %s6233_s17  ;;  %v7474_v22 = vpop.permute.xlu2 %5409 }
 0x246   : > { %2845 = vrot.lane.b32.xlu0 %v7036_v8, %s10567_s20  ;;  %v7478_v40 = vpop.permute.xlu0 %2315  ;;  %v10844_v8 = vld [vmem:[#allocation76_spill] sm:$0xff] }
 0x247   : > { %10843 = vst [vmem:[#allocation69_spill] sm:$0xff] %v7478_v40  ;;  %v7480_v36 = vpop.permute.xlu1 %2821 }
 0x248   : > { %4999 = vmatmul.msk.f32.gmra.mxu1 %vm10591_vm0, %v7099_v34  ;;  %v10847_v34 = vld [vmem:[#allocation31_spill] sm:$0xff] }
 0x24b   : > { %4967 = vmatmul.msk.f32.gmra.mxu0 %vm10591_vm0, %v7032_v47 }
 0x24c   : > { %2044 = vrot.lane.b32.xlu2 %v7063_v32, %s10563_s0 }
 0x24d   : > { %3622 = vrot.lane.b32.xlu1 %v6924_v44, %s6233_s17  ;;  %v7490_v51 = vpop.permute.xlu2 %2825 }
 0x24e   : > { %2365 = vrot.lane.b32.xlu0 %v10844_v8, %s10563_s0  ;;  %v7494_v40 = vpop.permute.xlu0 %2343  ;;  %s6247_s0 = smov 321  }
 0x24f   : > { %10845 = vst [vmem:[#allocation76_spill] sm:$0xff] %v7494_v40  ;;  %v7496_v16 = vpop.permute.xlu1 %2823 }
 0x250   : > { %5000 = vmatmul.msk.f32.gmra.mxu1 %vm10591_vm0, %v10846_v54  ;;  %v10849_v54 = vld [vmem:[#allocation38_spill] sm:$0xff] }
 0x253   : > { %4968 = vmatmul.msk.f32.gmra.mxu0 %vm10591_vm0, %v10847_v34 }
 0x254   : > { %2847 = vrot.lane.b32.xlu2 %v7063_v32, %s10567_s20 }
 0x255   : > { %3618 = vrot.lane.b32.xlu1 %v6874_v2, %s6233_s17  ;;  %v7506_v44 = vpop.permute.xlu2 %2026 }
 0x256   : > { %3628 = vrot.lane.b32.xlu0 %v6990_v0, %s6233_s17  ;;  %v7510_v9 = vpop.permute.xlu0 %2024 }
 0x257   : > { %v7512_v35 = vpop.permute.xlu1 %2022 }
 0x258   : > { %5001 = vmatmul.msk.f32.gmra.mxu1 %vm10591_vm0, %v10848_v24  ;;  %v10851_v24 = vld [vmem:[#allocation42_spill] sm:$0xff] }
 0x25b   : > { %4969 = vmatmul.msk.f32.gmra.mxu0 %vm10591_vm0, %v10849_v54  ;;  %v10852_v54 = vld [vmem:[#allocation48_spill] sm:$0xff] }
 0x25c   : > { %3634 = vrot.lane.b32.xlu2 %v7063_v32, %s6233_s17 }
 0x25d   : > { %3614 = vrot.lane.b32.xlu1 %v6842_v39, %s6233_s17  ;;  %v7522_v2 = vpop.permute.xlu2 %2351 }
 0x25e   : > { %3624 = vrot.lane.b32.xlu0 %v6938_v37, %s6233_s17  ;;  %v7526_v0 = vpop.permute.xlu0 %2827 }
 0x25f   : > { %v7528_v34 = vpop.permute.xlu1 %2345 }
 0x260   : > { %5002 = vmatmul.msk.f32.gmra.mxu1 %vm10591_vm0, %v10850_v53  ;;  %v10853_v53 = vld [vmem:[#allocation46_spill] sm:$0xff] }
 0x263   : > { %4970 = vmatmul.msk.f32.gmra.mxu0 %vm10591_vm0, %v10851_v24  ;;  %v10854_v24 = vld [vmem:[#allocation33_spill] sm:$0xff] }
 0x264   : > { %3630 = vrot.lane.b32.xlu2 %v7017_v3, %s6233_s17 }
 0x265   : > { %3610 = vrot.lane.b32.xlu1 %v6805_v13, %s6233_s17  ;;  %v7538_v39 = vpop.permute.xlu2 %2833 }
 0x266   : > { %3620 = vrot.lane.b32.xlu0 %v6898_v33, %s6233_s17  ;;  %v7542_v32 = vpop.permute.xlu0 %5414 }
 0x267   : > { %v7544_v37 = vpop.permute.xlu1 %2349 }
 0x268   : > { %5003 = vmatmul.msk.f32.gmra.mxu1 %vm10591_vm0, %v10852_v54 }
 0x26b   : > { %4971 = vmatmul.msk.f32.gmra.mxu0 %vm10591_vm0, %v10853_v53  ;;  %v10855_v53 = vld [vmem:[#allocation40_spill] sm:$0xff] }
 0x26c   : > { %3626 = vrot.lane.b32.xlu2 %v6964_v17, %s6233_s17 }
 0x26d   : > { %3608 = vrot.lane.b32.xlu1 %v6787_v4, %s6233_s17  ;;  %v7554_v13 = vpop.permute.xlu2 %2032 }
 0x26e   : > { %3108 = vrot.lane.b32.xlu0 %v6703_v21, %s10567_s20  ;;  %v7558_v3 = vpop.permute.xlu0 %2347 }
 0x26f   : > { %v7560_v33 = vpop.permute.xlu1 %2028 }
 0x270   : > { %5004 = vmatmul.msk.f32.gmra.mxu1 %vm10591_vm0, %v10854_v24 }
 0x274   : > { %3106 = vrot.lane.b32.xlu2 %v6667_v61, %s10567_s20 }
 0x275   : > { %3606 = vrot.lane.b32.xlu1 %v6769_v56, %s6233_s17 }
 0x276   : > { %3955 = vrot.lane.b32.xlu0 %v10844_v8, %s6233_s17  ;;  %v5425_v4 = vpop.permute.xlu2 %5424  ;;  %v7570_v17 = vpop.permute.xlu0 %2030 }
 0x277   : > { %v7572_v54 = vpop.permute.xlu1 %2831  ;;  %v5427_v19 = vunpack.i.h.bf16 %v5425_v4  ;;  %v5426_v47 = vunpack.i.l.bf16 %v5425_v4  ;;  %v5402_v4 = vunpack.i.h.bf16 %v7336_v59 }
 0x278   : > { %5005 = vmatmul.msk.f32.gmra.mxu1 %vm10591_vm0, %v10855_v53  ;;  %v10857_v53 = vld [vmem:[#allocation47_spill] sm:$0xff] }
 0x27c   : > { %3616 = vrot.lane.b32.xlu2 %v6861_v57, %s6233_s17 }
 0x27d   : > { %3604 = vrot.lane.b32.xlu1 %v6750_v43, %s6233_s17 }
 0x27e   : > { %3168 = vrot.lane.b32.xlu0 %v10844_v8, %s10567_s20  ;;  %v7582_v56 = vpop.permute.xlu2 %2355  ;;  %v7584_v24 = vpop.permute.xlu0 %2837 }
 0x27f   : > { %v5420_v21 = vpop.permute.xlu1 %5419 }
 0x280   : > { %5006 = vmatmul.msk.f32.gmra.mxu1 %vm10591_vm0, %v10856_v25  ;;  %v5422_v40 = vunpack.i.h.bf16 %v5420_v21 }
 0x284   : > { %3612 = vrot.lane.b32.xlu2 %v6823_v23, %s6233_s17 }
 0x285   : > { %3572 = vrot.lane.b32.xlu1 %v6669_v62, %s6233_s17 }
 0x286   : > { %3166 = vrot.lane.b32.xlu0 %v7059_v1, %s10567_s20  ;;  %v7594_v43 = vpop.permute.xlu2 %2829  ;;  %v7596_v57 = vpop.permute.xlu0 %2357 }
 0x287   : > { %v7598_v8 = vpop.permute.xlu1 %2353 }
 0x288   : > { %5007 = vmatmul.msk.f32.gmra.mxu1 %vm10591_vm0, %v10857_v53 }
 0x28c   : > { %3953 = vrot.lane.b32.xlu2 %v7059_v1, %s6233_s17 }
 0x28d   : > { %3943 = vrot.lane.b32.xlu1 %v7145_v7, %s6233_s17 }
 0x28e   : > { %3164 = vrot.lane.b32.xlu0 %v7074_v5, %s10567_s20  ;;  %v7608_v62 = vpop.permute.xlu2 %2359 }
 0x28f   : > { %v7610_v23 = vpop.permute.xlu1 %2835 }
 0x290   : > { %v7612_v25 = vpop.permute.xlu0 %2036 }
 0x294   : > { %3951 = vrot.lane.b32.xlu2 %v7074_v5, %s6233_s17 }
 0x295   : > { %3941 = vrot.lane.b32.xlu1 %v7171_v31, %s6233_s17 }
 0x296   : > { %3162 = vrot.lane.b32.xlu0 %v7097_v50, %s10567_s20  ;;  %v2039_v1 = vpop.permute.xlu2 %2038 }
 0x297   : > { %v7620_v53 = vpop.permute.xlu1 %2034 }
 0x298   : > { %v5430_v6 = vpop.permute.xlu0 %5429 }
 0x299   : > { %v5432_v61 = vunpack.i.h.bf16 %v5430_v6  ;;  %v5431_v30 = vunpack.i.l.bf16 %v5430_v6  ;;  %v5417_v6 = vunpack.i.h.bf16 %v7542_v32 }
 0x29b   : > { %2720 = vmatpush.msrb.mxu1 %v5432_v61  ;;  %v5421_v61 = vunpack.i.l.bf16 %v5420_v21 }
 0x29c   : > { %3949 = vrot.lane.b32.xlu2 %v7097_v50, %s6233_s17 }
 0x29d   : > { %2721 = vmatpush.msrb.mxu1 %v5431_v30  ;;  %3154 = vrot.lane.b32.xlu1 %v7171_v31, %s10567_s20  ;;  %v5416_v31 = vunpack.i.l.bf16 %v7542_v32  ;;  %v5406_v30 = vunpack.i.l.bf16 %v7408_v48 }
 0x29e   : > { %3160 = vrot.lane.b32.xlu0 %v7113_v14, %s10567_s20  ;;  %v2844_v5 = vpop.permute.xlu2 %2843 }
 0x29f   : > { %2722 = vmatpush.msrb.mxu1 %v5427_v19  ;;  %v7628_v55 = vpop.permute.xlu1 %2839 }
 0x2a0   : > { %v2842_v41 = vpop.permute.xlu0 %2841 }
 0x2a1   : > { %2723 = vmatpush.msrb.mxu1 %v5426_v47  ;;  %v5412_v47 = vunpack.i.h.bf16 %v7474_v22 }
 0x2a3   : > { %2724 = vmatpush.msrb.mxu1 %v5422_v40  ;;  %v5407_v40 = vunpack.i.h.bf16 %v7408_v48 }
 0x2a4   : > { %3947 = vrot.lane.b32.xlu2 %v7113_v14, %s6233_s17  ;;  %v5411_v14 = vunpack.i.l.bf16 %v7474_v22 }
 0x2a5   : > { %2725 = vmatpush.msrb.mxu1 %v5421_v61  ;;  %3152 = vrot.lane.b32.xlu1 %v7196_v18, %s10567_s20  ;;  %v5401_v61 = vunpack.i.l.bf16 %v7336_v59 }
 0x2a6   : > { %3574 = vrot.lane.b32.xlu0 %v6718_v29, %s6233_s17  ;;  %v2045_v50 = vpop.permute.xlu2 %2044 }
 0x2a7   : > { %2726 = vmatpush.msrb.mxu1 %v5417_v6  ;;  %v2041_v19 = vpop.permute.xlu1 %2040  ;;  %5008 = vmatpush.xpose.msk.msra.mxu3 %vm10591_vm0, %v2045_v50 }
 0x2a8   : > { %v2362_v21 = vpop.permute.xlu0 %2361 }
 0x2a9   : > { %2727 = vmatpush.msrb.mxu1 %v5416_v31 }
 0x2ab   : > { %2728 = vmatpush.msrb.mxu1 %v5412_v47 }
 0x2ac   : > { %3945 = vrot.lane.b32.xlu2 %v7131_v26, %s6233_s17 }
 0x2ad   : > { %2729 = vmatpush.msrb.mxu1 %v5411_v14  ;;  %3578 = vrot.lane.b32.xlu1 %v6837_v28, %s6233_s17  ;;  %v10858_v28 = vld [vmem:[#allocation63_spill] sm:$0xff]  ;;  %v10882_v14 = vld [vmem:[#allocation101_spill] sm:$0xff] }
 0x2ae   : > { %3939 = vrot.lane.b32.xlu0 %v7196_v18, %s6233_s17  ;;  %v2848_v29 = vpop.permute.xlu2 %2847  ;;  %v5397_v18 = vunpack.i.h.bf16 %v10858_v28  ;;  %v5396_v6 = vunpack.i.l.bf16 %v10858_v28  ;;  %v10889_v28 = vld [vmem:[#allocation38_spill] sm:$0xff] }
 0x2af   : > { %2730 = vmatpush.msrb.mxu1 %v5407_v40  ;;  %v2364_v32 = vpop.permute.xlu1 %2363  ;;  %5072 = vmatpush.xpose.msk.msrb.mxu2 %vm10591_vm0, %v2848_v29  ;;  %v10883_v40 = vld [vmem:[#allocation31_spill] sm:$0xff] }
 0x2b0   : > { %v2043_v22 = vpop.permute.xlu0 %2042 }
 0x2b1   : > { %5009 = vmatpush.xpose.msk.msra.mxu3 %vm10591_vm0, %v2043_v22  ;;  %2731 = vmatpush.msrb.mxu1 %v5406_v30  ;;  %v10887_v22 = vld [vmem:[#allocation57_spill] sm:$0xff] }
 0x2b3   : > { %2732 = vmatpush.msrb.mxu1 %v5402_v4 }
 0x2b4   : > { %3158 = vrot.lane.b32.xlu2 %v7131_v26, %s10567_s20 }
 0x2b5   : > { %5010 = vmatpush.xpose.msk.msra.mxu3 %vm10591_vm0, %v2041_v19  ;;  %2733 = vmatpush.msrb.mxu1 %v5401_v61  ;;  %v10888_v61 = vld [vmem:[#allocation95_spill] sm:$0xff] }
 0x2b6   : > { %3931 = vrot.lane.b32.xlu1 %v7008_v12, %s6233_s17  ;;  %3937 = vrot.lane.b32.xlu0 %v7230_v60, %s6233_s17  ;;  %v3635_v48 = vpop.permute.xlu2 %3634 }
 0x2b7   : > { %2734 = vmatpush.msrb.mxu1 %v5397_v18  ;;  %v3633_v59 = vpop.permute.xlu1 %3632 }
 0x2b8   : > { %v2846_v50 = vpop.permute.xlu0 %2845 }
 0x2b9   : > { %5011 = vmatpush.xpose.msk.msra.mxu3 %vm10591_vm0, %v2039_v1  ;;  %2735 = vmatpush.msrb.mxu1 %v5396_v6 }
 0x2ba   : > { %5073 = vmatpush.xpose.msk.msrb.mxu2 %vm10591_vm0, %v2846_v50 }
 0x2bb   : > { %5136 = vmatpush.xpose.msk.msra.mxu1 %vm10591_vm0, %v3635_v48 }
 0x2bc   : > { %3156 = vrot.lane.b32.xlu2 %v7145_v7, %s10567_s20 }
 0x2bd   : > { %5012 = vmatpush.xpose.msk.msra.mxu3 %vm10591_vm0, %v7612_v25 }
 0x2be   : > { %5074 = vmatpush.xpose.msk.msrb.mxu2 %vm10591_vm0, %v2844_v5  ;;  %3929 = vrot.lane.b32.xlu1 %v6981_v10, %s6233_s17  ;;  %v3631_v26 = vpop.permute.xlu2 %3630  ;;  %v10879_v5 = vld [vmem:[#allocation79_spill] sm:$0xff] }
 0x2bf   : > { %3150 = vrot.lane.b32.xlu0 %v7230_v60, %s10567_s20  ;;  %5137 = vmatpush.xpose.msk.msra.mxu1 %vm10591_vm0, %v3633_v59  ;;  %v3623_v1 = vpop.permute.xlu1 %3622  ;;  %v10859_v60 = vld [vmem:[#allocation92_spill] sm:$0xff]  ;;  %v10890_v59 = vld [vmem:[#allocation90_spill] sm:$0xff] }
 0x2c0   : > { %v2366_v31 = vpop.permute.xlu0 %2365 }
 0x2c1   : > { %5013 = vmatpush.xpose.msk.msra.mxu3 %vm10591_vm0, %v7620_v53  ;;  %5040 = vmatpush.xpose.msk.msra.mxu0 %vm10591_vm0, %v2366_v31 }
 0x2c2   : > { %5075 = vmatpush.xpose.msk.msrb.mxu2 %vm10591_vm0, %v2842_v41 }
 0x2c3   : > { %5138 = vmatpush.xpose.msk.msra.mxu1 %vm10591_vm0, %v3631_v26  ;;  %v10891_v26 = vld [vmem:[#allocation120_spill] sm:$0xff] }
 0x2c4   : > { %3576 = vrot.lane.b32.xlu2 %v6782_v63, %s6233_s17 }
 0x2c5   : > { %5014 = vmatpush.xpose.msk.msra.mxu3 %vm10591_vm0, %v7554_v13  ;;  %5041 = vmatpush.xpose.msk.msra.mxu0 %vm10591_vm0, %v2364_v32 }
 0x2c6   : > { %5076 = vmatpush.xpose.msk.msrb.mxu2 %vm10591_vm0, %v7628_v55  ;;  %3142 = vrot.lane.b32.xlu1 %v6981_v10, %s10567_s20  ;;  %v3627_v7 = vpop.permute.xlu2 %3626 }
 0x2c7   : > { %3148 = vrot.lane.b32.xlu0 %v10859_v60, %s10567_s20  ;;  %v3619_v53 = vpop.permute.xlu1 %3618 }
 0x2c8   : > { %v3629_v41 = vpop.permute.xlu0 %3628 }
 0x2c9   : > { %5015 = vmatpush.xpose.msk.msra.mxu3 %vm10591_vm0, %v7570_v17  ;;  %5042 = vmatpush.xpose.msk.msra.mxu0 %vm10591_vm0, %v2362_v21  ;;  %v10881_v21 = vld [vmem:[#allocation62_spill] sm:$0xff] }
 0x2ca   : > { %5077 = vmatpush.xpose.msk.msrb.mxu2 %vm10591_vm0, %v7584_v24  ;;  %5139 = vmatpush.xpose.msk.msra.mxu1 %vm10591_vm0, %v3629_v41 }
 0x2cc   : > { %3935 = vrot.lane.b32.xlu2 %v10859_v60, %s6233_s17 }
 0x2cd   : > { %5016 = vmatpush.xpose.msk.msra.mxu3 %vm10591_vm0, %v7560_v33  ;;  %5043 = vmatpush.xpose.msk.msra.mxu0 %vm10591_vm0, %v7608_v62  ;;  %v10877_v62 = vld [vmem:[#allocation114_spill] sm:$0xff] }
 0x2ce   : > { %5078 = vmatpush.xpose.msk.msrb.mxu2 %vm10591_vm0, %v7610_v23  ;;  %5140 = vmatpush.xpose.msk.msra.mxu1 %vm10591_vm0, %v3627_v7  ;;  %v7706_v10 = vpop.permute.xlu2 %3106  ;;  %v10893_v7 = vld [vmem:[#allocation83_spill] sm:$0xff] }
 0x2cf   : > { %3140 = vrot.lane.b32.xlu1 %v6988_v46, %s10567_s20  ;;  %3580 = vrot.lane.b32.xlu0 %v10834_v42, %s6233_s17  ;;  %v3615_v63 = vpop.permute.xlu1 %3614 }
 0x2d0   : > { %v3625_v55 = vpop.permute.xlu0 %3624 }
 0x2d1   : > { %5017 = vmatpush.xpose.msk.msra.mxu3 %vm10591_vm0, %v7506_v44  ;;  %5044 = vmatpush.xpose.msk.msra.mxu0 %vm10591_vm0, %v7596_v57  ;;  %v10866_v44 = vld [vmem:[#allocation116_spill] sm:$0xff] }
 0x2d2   : > { %5079 = vmatpush.xpose.msk.msrb.mxu2 %vm10591_vm0, %v7538_v39  ;;  %5141 = vmatpush.xpose.msk.msra.mxu1 %vm10591_vm0, %v3625_v55  ;;  %v10869_v39 = vld [vmem:[#allocation30_spill] sm:$0xff]  ;;  %v10896_v55 = vld [vmem:[#allocation123_spill] sm:$0xff] }
 0x2d4   : > { %3933 = vrot.lane.b32.xlu2 %v7089_v58, %s6233_s17 }
 0x2d5   : > { %5018 = vmatpush.xpose.msk.msra.mxu3 %vm10591_vm0, %v7510_v9  ;;  %5045 = vmatpush.xpose.msk.msra.mxu0 %vm10591_vm0, %v7582_v56  ;;  %v10874_v56 = vld [vmem:[#allocation113_spill] sm:$0xff] }
 0x2d6   : > { %5080 = vmatpush.xpose.msk.msrb.mxu2 %vm10591_vm0, %v7572_v54  ;;  %5142 = vmatpush.xpose.msk.msra.mxu1 %vm10591_vm0, %v3623_v1  ;;  %v3617_v24 = vpop.permute.xlu2 %3616  ;;  %v10865_v54 = vld [vmem:[#allocation74_spill] sm:$0xff] }
 0x2d7   : > { %3584 = vrot.lane.b32.xlu1 %v10842_v20, %s6233_s17  ;;  %3927 = vrot.lane.b32.xlu0 %v6988_v46, %s6233_s17  ;;  %v3611_v25 = vpop.permute.xlu1 %3610  ;;  %v10892_v1 = vld [vmem:[#allocation42_spill] sm:$0xff] }
 0x2d8   : > { %v3621_v42 = vpop.permute.xlu0 %3620 }
 0x2d9   : > { %5019 = vmatpush.xpose.msk.msra.mxu3 %vm10591_vm0, %v7512_v35  ;;  %5046 = vmatpush.xpose.msk.msra.mxu0 %vm10591_vm0, %v7598_v8  ;;  %v10875_v8 = vld [vmem:[#allocation85_spill] sm:$0xff] }
 0x2da   : > { %5081 = vmatpush.xpose.msk.msrb.mxu2 %vm10591_vm0, %v7594_v43  ;;  %5143 = vmatpush.xpose.msk.msra.mxu1 %vm10591_vm0, %v3621_v42  ;;  %v1455_v43 = vpop.f32.mrf.mxu2  ;;  %v7896_v42 = vpop.f32.mrf.mxu1 }
 0x2dc   : > { %3146 = vrot.lane.b32.xlu2 %v7089_v58, %s10567_s20  ;;  %v10860_v58 = vld [vmem:[#allocation99_spill] sm:$0xff] }
 0x2dd   : > { %5020 = vmatpush.xpose.msk.msra.mxu3 %vm10591_vm0, %v7424_v38  ;;  %5047 = vmatpush.xpose.msk.msra.mxu0 %vm10591_vm0, %v7522_v2  ;;  %v10867_v2 = vld [vmem:[#allocation111_spill] sm:$0xff] }
 0x2de   : > { %5082 = vmatpush.xpose.msk.msrb.mxu2 %vm10591_vm0, %v7526_v0  ;;  %5144 = vmatpush.xpose.msk.msra.mxu1 %vm10591_vm0, %v3619_v53  ;;  %v3613_v9 = vpop.permute.xlu2 %3612  ;;  %v10868_v0 = vld [vmem:[#allocation73_spill] sm:$0xff]  ;;  %v10894_v53 = vld [vmem:[#allocation104_spill] sm:$0xff] }
 0x2df   : > { %3897 = vrot.lane.b32.xlu1 %v6802_v11, %s6233_s17  ;;  %3925 = vrot.lane.b32.xlu0 %v6920_v15, %s6233_s17  ;;  %v3609_v20 = vpop.permute.xlu1 %3608 }
 0x2e0   : > { %v7752_v35 = vpop.permute.xlu0 %3108 }
 0x2e1   : > { %5021 = vmatpush.xpose.msk.msra.mxu3 %vm10591_vm0, %v7464_v49  ;;  %5048 = vmatpush.xpose.msk.msra.mxu0 %vm10591_vm0, %v7544_v37  ;;  %v10870_v37 = vld [vmem:[#allocation121_spill] sm:$0xff] }
 0x2e2   : > { %5083 = vmatpush.xpose.msk.msrb.mxu2 %vm10591_vm0, %v7490_v51  ;;  %5145 = vmatpush.xpose.msk.msra.mxu1 %vm10591_vm0, %v3617_v24  ;;  %v1458_v29 = vpop.f32.mrf.mxu2  ;;  %v10897_v24 = vld [vmem:[#allocation46_spill] sm:$0xff] }
 0x2e4   : > { %3144 = vrot.lane.b32.xlu2 %v7008_v12, %s10567_s20 }
 0x2e5   : > { %5022 = vmatpush.xpose.msk.msra.mxu3 %vm10591_vm0, %v7428_v45  ;;  %5049 = vmatpush.xpose.msk.msra.mxu0 %vm10591_vm0, %v7558_v3  ;;  %v10861_v45 = vld [vmem:[#allocation52_spill] sm:$0xff]  ;;  %v10872_v3 = vld [vmem:[#allocation70_spill] sm:$0xff] }
 0x2e6   : > { %5084 = vmatpush.xpose.msk.msrb.mxu2 %vm10591_vm0, %v7496_v16  ;;  %5146 = vmatpush.xpose.msk.msra.mxu1 %vm10591_vm0, %v3615_v63  ;;  %v7770_v49 = vpop.permute.xlu2 %3953  ;;  %v10863_v16 = vld [vmem:[#allocation118_spill] sm:$0xff] }
 0x2e7   : > { %3899 = vrot.lane.b32.xlu1 %v6859_v52, %s6233_s17  ;;  %3138 = vrot.lane.b32.xlu0 %v6920_v15, %s10567_s20  ;;  %v3607_v12 = vpop.permute.xlu1 %3606  ;;  %v10862_v15 = vld [vmem:[#allocation76_spill] sm:$0xff] }
 0x2e8   : > { %v7776_v46 = vpop.permute.xlu0 %3955 }
 0x2e9   : > { %5023 = vmatpush.xpose.msk.msra.mxu3 %vm10591_vm0, %v10860_v58  ;;  %5050 = vmatpush.xpose.msk.msra.mxu0 %vm10591_vm0, %v7528_v34 }
 0x2ea   : > { %5085 = vmatpush.xpose.msk.msrb.mxu2 %vm10591_vm0, %v7480_v36  ;;  %5147 = vmatpush.xpose.msk.msra.mxu1 %vm10591_vm0, %v3613_v9  ;;  %v10864_v36 = vld [vmem:[#allocation56_spill] sm:$0xff] }
 0x2eb   : > { %v10899_v9 = vld [vmem:[#allocation32_spill] sm:$0xff] }
 0x2ec   : > { %5024 = vmatmul.msk.f32.vlgmr.msra.gmra.mxu3 %vm10591_vm0, %v10861_v45  ;;  %3582 = vrot.lane.b32.xlu2 %v10839_v27, %s6233_s17  ;;  %v1419_v27 = vpop.f32.mrf.mxu0  ;;  %v1461_v45 = vpop.f32.mrf.mxu2 }
 0x2ed   : > { %5051 = vmatpush.xpose.msk.msra.mxu0 %vm10591_vm0, %v10862_v15 }
 0x2ee   : > { %5086 = vmatpush.xpose.msk.msrb.mxu2 %vm10591_vm0, %v10863_v16  ;;  %5148 = vmatpush.xpose.msk.msra.mxu1 %vm10591_vm0, %v3611_v25  ;;  %v7794_v34 = vpop.permute.xlu2 %3951  ;;  %v10903_v16 = vld [vmem:[#allocation119_spill] sm:$0xff] }
 0x2ef   : > { %3901 = vrot.lane.b32.xlu1 %v10864_v36, %s6233_s17  ;;  %3586 = vrot.lane.b32.xlu0 %v10865_v54, %s6233_s17  ;;  %v3605_v51 = vpop.permute.xlu1 %3604 }
 0x2f0   : > { %v3169_v38 = vpop.permute.xlu0 %3168 }
 0x2f1   : > { %5052 = vmatpush.xpose.msk.msra.mxu0 %vm10591_vm0, %v10866_v44  ;;  %5104 = vmatpush.xpose.msk.msrb.mxu3 %vm10591_vm0, %v3169_v38  ;;  %v7922_v44 = vpop.f32.mrf.mxu1 }
 0x2f2   : > { %5087 = vmatpush.xpose.msk.msrb.mxu2 %vm10591_vm0, %v10867_v2  ;;  %5149 = vmatpush.xpose.msk.msra.mxu1 %vm10591_vm0, %v3609_v20  ;;  %v10909_v2 = vld [vmem:[#allocation34_spill] sm:$0xff] }
 0x2f4   : > { %5025 = vmatmul.msk.f32.gmra.mxu3 %vm10591_vm0, %v10868_v0  ;;  %3893 = vrot.lane.b32.xlu2 %v10869_v39, %s6233_s17  ;;  %v7825_v57 = vpop.f32.mrf.mxu0 }
 0x2f5   : > { %5053 = vmatpush.xpose.msk.msra.mxu0 %vm10591_vm0, %v10870_v37  ;;  %v10911_v37 = vld [vmem:[#allocation41_spill] sm:$0xff] }
 0x2f6   : > { %5150 = vmatpush.xpose.msk.msra.mxu1 %vm10591_vm0, %v3607_v12  ;;  %v7813_v13 = vpop.permute.xlu2 %3949  ;;  %v10901_v12 = vld [vmem:[#allocation102_spill] sm:$0xff] }
 0x2f7   : > { %10871 = vst [vmem:[#allocation63_spill] sm:$0xff] %v7813_v13  ;;  %3903 = vrot.lane.b32.xlu1 %v10872_v3, %s6233_s17  ;;  %3110 = vrot.lane.b32.xlu0 %v6802_v11, %s10567_s20  ;;  %v7819_v33 = vpop.permute.xlu1 %3572  ;;  %v10876_v11 = vld [vmem:[#allocation35_spill] sm:$0xff] }
 0x2f8   : > { %10873 = vst [vmem:[#allocation92_spill] sm:$0xff] %v7819_v33  ;;  %v3167_v17 = vpop.permute.xlu0 %3166  ;;  %v8168_v33 = vld [vmem:[%s760_s27] ss:$0 sm:$0xff]  ;;  %s11006_s27 = smov 64  }
 0x2f9   : > { %5054 = vmatpush.xpose.msk.msra.mxu0 %vm10591_vm0, %v10874_v56  ;;  %5105 = vmatpush.xpose.msk.msrb.mxu3 %vm10591_vm0, %v3167_v17  ;;  %v10913_v17 = vld [vmem:[#allocation69_spill] sm:$0xff]  ;;  %vm1237_vm11 = vcmp.ne.f32.partialorder %v8168_v33, 0.0 }
 0x2fa   : > { %5151 = vmatpush.xpose.msk.msra.mxu1 %vm10591_vm0, %v3605_v51  ;;  %v10906_v51 = vld [vmem:[#allocation122_spill] sm:$0xff] }
 0x2fc   : > { %5026 = vmatmul.msk.f32.gmra.mxu3 %vm10591_vm0, %v10875_v8  ;;  %3895 = vrot.lane.b32.xlu2 %v10876_v11, %s6233_s17  ;;  %v10915_v8 = vld [vmem:[#allocation39_spill] sm:$0xff] }
 0x2fd   : > { %5055 = vmatpush.xpose.msk.msra.mxu0 %vm10591_vm0, %v10877_v62  ;;  %v10916_v62 = vld [vmem:[#allocation44_spill] sm:$0xff] }
 0x2fe   : > { %v7833_v23 = vpop.permute.xlu2 %3947 }
 0x2ff   : > { %10878 = vst [vmem:[#allocation99_spill] sm:$0xff] %v7833_v23  ;;  %3905 = vrot.lane.b32.xlu1 %v10879_v5, %s6233_s17  ;;  %3112 = vrot.lane.b32.xlu0 %v6859_v52, %s10567_s20  ;;  %v7839_v19 = vpop.permute.xlu1 %3943  ;;  %v1425_v52 = vpop.f32.mrf.mxu0 }
 0x300   : > { %10880 = vst [vmem:[#allocation52_spill] sm:$0xff] %v7839_v19  ;;  %5056 = vmatmul.msk.f32.vlgmr.msra.gmra.mxu0 %vm10591_vm0, %v10881_v21  ;;  %v3165_v47 = vpop.permute.xlu0 %3164 }
 0x301   : > { %5106 = vmatpush.xpose.msk.msrb.mxu3 %vm10591_vm0, %v3165_v47  ;;  %v10917_v47 = vld [vmem:[#allocation49_spill] sm:$0xff] }
 0x304   : > { %5027 = vmatmul.msk.f32.gmra.mxu3 %vm10591_vm0, %v10882_v14  ;;  %3588 = vrot.lane.b32.xlu2 %v10883_v40, %s6233_s17  ;;  %v10918_v40 = vld [vmem:[#allocation75_spill] sm:$0xff] }
 0x306   : > { %v7856_v30 = vpop.permute.xlu2 %3945 }
 0x307   : > { %10885 = vst [vmem:[#allocation76_spill] sm:$0xff] %v7856_v30  ;;  %1521 = vrot.lane.b32.xlu1 %v1458_v29, %s6234_s21  ;;  %3114 = vrot.lane.b32.xlu0 %v10864_v36, %s10567_s20  ;;  %v7861_v32 = vpop.permute.xlu1 %3941  ;;  %v1428_v6 = vpop.f32.mrf.mxu0 }
 0x308   : > { %10886 = vst [vmem:[#allocation118_spill] sm:$0xff] %v7861_v32  ;;  %5057 = vmatmul.msk.f32.gmra.mxu0 %vm10591_vm0, %v10887_v22  ;;  %v3163_v4 = vpop.permute.xlu0 %3162 }
 0x309   : > { %5107 = vmatpush.xpose.msk.msrb.mxu3 %vm10591_vm0, %v3163_v4  ;;  %v10919_v4 = vld [vmem:[#allocation64_spill] sm:$0xff] }
 0x30c   : > { %5028 = vmatmul.msk.f32.gmra.mxu3 %vm10591_vm0, %v10888_v61  ;;  %3590 = vrot.lane.b32.xlu2 %v10889_v28, %s6233_s17 }
 0x30e   : > { %v3159_v18 = vpop.permute.xlu2 %3158 }
 0x30f   : > { %1477 = vrot.lane.b32.xlu1 %v1425_v52, %s10570_s4  ;;  %3116 = vrot.lane.b32.xlu0 %v10872_v3, %s10567_s20  ;;  %v3155_v48 = vpop.permute.xlu1 %3154  ;;  %v1431_v63 = vpop.f32.mrf.mxu0 }
 0x310   : > { %5058 = vmatmul.msk.f32.gmra.mxu0 %vm10591_vm0, %v10890_v59  ;;  %v3161_v50 = vpop.permute.xlu0 %3160  ;;  %v1464_v52 = vpop.f32.mrf.mxu2  ;;  %v10923_v59 = vld [vmem:[#allocation48_spill] sm:$0xff] }
 0x311   : > { %5108 = vmatpush.xpose.msk.msrb.mxu3 %vm10591_vm0, %v3161_v50 }
 0x314   : > { %5029 = vmatmul.msk.f32.gmra.mxu3 %vm10591_vm0, %v10891_v26  ;;  %3592 = vrot.lane.b32.xlu2 %v10892_v1, %s6233_s17  ;;  %v10924_v26 = vld [vmem:[#allocation82_spill] sm:$0xff] }
 0x315   : > { %5109 = vmatpush.xpose.msk.msrb.mxu3 %vm10591_vm0, %v3159_v18 }
 0x316   : > { %v3157_v31 = vpop.permute.xlu2 %3156 }
 0x317   : > { %3907 = vrot.lane.b32.xlu1 %v10893_v7, %s6233_s17  ;;  %1469 = vrot.lane.b32.xlu0 %v1419_v27, %s6236_s26  ;;  %v3153_v60 = vpop.permute.xlu1 %3152  ;;  %v1434_v15 = vpop.f32.mrf.mxu0  ;;  %v10908_v27 = vld [vmem:[#allocation61_spill] sm:$0xff] }
 0x318   : > { %5059 = vmatmul.msk.f32.gmra.mxu0 %vm10591_vm0, %v10894_v53  ;;  %v7886_v41 = vpop.permute.xlu0 %3574  ;;  %v10928_v53 = vld [vmem:[#allocation45_spill] sm:$0xff] }
 0x319   : > { %10895 = vst [vmem:[#allocation56_spill] sm:$0xff] %v7886_v41  ;;  %5110 = vmatpush.xpose.msk.msrb.mxu3 %vm10591_vm0, %v3157_v31 }
 0x31c   : > { %5030 = vmatmul.msk.f32.gmra.mxu3 %vm10591_vm0, %v10896_v55  ;;  %3594 = vrot.lane.b32.xlu2 %v10897_v24, %s6233_s17  ;;  %v10930_v55 = vld [vmem:[#allocation40_spill] sm:$0xff] }
 0x31d   : > { %5111 = vmatpush.xpose.msk.msrb.mxu3 %vm10591_vm0, %v3155_v48  ;;  %v10921_v48 = vld [vmem:[#allocation100_spill] sm:$0xff] }
 0x31e   : > { %v7894_v25 = vpop.permute.xlu2 %3576  ;;  %v10931_v24 = vld [vmem:[#allocation80_spill] sm:$0xff] }
 0x31f   : > { %10898 = vst [vmem:[#allocation74_spill] sm:$0xff] %v7894_v25  ;;  %3909 = vrot.lane.b32.xlu1 %v10899_v9, %s6233_s17  ;;  %1517 = vrot.lane.b32.xlu0 %v1455_v43, %s6237_s8  ;;  %v7901_v20 = vpop.permute.xlu1 %3578  ;;  %v7928_v0 = vpop.f32.mrf.mxu0 }
 0x320   : > { %10900 = vst [vmem:[#allocation116_spill] sm:$0xff] %v7901_v20  ;;  %5060 = vmatmul.msk.f32.gmra.mxu0 %vm10591_vm0, %v10901_v12  ;;  %v7905_v58 = vpop.permute.xlu0 %3939  ;;  %v7941_v43 = vpop.f32.mrf.mxu1 }
 0x321   : > { %10902 = vst [vmem:[#allocation111_spill] sm:$0xff] %v7905_v58  ;;  %5112 = vmatpush.xpose.msk.msrb.mxu3 %vm10591_vm0, %v3153_v60  ;;  %v10927_v60 = vld [vmem:[#allocation68_spill] sm:$0xff] }
 0x324   : > { %5031 = vmatmul.msk.f32.gmra.mxu3 %vm10591_vm0, %v10903_v16  ;;  %1525 = vrot.lane.b32.xlu2 %v1461_v45, %s10565_s14  ;;  %v10935_v16 = vld [vmem:[#allocation53_spill] sm:$0xff]  ;;  %s6248_s14 = smov 329  }
 0x326   : > { %v7911_v36 = vpop.permute.xlu2 %3935 }
 0x327   : > { %10904 = vst [vmem:[#allocation73_spill] sm:$0xff] %v7911_v36  ;;  %1481 = vrot.lane.b32.xlu1 %v1428_v6, %s6239_s9  ;;  %1473 = vrot.lane.b32.xlu0 %v7825_v57, %s10572_s6  ;;  %v10914_v57 = vld [vmem:[#allocation78_spill] sm:$0xff] }
 0x328   : > { %v7916_v54 = vpop.permute.xlu1 %3931  ;;  %5061 = vmatmul.msk.f32.gmra.mxu0 %vm10591_vm0, %v10906_v51  ;;  %v7920_v38 = vpop.permute.xlu0 %3937 }
 0x329   : > { %10905 = vst [vmem:[#allocation30_spill] sm:$0xff] %v7916_v54  ;;  %v7957_v29 = vpop.f32.mrf.mxu1 }
 0x32a   : > { %10907 = vst [vmem:[#allocation121_spill] sm:$0xff] %v7920_v38 }
 0x32c   : > { %5032 = vmatmul.msk.f32.gmra.mxu3 %vm10591_vm0, %v10908_v27  ;;  %3596 = vrot.lane.b32.xlu2 %v10909_v2, %s6233_s17  ;;  %v10937_v2 = vld [vmem:[#allocation103_spill] sm:$0xff] }
 0x32e   : > { %v7930_v39 = vpop.permute.xlu2 %3933 }
 0x32f   : > { %10910 = vst [vmem:[#allocation70_spill] sm:$0xff] %v7930_v39  ;;  %3911 = vrot.lane.b32.xlu1 %v10911_v37, %s6233_s17  ;;  %3118 = vrot.lane.b32.xlu0 %v10879_v5, %s10567_s20  ;;  %v1440_v5 = vpop.f32.mrf.mxu0 }
 0x330   : > { %v7936_v3 = vpop.permute.xlu1 %3929  ;;  %5062 = vmatmul.msk.f32.gmra.mxu0 %vm10591_vm0, %v10913_v17 }
 0x331   : > { %10912 = vst [vmem:[#allocation113_spill] sm:$0xff] %v7936_v3  ;;  %v3151_v56 = vpop.permute.xlu0 %3150  ;;  %v7977_v50 = vpop.f32.mrf.mxu1 }
 0x332   : > { %5113 = vmatpush.xpose.msk.msrb.mxu3 %vm10591_vm0, %v3151_v56 }
 0x334   : > { %5033 = vmatmul.msk.f32.gmra.mxu3 %vm10591_vm0, %v10914_v57  ;;  %3598 = vrot.lane.b32.xlu2 %v10915_v8, %s6233_s17  ;;  %v10939_v57 = vld [vmem:[#allocation96_spill] sm:$0xff] }
 0x336   : > { %v3147_v11 = vpop.permute.xlu2 %3146 }
 0x337   : > { %3913 = vrot.lane.b32.xlu1 %v10916_v62, %s6233_s17  ;;  %3120 = vrot.lane.b32.xlu0 %v10893_v7, %s10567_s20  ;;  %v1443_v18 = vpop.f32.mrf.mxu0 }
 0x338   : > { %v3143_v21 = vpop.permute.xlu1 %3142  ;;  %5063 = vmatmul.msk.f32.gmra.mxu0 %vm10591_vm0, %v10917_v47 }
 0x339   : > { %v3149_v14 = vpop.permute.xlu0 %3148  ;;  %v8002_v45 = vpop.f32.mrf.mxu1 }
 0x33a   : > { %5114 = vmatpush.xpose.msk.msrb.mxu3 %vm10591_vm0, %v3149_v14 }
 0x33c   : > { %5034 = vmatmul.msk.f32.gmra.mxu3 %vm10591_vm0, %v10918_v40  ;;  %1485 = vrot.lane.b32.xlu2 %v1431_v63, %s6241_s29  ;;  %v10946_v40 = vld [vmem:[#allocation33_spill] sm:$0xff] }
 0x33e   : > { %5115 = vmatpush.xpose.msk.msrb.mxu3 %vm10591_vm0, %v3147_v11  ;;  %v3145_v22 = vpop.permute.xlu2 %3144 }
 0x33f   : > { %1497 = vrot.lane.b32.xlu1 %v1440_v5, %s6242_s18  ;;  %1529 = vrot.lane.b32.xlu0 %v1464_v52, %s6243_s13  ;;  %v1446_v7 = vpop.f32.mrf.mxu0  ;;  %v10947_v52 = vld [vmem:[#allocation81_spill] sm:$0xff] }
 0x340   : > { %5064 = vmatmul.msk.f32.gmra.mxu0 %vm10591_vm0, %v10919_v4 }
 0x341   : > { %v3141_v61 = vpop.permute.xlu1 %3140  ;;  %v7964_v28 = vpop.permute.xlu0 %3580 }
 0x342   : > { %10920 = vst [vmem:[#allocation85_spill] sm:$0xff] %v7964_v28  ;;  %5116 = vmatpush.xpose.msk.msrb.mxu3 %vm10591_vm0, %v3145_v22  ;;  %v8018_v56 = vpop.f32.mrf.mxu1 }
 0x344   : > { %5035 = vmatmul.msk.f32.gmra.mxu3 %vm10591_vm0, %v10921_v48  ;;  %1489 = vrot.lane.b32.xlu2 %v1434_v15, %s6244_s7  ;;  %v10934_v15 = vld [vmem:[#allocation66_spill] sm:$0xff]  ;;  %v10950_v48 = vld [vmem:[#allocation91_spill] sm:$0xff] }
 0x346   : > { %5117 = vmatpush.xpose.msk.msrb.mxu3 %vm10591_vm0, %v3143_v21  ;;  %v7971_v6 = vpop.permute.xlu2 %3582  ;;  %v10944_v21 = vld [vmem:[#allocation112_spill] sm:$0xff] }
 0x347   : > { %10922 = vst [vmem:[#allocation35_spill] sm:$0xff] %v7971_v6  ;;  %3128 = vrot.lane.b32.xlu1 %v10923_v59, %s10567_s20  ;;  %3122 = vrot.lane.b32.xlu0 %v10899_v9, %s10567_s20  ;;  %v1449_v51 = vpop.f32.mrf.mxu0 }
 0x348   : > { %5065 = vmatmul.msk.f32.gmra.mxu0 %vm10591_vm0, %v10924_v26 }
 0x349   : > { %v7981_v1 = vpop.permute.xlu1 %3584  ;;  %v7983_v31 = vpop.permute.xlu0 %3927 }
 0x34a   : > { %10925 = vst [vmem:[#allocation114_spill] sm:$0xff] %v7981_v1  ;;  %5118 = vmatpush.xpose.msk.msrb.mxu3 %vm10591_vm0, %v3141_v61  ;;  %v8037_v47 = vpop.f32.mrf.mxu1 }
 0x34b   : > { %10926 = vst [vmem:[#allocation79_spill] sm:$0xff] %v7983_v31 }
 0x34c   : > { %5036 = vmatmul.msk.f32.gmra.mxu3 %vm10591_vm0, %v10927_v60  ;;  %3600 = vrot.lane.b32.xlu2 %v10928_v53, %s6233_s17  ;;  %v10953_v53 = vld [vmem:[#allocation89_spill] sm:$0xff] }
 0x34e   : > { %v7990_v63 = vpop.permute.xlu2 %3893 }
 0x34f   : > { %10929 = vst [vmem:[#allocation62_spill] sm:$0xff] %v7990_v63  ;;  %3919 = vrot.lane.b32.xlu1 %v10930_v55, %s6233_s17  ;;  %3124 = vrot.lane.b32.xlu0 %v10911_v37, %s10567_s20 }
 0x350   : > { %5066 = vmatmul.msk.f32.gmra.mxu0 %vm10591_vm0, %v10931_v24 }
 0x351   : > { %v7998_v9 = vpop.permute.xlu1 %3897  ;;  %v8000_v12 = vpop.permute.xlu0 %3925 }
 0x352   : > { %10932 = vst [vmem:[#allocation101_spill] sm:$0xff] %v7998_v9 }
 0x353   : > { %10933 = vst [vmem:[#allocation31_spill] sm:$0xff] %v8000_v12 }
 0x354   : > { %5037 = vmatmul.msk.f32.gmra.mxu3 %vm10591_vm0, %v10934_v15  ;;  %3602 = vrot.lane.b32.xlu2 %v10935_v16, %s6233_s17 }
 0x356   : > { %v8008_v27 = vpop.permute.xlu2 %3895 }
 0x357   : > { %10936 = vst [vmem:[#allocation57_spill] sm:$0xff] %v8008_v27  ;;  %1509 = vrot.lane.b32.xlu1 %v1449_v51, %s6245_s16  ;;  %1493 = vrot.lane.b32.xlu0 %v7928_v0, %s6246_s1  ;;  %v10941_v0 = vld [vmem:[#allocation54_spill] sm:$0xff] }
 0x358   : > { %5067 = vmatmul.msk.f32.gmra.mxu0 %vm10591_vm0, %v10937_v2 }
 0x359   : > { %v8015_v37 = vpop.permute.xlu1 %3899  ;;  %v3139_v17 = vpop.permute.xlu0 %3138 }
 0x35a   : > { %10938 = vst [vmem:[#allocation95_spill] sm:$0xff] %v8015_v37  ;;  %5119 = vmatpush.xpose.msk.msrb.mxu3 %vm10591_vm0, %v3139_v17 }
 0x35c   : > { %5038 = vmatmul.msk.f32.gmra.mxu3 %vm10591_vm0, %v10939_v57  ;;  %1501 = vrot.lane.b32.xlu2 %v1443_v18, %s6247_s0  ;;  %v8054_v18 = vpop.f32.mrf.mxu1 }
 0x35e   : > { %v8023_v8 = vpop.permute.xlu2 %3588 }
 0x35f   : > { %10940 = vst [vmem:[#allocation38_spill] sm:$0xff] %v8023_v8  ;;  %3915 = vrot.lane.b32.xlu0 %v10923_v59, %s6233_s17 }
 0x360   : > { %5068 = vmatmul.msk.f32.gmra.mxu0 %vm10591_vm0, %v10941_v0 }
 0x361   : > { %v8029_v11 = vpop.permute.xlu1 %3901  ;;  %v8031_v5 = vpop.permute.xlu0 %3586 }
 0x362   : > { %10942 = vst [vmem:[#allocation90_spill] sm:$0xff] %v8029_v11 }
 0x363   : > { %10943 = vst [vmem:[#allocation120_spill] sm:$0xff] %v8031_v5 }
 0x364   : > { %5039 = vmatmul.msk.f32.gmra.mxu3 %vm10591_vm0, %v10944_v21  ;;  %3126 = vrot.lane.b32.xlu2 %v10916_v62, %s10567_s20  ;;  %v8071_v16 = vpop.f32.mrf.mxu1  ;;  %v1238_v21 = vlaneseq }
 0x366   : > { %v8039_v14 = vpop.permute.xlu2 %3590 }
 0x367   : > { %10945 = vst [vmem:[#allocation42_spill] sm:$0xff] %v8039_v14  ;;  %3130 = vrot.lane.b32.xlu0 %v10946_v40, %s10567_s20  ;;  %s6249_s20 = smov 345  }
 0x368   : > { %5069 = vmatmul.msk.f32.gmra.mxu0 %vm10591_vm0, %v10947_v52 }
 0x369   : > { %v8045_v22 = vpop.permute.xlu1 %3903  ;;  %v3111_v4 = vpop.permute.xlu0 %3110 }
 0x36a   : > { %10948 = vst [vmem:[#allocation83_spill] sm:$0xff] %v8045_v22 }
 0x36c   : > { %5120 = vmatmul.msk.f32.vlgmr.msrb.gmra.mxu3 %vm10591_vm0, %v7706_v10  ;;  %3917 = vrot.lane.b32.xlu2 %v10946_v40, %s6233_s17  ;;  %v1452_v10 = vpop.f32.mrf.mxu0  ;;  %v8079_v57 = vpop.f32.mrf.mxu1 }
 0x36e   : > { %v8051_v62 = vpop.permute.xlu2 %3592 }
 0x36f   : > { %10949 = vst [vmem:[#allocation104_spill] sm:$0xff] %v8051_v62  ;;  %1505 = vrot.lane.b32.xlu0 %v1446_v7, %s6248_s14  ;;  %v2127_v61 = vpop.f32.mrf.mxu3 }
 0x370   : > { %2177 = vrot.lane.b32.xlu1 %v2127_v61, %s6236_s26  ;;  %5070 = vmatmul.msk.f32.gmra.mxu0 %vm10591_vm0, %v10950_v48 }
 0x371   : > { %v8059_v59 = vpop.permute.xlu1 %3905  ;;  %v3113_v26 = vpop.permute.xlu0 %3112 }
 0x372   : > { %10951 = vst [vmem:[#allocation123_spill] sm:$0xff] %v8059_v59 }
 0x374   : > { %5121 = vmatmul.msk.f32.gmra.mxu3 %vm10591_vm0, %v7752_v35  ;;  %1513 = vrot.lane.b32.xlu2 %v1452_v10, %s6249_s20  ;;  %v8094_v48 = vpop.f32.mrf.mxu1 }
 0x376   : > { %v8064_v60 = vpop.permute.xlu2 %3594 }
 0x377   : > { %10952 = vst [vmem:[#allocation46_spill] sm:$0xff] %v8064_v60  ;;  %v2130_v7 = vpop.f32.mrf.mxu3  ;;  %v8107_v60 = vand.u32 127, %v1238_v21 }
 0x378   : > { %2181 = vrot.lane.b32.xlu0 %v2130_v7, %s10572_s6  ;;  %5071 = vmatmul.msk.f32.gmra.mxu0 %vm10591_vm0, %v10953_v53  ;;  %s11144_s6 = smov 273  }
 0x379   : > { %v8069_v24 = vpop.permute.xlu1 %1521  ;;  %v3115_v15 = vpop.permute.xlu0 %3114 }
 0x37c   : > { %5122 = vmatmul.msk.f32.gmra.mxu3 %vm10591_vm0, %v3111_v4  ;;  %v8088_v4 = vshrl.u32 %v1238_v21, 7  ;;  %v1745_v5 = vpop.f32.mrf.mxu1 }
 0x37e   : > { %v8074_v51 = vpop.permute.xlu2 %1525  ;;  %v8092_v61 = vadd.s32 96, %v8088_v4  ;;  %vm1547_vm1 = vcmp.lt.s32.totalorder %v8088_v4, 7  ;;  %v8124_v21 = vadd.s32 1, %v8088_v4  ;;  %v8127_v14 = vadd.s32 16, %v8088_v4 }
 0x37f   : > { %v2133_v35 = vpop.f32.mrf.mxu3  ;;  %vm1257_vm6 = vcmp.le.s32.totalorder %v8107_v60, %v8088_v4  ;;  %v10967_v59 = vrot.slane %v8074_v51, 1  ;;  %v10978_v63 = vrot.slane %v8074_v51, 1  ;;  %v8478_v58 = vadd.s32 64, %v8088_v4 }
 0x380   : > { %2185 = vrot.lane.b32.xlu2 %v2133_v35, %s10570_s4  ;;  %10956 = vst [vmem:[#allocation119_spill] sm:$0xff] %v8092_v61  ;;  %vm10575_vm3 = vcmp.le.s32.totalorder %v8107_v60, %v8092_v61  ;;  %vm1289_vm4 = vcmp.eq.s32.totalorder %v8107_v60, %v8124_v21  ;;  %v8148_v25 = vadd.s32 1, %v8127_v14  ;;  %vm10655_vm12 = vcmp.le.s32.totalorder %v8107_v60, %v8127_v14  ;;  %s11141_s4 = smov 265  }
 0x381   : > { %v8077_v2 = vpop.permute.xlu1 %1477  ;;  %v3117_v17 = vpop.permute.xlu0 %3116  ;;  %10962 = vst [vmem:[#allocation78_spill] sm:$0xff] %v8124_v21 }
 0x382   : > { %10963 = vst [vmem:[#allocation39_spill] sm:$0xff] %v8127_v14  ;;  %v1533_v1 = vrot.slane %v8077_v2, 1  ;;  %vm10656_vm8 = vcmp.eq.s32.totalorder %v8107_v60, %v8148_v25 }
 0x383   : > { %10966 = vst [vmem:[#allocation75_spill] sm:$0xff] %v8148_v25 }
 0x384   : > { %5123 = vmatmul.msk.f32.gmra.mxu3 %vm10591_vm0, %v3113_v26  ;;  %v8101_v26 = vadd.s32 1, %v8092_v61  ;;  %10992 = vst [vmem:[#allocation127_spill] sm:$0xff] %v8478_v58 }
 0x386   : > { %v8082_v0 = vpop.permute.xlu2 %3596  ;;  %10959 = vst [vmem:[#allocation34_spill] sm:$0xff] %v8101_v26  ;;  %vm10578_vm2 = vcmp.eq.s32.totalorder %v8107_v60, %v8101_v26 }
 0x387   : > { %10954 = vst [vmem:[#allocation32_spill] sm:$0xff] %v8082_v0  ;;  %v1544_v0 = vrot.slane %v8069_v24, 1 }
 0x389   : > { %v8084_v40 = vpop.permute.xlu1 %3907  ;;  %v8086_v52 = vpop.permute.xlu0 %1469  ;;  %v1549_v22 = vsel %vm1547_vm1, %v1544_v0, %v10967_v59 }
 0x38a   : > { %10955 = vst [vmem:[#allocation102_spill] sm:$0xff] %v8084_v40  ;;  %v10574_v41 = vrot.slane %v8086_v52, 1  ;;  %v10977_v9 = vrot.slane %v8086_v52, 1 }
 0x38c   : > { %5124 = vmatmul.msk.f32.gmra.mxu3 %vm10591_vm0, %v3115_v15  ;;  %v8110_v15 = vadd.s32 8, %v8088_v4 }
 0x38e   : > { %v8096_v10 = vpop.permute.xlu2 %3598  ;;  %10960 = vst [vmem:[#allocation41_spill] sm:$0xff] %v8110_v15  ;;  %vm1258_vm9 = vcmp.le.s32.totalorder %v8107_v60, %v8110_v15 }
 0x38f   : > { %10957 = vst [vmem:[#allocation122_spill] sm:$0xff] %v8096_v10  ;;  %v8115_v10 = vadd.s32 104, %v8088_v4 }
 0x391   : > { %v8098_v7 = vpop.permute.xlu1 %3909  ;;  %v8103_v53 = vpop.permute.xlu0 %1517  ;;  %10961 = vst [vmem:[#allocation69_spill] sm:$0xff] %v8115_v10  ;;  %v8141_v6 = vadd.s32 1, %v8115_v10  ;;  %vm10589_vm10 = vcmp.le.s32.totalorder %v8107_v60, %v8115_v10 }
 0x392   : > { %10958 = vst [vmem:[#allocation61_spill] sm:$0xff] %v8098_v7  ;;  %v10569_v35 = vrot.slane %v8103_v53, 1 }
 0x393   : > { %10965 = vst [vmem:[#allocation49_spill] sm:$0xff] %v8141_v6  ;;  %vm10590_vm7 = vcmp.eq.s32.totalorder %v8107_v60, %v8141_v6 }
 0x394   : > { %5125 = vmatmul.msk.f32.gmra.mxu3 %vm10591_vm0, %v3117_v17  ;;  %v1550_v62 = vsel %vm1547_vm1, %v10569_v35, %v1544_v0  ;;  %v8132_v17 = vadd.s32 1, %v8110_v15 }
 0x395   : > { %v1576_v35 = vsel %vm10578_vm2, 0.0, %v1550_v62 }
 0x396   : > { %v8129_v8 = vpop.permute.xlu2 %1485  ;;  %10964 = vst [vmem:[#allocation44_spill] sm:$0xff] %v8132_v17  ;;  %v1592_v62 = vsel %vm10575_vm3, %v8103_v53, %v1576_v35  ;;  %vm10621_vm5 = vcmp.eq.s32.totalorder %v8107_v60, %v8132_v17 }
 0x397   : > { %v1746_v0 = vadd.f32 %v1745_v5, %v1592_v62 }
 0x399   : > { %v8143_v28 = vpop.permute.xlu1 %1481  ;;  %v1474_v20 = vpop.permute.xlu0 %1473  ;;  %v8223_v62 = vsel %vm1237_vm11, -1e+09, %v1746_v0 }
 0x39a   : > { %v1532_v7 = vrot.slane %v1474_v20, 1  ;;  %v10968_v37 = vrot.slane %v8143_v28, 1 }
 0x39c   : > { %v1561_v40 = vsel %vm1547_vm1, %v1532_v7, %v1533_v1  ;;  %v1562_v35 = vsel %vm1547_vm1, %v10574_v41, %v1532_v7  ;;  %v1560_v7 = vsel %vm1547_vm1, %v1533_v1, %v10968_v37  ;;  %v1577_v1 = vsel %vm10590_vm7, 0.0, %v1549_v22  ;;  %v1748_v22 = vpop.f32.mrf.mxu1 }
 0x39d   : > { %v1564_v11 = vsel %vm1289_vm4, 0.0, %v1562_v35  ;;  %v1565_v41 = vsel %vm10621_vm5, 0.0, %v1561_v40  ;;  %v1566_v37 = vsel %vm10656_vm8, 0.0, %v1560_v7 }
 0x39e   : > { %v1580_v59 = vsel %vm1257_vm6, %v8086_v52, %v1564_v11  ;;  %v8213_v11 = vpop.permute.xlu2 %1489 }
 0x39f   : > { %v1710_v35 = vadd.f32 %v7896_v42, %v1580_v59  ;;  %v1581_v42 = vsel %vm1258_vm9, %v1474_v20, %v1565_v41  ;;  %v1593_v41 = vsel %vm10589_vm10, %v8069_v24, %v1577_v1  ;;  %v1582_v20 = vsel %vm10655_vm12, %v8077_v2, %v1566_v37 }
 0x3a0   : > { %v1713_v7 = vadd.f32 %v7922_v44, %v1581_v42  ;;  %v1749_v59 = vadd.f32 %v1748_v22, %v1593_v41  ;;  %v8255_v2 = vadd.s32 112, %v8088_v4  ;;  %v2136_v42 = vpop.f32.mrf.mxu3  ;;  %v8261_v22 = vadd.s32 24, %v8088_v4 }
 0x3a1   : > { %v3119_v5 = vpop.permute.xlu0 %3118  ;;  %v8217_v40 = vsel %vm1237_vm11, -1e+09, %v1710_v35  ;;  %v1716_v35 = vadd.f32 %v7941_v43, %v1582_v20  ;;  %v8252_v43 = vadd.s32 120, %v8088_v4 }
 0x3a2   : > { %5126 = vmatmul.msk.f32.gmra.mxu3 %vm10591_vm0, %v3119_v5  ;;  %1773 = vmax.xlane.f32.xlu1 %v8217_v40  ;;  %v8238_v0 = vsel %vm1237_vm11, -1e+09, %v1713_v7  ;;  %v8243_v24 = vsel %vm1237_vm11, -1e+09, %v1749_v59  ;;  %10970 = vst [vmem:[#allocation100_spill] sm:$0xff] %v8255_v2  ;;  %v8267_v20 = vadd.s32 1, %v8255_v2  ;;  %vm10586_vm3 = vcmp.le.s32.totalorder %v8107_v60, %v8255_v2 }
 0x3a3   : > { %1797 = vmax.xlane.f32.xlu0 %v8223_v62  ;;  %v8249_v44 = vsel %vm1237_vm11, -1e+09, %v1716_v35  ;;  %10969 = vst [vmem:[#allocation64_spill] sm:$0xff] %v8252_v43  ;;  %v8264_v41 = vadd.s32 1, %v8252_v43  ;;  %v1535_v7 = vrot.slane %v8129_v8, 1  ;;  %v8271_v35 = vadd.s32 1, %v8261_v22 }
 0x3a4   : > { %v1751_v37 = vpop.f32.mrf.mxu1  ;;  %10972 = vst [vmem:[#allocation82_spill] sm:$0xff] %v8261_v22  ;;  %vm10581_vm14 = vcmp.eq.s32.totalorder %v8107_v60, %v8267_v20  ;;  %vm10587_vm15 = vcmp.le.s32.totalorder %v8107_v60, %v8252_v43 }
 0x3a5   : > { %10973 = vst [vmem:[#allocation68_spill] sm:$0xff] %v8264_v41  ;;  %vm10588_vm13 = vcmp.eq.s32.totalorder %v8107_v60, %v8264_v41  ;;  %vm1292_vm2 = vcmp.eq.s32.totalorder %v8107_v60, %v8271_v35 }
 0x3a6   : > { %v8257_v1 = vpop.permute.xlu2 %3600  ;;  %10974 = vst [vmem:[#allocation45_spill] sm:$0xff] %v8267_v20 }
 0x3a7   : > { %10971 = vst [vmem:[#allocation48_spill] sm:$0xff] %v8257_v1  ;;  %v8277_v1 = vpop.permute.xlu1 %3911 }
 0x3a8   : > { %10975 = vst [vmem:[#allocation40_spill] sm:$0xff] %v8271_v35 }
 0x3a9   : > { %v3121_v5 = vpop.permute.xlu0 %3120  ;;  %1775 = vmax.xlane.f32.xlu2 %v8238_v0  ;;  %10976 = vst [vmem:[#allocation80_spill] sm:$0xff] %v8277_v1 }
 0x3aa   : > { %5127 = vmatmul.msk.f32.gmra.mxu3 %vm10591_vm0, %v3121_v5  ;;  %1799 = vmax.xlane.f32.xlu1 %v8243_v24 }
 0x3ab   : > { %1777 = vmax.xlane.f32.xlu0 %v8249_v44 }
 0x3ac   : > { %v1754_v26 = vpop.f32.mrf.mxu1 }
 0x3ae   : > { %v8291_v31 = vpop.permute.xlu2 %3602 }
 0x3af   : > { %10979 = vst [vmem:[#allocation66_spill] sm:$0xff] %v8291_v31 }
 0x3b1   : > { %v1530_v59 = vpop.permute.xlu0 %1529 }
 0x3b2   : > { %v1546_v5 = vrot.slane %v1530_v59, 1 }
 0x3b4   : > { %v1563_v27 = vsel %vm1547_vm1, %v1546_v5, %v10977_v9  ;;  %v1548_v12 = vsel %vm1547_vm1, %v10978_v63, %v1546_v5  ;;  %v10980_v9 = vrot.slane %v8143_v28, 1  ;;  %v2139_v5 = vpop.f32.mrf.mxu3 }
 0x3b5   : > { %v1579_v1 = vsel %vm10588_vm13, 0.0, %v1563_v27  ;;  %v1578_v61 = vsel %vm10581_vm14, 0.0, %v1548_v12  ;;  %vm1260_vm14 = vcmp.le.s32.totalorder %v8107_v60, %v8261_v22 }
 0x3b6   : > { %v1559_v52 = vsel %vm1547_vm1, %v10980_v9, %v1535_v7  ;;  %v1595_v63 = vsel %vm10587_vm15, %v1530_v59, %v1579_v1  ;;  %v1594_v27 = vsel %vm10586_vm3, %v8074_v51, %v1578_v61  ;;  %v8332_v61 = vpop.permute.xlu1 %3913 }
 0x3b7   : > { %v1755_v12 = vadd.f32 %v1754_v26, %v1595_v63  ;;  %v1752_v31 = vadd.f32 %v1751_v37, %v1594_v27  ;;  %v1567_v9 = vsel %vm1292_vm2, 0.0, %v1559_v52  ;;  %10981 = vst [vmem:[#allocation53_spill] sm:$0xff] %v8332_v61  ;;  %v8335_v37 = vpop.permute.xlu2 %1501 }
 0x3b8   : > { %v1583_v51 = vsel %vm1260_vm14, %v8143_v28, %v1567_v9 }
 0x3b9   : > { %v3123_v20 = vpop.permute.xlu0 %3122  ;;  %v8319_v43 = vsel %vm1237_vm11, -1e+09, %v1755_v12  ;;  %v8323_v1 = vsel %vm1237_vm11, -1e+09, %v1752_v31  ;;  %v1719_v26 = vadd.f32 %v7957_v29, %v1583_v51  ;;  %v8353_v51 = vadd.s32 32, %v8088_v4 }
 0x3ba   : > { %5128 = vmatmul.msk.f32.gmra.mxu3 %vm10591_vm0, %v3123_v20  ;;  %1803 = vmax.xlane.f32.xlu0 %v8319_v43 }
 0x3bb   : > { %1801 = vmax.xlane.f32.xlu2 %v8323_v1  ;;  %v8340_v20 = vsel %vm1237_vm11, -1e+09, %v1719_v26  ;;  %10983 = vst [vmem:[#allocation96_spill] sm:$0xff] %v8353_v51  ;;  %v1536_v26 = vrot.slane %v8213_v11, 1  ;;  %vm10649_vm15 = vcmp.le.s32.totalorder %v8107_v60, %v8353_v51 }
 0x3bc   : > { %v2142_v59 = vpop.f32.mrf.mxu3 }
 0x3be   : > { %v8344_v52 = vpop.permute.xlu1 %1497 }
 0x3bf   : > { %v3127_v28 = vpop.permute.xlu2 %3126 }
 0x3c1   : > { %v3125_v31 = vpop.permute.xlu0 %3124 }
 0x3c2   : > { %5129 = vmatmul.msk.f32.gmra.mxu3 %vm10591_vm0, %v3125_v31  ;;  %v1558_v31 = vsel %vm1547_vm1, %v1535_v7, %v1536_v26 }
 0x3c3   : > { %1779 = vmax.xlane.f32.xlu2 %v8340_v20  ;;  %2189 = vrot.lane.b32.xlu1 %v2136_v42, %s6239_s9 }
 0x3c4   : > { %v2145_v29 = vpop.f32.mrf.mxu3 }
 0x3c6   : > { %v3129_v27 = vpop.permute.xlu1 %3128 }
 0x3c9   : > { %v1494_v63 = vpop.permute.xlu0 %1493 }
 0x3ca   : > { %5130 = vmatmul.msk.f32.gmra.mxu3 %vm10591_vm0, %v3127_v28 }
 0x3cc   : > { %v2148_v9 = vpop.f32.mrf.mxu3 }
 0x3ce   : > { %2193 = vrot.lane.b32.xlu0 %v2139_v5, %s6241_s29  ;;  %v8359_v5 = vadd.s32 1, %v8353_v51 }
 0x3d0   : > { %10984 = vst [vmem:[#allocation54_spill] sm:$0xff] %v8359_v5  ;;  %vm10654_vm3 = vcmp.eq.s32.totalorder %v8107_v60, %v8359_v5 }
 0x3d1   : > { %v8348_v12 = vpop.permute.xlu0 %3915  ;;  %v1568_v28 = vsel %vm10654_vm3, 0.0, %v1558_v31  ;;  %v1537_v31 = vrot.slane %v1494_v63, 1 }
 0x3d2   : > { %10982 = vst [vmem:[#allocation103_spill] sm:$0xff] %v8348_v12  ;;  %5131 = vmatmul.msk.f32.gmra.mxu3 %vm10591_vm0, %v3129_v27  ;;  %v8387_v12 = vadd.s32 40, %v8088_v4 }
 0x3d4   : > { %v2151_v3 = vpop.f32.mrf.mxu3 }
 0x3d6   : > { %2205 = vrot.lane.b32.xlu0 %v2148_v9, %s6242_s18  ;;  %v8376_v9 = vadd.s32 48, %v8088_v4 }
 0x3d8   : > { %10985 = vst [vmem:[#allocation112_spill] sm:$0xff] %v8376_v9  ;;  %vm10596_vm10 = vcmp.le.s32.totalorder %v8107_v60, %v8376_v9 }
 0x3d9   : > { %v3131_v42 = vpop.permute.xlu0 %3130 }
 0x3da   : > { %5132 = vmatmul.msk.f32.gmra.mxu3 %vm10591_vm0, %v3131_v42  ;;  %v8384_v42 = vadd.s32 1, %v8376_v9  ;;  %vm10600_vm0 = vcmp.le.s32.totalorder %v8107_v60, %v8387_v12 }
 0x3db   : > { %2197 = vrot.lane.b32.xlu2 %v2142_v59, %s6244_s7  ;;  %v1584_v59 = vsel %vm10649_vm15, %v8129_v8, %v1568_v28  ;;  %v1538_v8 = vrot.slane %v8344_v52, 1  ;;  %v8395_v28 = vadd.s32 1, %v8387_v12 }
 0x3dc   : > { %v1722_v27 = vadd.f32 %v7977_v50, %v1584_v59  ;;  %10986 = vst [vmem:[#allocation33_spill] sm:$0xff] %v8384_v42  ;;  %vm10597_vm13 = vcmp.eq.s32.totalorder %v8107_v60, %v8384_v42 }
 0x3dd   : > { %v1556_v50 = vsel %vm1547_vm1, %v1537_v31, %v1538_v8  ;;  %vm10601_vm7 = vcmp.eq.s32.totalorder %v8107_v60, %v8395_v28 }
 0x3de   : > { %v8380_v7 = vsel %vm1237_vm11, -1e+09, %v1722_v27  ;;  %v1570_v59 = vsel %vm10597_vm13, 0.0, %v1556_v50  ;;  %v1557_v27 = vsel %vm1547_vm1, %v1536_v26, %v1537_v31 }
 0x3df   : > { %v1586_v61 = vsel %vm10596_vm10, %v1494_v63, %v1570_v59  ;;  %v1569_v2 = vsel %vm10601_vm7, 0.0, %v1557_v27  ;;  %v1539_v59 = vrot.slane %v8335_v37, 1 }
 0x3e0   : > { %v1728_v41 = vadd.f32 %v8018_v56, %v1586_v61  ;;  %v1585_v50 = vsel %vm10600_vm0, %v8213_v11, %v1569_v2  ;;  %v2154_v56 = vpop.f32.mrf.mxu3  ;;  %v8431_v61 = vpop.permute.xlu1 %3919 }
 0x3e1   : > { %v1725_v63 = vadd.f32 %v8002_v45, %v1585_v50  ;;  %10987 = vst [vmem:[#allocation81_spill] sm:$0xff] %v8431_v61  ;;  %v1506_v2 = vpop.permute.xlu0 %1505  ;;  %v1555_v50 = vsel %vm1547_vm1, %v1538_v8, %v1539_v59  ;;  %v8460_v61 = vadd.s32 72, %v8088_v4 }
 0x3e2   : > { %v8421_v26 = vsel %vm1237_vm11, -1e+09, %v1728_v41  ;;  %v8435_v41 = vadd.s32 56, %v8088_v4  ;;  %v1540_v36 = vrot.slane %v1506_v2, 1 }
 0x3e3   : > { %v8427_v31 = vsel %vm1237_vm11, -1e+09, %v1725_v63  ;;  %10989 = vst [vmem:[#allocation89_spill] sm:$0xff] %v8460_v61  ;;  %v8468_v39 = vadd.s32 1, %v8460_v61  ;;  %vm10613_vm7 = vcmp.le.s32.totalorder %v8107_v60, %v8460_v61 }
 0x3e4   : > { %vm10604_vm13 = vcmp.le.s32.totalorder %v8107_v60, %v8435_v41  ;;  %v1554_v32 = vsel %vm1547_vm1, %v1539_v59, %v1540_v36 }
 0x3e5   : > { %10990 = vst [vmem:[#allocation125_spill] sm:$0xff] %v8468_v39  ;;  %vm10607_vm0 = vcmp.eq.s32.totalorder %v8107_v60, %v8468_v39 }
 0x3e8   : > { %v2157_v11 = vpop.f32.mrf.mxu3  ;;  %v8437_v45 = vpop.permute.xlu1 %1509 }
 0x3ea   : > { %v8441_v27 = vpop.permute.xlu0 %2181 }
 0x3ed   : > { %1781 = vmax.xlane.f32.xlu1 %v8380_v7 }
 0x3f0   : > { %v8450_v63 = vpop.permute.xlu1 %2177 }
 0x400   : > { %1785 = vmax.xlane.f32.xlu0 %v8421_v26 }
 0x404   : > { %1783 = vmax.xlane.f32.xlu2 %v8427_v31 }
 0x406   : > { %2201 = vrot.lane.b32.xlu1 %v2145_v29, %s6246_s1  ;;  %v8444_v29 = vadd.s32 1, %v8435_v41 }
 0x408   : > { %10988 = vst [vmem:[#allocation91_spill] sm:$0xff] %v8444_v29  ;;  %vm1296_vm10 = vcmp.eq.s32.totalorder %v8107_v60, %v8444_v29 }
 0x414   : > { %2217 = vrot.lane.b32.xlu0 %v2157_v11, %s6245_s16 }
 0x415   : > { %v8470_v38 = vpop.xlane.xlu1 %1773 }
 0x416   : > { %v8457_v11 = vpop.xlane.xlu0 %1797 }
 0x41c   : > { %2209 = vrot.lane.b32.xlu2 %v2151_v3, %s6247_s0  ;;  %v1571_v3 = vsel %vm1296_vm10, 0.0, %v1555_v50  ;;  %v1541_v50 = vrot.slane %v8437_v45, 1 }
 0x41d   : > { %v1587_v54 = vsel %vm10604_vm13, %v8344_v52, %v1571_v3  ;;  %v8493_v3 = vadd.s32 1, %v8478_v58  ;;  %v8498_v6 = vpop.xlane.xlu1 %1799 }
 0x41e   : > { %v1731_v8 = vadd.f32 %v8037_v47, %v1587_v54  ;;  %v1553_v54 = vsel %vm1547_vm1, %v1540_v36, %v1541_v50  ;;  %v8484_v47 = vpop.xlane.xlu0 %1777 }
 0x41f   : > { %v1573_v52 = vsel %vm10607_vm0, 0.0, %v1553_v54  ;;  %10993 = vst [vmem:[#allocation128_spill] sm:$0xff] %v8493_v3  ;;  %vm10620_vm13 = vcmp.eq.s32.totalorder %v8107_v60, %v8493_v3  ;;  %vm10614_vm0 = vcmp.le.s32.totalorder %v8107_v60, %v8478_v58  ;;  %v2448_v3 = vpop.f32.mrf.mxu0 }
 0x420   : > { %v8475_v10 = vsel %vm1237_vm11, -1e+09, %v1731_v8  ;;  %v1589_v8 = vsel %vm10613_vm7, %v1506_v2, %v1573_v52  ;;  %v1572_v54 = vsel %vm10620_vm13, 0.0, %v1554_v32  ;;  %v2160_v2 = vpop.f32.mrf.mxu3 }
 0x421   : > { %10991 = vst [vmem:[#allocation126_spill] sm:$0xff] %v8475_v10  ;;  %v1737_v39 = vadd.f32 %v8071_v16, %v1589_v8  ;;  %v1588_v36 = vsel %vm10614_vm0, %v8335_v37, %v1572_v54 }
 0x422   : > { %v1734_v8 = vadd.f32 %v8054_v18, %v1588_v36  ;;  %v8543_v36 = vpop.permute.xlu2 %3917 }
 0x423   : > { %v8514_v52 = vsel %vm1237_vm11, -1e+09, %v1737_v39  ;;  %10995 = vst [vmem:[#allocation130_spill] sm:$0xff] %v8543_v36  ;;  %v2240_v36 = vrot.slane %v8441_v27, 1 }
 0x424   : > { %10994 = vst [vmem:[#allocation129_spill] sm:$0xff] %v8514_v52  ;;  %v8538_v37 = vsel %vm1237_vm11, -1e+09, %v1734_v8 }
 0x428   : > { %v2163_v54 = vpop.f32.mrf.mxu3 }
 0x42d   : > { %v8504_v19 = vpop.xlane.xlu0 %1803 }
 0x430   : > { %1787 = vmax.xlane.f32.xlu1 %v8475_v10  ;;  %v2166_v18 = vpop.f32.mrf.mxu3  ;;  %v8573_v10 = vadd.s32 88, %v8088_v4 }
 0x435   : > { %v8520_v59 = vpop.permute.xlu1 %2189 }
 0x436   : > { %v10611_v32 = vrot.slane %v8520_v59, 1 }
 0x43e   : > { %1791 = vmax.xlane.f32.xlu0 %v8514_v52  ;;  %v8547_v52 = vadd.s32 80, %v8088_v4 }
 0x440   : > { %v8523_v16 = vpop.permute.xlu0 %2193  ;;  %v8550_v8 = vadd.s32 1, %v8547_v52  ;;  %vm1267_vm0 = vcmp.le.s32.totalorder %v8107_v60, %v8547_v52 }
 0x441   : > { %v10612_v61 = vrot.slane %v8523_v16, 1 }
 0x442   : > { %vm1299_vm7 = vcmp.eq.s32.totalorder %v8107_v60, %v8550_v8 }
 0x443   : > { %v8534_v39 = vsel %vm1547_vm1, %v10611_v32, %v10612_v61  ;;  %v1514_v32 = vpop.permute.xlu2 %1513 }
 0x444   : > { %v1542_v61 = vrot.slane %v1514_v32, 1 }
 0x445   : > { %1789 = vmax.xlane.f32.xlu2 %v8538_v37 }
 0x448   : > { %v2206_v51 = vpop.permute.xlu0 %2205 }
 0x449   : > { %2213 = vrot.lane.b32.xlu1 %v2154_v56, %s6248_s14  ;;  %v1552_v56 = vsel %vm1547_vm1, %v1541_v50, %v1542_v61 }
 0x452   : > { %2229 = vrot.lane.b32.xlu0 %v2166_v18, %s6234_s21  ;;  %v8561_v18 = vpop.permute.xlu2 %2185 }
 0x453   : > { %v2241_v30 = vrot.slane %v8561_v18, 1 }
 0x455   : > { %v2268_v50 = vsel %vm1547_vm1, %v2240_v36, %v2241_v30 }
 0x45d   : > { %2221 = vrot.lane.b32.xlu2 %v2160_v2, %s6249_s20  ;;  %v1574_v2 = vsel %vm1299_vm7, 0.0, %v1552_v56  ;;  %v2272_v56 = vsel %vm10621_vm5, 0.0, %v2268_v50  ;;  %v10996_v50 = vrot.slane %v8103_v53, 1  ;;  %vm1268_vm5 = vcmp.le.s32.totalorder %v8107_v60, %v8573_v10 }
 0x45e   : > { %v1590_v58 = vsel %vm1267_vm0, %v8437_v45, %v1574_v2  ;;  %v8584_v45 = vadd.s32 1, %v8573_v10 }
 0x45f   : > { %v1740_v23 = vadd.f32 %v8079_v57, %v1590_v58  ;;  %v2288_v58 = vsel %vm1258_vm9, %v8441_v27, %v2272_v56  ;;  %v2451_v57 = vpop.f32.mrf.mxu0 }
 0x460   : > { %v2452_v2 = vadd.f32 %v2451_v57, %v2288_v58  ;;  %vm1300_vm13 = vcmp.eq.s32.totalorder %v8107_v60, %v8584_v45  ;;  %v2169_v58 = vpop.f32.mrf.mxu3  ;;  %v10998_v57 = vld [vmem:[#allocation43_spill] sm:$0xff] }
 0x461   : > { %v8580_v13 = vsel %vm1237_vm11, -1e+09, %v1740_v23  ;;  %v1551_v23 = vsel %vm1547_vm1, %v1542_v61, %v10996_v50  ;;  %v1776_v50 = vpop.xlane.xlu2 %1775 }
 0x462   : > { %v1575_v17 = vsel %vm1300_vm13, 0.0, %v1551_v23  ;;  %v8603_v27 = vsel %vm1237_vm11, -1e+09, %v2452_v2  ;;  %v10626_v23 = vrot.slane %v8450_v63, 1 }
 0x463   : > { %10997 = vst [vmem:[#allocation131_spill] sm:$0xff] %v8603_v27  ;;  %v1591_v53 = vsel %vm1268_vm5, %v1514_v32, %v1575_v17 }
 0x464   : > { %v1743_v56 = vadd.f32 %v8094_v48, %v1591_v53  ;;  %v1807_v48 = vsub.f32 %v8249_v44, %v8484_v47  ;;  %v1805_v47 = vsub.f32 %v8217_v40, %v8470_v38  ;;  %v11000_v38 = vrot.slane %v8523_v16, 1 }
 0x466   : > { %v8612_v61 = vsel %vm1237_vm11, -1e+09, %v1743_v56  ;;  %v1825_v53 = vmul.f32 1.442695, %v1807_v48 }
 0x467   : > { %v2454_v56 = vpop.f32.mrf.mxu0 }
 0x468   : > { %v2172_v2 = vpop.f32.mrf.mxu3  ;;  %5610 = vpow2.f32 %v1825_v53 }
 0x469   : > { %v1802_v17 = vpop.xlane.xlu2 %1801 }
 0x46e   : > { %v8642_v53 = vpop.eup %5610 }
 0x471   : > { %v8622_v32 = vpop.xlane.xlu2 %1779 }
 0x473   : > { %1793 = vmax.xlane.f32.xlu1 %v8580_v13  ;;  %v8733_v25 = vpop.xlane.xlu0 %1785 }
 0x479   : > { %v8639_v15 = vpop.permute.xlu2 %2197 }
 0x47c   : > { %2514 = vmax.xlane.f32.xlu0 %v8603_v27 }
 0x486   : > { %1795 = vmax.xlane.f32.xlu2 %v8612_v61 }
 0x48c   : > { %2225 = vrot.lane.b32.xlu1 %v2163_v54, %s6237_s8  ;;  %v2269_v54 = vsel %vm1547_vm1, %v10626_v23, %v2240_v36  ;;  %v1806_v36 = vsub.f32 %v8238_v0, %v1776_v50  ;;  %v1821_v23 = vmul.f32 1.442695, %v1805_v47 }
 0x490   : > { %3921 = vrot.lane.b32.xlu0 %v10998_v57, %s6233_s17 }
 0x494   : > { %2237 = vrot.lane.b32.xlu1 %v2172_v2, %s6243_s13  ;;  %v1819_v2 = vsub.f32 %v8323_v1, %v1802_v17  ;;  %v8644_v17 = vpop.f32.mrf.mxu0 }
 0x496   : > { %v1849_v48 = vmul.f32 1.442695, %v1819_v2 }
 0x498   : > { %5612 = vpow2.f32 %v1849_v48 }
 0x499   : > { %5614 = vpow2.f32 %v1821_v23 }
 0x49e   : > { %2233 = vrot.lane.b32.xlu2 %v2169_v58, %s10999_s19  ;;  %v2271_v58 = vsel %vm1289_vm4, 0.0, %v2269_v54  ;;  %v10627_v54 = vrot.slane %v8639_v15, 1  ;;  %v8664_v2 = vpop.eup %5612 }
 0x49f   : > { %v2287_v44 = vsel %vm1257_vm6, %v8450_v63, %v2271_v58  ;;  %v1823_v58 = vmul.f32 1.442695, %v1806_v36  ;;  %11001 = vst [vmem:[#allocation43_spill] sm:$0xff] %v8664_v2  ;;  %v8678_v36 = vpop.eup %5614 }
 0x4a0   : > { %v2449_v1 = vadd.f32 %v2448_v3, %v2287_v44  ;;  %v2265_v40 = vsel %vm1547_vm1, %v11000_v38, %v10627_v54  ;;  %v1817_v3 = vsub.f32 %v8223_v62, %v8457_v11  ;;  %v11002_v44 = vrot.slane %v8520_v59, 1  ;;  %v2460_v11 = vpop.f32.mrf.mxu0 }
 0x4a1   : > { %v2275_v50 = vsel %vm10654_vm3, 0.0, %v2265_v40  ;;  %5616 = vpow2.f32 %v1823_v58 }
 0x4a2   : > { %v8656_v0 = vsel %vm1237_vm11, -1e+09, %v2449_v1  ;;  %v2267_v47 = vsel %vm1547_vm1, %v2241_v30, %v11002_v44  ;;  %v2291_v23 = vsel %vm10649_vm15, %v8523_v16, %v2275_v50  ;;  %v1845_v62 = vmul.f32 1.442695, %v1817_v3 }
 0x4a3   : > { %v2273_v48 = vsel %vm10656_vm8, 0.0, %v2267_v47  ;;  %v2461_v1 = vadd.f32 %v2460_v11, %v2291_v23  ;;  %v1818_v16 = vsub.f32 %v8243_v24, %v8498_v6  ;;  %v1782_v24 = vpop.xlane.xlu1 %1781  ;;  %v11008_v11 = vld [vmem:[#allocation105_spill] sm:$0xff]  ;;  %vm11010_vm15 = vcmp.le.s32.totalorder %v8107_v60, %v8435_v41 }
 0x4a4   : > { %5618 = vpow2.f32 %v1845_v62  ;;  %v2289_v30 = vsel %vm10655_vm12, %v8561_v18, %v2273_v48  ;;  %v1784_v18 = vpop.xlane.xlu2 %1783 }
 0x4a5   : > { %v8692_v38 = vsel %vm1237_vm11, -1e+09, %v2461_v1  ;;  %v2455_v40 = vadd.f32 %v2454_v56, %v2289_v30  ;;  %v1847_v3 = vmul.f32 1.442695, %v1818_v16  ;;  %v11007_v56 = vld [vmem:[#allocation47_spill] sm:$0xff] }
 0x4a6   : > { %11003 = vst [vmem:[#allocation132_spill] sm:$0xff] %v8692_v38 }
 0x4a7   : > { %v8680_v58 = vpop.eup %5616  ;;  %v8700_v44 = vsel %vm1237_vm11, -1e+09, %v2455_v40  ;;  %5620 = vpow2.f32 %v1847_v3 }
 0x4a8   : > { %v2463_v30 = vpop.f32.mrf.mxu0 }
 0x4aa   : > { %v8695_v50 = vpop.eup %5618 }
 0x4ab   : > { %11004 = vst [vmem:[#allocation133_spill] sm:$0xff] %v8695_v50  ;;  %v8706_v47 = vpop.permute.xlu1 %2201 }
 0x4ac   : > { %v8710_v23 = vpop.permute.xlu2 %2209 }
 0x4ad   : > { %v8703_v6 = vpop.eup %5620  ;;  %v11009_v35 = vrot.slane %v8710_v23, 1 }
 0x4ae   : > { %11005 = vst [vmem:[#allocation134_spill] sm:$0xff] %v8703_v6 }
 0x4b0   : > { %v8726_v3 = vpop.f32.mrf.mxu0 }
 0x4b3   : > { %v8712_v62 = vpop.xlane.xlu1 %1787 }
 0x4b8   : > { %v1790_v48 = vpop.xlane.xlu2 %1789  ;;  %v2469_v14 = vpop.f32.mrf.mxu0 }
 0x4ba   : > { %1857 = vadd.xlane.f32.xlu0 %v8642_v53 }
 0x4bb   : > { %v8718_v1 = vpop.permute.xlu1 %2213 }
 0x4be   : > { %2512 = vmax.xlane.f32.xlu1 %v8656_v0 }
 0x4c0   : > { %v8722_v16 = vpop.permute.xlu2 %2221  ;;  %v8771_v22 = vpop.f32.mrf.mxu0 }
 0x4c2   : > { %1881 = vadd.xlane.f32.xlu0 %v8664_v2 }
 0x4c6   : > { %1853 = vadd.xlane.f32.xlu1 %v8678_v36 }
 0x4c7   : > { %1855 = vadd.xlane.f32.xlu2 %v8680_v58 }
 0x4ca   : > { %2520 = vmax.xlane.f32.xlu0 %v8692_v38 }
 0x4ce   : > { %1877 = vadd.xlane.f32.xlu1 %v8695_v50  ;;  %v2274_v50 = vsel %vm1292_vm2, 0.0, %v8534_v39 }
 0x4cf   : > { %2516 = vmax.xlane.f32.xlu2 %v8700_v44 }
 0x4d7   : > { %1879 = vadd.xlane.f32.xlu2 %v8703_v6 }
 0x4de   : > { %3136 = vrot.lane.b32.xlu0 %v11007_v56, %s11006_s27 }
 0x4e6   : > { %5434 = vrot.lane.b32.xlu0 %v11008_v11, %s6233_s17  ;;  %v8724_v40 = vpop.xlane.xlu1 %1793 }
 0x4e7   : > { %3134 = vrot.lane.b32.xlu1 %v10998_v57, %s11006_s27  ;;  %v1810_v57 = vsub.f32 %v8427_v31, %v1784_v18  ;;  %v2246_v31 = vrot.slane %v2206_v51, 1  ;;  %v1809_v18 = vsub.f32 %v8380_v7, %v1782_v24 }
 0x4e9   : > { %v1831_v2 = vmul.f32 1.442695, %v1810_v57  ;;  %v2290_v57 = vsel %vm1260_vm14, %v8520_v59, %v2274_v50  ;;  %v2262_v7 = vsel %vm1547_vm1, %v2246_v31, %v11009_v35  ;;  %v1829_v50 = vmul.f32 1.442695, %v1809_v18 }
 0x4ea   : > { %v2458_v59 = vadd.f32 %v8644_v17, %v2290_v57  ;;  %v2278_v24 = vsel %vm1296_vm10, 0.0, %v2262_v7  ;;  %v1813_v17 = vsub.f32 %v8538_v37, %v1790_v48  ;;  %v11011_v18 = vrot.slane %v8639_v15, 1 }
 0x4eb   : > { %5622 = vpow2.f32 %v1831_v2  ;;  %v8765_v2 = vpop.permute.xlu0 %2217  ;;  %v2294_v35 = vsel %vm11010_vm15, %v2206_v51, %v2278_v24  ;;  %vm11012_vm15 = vcmp.eq.s32.totalorder %v8107_v60, %v8395_v28  ;;  %v10652_v48 = vrot.slane %v8722_v16, 1 }
 0x4ec   : > { %5624 = vpow2.f32 %v1829_v50  ;;  %v2470_v7 = vadd.f32 %v2469_v14, %v2294_v35  ;;  %v1837_v29 = vmul.f32 1.442695, %v1813_v17  ;;  %v8806_v50 = vpop.f32.mrf.mxu0  ;;  %v10653_v14 = vrot.slane %v8765_v2, 1 }
 0x4ee   : > { %v2259_v35 = vsel %vm1547_vm1, %v10653_v14, %v10652_v48 }
 0x4ef   : > { %3132 = vrot.lane.b32.xlu2 %v10930_v55, %s11006_s27  ;;  %v1820_v55 = vsub.f32 %v8319_v43, %v8504_v19  ;;  %v8779_v43 = vsel %vm1237_vm11, -1e+09, %v2458_v59 }
 0x4f1   : > { %v8774_v19 = vpop.eup %5622 }
 0x4f3   : > { %v8792_v59 = vpop.xlane.xlu0 %1791 }
 0x4f9   : > { %v8728_v54 = vpop.xlane.xlu2 %1795 }
 0x4fe   : > { %v8730_v5 = vpop.permute.xlu1 %2225 }
 0x501   : > { %v8735_v21 = vpop.permute.xlu2 %2233 }
 0x502   : > { %v10648_v38 = vrot.slane %v8735_v21, 1 }
 0x506   : > { %v8738_v6 = vpop.permute.xlu1 %2237 }
 0x507   : > { %v10647_v27 = vrot.slane %v8738_v6, 1 }
 0x509   : > { %v8757_v39 = vsel %vm1547_vm1, %v10648_v38, %v10647_v27  ;;  %v1851_v27 = vmul.f32 1.442695, %v1820_v55  ;;  %v2245_v38 = vrot.slane %v8706_v47, 1  ;;  %v1808_v55 = vsub.f32 %v8340_v20, %v8622_v32 }
 0x50a   : > { %v8802_v20 = vsel %vm1237_vm11, -1e+09, %v2470_v7 }
 0x50b   : > { %5626 = vpow2.f32 %v1851_v27  ;;  %v2264_v57 = vsel %vm1547_vm1, %v11011_v18, %v2245_v38  ;;  %v1827_v37 = vmul.f32 1.442695, %v1808_v55  ;;  %v8798_v27 = vpop.eup %5624  ;;  %v2263_v17 = vsel %vm1547_vm1, %v2245_v38, %v2246_v31  ;;  %v8824_v18 = vpop.permute.xlu0 %2229 }
 0x50c   : > { %v2276_v51 = vsel %vm11012_vm15, 0.0, %v2264_v57  ;;  %vm11013_vm15 = vcmp.le.s32.totalorder %v8107_v60, %v8387_v12  ;;  %5628 = vpow2.f32 %v1837_v29  ;;  %v1816_v31 = vsub.f32 %v8612_v61, %v8728_v54 }
 0x50d   : > { %v2292_v24 = vsel %vm11013_vm15, %v8639_v15, %v2276_v51  ;;  %5630 = vpow2.f32 %v1827_v37  ;;  %v2281_v15 = vsel %vm1299_vm7, 0.0, %v2259_v35  ;;  %vm11014_vm15 = vcmp.eq.s32.totalorder %v8107_v60, %v8384_v42  ;;  %v2478_v37 = vpop.f32.mrf.mxu0 }
 0x50e   : > { %v2464_v55 = vadd.f32 %v2463_v30, %v2292_v24  ;;  %v2277_v29 = vsel %vm11014_vm15, 0.0, %v2263_v17  ;;  %v2297_v38 = vsel %vm1267_vm0, %v8765_v2, %v2281_v15  ;;  %vm11015_vm15 = vcmp.le.s32.totalorder %v8107_v60, %v8376_v9 }
 0x50f   : > { %v2293_v30 = vsel %vm11015_vm15, %v8706_v47, %v2277_v29  ;;  %v1811_v24 = vsub.f32 %v8421_v26, %v8733_v25  ;;  %v2479_v35 = vadd.f32 %v2478_v37, %v2297_v38  ;;  %v1843_v15 = vmul.f32 1.442695, %v1816_v31 }
 0x510   : > { %1863 = vadd.xlane.f32.xlu0 %v8774_v19  ;;  %v8836_v7 = vsel %vm1237_vm11, -1e+09, %v2464_v55  ;;  %v2467_v55 = vadd.f32 %v8726_v3, %v2293_v30  ;;  %vm11016_vm15 = vcmask 261120  }
 0x511   : > { %2518 = vmax.xlane.f32.xlu1 %v8779_v43  ;;  %v8804_v32 = vpop.eup %5626  ;;  %v1833_v48 = vmul.f32 1.442695, %v1811_v24  ;;  %v8860_v14 = vsel %vm1237_vm11, -1e+09, %v2479_v35  ;;  %5632 = vpow2.f32 %v1843_v15  ;;  %v11017_v24 = vld [vmem:[#allocation98_spill] sm:$0xff]  ;;  %vm11018_vm3 = vmmov %vm11016_vm15 }
 0x512   : > { %v8832_v57 = vpop.eup %5628  ;;  %v8865_v61 = vsel %vm1237_vm11, -1e+09, %v2467_v55  ;;  %vm11021_vm12 = vmmov %vm11018_vm3 }
 0x513   : > { %v8838_v51 = vpop.eup %5630  ;;  %v8855_v17 = vpop.xlane.xlu0 %2514  ;;  %5634 = vpow2.f32 %v1833_v48  ;;  %vm11027_vm8 = vmmov %vm11018_vm3 }
 0x517   : > { %v8870_v26 = vpop.eup %5632 }
 0x518   : > { %1861 = vadd.xlane.f32.xlu2 %v8798_v27  ;;  %2526 = vmax.xlane.f32.xlu0 %v8802_v20 }
 0x519   : > { %1883 = vadd.xlane.f32.xlu1 %v8804_v32  ;;  %v8872_v54 = vpop.eup %5634 }
 0x51b   : > { %v8868_v25 = vpop.permute.xlu0 %3921 }
 0x520   : > { %2522 = vmax.xlane.f32.xlu2 %v8836_v7  ;;  %1869 = vadd.xlane.f32.xlu0 %v8832_v57 }
 0x521   : > { %1859 = vadd.xlane.f32.xlu1 %v8838_v51 }
 0x528   : > { %2532 = vmax.xlane.f32.xlu0 %v8860_v14 }
 0x529   : > { %2524 = vmax.xlane.f32.xlu1 %v8865_v61 }
 0x52d   : > { %v1858_v3 = vpop.xlane.xlu0 %1857 }
 0x530   : > { %1875 = vadd.xlane.f32.xlu0 %v8870_v26 }
 0x531   : > { %1865 = vadd.xlane.f32.xlu1 %v8872_v54  ;;  %v8876_v47 = vpop.xlane.xlu1 %2512 }
 0x535   : > { %v8880_v48 = vpop.xlane.xlu0 %1881 }
 0x538   : > { %3923 = vrot.lane.b32.xlu2 %v11007_v56, %s6233_s17 }
 0x539   : > { %v1854_v29 = vpop.xlane.xlu1 %1853 }
 0x53a   : > { %v1856_v38 = vpop.xlane.xlu2 %1855  ;;  %5636 = vrcp.f32 %v1854_v29 }
 0x53b   : > { %5638 = vrcp.f32 %v1856_v38 }
 0x53c   : > { %5640 = vrcp.f32 %v1858_v3 }
 0x53d   : > { %v8889_v56 = vpop.xlane.xlu0 %2520 }
 0x540   : > { %v5637_v30 = vpop.eup %5636 }
 0x541   : > { %v1901_v31 = vmul.f32 %v5637_v30, %v8678_v36  ;;  %v5639_v35 = vpop.eup %5638  ;;  %v11020_v36 = vld [vmem:[#allocation63_spill] sm:$0xff]  ;;  %v8902_v29 = vpop.xlane.xlu1 %1877 }
 0x542   : > { %v8883_v37 = vpop.xlane.xlu2 %2516  ;;  %v1902_v55 = vmul.f32 %v5639_v35, %v8680_v58  ;;  %v11022_v58 = vld [vmem:[#allocation126_spill] sm:$0xff]  ;;  %v2248_v35 = vrot.slane %v8718_v1, 1 }
 0x543   : > { %1933 = vmatmul.f32.vlgmr.msra.gmra.mxu2 %v1901_v31  ;;  %v1812_v38 = vsub.f32 %v11022_v58, %v8712_v62  ;;  %v8908_v31 = vpop.f32.mrf.mxu0  ;;  %v11028_v62 = vrot.slane %v8710_v23, 1 }
 0x544   : > { %5168 = vmatpush.xpose.msk.msra.mxu2 %vm11016_vm15, %v7776_v46  ;;  %5454 = vrot.lane.b32.xlu0 %v11017_v24, %s11006_s27  ;;  %vm11019_vm15 = vmmov %vm11018_vm3  ;;  %v5641_v46 = vpop.eup %5640 }
 0x548   : > { %5169 = vmatpush.xpose.msk.msra.mxu2 %vm11018_vm3, %v7770_v49  ;;  %v1903_v49 = vmul.f32 %v5641_v46, %v8642_v53 }
 0x54a   : > { %v8894_v15 = vpop.xlane.xlu2 %1879  ;;  %5439 = vrot.lane.b32.xlu1 %v11017_v24, %s6233_s17  ;;  %v11023_v24 = vld [vmem:[#allocation99_spill] sm:$0xff] }
 0x54b   : > { %1936 = vmatmul.f32.gmra.mxu2 %v1902_v55  ;;  %v11025_v55 = vld [vmem:[#allocation76_spill] sm:$0xff] }
 0x54c   : > { %5170 = vmatpush.xpose.msk.msra.mxu2 %vm11019_vm15, %v7794_v34  ;;  %vm11024_vm15 = vmmov %vm11018_vm3  ;;  %v1835_v34 = vmul.f32 1.442695, %v1812_v38  ;;  %v2484_v38 = vpop.f32.mrf.mxu0 }
 0x54e   : > { %5642 = vpow2.f32 %v1835_v34 }
 0x550   : > { %5171 = vmatpush.xpose.msk.msra.mxu2 %vm11021_vm12, %v11020_v36  ;;  %v3137_v3 = vpop.permute.xlu0 %3136  ;;  %vm11026_vm12 = vmmov %vm11018_vm3 }
 0x552   : > { %v3133_v30 = vpop.permute.xlu2 %3132 }
 0x553   : > { %5133 = vmatmul.msk.f32.gmra.mxu3 %vm11018_vm3, %v3133_v30  ;;  %1939 = vmatmul.f32.gmra.mxu2 %v1903_v49  ;;  %v2261_v49 = vsel %vm1547_vm1, %v11028_v62, %v2248_v35  ;;  %v11029_v30 = vld [vmem:[#allocation52_spill] sm:$0xff]  ;;  %v11034_v62 = vrot.slane %v8735_v21, 1 }
 0x554   : > { %5172 = vmatpush.xpose.msk.msra.mxu2 %vm11024_vm15, %v11023_v24  ;;  %v2252_v24 = vrot.slane %v8824_v18, 1  ;;  %v8926_v9 = vpop.eup %5642 }
 0x558   : > { %5173 = vmatpush.xpose.msk.msra.mxu2 %vm11026_vm12, %v11025_v55  ;;  %v5435_v36 = vpop.permute.xlu0 %5434  ;;  %v11030_v55 = vld [vmem:[#allocation128_spill] sm:$0xff] }
 0x559   : > { %v5436_v53 = vunpack.i.l.bf16 %v5435_v36  ;;  %v3135_v46 = vpop.permute.xlu1 %3134  ;;  %v5437_v58 = vunpack.i.h.bf16 %v5435_v36  ;;  %vm11031_vm15 = vcmp.eq.s32.totalorder %v8107_v60, %v11030_v55  ;;  %v2256_v36 = vsel %vm1547_vm1, %v2252_v24, %v11034_v62  ;;  %v11039_v55 = vld [vmem:[#allocation111_spill] sm:$0xff] }
 0x55a   : > { %v2279_v34 = vsel %vm11031_vm15, 0.0, %v2261_v49  ;;  %v11037_v49 = vld [vmem:[#allocation49_spill] sm:$0xff]  ;;  %v11041_v62 = vrot.slane %v8765_v2, 1 }
 0x55b   : > { %5134 = vmatmul.msk.f32.gmra.mxu3 %vm11027_vm8, %v3135_v46  ;;  %v11032_v46 = vld [vmem:[#allocation118_spill] sm:$0xff]  ;;  %vm11033_vm8 = vmmov %vm11018_vm3  ;;  %vm11038_vm15 = vcmp.eq.s32.totalorder %v8107_v60, %v11037_v49  ;;  %v11045_v2 = vld [vmem:[#allocation125_spill] sm:$0xff] }
 0x55c   : > { %5174 = vmatpush.xpose.msk.msra.mxu2 %vm11018_vm3, %v11029_v30  ;;  %4294 = vmatpush.msra.mxu3 %v5436_v53  ;;  %v11035_v53 = vld [vmem:[#allocation127_spill] sm:$0xff]  ;;  %v2284_v30 = vsel %vm11038_vm15, 0.0, %v2256_v36  ;;  %v2260_v42 = vsel %vm1547_vm1, %v2248_v35, %v11041_v62  ;;  %v11044_v36 = vld [vmem:[#allocation121_spill] sm:$0xff]  ;;  %vm11046_vm15 = vcmp.eq.s32.totalorder %v8107_v60, %v11045_v2 }
 0x55d   : > { %vm11036_vm12 = vcmp.le.s32.totalorder %v8107_v60, %v11035_v53  ;;  %v11042_v53 = vld [vmem:[#allocation69_spill] sm:$0xff]  ;;  %v2280_v35 = vsel %vm11046_vm15, 0.0, %v2260_v42  ;;  %vm11054_vm15 = vmmov %vm11018_vm3 }
 0x55e   : > { %4295 = vmatpush.msra.mxu3 %v5437_v58  ;;  %v2295_v58 = vsel %vm11036_vm12, %v8710_v23, %v2279_v34  ;;  %vm11043_vm12 = vcmp.le.s32.totalorder %v8107_v60, %v11042_v53  ;;  %v2487_v34 = vpop.f32.mrf.mxu0 }
 0x55f   : > { %v2300_v23 = vsel %vm11043_vm12, %v8824_v18, %v2284_v30  ;;  %v11047_v18 = vld [vmem:[#allocation89_spill] sm:$0xff]  ;;  %vm11050_vm12 = vmmov %vm11018_vm3 }
 0x560   : > { %5175 = vmatpush.xpose.msk.msra.mxu2 %vm11033_vm8, %v11032_v46  ;;  %vm11040_vm8 = vmmov %vm11018_vm3  ;;  %v2473_v46 = vadd.f32 %v8771_v22, %v2295_v58  ;;  %v11051_v30 = vld [vmem:[#allocation129_spill] sm:$0xff] }
 0x561   : > { %1867 = vadd.xlane.f32.xlu2 %v8926_v9 }
 0x562   : > { %v8960_v22 = vsel %vm1237_vm11, -1e+09, %v2473_v46  ;;  %v1814_v46 = vsub.f32 %v11051_v30, %v8792_v59  ;;  %v11053_v59 = vld [vmem:[#allocation30_spill] sm:$0xff]  ;;  %v11059_v30 = vld [vmem:[#allocation119_spill] sm:$0xff] }
 0x563   : > { %5135 = vmatmul.msk.f32.gmra.mxu3 %vm11018_vm3, %v3137_v3  ;;  %v2544_v3 = vsub.f32 %v8656_v0, %v8876_v47  ;;  %v11049_v47 = vld [vmem:[#allocation73_spill] sm:$0xff] }
 0x564   : > { %5176 = vmatpush.xpose.msk.msra.mxu2 %vm11040_vm8, %v11039_v55  ;;  %v2488_v55 = vadd.f32 %v2487_v34, %v2300_v23  ;;  %vm11048_vm8 = vcmp.le.s32.totalorder %v8107_v60, %v11047_v18  ;;  %v11052_v23 = vld [vmem:[#allocation70_spill] sm:$0xff] }
 0x565   : > { %v2560_v58 = vmul.f32 1.442695, %v2544_v3  ;;  %v2296_v0 = vsel %vm11048_vm8, %v8718_v1, %v2280_v35  ;;  %v1839_v3 = vmul.f32 1.442695, %v1814_v46  ;;  %v10661_v1 = vrot.slane %v8730_v5, 1  ;;  %v11055_v35 = vld [vmem:[#allocation113_spill] sm:$0xff]  ;;  %vm11056_vm8 = vmmov %vm11018_vm3 }
 0x566   : > { %v8976_v62 = vsel %vm1237_vm11, -1e+09, %v2488_v55  ;;  %v2476_v42 = vadd.f32 %v8806_v50, %v2296_v0  ;;  %v11057_v55 = vld [vmem:[#allocation34_spill] sm:$0xff] }
 0x567   : > { %5644 = vpow2.f32 %v2560_v58  ;;  %v2257_v50 = vsel %vm1547_vm1, %v10661_v1, %v2252_v24  ;;  %v11063_v24 = vrot.slane %v8450_v63, 1  ;;  %v11068_v63 = vld [vmem:[#allocation64_spill] sm:$0xff] }
 0x568   : > { %5177 = vmatpush.xpose.msk.msra.mxu2 %vm11018_vm3, %v11044_v36  ;;  %v8985_v34 = vsel %vm1237_vm11, -1e+09, %v2476_v42  ;;  %5646 = vpow2.f32 %v1839_v3  ;;  %v11061_v42 = vld [vmem:[#allocation79_spill] sm:$0xff] }
 0x569   : > { %2528 = vmax.xlane.f32.xlu2 %v8960_v22 }
 0x56c   : > { %5178 = vmatpush.xpose.msk.msra.mxu2 %vm11050_vm12, %v11049_v47  ;;  %vm11058_vm12 = vcmp.eq.s32.totalorder %v8107_v60, %v11057_v55  ;;  %v9004_v47 = vpop.f32.mrf.mxu0 }
 0x56d   : > { %v8990_v36 = vpop.eup %5644  ;;  %v2283_v58 = vsel %vm11058_vm12, 0.0, %v2257_v50  ;;  %v11065_v50 = vld [vmem:[#allocation31_spill] sm:$0xff] }
 0x56e   : > { %2538 = vmax.xlane.f32.xlu0 %v8976_v62  ;;  %v9002_v0 = vpop.eup %5646 }
 0x570   : > { %5179 = vmatpush.xpose.msk.msra.mxu2 %vm11018_vm3, %v11052_v23  ;;  %vm11060_vm3 = vcmp.le.s32.totalorder %v8107_v60, %v11059_v30  ;;  %v11064_v23 = vrot.slane %v8738_v6, 1 }
 0x571   : > { %v2299_v46 = vsel %vm11060_vm3, %v8730_v5, %v2283_v58  ;;  %vm11069_vm3 = vcmp.le.s32.totalorder %v8107_v60, %v11068_v63 }
 0x572   : > { %v2270_v3 = vsel %vm1547_vm1, %v11064_v23, %v11063_v24 }
 0x574   : > { %5180 = vmatpush.xpose.msk.msra.mxu2 %vm11054_vm15, %v11053_v59  ;;  %2530 = vmax.xlane.f32.xlu1 %v8985_v34  ;;  %vm11062_vm15 = vmmov %vm11056_vm8  ;;  %v2485_v59 = vadd.f32 %v2484_v38, %v2299_v46  ;;  %v2546_v46 = vsub.f32 %v8700_v44, %v8883_v37 }
 0x576   : > { %2592 = vadd.xlane.f32.xlu0 %v8990_v36  ;;  %v2564_v1 = vmul.f32 1.442695, %v2546_v46  ;;  %v1815_v46 = vsub.f32 %v8580_v13, %v8724_v40  ;;  %v11070_v40 = vrot.slane %v8730_v5, 1 }
 0x578   : > { %5181 = vmatpush.xpose.msk.msra.mxu2 %vm11056_vm8, %v11055_v35  ;;  %v11066_v35 = vld [vmem:[#allocation68_spill] sm:$0xff]  ;;  %v1841_v63 = vmul.f32 1.442695, %v1815_v46 }
 0x579   : > { %vm11067_vm12 = vcmp.eq.s32.totalorder %v8107_v60, %v11066_v35 }
 0x57a   : > { %v2286_v58 = vsel %vm11067_vm12, 0.0, %v2270_v3  ;;  %v2493_v3 = vpop.f32.mrf.mxu0  ;;  %vm11095_vm12 = vcmask 261120  }
 0x57b   : > { %v2302_v24 = vsel %vm11069_vm3, %v8738_v6, %v2286_v58  ;;  %vm11098_vm3 = vmmov %vm11095_vm12 }
 0x57c   : > { %5182 = vmatpush.xpose.msk.msra.mxu2 %vm11062_vm15, %v11061_v42  ;;  %1871 = vadd.xlane.f32.xlu1 %v9002_v0  ;;  %v9028_v42 = vsel %vm1237_vm11, -1e+09, %v2485_v59 }
 0x580   : > { %5183 = vmatpush.xpose.msk.msra.mxu2 %vm11056_vm8, %v11065_v50 }
 0x581   : > { %5444 = vrot.lane.b32.xlu2 %v11008_v11, %s11006_s27  ;;  %v2494_v11 = vadd.f32 %v2493_v3, %v2302_v24 }
 0x583   : > { %v9040_v35 = vsel %vm1237_vm11, -1e+09, %v2494_v11 }
 0x584   : > { %2536 = vmax.xlane.f32.xlu1 %v9028_v42  ;;  %v2519_v38 = vpop.xlane.xlu1 %2518 }
 0x585   : > { %v2547_v23 = vsub.f32 %v8779_v43, %v2519_v38 }
 0x587   : > { %v2566_v50 = vmul.f32 1.442695, %v2547_v23 }
 0x589   : > { %5648 = vpow2.f32 %v2566_v50 }
 0x58a   : > { %5650 = vpow2.f32 %v2564_v1 }
 0x58b   : > { %v1862_v59 = vpop.xlane.xlu2 %1861 }
 0x58c   : > { %2542 = vmax.xlane.f32.xlu1 %v9040_v35  ;;  %v9043_v6 = vpop.xlane.xlu1 %1883 }
 0x58f   : > { %v9045_v58 = vpop.eup %5648 }
 0x590   : > { %2598 = vadd.xlane.f32.xlu0 %v9045_v58  ;;  %v9048_v44 = vpop.eup %5650 }
 0x593   : > { %v2523_v43 = vpop.xlane.xlu2 %2522 }
 0x594   : > { %v2549_v37 = vsub.f32 %v8836_v7, %v2523_v43  ;;  %2596 = vadd.xlane.f32.xlu1 %v9048_v44  ;;  %v1860_v24 = vpop.xlane.xlu1 %1859  ;;  %v1864_v43 = vpop.xlane.xlu0 %1863 }
 0x595   : > { %5652 = vrcp.f32 %v1860_v24 }
 0x596   : > { %v2570_v38 = vmul.f32 1.442695, %v2549_v37 }
 0x598   : > { %5654 = vpow2.f32 %v2570_v38 }
 0x599   : > { %5656 = vrcp.f32 %v1862_v59 }
 0x59b   : > { %v5653_v23 = vpop.eup %5652 }
 0x59c   : > { %v2525_v1 = vpop.xlane.xlu1 %2524  ;;  %v1904_v3 = vmul.f32 %v5653_v23, %v8838_v51  ;;  %v11071_v51 = vrot.slane %v8722_v16, 1 }
 0x59d   : > { %v2550_v50 = vsub.f32 %v8865_v61, %v2525_v1 }
 0x59e   : > { %v9056_v11 = vpop.eup %5654  ;;  %1942 = vmatmul.f32.gmra.mxu2 %v1904_v3  ;;  %v2258_v61 = vsel %vm1547_vm1, %v11071_v51, %v11070_v40  ;;  %v11073_v40 = vld [vmem:[#allocation109_spill] sm:$0xff] }
 0x59f   : > { %v2572_v7 = vmul.f32 1.442695, %v2550_v50  ;;  %2602 = vadd.xlane.f32.xlu1 %v9056_v11  ;;  %v5657_v37 = vpop.eup %5656  ;;  %v2282_v24 = vsel %vm1300_vm13, 0.0, %v2258_v61  ;;  %v9086_v50 = vpop.xlane.xlu0 %2526 }
 0x5a0   : > { %v1905_v13 = vmul.f32 %v5657_v37, %v8798_v27  ;;  %v2298_v5 = vsel %vm1268_vm5, %v8722_v16, %v2282_v24  ;;  %v9097_v61 = vpop.permute.xlu2 %3923 }
 0x5a1   : > { %5658 = vpow2.f32 %v2572_v7  ;;  %v2482_v23 = vadd.f32 %v8908_v31, %v2298_v5  ;;  %v11072_v31 = vld [vmem:[#allocation110_spill] sm:$0xff] }
 0x5a2   : > { %5660 = vpow2.f32 %v1841_v63  ;;  %v9093_v51 = vpack.i.bf16 %v11073_v40, %v11072_v31 }
 0x5a3   : > { %5662 = vrcp.f32 %v1864_v43  ;;  %v9083_v3 = vsel %vm1237_vm11, -1e+09, %v2482_v23 }
 0x5a4   : > { %v1866_v63 = vpop.xlane.xlu1 %1865 }
 0x5a5   : > { %5664 = vrcp.f32 %v1866_v63 }
 0x5a6   : > { %1945 = vmatmul.f32.gmra.mxu2 %v1905_v13 }
 0x5a7   : > { %v9066_v59 = vpop.eup %5658  ;;  %v1870_v16 = vpop.xlane.xlu0 %1869 }
 0x5a8   : > { %v9071_v38 = vpop.eup %5660  ;;  %2604 = vadd.xlane.f32.xlu0 %v9066_v59 }
 0x5a9   : > { %v5663_v27 = vpop.eup %5662 }
 0x5aa   : > { %1873 = vadd.xlane.f32.xlu2 %v9071_v38  ;;  %v1906_v46 = vmul.f32 %v5663_v27, %v8774_v19 }
 0x5ab   : > { %v5665_v1 = vpop.eup %5664 }
 0x5ac   : > { %v1907_v7 = vmul.f32 %v5665_v1, %v8872_v54 }
 0x5ae   : > { %1948 = vmatmul.f32.gmra.mxu2 %v1906_v46 }
 0x5af   : > { %v9089_v19 = vpop.xlane.xlu0 %2532 }
 0x5b2   : > { %2534 = vmax.xlane.f32.xlu2 %v9083_v3 }
 0x5b6   : > { %1951 = vmatmul.f32.gmra.mxu2 %v1907_v7 }
 0x5b7   : > { %v9099_v24 = vpop.xlane.xlu0 %1875 }
 0x5bc   : > { %v5440_v43 = vpop.permute.xlu1 %5439 }
 0x5bd   : > { %v5441_v37 = vunpack.i.l.bf16 %v5440_v43  ;;  %v5442_v13 = vunpack.i.h.bf16 %v5440_v43 }
 0x5bf   : > { %4296 = vmatpush.msra.mxu3 %v5441_v37  ;;  %v5455_v63 = vpop.permute.xlu0 %5454 }
 0x5c1   : > { %4297 = vmatpush.msra.mxu3 %v5442_v13 }
 0x5ca   : > { %5449 = vrot.lane.b32.xlu2 %v9093_v51, %s6233_s17 }
 0x5d4   : > { %v1868_v54 = vpop.xlane.xlu2 %1867 }
 0x5d5   : > { %5666 = vrcp.f32 %v1868_v54 }
 0x5d6   : > { %5668 = vrcp.f32 %v1870_v16 }
 0x5db   : > { %v5667_v27 = vpop.eup %5666 }
 0x5dc   : > { %v2529_v5 = vpop.xlane.xlu2 %2528  ;;  %v1908_v46 = vmul.f32 %v5667_v27, %v8926_v9  ;;  %v5669_v7 = vpop.eup %5668 }
 0x5dd   : > { %v2552_v23 = vsub.f32 %v8960_v22, %v2529_v5  ;;  %v1909_v13 = vmul.f32 %v5669_v7, %v8832_v57  ;;  %v11074_v22 = vld [vmem:[#allocation45_spill] sm:$0xff]  ;;  %v5456_v5 = vunpack.i.l.bf16 %v5455_v63 }
 0x5de   : > { %1954 = vmatmul.f32.gmra.mxu2 %v1908_v46  ;;  %vm11075_vm15 = vcmp.eq.s32.totalorder %v8107_v60, %v11074_v22 }
 0x5df   : > { %v2576_v1 = vmul.f32 1.442695, %v2552_v23  ;;  %v2285_v27 = vsel %vm11075_vm15, 0.0, %v8757_v39  ;;  %v5457_v23 = vunpack.i.h.bf16 %v5455_v63  ;;  %vm11101_vm15 = vmmov %vm11098_vm3 }
 0x5e1   : > { %5670 = vpow2.f32 %v2576_v1  ;;  %v9103_v43 = vpop.xlane.xlu0 %2538  ;;  %v11076_v1 = vld [vmem:[#allocation100_spill] sm:$0xff] }
 0x5e2   : > { %vm11077_vm8 = vcmp.le.s32.totalorder %v8107_v60, %v11076_v1 }
 0x5e3   : > { %v2301_v7 = vsel %vm11077_vm8, %v8735_v21, %v2285_v27  ;;  %vm11104_vm8 = vmmov %vm11098_vm3 }
 0x5e4   : > { %v5445_v37 = vpop.permute.xlu2 %5444 }
 0x5e5   : > { %v5446_v31 = vunpack.i.l.bf16 %v5445_v37  ;;  %v5447_v54 = vunpack.i.h.bf16 %v5445_v37  ;;  %v11078_v37 = vld [vmem:[#allocation131_spill] sm:$0xff] }
 0x5e6   : > { %1957 = vmatmul.f32.gmra.mxu2 %v1909_v13  ;;  %v2491_v13 = vadd.f32 %v9004_v47, %v2301_v7 }
 0x5e7   : > { %v9106_v40 = vpop.eup %5670  ;;  %3507 = vmatpush.msrb.mxu0 %v5446_v31  ;;  %v2531_v16 = vpop.xlane.xlu1 %2530 }
 0x5e8   : > { %2608 = vadd.xlane.f32.xlu1 %v9106_v40  ;;  %v2553_v9 = vsub.f32 %v8985_v34, %v2531_v16  ;;  %v2545_v34 = vsub.f32 %v11078_v37, %v8855_v17 }
 0x5e9   : > { %3508 = vmatpush.msrb.mxu0 %v5447_v54  ;;  %v2593_v46 = vpop.xlane.xlu0 %2592 }
 0x5ea   : > { %v2578_v57 = vmul.f32 1.442695, %v2553_v9  ;;  %5672 = vrcp.f32 %v2593_v46  ;;  %v2562_v54 = vmul.f32 1.442695, %v2545_v34  ;;  %v9126_v9 = vsel %vm1237_vm11, -1e+09, %v2491_v13 }
 0x5eb   : > { %3509 = vmatpush.msrb.mxu0 %v5456_v5  ;;  %v11083_v13 = vld [vmem:[#allocation51_spill] sm:$0xff] }
 0x5ec   : > { %5674 = vpow2.f32 %v2578_v57  ;;  %v11079_v57 = vld [vmem:[#allocation94_spill] sm:$0xff] }
 0x5ed   : > { %3510 = vmatpush.msrb.mxu0 %v5457_v23  ;;  %v11080_v23 = vld [vmem:[#allocation93_spill] sm:$0xff] }
 0x5ee   : > { %v9140_v7 = vpack.i.bf16 %v11080_v23, %v11079_v57 }
 0x5ef   : > { %v1872_v39 = vpop.xlane.xlu1 %1871 }
 0x5f0   : > { %v5673_v31 = vpop.eup %5672  ;;  %5676 = vrcp.f32 %v1872_v39  ;;  %v11084_v39 = vld [vmem:[#allocation50_spill] sm:$0xff] }
 0x5f1   : > { %v2640_v16 = vmul.f32 %v5673_v31, %v8990_v36  ;;  %5678 = vpow2.f32 %v2562_v54  ;;  %v5488_v31 = vpack.i.bf16 %v11084_v39, %v11083_v13 }
 0x5f2   : > { %v9122_v63 = vpop.eup %5674 }
 0x5f3   : > { %2540 = vmax.xlane.f32.xlu2 %v9126_v9  ;;  %2736 = vmatmul.f32.vlgmr.msrb.gmra.mxu1 %v2640_v16 }
 0x5f4   : > { %2610 = vadd.xlane.f32.xlu0 %v9122_v63 }
 0x5f6   : > { %v5677_v21 = vpop.eup %5676 }
 0x5f7   : > { %v2537_v17 = vpop.xlane.xlu1 %2536  ;;  %v1910_v47 = vmul.f32 %v5677_v21, %v9002_v0  ;;  %v9132_v36 = vpop.eup %5678  ;;  %v11081_v0 = vld [vmem:[#allocation59_spill] sm:$0xff] }
 0x5f8   : > { %v2556_v27 = vsub.f32 %v9028_v42, %v2537_v17  ;;  %v11082_v42 = vld [vmem:[#allocation58_spill] sm:$0xff]  ;;  %v11085_v17 = vld [vmem:[#allocation37_spill] sm:$0xff] }
 0x5f9   : > { %1960 = vmatmul.f32.gmra.mxu2 %v1910_v47  ;;  %v9146_v37 = vpack.i.bf16 %v11082_v42, %v11081_v0  ;;  %v11086_v47 = vld [vmem:[#allocation36_spill] sm:$0xff] }
 0x5fa   : > { %v2584_v5 = vmul.f32 1.442695, %v2556_v27  ;;  %v9157_v27 = vpack.i.bf16 %v11086_v47, %v11085_v17  ;;  %v2554_v47 = vsub.f32 %v8860_v14, %v9089_v19  ;;  %v11091_v14 = vld [vmem:[#allocation88_spill] sm:$0xff]  ;;  %v11092_v19 = vld [vmem:[#allocation87_spill] sm:$0xff] }
 0x5fb   : > { %2594 = vadd.xlane.f32.xlu2 %v9132_v36 }
 0x5fc   : > { %5680 = vpow2.f32 %v2584_v5 }
 0x602   : > { %v9135_v46 = vpop.eup %5680 }
 0x603   : > { %2616 = vadd.xlane.f32.xlu0 %v9135_v46 }
 0x613   : > { %5459 = vrot.lane.b32.xlu2 %v9140_v7, %s6233_s17 }
 0x617   : > { %5479 = vrot.lane.b32.xlu0 %v9146_v37, %s6233_s17 }
 0x61d   : > { %v1874_v34 = vpop.xlane.xlu2 %1873 }
 0x61e   : > { %5682 = vrcp.f32 %v1874_v34 }
 0x61f   : > { %5489 = vrot.lane.b32.xlu0 %v5488_v31, %s6233_s17  ;;  %5684 = vrcp.f32 %v9099_v24  ;;  %v11087_v24 = vld [vmem:[#allocation132_spill] sm:$0xff] }
 0x620   : > { %v2548_v0 = vsub.f32 %v11087_v24, %v8889_v56  ;;  %v2551_v56 = vsub.f32 %v8802_v20, %v9086_v50  ;;  %v2580_v20 = vmul.f32 1.442695, %v2554_v47 }
 0x622   : > { %v2568_v39 = vmul.f32 1.442695, %v2548_v0 }
 0x624   : > { %v5683_v54 = vpop.eup %5682 }
 0x625   : > { %v2535_v16 = vpop.xlane.xlu2 %2534  ;;  %v1911_v21 = vmul.f32 %v5683_v54, %v9071_v38  ;;  %v5685_v23 = vpop.eup %5684 }
 0x626   : > { %v2555_v5 = vsub.f32 %v9083_v3, %v2535_v16  ;;  %v1912_v38 = vmul.f32 %v5685_v23, %v8870_v26  ;;  %v2574_v26 = vmul.f32 1.442695, %v2551_v56 }
 0x627   : > { %1963 = vmatmul.f32.gmra.mxu2 %v1911_v21  ;;  %5499 = vrot.lane.b32.xlu0 %v9157_v27, %s6233_s17 }
 0x628   : > { %v2582_v57 = vmul.f32 1.442695, %v2555_v5 }
 0x62a   : > { %5686 = vpow2.f32 %v2582_v57  ;;  %v2543_v57 = vpop.xlane.xlu1 %2542 }
 0x62b   : > { %5688 = vrcp.f32 %v8902_v29  ;;  %v11088_v29 = vld [vmem:[#allocation133_spill] sm:$0xff]  ;;  %v2559_v23 = vsub.f32 %v9040_v35, %v2543_v57 }
 0x62c   : > { %5690 = vrcp.f32 %v8894_v15  ;;  %v11089_v15 = vld [vmem:[#allocation134_spill] sm:$0xff] }
 0x62d   : > { %v5450_v42 = vpop.permute.xlu2 %5449  ;;  %5692 = vpow2.f32 %v2568_v39 }
 0x62e   : > { %v5451_v34 = vunpack.i.l.bf16 %v5450_v42  ;;  %v5452_v3 = vunpack.i.h.bf16 %v5450_v42  ;;  %5694 = vrcp.f32 %v8880_v48  ;;  %v11090_v48 = vld [vmem:[#allocation43_spill] sm:$0xff]  ;;  %v2590_v42 = vmul.f32 1.442695, %v2559_v23 }
 0x62f   : > { %1966 = vmatmul.f32.gmra.mxu2 %v1912_v38  ;;  %5696 = vpow2.f32 %v2574_v26  ;;  %v5483_v38 = vpack.i.bf16 %v11092_v19, %v11091_v14  ;;  %v11100_v26 = vld [vmem:[#allocation86_spill] sm:$0xff]  ;;  %v2599_v14 = vpop.xlane.xlu0 %2598 }
 0x630   : > { %v9166_v13 = vpop.eup %5686  ;;  %4298 = vmatpush.msra.mxu3 %v5451_v34  ;;  %5698 = vrcp.f32 %v9043_v6  ;;  %v9193_v6 = vpop.f32.mrf.mxu2 }
 0x631   : > { %2614 = vadd.xlane.f32.xlu1 %v9166_v13  ;;  %v5689_v54 = vpop.eup %5688  ;;  %5700 = vpow2.f32 %v2580_v20  ;;  %11093 = vst [vmem:[#allocation47_spill] sm:$0xff] %v9193_v6 }
 0x632   : > { %4299 = vmatpush.msra.mxu3 %v5452_v3  ;;  %v1913_v16 = vmul.f32 %v5689_v54, %v11088_v29  ;;  %v5691_v21 = vpop.eup %5690  ;;  %5702 = vpow2.f32 %v2590_v42  ;;  %v11094_v54 = vld [vmem:[#allocation67_spill] sm:$0xff]  ;;  %v11097_v29 = vld [vmem:[#allocation60_spill] sm:$0xff] }
 0x633   : > { %v9173_v17 = vpop.eup %5692  ;;  %v1914_v5 = vmul.f32 %v5691_v21, %v11089_v15  ;;  %v11103_v15 = vld [vmem:[#allocation107_spill] sm:$0xff] }
 0x634   : > { %v5695_v50 = vpop.eup %5694 }
 0x635   : > { %v9181_v24 = vpop.eup %5696  ;;  %v1915_v0 = vmul.f32 %v5695_v50, %v11090_v48 }
 0x636   : > { %v5699_v34 = vpop.eup %5698 }
 0x637   : > { %1969 = vmatmul.f32.gmra.mxu2 %v1913_v16  ;;  %v9189_v3 = vpop.eup %5700  ;;  %v1916_v35 = vmul.f32 %v5699_v34, %v8804_v32  ;;  %v2557_v34 = vsub.f32 %v8976_v62, %v9103_v43 }
 0x638   : > { %v9195_v39 = vpop.eup %5702  ;;  %v9201_v56 = vpop.f32.mrf.mxu2 }
 0x639   : > { %11096 = vst [vmem:[#allocation105_spill] sm:$0xff] %v9201_v56 }
 0x63c   : > { %2600 = vadd.xlane.f32.xlu2 %v9173_v17 }
 0x63f   : > { %1972 = vmatmul.f32.gmra.mxu2 %v1914_v5  ;;  %v2597_v5 = vpop.xlane.xlu1 %2596 }
 0x640   : > { %v9205_v16 = vpop.f32.mrf.mxu2 }
 0x641   : > { %11099 = vst [vmem:[#allocation98_spill] sm:$0xff] %v9205_v16 }
 0x644   : > { %2606 = vadd.xlane.f32.xlu2 %v9181_v24 }
 0x647   : > { %1975 = vmatmul.f32.gmra.mxu2 %v1915_v0  ;;  %v11106_v0 = vld [vmem:[#allocation106_spill] sm:$0xff] }
 0x648   : > { %v9211_v21 = vpop.f32.mrf.mxu2 }
 0x649   : > { %11102 = vst [vmem:[#allocation63_spill] sm:$0xff] %v9211_v21 }
 0x64a   : > { %5484 = vrot.lane.b32.xlu1 %v5483_v38, %s11006_s27 }
 0x64c   : > { %2612 = vadd.xlane.f32.xlu2 %v9189_v3 }
 0x64f   : > { %1978 = vmatmul.f32.gmra.mxu2 %v1916_v35 }
 0x650   : > { %v9216_v20 = vpop.f32.mrf.mxu2 }
 0x651   : > { %2622 = vadd.xlane.f32.xlu0 %v9195_v39  ;;  %11105 = vst [vmem:[#allocation126_spill] sm:$0xff] %v9216_v20 }
 0x652   : > { %5504 = vrot.lane.b32.xlu1 %v5488_v31, %s11006_s27 }
 0x657   : > { %5088 = vmatmul.msk.f32.vlgmr.msrb.gmra.mxu2 %vm11095_vm12, %v11094_v54  ;;  %vm11107_vm12 = vmmov %vm11098_vm3  ;;  %v11109_v54 = vld [vmem:[#allocation115_spill] sm:$0xff] }
 0x658   : > { %v9226_v35 = vpop.f32.mrf.mxu2 }
 0x659   : > { %11108 = vst [vmem:[#allocation99_spill] sm:$0xff] %v9226_v35 }
 0x65f   : > { %5089 = vmatmul.msk.f32.gmra.mxu2 %vm11098_vm3, %v11097_v29  ;;  %v2586_v29 = vmul.f32 1.442695, %v2557_v34 }
 0x664   : > { %5464 = vrot.lane.b32.xlu2 %v9093_v51, %s11006_s27 }
 0x666   : > { %v2541_v32 = vpop.xlane.xlu2 %2540 }
 0x667   : > { %5090 = vmatmul.msk.f32.gmra.mxu2 %vm11101_vm15, %v11100_v26  ;;  %v2558_v31 = vsub.f32 %v9126_v9, %v2541_v32  ;;  %vm11111_vm15 = vmmov %vm11098_vm3 }
 0x669   : > { %v2588_v57 = vmul.f32 1.442695, %v2558_v31  ;;  %v11110_v31 = vld [vmem:[#allocation124_spill] sm:$0xff] }
 0x66e   : > { %v2595_v47 = vpop.xlane.xlu2 %2594 }
 0x66f   : > { %5704 = vrcp.f32 %v2595_v47  ;;  %5091 = vmatmul.msk.f32.gmra.mxu2 %vm11104_vm8, %v11103_v15  ;;  %v9234_v47 = vpop.f32.mrf.mxu2  ;;  %vm11114_vm8 = vmmov %vm11098_vm3  ;;  %v11116_v15 = vld [vmem:[#allocation65_spill] sm:$0xff] }
 0x670   : > { %5706 = vrcp.f32 %v2597_v5  ;;  %11112 = vst [vmem:[#allocation76_spill] sm:$0xff] %v9234_v47 }
 0x671   : > { %5708 = vpow2.f32 %v2588_v57 }
 0x672   : > { %5710 = vrcp.f32 %v2599_v14  ;;  %v11127_v14 = vld [vmem:[#allocation72_spill] sm:$0xff] }
 0x673   : > { %5712 = vpow2.f32 %v2586_v29 }
 0x675   : > { %v5705_v50 = vpop.eup %5704 }
 0x676   : > { %v5460_v51 = vpop.permute.xlu2 %5459  ;;  %v2641_v23 = vmul.f32 %v5705_v50, %v9132_v36  ;;  %v5707_v42 = vpop.eup %5706  ;;  %v11121_v50 = vld [vmem:[#allocation84_spill] sm:$0xff] }
 0x677   : > { %v5461_v48 = vunpack.i.l.bf16 %v5460_v51  ;;  %5092 = vmatmul.msk.f32.gmra.mxu2 %vm11107_vm12, %v11106_v0  ;;  %v5462_v9 = vunpack.i.h.bf16 %v5460_v51  ;;  %v9221_v19 = vpop.eup %5708  ;;  %v2642_v36 = vmul.f32 %v5707_v42, %v9048_v44  ;;  %v11113_v44 = vld [vmem:[#allocation55_spill] sm:$0xff]  ;;  %v9241_v43 = vpop.f32.mrf.mxu2  ;;  %vm11117_vm12 = vmmov %vm11098_vm3 }
 0x678   : > { %2739 = vmatmul.f32.gmra.mxu1 %v2641_v23  ;;  %v5711_v32 = vpop.eup %5710  ;;  %11115 = vst [vmem:[#allocation52_spill] sm:$0xff] %v9241_v43  ;;  %v11207_v43 = vld [vmem:[#allocation32_spill] sm:$0xff] }
 0x679   : > { %4300 = vmatpush.msra.mxu3 %v5461_v48  ;;  %v2643_v26 = vmul.f32 %v5711_v32, %v9045_v58  ;;  %v9236_v62 = vpop.eup %5712  ;;  %v11119_v58 = vld [vmem:[#allocation77_spill] sm:$0xff]  ;;  %v11124_v48 = vld [vmem:[#allocation108_spill] sm:$0xff]  ;;  %v11130_v32 = vld [vmem:[#allocation71_spill] sm:$0xff] }
 0x67b   : > { %4301 = vmatpush.msra.mxu3 %v5462_v9  ;;  %v2603_v9 = vpop.xlane.xlu1 %2602 }
 0x67c   : > { %2620 = vadd.xlane.f32.xlu1 %v9221_v19 }
 0x67f   : > { %5093 = vmatmul.msk.f32.gmra.mxu2 %vm11098_vm3, %v11109_v54  ;;  %v9245_v5 = vpop.f32.mrf.mxu2 }
 0x680   : > { %2742 = vmatmul.f32.gmra.mxu1 %v2642_v36  ;;  %11118 = vst [vmem:[#allocation118_spill] sm:$0xff] %v9245_v5  ;;  %v2605_v36 = vpop.xlane.xlu0 %2604 }
 0x687   : > { %5094 = vmatmul.msk.f32.gmra.mxu2 %vm11111_vm15, %v11110_v31  ;;  %v9249_v57 = vpop.f32.mrf.mxu2  ;;  %vm11122_vm15 = vmmov %vm11098_vm3 }
 0x688   : > { %2745 = vmatmul.f32.gmra.mxu1 %v2643_v26  ;;  %11120 = vst [vmem:[#allocation49_spill] sm:$0xff] %v9249_v57 }
 0x68d   : > { %2618 = vadd.xlane.f32.xlu2 %v9236_v62 }
 0x68f   : > { %5095 = vmatmul.msk.f32.gmra.mxu2 %vm11114_vm8, %v11113_v44  ;;  %vm11125_vm8 = vmmov %vm11098_vm3 }
 0x697   : > { %5096 = vmatmul.msk.f32.gmra.mxu2 %vm11117_vm12, %v11116_v15  ;;  %vm11128_vm12 = vmmov %vm11098_vm3  ;;  %v11132_v15 = vld [vmem:[#allocation97_spill] sm:$0xff] }
 0x69f   : > { %5097 = vmatmul.msk.f32.gmra.mxu2 %vm11098_vm3, %v11119_v58 }
 0x6a5   : > { %5469 = vrot.lane.b32.xlu2 %v5483_v38, %s6233_s17 }
 0x6a7   : > { %5098 = vmatmul.msk.f32.gmra.mxu2 %vm11122_vm15, %v11121_v50  ;;  %vm11133_vm15 = vmmov %vm11098_vm3 }
 0x6aa   : > { %v9254_v51 = vpop.f32.mrf.mxu2 }
 0x6ab   : > { %11123 = vst [vmem:[#allocation111_spill] sm:$0xff] %v9254_v51  ;;  %v11203_v51 = vld [vmem:[#allocation46_spill] sm:$0xff] }
 0x6ad   : > { %5474 = vrot.lane.b32.xlu2 %v9140_v7, %s11006_s27 }
 0x6af   : > { %v2601_v23 = vpop.xlane.xlu2 %2600  ;;  %5099 = vmatmul.msk.f32.gmra.mxu2 %vm11125_vm8, %v11124_v48  ;;  %v2609_v48 = vpop.xlane.xlu1 %2608  ;;  %vm11136_vm8 = vmmov %vm11098_vm3 }
 0x6b0   : > { %5714 = vrcp.f32 %v2601_v23 }
 0x6b1   : > { %5716 = vrcp.f32 %v2603_v9 }
 0x6b2   : > { %v9260_v0 = vpop.f32.mrf.mxu2  ;;  %5718 = vrcp.f32 %v2605_v36 }
 0x6b3   : > { %11126 = vst [vmem:[#allocation69_spill] sm:$0xff] %v9260_v0 }
 0x6b5   : > { %5494 = vrot.lane.b32.xlu2 %v9146_v37, %s11006_s27 }
 0x6b6   : > { %v5715_v38 = vpop.eup %5714 }
 0x6b7   : > { %v2607_v42 = vpop.xlane.xlu2 %2606  ;;  %5100 = vmatmul.msk.f32.gmra.mxu2 %vm11128_vm12, %v11127_v14  ;;  %v2644_v34 = vmul.f32 %v5715_v38, %v9173_v17  ;;  %v5717_v54 = vpop.eup %5716  ;;  %vm11139_vm12 = vmmov %vm11098_vm3 }
 0x6b8   : > { %v2645_v37 = vmul.f32 %v5717_v54, %v9056_v11  ;;  %v5719_v31 = vpop.eup %5718  ;;  %5720 = vrcp.f32 %v2607_v42  ;;  %v11135_v11 = vld [vmem:[#allocation117_spill] sm:$0xff]  ;;  %v2611_v14 = vpop.xlane.xlu0 %2610 }
 0x6b9   : > { %2748 = vmatmul.f32.gmra.mxu1 %v2644_v34  ;;  %v2646_v17 = vmul.f32 %v5719_v31, %v9066_v59  ;;  %5722 = vrcp.f32 %v2609_v48  ;;  %v11138_v34 = vld [vmem:[#allocation62_spill] sm:$0xff] }
 0x6ba   : > { %v9267_v7 = vpop.f32.mrf.mxu2  ;;  %5724 = vrcp.f32 %v2611_v14  ;;  %v11147_v14 = vld [vmem:[#allocation90_spill] sm:$0xff] }
 0x6bb   : > { %11129 = vst [vmem:[#allocation121_spill] sm:$0xff] %v9267_v7 }
 0x6be   : > { %v5721_v9 = vpop.eup %5720 }
 0x6bf   : > { %v2613_v29 = vpop.xlane.xlu2 %2612  ;;  %5101 = vmatmul.msk.f32.gmra.mxu2 %vm11098_vm3, %v11130_v32  ;;  %v2647_v38 = vmul.f32 %v5721_v9, %v9181_v24  ;;  %v5723_v59 = vpop.eup %5722 }
 0x6c0   : > { %v2648_v36 = vmul.f32 %v5723_v59, %v9106_v40  ;;  %v5725_v32 = vpop.eup %5724  ;;  %5726 = vrcp.f32 %v2613_v29 }
 0x6c1   : > { %2751 = vmatmul.f32.gmra.mxu1 %v2645_v37  ;;  %v11140_v37 = vld [vmem:[#allocation57_spill] sm:$0xff]  ;;  %v2649_v24 = vmul.f32 %v5725_v32, %v9122_v63  ;;  %v11145_v63 = vld [vmem:[#allocation95_spill] sm:$0xff] }
 0x6c2   : > { %v9272_v26 = vpop.f32.mrf.mxu2 }
 0x6c3   : > { %11131 = vst [vmem:[#allocation125_spill] sm:$0xff] %v9272_v26  ;;  %v11200_v26 = vld [vmem:[#allocation104_spill] sm:$0xff] }
 0x6c7   : > { %v5465_v44 = vpop.permute.xlu2 %5464  ;;  %5102 = vmatmul.msk.f32.gmra.mxu2 %vm11133_vm15, %v11132_v15  ;;  %v5727_v15 = vpop.eup %5726  ;;  %vm11143_vm15 = vmmov %vm11098_vm3 }
 0x6c8   : > { %v5466_v58 = vunpack.i.l.bf16 %v5465_v44  ;;  %v5467_v50 = vunpack.i.h.bf16 %v5465_v44  ;;  %v2615_v44 = vpop.xlane.xlu1 %2614  ;;  %v2650_v40 = vmul.f32 %v5727_v15, %v9189_v3 }
 0x6c9   : > { %2754 = vmatmul.f32.gmra.mxu1 %v2646_v17  ;;  %5728 = vrcp.f32 %v2615_v44  ;;  %v11142_v17 = vld [vmem:[#allocation101_spill] sm:$0xff] }
 0x6ca   : > { %v9277_v23 = vpop.f32.mrf.mxu2  ;;  %3511 = vmatpush.msrb.mxu0 %v5466_v58  ;;  %v2617_v58 = vpop.xlane.xlu0 %2616 }
 0x6cb   : > { %11134 = vst [vmem:[#allocation89_spill] sm:$0xff] %v9277_v23  ;;  %5730 = vrcp.f32 %v2617_v58 }
 0x6cc   : > { %3512 = vmatpush.msrb.mxu0 %v5467_v50 }
 0x6cf   : > { %5103 = vmatmul.msk.f32.gmra.mxu2 %vm11136_vm8, %v11135_v11  ;;  %v5729_v50 = vpop.eup %5728  ;;  %vm11146_vm8 = vmmov %vm11098_vm3 }
 0x6d0   : > { %v2651_v48 = vmul.f32 %v5729_v50, %v9166_v13  ;;  %v9299_v11 = vpop.permute.xlu1 %5484  ;;  %v11149_v13 = vld [vmem:[#allocation83_spill] sm:$0xff] }
 0x6d1   : > { %2757 = vmatmul.f32.gmra.mxu1 %v2647_v38  ;;  %v5731_v3 = vpop.eup %5730 }
 0x6d2   : > { %v9282_v42 = vpop.f32.mrf.mxu2  ;;  %v5480_v9 = vpop.permute.xlu0 %5479  ;;  %v2652_v59 = vmul.f32 %v5731_v3, %v9135_v46  ;;  %v11150_v46 = vld [vmem:[#allocation123_spill] sm:$0xff]  ;;  %v11152_v3 = vld [vmem:[#allocation102_spill] sm:$0xff] }
 0x6d3   : > { %11137 = vst [vmem:[#allocation73_spill] sm:$0xff] %v9282_v42 }
 0x6d7   : > { %5184 = vmatmul.msk.f32.vlgmr.msra.gmra.mxu2 %vm11139_vm12, %v11138_v34  ;;  %vm11148_vm12 = vmmov %vm11098_vm3 }
 0x6d9   : > { %2760 = vmatmul.f32.gmra.mxu1 %v2648_v36 }
 0x6da   : > { %v2930_v54 = vpop.f32.mrf.mxu2  ;;  %v5490_v34 = vpop.permute.xlu0 %5489 }
 0x6db   : > { %2980 = vrot.lane.b32.xlu0 %v2930_v54, %s6236_s26  ;;  %v9306_v54 = vpop.permute.xlu1 %5504 }
 0x6df   : > { %5185 = vmatmul.msk.f32.gmra.mxu2 %vm11098_vm3, %v11140_v37 }
 0x6e1   : > { %2763 = vmatmul.f32.gmra.mxu1 %v2649_v24 }
 0x6e2   : > { %v2933_v31 = vpop.f32.mrf.mxu2  ;;  %v5500_v24 = vpop.permute.xlu0 %5499 }
 0x6e3   : > { %2984 = vrot.lane.b32.xlu1 %v2933_v31, %s11141_s4 }
 0x6e7   : > { %5186 = vmatmul.msk.f32.gmra.mxu2 %vm11143_vm15, %v11142_v17  ;;  %vm11151_vm15 = vmmov %vm11098_vm3 }
 0x6e9   : > { %2766 = vmatmul.f32.gmra.mxu1 %v2650_v40 }
 0x6ea   : > { %v2936_v29 = vpop.f32.mrf.mxu2  ;;  %v2623_v50 = vpop.xlane.xlu0 %2622 }
 0x6eb   : > { %2988 = vrot.lane.b32.xlu2 %v2936_v29, %s11144_s6 }
 0x6ef   : > { %5187 = vmatmul.msk.f32.gmra.mxu2 %vm11146_vm8, %v11145_v63  ;;  %v2621_v31 = vpop.xlane.xlu1 %2620  ;;  %vm11153_vm8 = vmmov %vm11098_vm3 }
 0x6f1   : > { %2769 = vmatmul.f32.gmra.mxu1 %v2651_v48  ;;  %v5481_v48 = vunpack.i.l.bf16 %v5480_v9 }
 0x6f2   : > { %v2939_v38 = vpop.f32.mrf.mxu2 }
 0x6f3   : > { %2992 = vrot.lane.b32.xlu0 %v2939_v38, %s6239_s9  ;;  %v5482_v38 = vunpack.i.h.bf16 %v5480_v9  ;;  %v5492_v9 = vunpack.i.h.bf16 %v5490_v34 }
 0x6f7   : > { %5188 = vmatmul.msk.f32.gmra.mxu2 %vm11148_vm12, %v11147_v14  ;;  %vm11156_vm12 = vmmov %vm11098_vm3 }
 0x6f9   : > { %2772 = vmatmul.f32.gmra.mxu1 %v2652_v59 }
 0x6fa   : > { %v2942_v36 = vpop.f32.mrf.mxu2 }
 0x6fb   : > { %2996 = vrot.lane.b32.xlu1 %v2942_v36, %s6241_s29  ;;  %v9318_v36 = vpop.f32.mrf.mxu1 }
 0x6fc   : > { %11154 = vst [vmem:[#allocation129_spill] sm:$0xff] %v9318_v36 }
 0x6ff   : > { %5189 = vmatmul.msk.f32.gmra.mxu2 %vm11098_vm3, %v11149_v13  ;;  %v5491_v13 = vunpack.i.l.bf16 %v5490_v34 }
 0x700   : > { %v2619_v32 = vpop.xlane.xlu2 %2618 }
 0x701   : > { %5732 = vrcp.f32 %v2619_v32 }
 0x702   : > { %v2945_v37 = vpop.f32.mrf.mxu2  ;;  %5734 = vrcp.f32 %v2621_v31 }
 0x703   : > { %3000 = vrot.lane.b32.xlu2 %v2945_v37, %s6244_s7  ;;  %5736 = vrcp.f32 %v2623_v50  ;;  %v9326_v34 = vpop.f32.mrf.mxu1 }
 0x704   : > { %11157 = vst [vmem:[#allocation70_spill] sm:$0xff] %v9326_v34 }
 0x707   : > { %v5733_v44 = vpop.eup %5732  ;;  %5190 = vmatmul.msk.f32.gmra.mxu2 %vm11151_vm15, %v11150_v46  ;;  %v5501_v46 = vunpack.i.l.bf16 %v5500_v24  ;;  %vm11160_vm15 = vmmov %vm11098_vm3 }
 0x708   : > { %v5470_v15 = vpop.permute.xlu2 %5469  ;;  %v2653_v17 = vmul.f32 %v5733_v44, %v9236_v62  ;;  %v5735_v63 = vpop.eup %5734  ;;  %v5486_v44 = vunpack.i.l.bf16 %v9299_v11 }
 0x709   : > { %v5471_v40 = vunpack.i.l.bf16 %v5470_v15  ;;  %v5472_v29 = vunpack.i.h.bf16 %v5470_v15  ;;  %v2654_v62 = vmul.f32 %v5735_v63, %v9221_v19  ;;  %v5737_v31 = vpop.eup %5736  ;;  %v5487_v19 = vunpack.i.h.bf16 %v9299_v11  ;;  %v11155_v15 = vld [vmem:[#allocation61_spill] sm:$0xff] }
 0x70a   : > { %2775 = vmatmul.f32.gmra.mxu1 %v2653_v17  ;;  %v2948_v58 = vpop.f32.mrf.mxu2  ;;  %v5502_v17 = vunpack.i.h.bf16 %v5500_v24  ;;  %v5506_v11 = vunpack.i.l.bf16 %v9306_v54  ;;  %v5507_v24 = vunpack.i.h.bf16 %v9306_v54 }
 0x70b   : > { %3004 = vrot.lane.b32.xlu0 %v2948_v58, %s6246_s1  ;;  %4302 = vmatpush.msra.mxu3 %v5471_v40  ;;  %v2655_v58 = vmul.f32 %v5737_v31, %v9195_v39  ;;  %v11171_v31 = vld [vmem:[#allocation130_spill] sm:$0xff] }
 0x70d   : > { %4303 = vmatpush.msra.mxu3 %v5472_v29 }
 0x70f   : > { %5191 = vmatmul.msk.f32.gmra.mxu2 %vm11153_vm8, %v11152_v3  ;;  %4304 = vmatpush.msra.mxu3 %v5481_v48  ;;  %v11158_v48 = vld [vmem:[#allocation80_spill] sm:$0xff]  ;;  %v9336_v3 = vpop.f32.mrf.mxu1  ;;  %vm11163_vm8 = vmmov %vm11098_vm3 }
 0x710   : > { %v5475_v14 = vpop.permute.xlu2 %5474  ;;  %11161 = vst [vmem:[#allocation30_spill] sm:$0xff] %v9336_v3 }
 0x711   : > { %v5476_v59 = vunpack.i.l.bf16 %v5475_v14  ;;  %4305 = vmatpush.msra.mxu3 %v5482_v38  ;;  %v5477_v37 = vunpack.i.h.bf16 %v5475_v14  ;;  %v11159_v38 = vld [vmem:[#allocation92_spill] sm:$0xff]  ;;  %v11162_v14 = vld [vmem:[#allocation53_spill] sm:$0xff] }
 0x712   : > { %2778 = vmatmul.f32.gmra.mxu1 %v2654_v62  ;;  %v2951_v32 = vpop.f32.mrf.mxu2 }
 0x713   : > { %3513 = vmatpush.msrb.mxu0 %v5476_v59  ;;  %3008 = vrot.lane.b32.xlu1 %v2951_v32, %s6242_s18  ;;  %v11164_v59 = vld [vmem:[#allocation56_spill] sm:$0xff] }
 0x714   : > { %4306 = vmatpush.msra.mxu3 %v5491_v13  ;;  %v11167_v13 = vld [vmem:[#allocation103_spill] sm:$0xff] }
 0x715   : > { %3514 = vmatpush.msrb.mxu0 %v5477_v37  ;;  %v11168_v37 = vld [vmem:[#allocation74_spill] sm:$0xff] }
 0x716   : > { %4307 = vmatpush.msra.mxu3 %v5492_v9 }
 0x717   : > { %3515 = vmatpush.msrb.mxu0 %v5486_v44  ;;  %5192 = vmatmul.msk.f32.gmra.mxu2 %vm11156_vm12, %v11155_v15  ;;  %vm11165_vm12 = vmmov %vm11098_vm3  ;;  %v9343_v54 = vpop.f32.mrf.mxu1  ;;  %v11176_v15 = vld [vmem:[#allocation81_spill] sm:$0xff] }
 0x718   : > { %4308 = vmatpush.msra.mxu3 %v5501_v46  ;;  %v5495_v40 = vpop.permute.xlu2 %5494  ;;  %11166 = vst [vmem:[#allocation113_spill] sm:$0xff] %v9343_v54  ;;  %v11173_v46 = vld [vmem:[#allocation116_spill] sm:$0xff] }
 0x719   : > { %v5496_v29 = vunpack.i.l.bf16 %v5495_v40  ;;  %3516 = vmatpush.msrb.mxu0 %v5487_v19  ;;  %v5497_v63 = vunpack.i.h.bf16 %v5495_v40 }
 0x71a   : > { %4309 = vmatpush.msra.mxu3 %v5502_v17  ;;  %2781 = vmatmul.f32.gmra.mxu1 %v2655_v58  ;;  %v2954_v50 = vpop.f32.mrf.mxu2  ;;  %v9361_v17 = vpop.f32.mrf.mxu3  ;;  %v11177_v58 = vld [vmem:[#allocation85_spill] sm:$0xff] }
 0x71b   : > { %3012 = vrot.lane.b32.xlu2 %v2954_v50, %s6247_s0  ;;  %3517 = vmatpush.msrb.mxu0 %v5496_v29 }
 0x71d   : > { %3518 = vmatpush.msrb.mxu0 %v5497_v63  ;;  %v11181_v63 = vld [vmem:[#allocation35_spill] sm:$0xff] }
 0x71f   : > { %3519 = vmatpush.msrb.mxu0 %v5506_v11  ;;  %5193 = vmatmul.msk.f32.gmra.mxu2 %vm11098_vm3, %v11158_v48  ;;  %v11184_v48 = vld [vmem:[#allocation114_spill] sm:$0xff] }
 0x721   : > { %3520 = vmatpush.msrb.mxu0 %v5507_v24 }
 0x722   : > { %v2957_v39 = vpop.f32.mrf.mxu2  ;;  %5152 = vmatmul.msk.f32.vlgmr.msra.gmra.mxu1 %vm11160_vm15, %v11159_v38  ;;  %vm11169_vm15 = vmmov %vm11098_vm3  ;;  %v9373_v11 = vpop.f32.mrf.mxu3 }
 0x723   : > { %3016 = vrot.lane.b32.xlu0 %v2957_v39, %s6248_s14 }
 0x727   : > { %5194 = vmatmul.msk.f32.gmra.mxu2 %vm11163_vm8, %v11162_v14  ;;  %vm11172_vm8 = vmmov %vm11098_vm3 }
 0x72a   : > { %v2960_v62 = vpop.f32.mrf.mxu2  ;;  %5153 = vmatmul.msk.f32.gmra.mxu1 %vm11165_vm12, %v11164_v59  ;;  %vm11174_vm12 = vmmov %vm11098_vm3 }
 0x72b   : > { %3020 = vrot.lane.b32.xlu1 %v2960_v62, %s6245_s16 }
 0x72f   : > { %5195 = vmatmul.msk.f32.gmra.mxu2 %vm11098_vm3, %v11167_v13  ;;  %v11187_v13 = vld [vmem:[#allocation44_spill] sm:$0xff] }
 0x732   : > { %v2963_v32 = vpop.f32.mrf.mxu2  ;;  %5154 = vmatmul.msk.f32.gmra.mxu1 %vm11169_vm15, %v11168_v37  ;;  %vm11178_vm15 = vmmov %vm11098_vm3 }
 0x733   : > { %3024 = vrot.lane.b32.xlu2 %v2963_v32, %s6249_s20 }
 0x736   : > { %v9350_v9 = vpop.f32.mrf.mxu1 }
 0x737   : > { %11170 = vst [vmem:[#allocation34_spill] sm:$0xff] %v9350_v9  ;;  %5196 = vmatmul.msk.f32.gmra.mxu2 %vm11172_vm8, %v11171_v31  ;;  %vm11180_vm8 = vmmov %vm11098_vm3 }
 0x73a   : > { %v2966_v44 = vpop.f32.mrf.mxu2  ;;  %5155 = vmatmul.msk.f32.gmra.mxu1 %vm11174_vm12, %v11173_v46  ;;  %vm11182_vm12 = vmmov %vm11098_vm3 }
 0x73b   : > { %3028 = vrot.lane.b32.xlu0 %v2966_v44, %s6237_s8  ;;  %v11190_v44 = vld [vmem:[#allocation120_spill] sm:$0xff] }
 0x73e   : > { %v9357_v19 = vpop.f32.mrf.mxu1 }
 0x73f   : > { %11175 = vst [vmem:[#allocation119_spill] sm:$0xff] %v9357_v19  ;;  %5197 = vmatmul.msk.f32.gmra.mxu2 %vm11098_vm3, %v11176_v15 }
 0x742   : > { %v2969_v40 = vpop.f32.mrf.mxu2  ;;  %5156 = vmatmul.msk.f32.gmra.mxu1 %vm11178_vm15, %v11177_v58  ;;  %vm11185_vm15 = vmmov %vm11098_vm3  ;;  %v11193_v58 = vld [vmem:[#allocation38_spill] sm:$0xff] }
 0x743   : > { %3032 = vrot.lane.b32.xlu1 %v2969_v40, %s6234_s21 }
 0x745   : > { %v9381_v39 = vpop.permute.xlu2 %2988 }
 0x746   : > { %v9366_v29 = vpop.f32.mrf.mxu1  ;;  %v10662_v14 = vrot.slane %v9381_v39, 1  ;;  %v11229_v36 = vrot.slane %v9381_v39, 1 }
 0x747   : > { %11179 = vst [vmem:[#allocation79_spill] sm:$0xff] %v9366_v29  ;;  %5198 = vmatmul.msk.f32.gmra.mxu2 %vm11180_vm8, %v8868_v25  ;;  %v9385_v25 = vpop.f32.mrf.mxu3  ;;  %vm11188_vm8 = vcmp.eq.s32.totalorder %v8107_v60, %v11187_v13 }
 0x74a   : > { %v2972_v50 = vpop.f32.mrf.mxu2  ;;  %5157 = vmatmul.msk.f32.gmra.mxu1 %vm11182_vm12, %v11181_v63  ;;  %vm11191_vm12 = vmmov %vm11098_vm3 }
 0x74b   : > { %3036 = vrot.lane.b32.xlu0 %v2972_v50, %s10999_s19 }
 0x74d   : > { %v9416_v50 = vpop.permute.xlu0 %2980 }
 0x74e   : > { %v9375_v24 = vpop.f32.mrf.mxu1  ;;  %11194 = vst [vmem:[#allocation131_spill] sm:$0xff] %v9416_v50  ;;  %v10679_v54 = vrot.slane %v9416_v50, 1 }
 0x74f   : > { %11183 = vst [vmem:[#allocation31_spill] sm:$0xff] %v9375_v24  ;;  %5199 = vmatmul.msk.f32.gmra.mxu2 %vm11098_vm3, %v9097_v61  ;;  %v9412_v40 = vpop.f32.mrf.mxu3 }
 0x752   : > { %5158 = vmatmul.msk.f32.gmra.mxu1 %vm11185_vm15, %v11184_v48  ;;  %vm11197_vm15 = vmmov %vm11098_vm3  ;;  %v2975_v29 = vpop.f32.mrf.mxu2 }
 0x755   : > { %v9383_v38 = vpop.permute.xlu1 %2984 }
 0x756   : > { %v10663_v62 = vrot.slane %v9383_v38, 1  ;;  %v9389_v59 = vpop.f32.mrf.mxu1  ;;  %v11226_v3 = vrot.slane %v9383_v38, 1 }
 0x757   : > { %11186 = vst [vmem:[#allocation110_spill] sm:$0xff] %v9389_v59  ;;  %v9420_v48 = vpop.f32.mrf.mxu3 }
 0x758   : > { %v3071_v61 = vsel %vm1547_vm1, %v10663_v62, %v10662_v14 }
 0x759   : > { %v3075_v32 = vsel %vm11188_vm8, 0.0, %v3071_v61  ;;  %v11196_v61 = vld [vmem:[#allocation42_spill] sm:$0xff]  ;;  %vm11201_vm8 = vmmov %vm11098_vm3 }
 0x75a   : > { %v9404_v31 = vsel %vm1258_vm9, %v9383_v38, %v3075_v32  ;;  %5159 = vmatmul.msk.f32.gmra.mxu1 %vm11191_vm12, %v11190_v44  ;;  %vm11204_vm12 = vmmov %vm11098_vm3 }
 0x75d   : > { %v9455_v57 = vpop.permute.xlu2 %3000 }
 0x75e   : > { %v9408_v46 = vpop.f32.mrf.mxu1 }
 0x75f   : > { %11192 = vst [vmem:[#allocation109_spill] sm:$0xff] %v9408_v46 }
 0x762   : > { %5160 = vmatmul.msk.f32.gmra.mxu1 %vm11098_vm3, %v11193_v58  ;;  %v9451_v58 = vpop.f32.mrf.mxu3  ;;  %vm11206_vm3 = vcmp.eq.s32.totalorder %v8107_v60, %v8395_v28 }
 0x765   : > { %v9424_v32 = vpop.permute.xlu0 %2992 }
 0x766   : > { %v9418_v63 = vpop.f32.mrf.mxu1  ;;  %v10665_v15 = vrot.slane %v9424_v32, 1 }
 0x767   : > { %11195 = vst [vmem:[#allocation94_spill] sm:$0xff] %v9418_v63  ;;  %v11213_v63 = vld [vmem:[#allocation122_spill] sm:$0xff] }
 0x76a   : > { %5161 = vmatmul.msk.f32.gmra.mxu1 %vm11197_vm15, %v11196_v61  ;;  %vm11208_vm15 = vmmov %vm11201_vm8 }
 0x76d   : > { %v9426_v44 = vpop.permute.xlu1 %2996 }
 0x76e   : > { %v10664_v14 = vrot.slane %v9426_v44, 1  ;;  %v9430_v62 = vpop.f32.mrf.mxu1 }
 0x76f   : > { %11198 = vst [vmem:[#allocation93_spill] sm:$0xff] %v9430_v62 }
 0x770   : > { %v3069_v61 = vsel %vm1547_vm1, %v10665_v15, %v10664_v14  ;;  %v9457_v14 = vpop.f32.mrf.mxu3 }
 0x771   : > { %v3077_v23 = vsel %vm1292_vm2, 0.0, %v3069_v61  ;;  %v10666_v61 = vrot.slane %v9455_v57, 1 }
 0x772   : > { %5162 = vmatmul.msk.f32.gmra.mxu1 %vm11201_vm8, %v11200_v26  ;;  %v9449_v0 = vsel %vm1260_vm14, %v9424_v32, %v3077_v23  ;;  %vm11209_vm8 = vcmp.le.s32.totalorder %v8107_v60, %v8387_v12 }
 0x775   : > { %v9482_v35 = vpop.permute.xlu2 %3012 }
 0x776   : > { %v9463_v5 = vpop.f32.mrf.mxu1 }
 0x777   : > { %11205 = vst [vmem:[#allocation59_spill] sm:$0xff] %v9463_v5 }
 0x778   : > { %v9486_v21 = vpop.f32.mrf.mxu3 }
 0x77a   : > { %5163 = vmatmul.msk.f32.gmra.mxu1 %vm11204_vm12, %v11203_v51  ;;  %vm11212_vm12 = vcmp.le.s32.totalorder %v8107_v60, %v8435_v41 }
 0x77d   : > { %v9459_v15 = vpop.permute.xlu0 %3004 }
 0x77e   : > { %v10667_v26 = vrot.slane %v9459_v15, 1 }
 0x780   : > { %v3067_v23 = vsel %vm1547_vm1, %v10666_v61, %v10667_v26  ;;  %v10671_v61 = vrot.slane %v9482_v35, 1  ;;  %v9509_v62 = vpop.f32.mrf.mxu3 }
 0x781   : > { %v3079_v51 = vsel %vm11206_vm3, 0.0, %v3067_v23  ;;  %vm11214_vm3 = vmmov %vm11208_vm15 }
 0x782   : > { %5164 = vmatmul.msk.f32.gmra.mxu1 %vm11208_vm15, %v11207_v43  ;;  %v9480_v47 = vsel %vm11209_vm8, %v9455_v57, %v3079_v51  ;;  %vm11217_vm15 = vmmov %vm11214_vm3 }
 0x783   : > { %vm11220_vm8 = vmmov %vm11214_vm3 }
 0x785   : > { %v9484_v20 = vpop.permute.xlu1 %3008 }
 0x786   : > { %v3049_v26 = vrot.slane %v9484_v20, 1 }
 0x787   : > { %v9490_v23 = vpop.f32.mrf.mxu1 }
 0x788   : > { %11210 = vst [vmem:[#allocation58_spill] sm:$0xff] %v9490_v23  ;;  %v3065_v43 = vsel %vm1547_vm1, %v3049_v26, %v10671_v61  ;;  %v11216_v61 = vld [vmem:[#allocation48_spill] sm:$0xff]  ;;  %v9517_v5 = vpop.f32.mrf.mxu3 }
 0x789   : > { %v3081_v56 = vsel %vm1296_vm10, 0.0, %v3065_v43  ;;  %v11219_v43 = vld [vmem:[#allocation66_spill] sm:$0xff] }
 0x78a   : > { %v9505_v6 = vsel %vm11212_vm12, %v9484_v20, %v3081_v56  ;;  %5165 = vmatmul.msk.f32.gmra.mxu1 %vm11214_vm3, %v11213_v63  ;;  %vm11223_vm12 = vcmp.eq.s32.totalorder %v8107_v60, %v11057_v55  ;;  %vm11224_vm3 = vcmp.le.s32.totalorder %v8107_v60, %v11059_v30 }
 0x78d   : > { %v9521_v23 = vpop.permute.xlu2 %3024 }
 0x78e   : > { %v10675_v20 = vrot.slane %v9521_v23, 1 }
 0x78f   : > { %v9511_v59 = vpop.f32.mrf.mxu1 }
 0x790   : > { %11215 = vst [vmem:[#allocation51_spill] sm:$0xff] %v9511_v59 }
 0x792   : > { %5166 = vmatmul.msk.f32.gmra.mxu1 %vm11217_vm15, %v11216_v61 }
 0x797   : > { %v9515_v51 = vpop.f32.mrf.mxu1 }
 0x798   : > { %11218 = vst [vmem:[#allocation50_spill] sm:$0xff] %v9515_v51  ;;  %v3281_v51 = vpop.f32.mrf.mxu3 }
 0x79a   : > { %5167 = vmatmul.msk.f32.gmra.mxu1 %vm11220_vm8, %v11219_v43 }
 0x79d   : > { %v9523_v56 = vpop.permute.xlu1 %3020 }
 0x79e   : > { %v10676_v63 = vrot.slane %v9523_v56, 1 }
 0x79f   : > { %v3717_v46 = vpop.f32.mrf.mxu1 }
 0x7a0   : > { %v3062_v61 = vsel %vm1547_vm1, %v10676_v63, %v10675_v20  ;;  %3767 = vrot.lane.b32.xlu1 %v3717_v46, %s6236_s26  ;;  %v9545_v20 = vpop.permute.xlu0 %3016  ;;  %s10371_s26 = scalar_lea.vmem [#allocation17], %s6556_s10 }
 0x7a1   : > { %v3084_v43 = vsel %vm1299_vm7, 0.0, %v3062_v61 }
 0x7a2   : > { %v3100_v59 = vsel %vm1267_vm0, %v9523_v56, %v3084_v43 }
 0x7a3   : > { %v9541_v24 = vadd.f32 %v3281_v51, %v3100_v59 }
 0x7a5   : > { %11221 = vst [vmem:[#allocation37_spill] sm:$0xff] %v9541_v24 }
 0x7a7   : > { %v3720_v19 = vpop.f32.mrf.mxu1 }
 0x7a8   : > { %3040 = vrot.lane.b32.xlu1 %v2975_v29, %s6243_s13  ;;  %3771 = vrot.lane.b32.xlu2 %v3720_v19, %s11141_s4 }
 0x7ad   : > { %v9548_v61 = vpop.permute.xlu0 %3028 }
 0x7ae   : > { %v10678_v9 = vrot.slane %v9548_v61, 1 }
 0x7af   : > { %v3723_v46 = vpop.f32.mrf.mxu1 }
 0x7b0   : > { %3775 = vrot.lane.b32.xlu0 %v3723_v46, %s11144_s6 }
 0x7b5   : > { %v9550_v63 = vpop.permute.xlu1 %3032 }
 0x7b6   : > { %11222 = vst [vmem:[#allocation36_spill] sm:$0xff] %v9550_v63  ;;  %v10677_v59 = vrot.slane %v9550_v63, 1 }
 0x7b7   : > { %v3726_v51 = vpop.f32.mrf.mxu1 }
 0x7b8   : > { %v3060_v19 = vsel %vm1547_vm1, %v10678_v9, %v10677_v59  ;;  %v3072_v59 = vsel %vm1547_vm1, %v10679_v54, %v11226_v3  ;;  %v11230_v54 = vld [vmem:[#allocation75_spill] sm:$0xff] }
 0x7b9   : > { %v3086_v29 = vsel %vm11223_vm12, 0.0, %v3060_v19  ;;  %v3074_v34 = vsel %vm1289_vm4, 0.0, %v3072_v59  ;;  %vm11231_vm15 = vcmp.eq.s32.totalorder %v8107_v60, %v11230_v54 }
 0x7ba   : > { %v9567_v43 = vsel %vm11224_vm3, %v9548_v61, %v3086_v29  ;;  %v3090_v29 = vsel %vm1257_vm6, %v9416_v50, %v3074_v34  ;;  %v11232_v34 = vld [vmem:[#allocation39_spill] sm:$0xff] }
 0x7bb   : > { %11225 = vst [vmem:[#allocation132_spill] sm:$0xff] %v9567_v43  ;;  %v3252_v43 = vadd.f32 %v9361_v17, %v3090_v29  ;;  %vm11233_vm8 = vcmp.le.s32.totalorder %v8107_v60, %v11232_v34 }
 0x7bd   : > { %v9596_v59 = vsel %vm1237_vm11, -1e+09, %v3252_v43  ;;  %v11234_v43 = vrot.slane %v9459_v15, 1 }
 0x7bf   : > { %v3729_v46 = vpop.f32.mrf.mxu1 }
 0x7c0   : > { %3783 = vrot.lane.b32.xlu2 %v3729_v46, %s6241_s29  ;;  %v11228_v46 = vrot.slane %v9424_v32, 1  ;;  %s11370_s29 = sld [smem:[#allocation146_spill]] }
 0x7c2   : > { %v3070_v38 = vsel %vm1547_vm1, %v11229_v36, %v11228_v46 }
 0x7c3   : > { %v3076_v63 = vsel %vm11231_vm15, 0.0, %v3070_v38  ;;  %v11237_v38 = vld [vmem:[#allocation112_spill] sm:$0xff] }
 0x7c4   : > { %v3092_v32 = vsel %vm11233_vm8, %v9381_v39, %v3076_v63  ;;  %v3066_v39 = vsel %vm1547_vm1, %v11234_v43, %v3049_v26  ;;  %vm11238_vm3 = vcmp.le.s32.totalorder %v8107_v60, %v11237_v38  ;;  %v11241_v26 = vrot.slane %v9426_v44, 1 }
 0x7c5   : > { %v3258_v36 = vadd.f32 %v9385_v25, %v3092_v32  ;;  %v11235_v25 = vld [vmem:[#allocation33_spill] sm:$0xff] }
 0x7c6   : > { %vm11236_vm12 = vcmp.eq.s32.totalorder %v8107_v60, %v11235_v25  ;;  %s6156_s4 = scalar_lea.hbm %s11370_s29, 256 }
 0x7c7   : > { %v3732_v9 = vpop.f32.mrf.mxu1  ;;  %v9606_v17 = vsel %vm1237_vm11, -1e+09, %v3258_v36  ;;  %v3080_v63 = vsel %vm11236_vm12, 0.0, %v3066_v39  ;;  %v11242_v39 = vld [vmem:[#allocation54_spill] sm:$0xff]  ;;  %vm11247_vm12 = vcmp.eq.s32.totalorder %v8107_v60, %v11187_v13 }
 0x7c8   : > { %v3096_v32 = vsel %vm11238_vm3, %v9459_v15, %v3080_v63  ;;  %vm11243_vm15 = vcmp.eq.s32.totalorder %v8107_v60, %v11242_v39  ;;  %v11244_v63 = vld [vmem:[#allocation96_spill] sm:$0xff]  ;;  %vm11260_vm3 = vcmp.le.s32.totalorder %v8107_v60, %v11047_v18 }
 0x7c9   : > { %v3270_v36 = vadd.f32 %v9457_v14, %v3096_v32  ;;  %v3255_v14 = vadd.f32 %v9373_v11, %v9404_v31  ;;  %vm11245_vm8 = vcmp.le.s32.totalorder %v8107_v60, %v11244_v63  ;;  %v3261_v11 = vadd.f32 %v9412_v40, %v9449_v0  ;;  %v9657_v31 = vpop.permute.xlu0 %3036 }
 0x7ca   : > { %11246 = vst [vmem:[#allocation134_spill] sm:$0xff] %v9657_v31 }
 0x7cb   : > { %v9647_v50 = vsel %vm1237_vm11, -1e+09, %v3255_v14 }
 0x7cf   : > { %v3735_v3 = vpop.f32.mrf.mxu1 }
 0x7d2   : > { %3315 = vmax.xlane.f32.xlu1 %v9596_v59 }
 0x7d7   : > { %v3738_v46 = vpop.f32.mrf.mxu1 }
 0x7da   : > { %3319 = vmax.xlane.f32.xlu0 %v9606_v17 }
 0x7df   : > { %v3741_v29 = vpop.f32.mrf.mxu1 }
 0x7e0   : > { %3799 = vrot.lane.b32.xlu2 %v3741_v29, %s6247_s0  ;;  %s11330_s0 = smov 96  }
 0x7e7   : > { %v3744_v43 = vpop.f32.mrf.mxu1 }
 0x7eb   : > { %3779 = vrot.lane.b32.xlu1 %v3726_v51, %s6239_s9  ;;  %v9626_v51 = vsel %vm1237_vm11, -1e+09, %v3270_v36 }
 0x7ec   : > { %11239 = vst [vmem:[#allocation133_spill] sm:$0xff] %v9626_v51 }
 0x7ee   : > { %3787 = vrot.lane.b32.xlu0 %v3732_v9, %s6244_s7  ;;  %v11240_v9 = vrot.slane %v9455_v57, 1 }
 0x7ef   : > { %v3747_v36 = vpop.f32.mrf.mxu1 }
 0x7f0   : > { %v3068_v29 = vsel %vm1547_vm1, %v11241_v26, %v11240_v9 }
 0x7f1   : > { %v3078_v15 = vsel %vm11243_vm15, 0.0, %v3068_v29 }
 0x7f2   : > { %v3094_v32 = vsel %vm11245_vm8, %v9426_v44, %v3078_v15  ;;  %vm11267_vm8 = vcmp.eq.s32.totalorder %v8107_v60, %v11235_v25 }
 0x7f3   : > { %v3264_v57 = vadd.f32 %v9420_v48, %v3094_v32  ;;  %v9661_v48 = vsel %vm1237_vm11, -1e+09, %v3261_v11 }
 0x7f5   : > { %v9652_v9 = vsel %vm1237_vm11, -1e+09, %v3264_v57 }
 0x7f7   : > { %v3750_v44 = vpop.f32.mrf.mxu1 }
 0x7ff   : > { %v3753_v57 = vpop.f32.mrf.mxu1 }
 0x802   : > { %v3772_v26 = vpop.permute.xlu2 %3771 }
 0x803   : > { %v3830_v15 = vrot.slane %v3772_v26, 1 }
 0x807   : > { %v3756_v13 = vpop.f32.mrf.mxu1 }
 0x809   : > { %3327 = vmax.xlane.f32.xlu2 %v9626_v51 }
 0x812   : > { %v9683_v11 = vpop.permute.xlu1 %3767 }
 0x813   : > { %11248 = vst [vmem:[#allocation43_spill] sm:$0xff] %v9683_v11 }
 0x815   : > { %3317 = vmax.xlane.f32.xlu1 %v9647_v50 }
 0x818   : > { %3323 = vmax.xlane.f32.xlu0 %v9652_v9 }
 0x81d   : > { %3321 = vmax.xlane.f32.xlu1 %v9661_v48 }
 0x821   : > { %3811 = vrot.lane.b32.xlu2 %v3750_v44, %s6249_s20  ;;  %v10683_v44 = vrot.slane %v9683_v11, 1 }
 0x822   : > { %v9665_v29 = vpop.permute.xlu0 %3775 }
 0x823   : > { %v10684_v14 = vrot.slane %v9665_v29, 1  ;;  %v3859_v37 = vsel %vm1547_vm1, %v10683_v44, %v3830_v15  ;;  %v11257_v44 = vrot.slane %v9523_v56, 1 }
 0x825   : > { %v3858_v0 = vsel %vm1547_vm1, %v3830_v15, %v10684_v14  ;;  %v3267_v15 = vadd.f32 %v9451_v58, %v9480_v47  ;;  %v3051_v47 = vrot.slane %v9545_v20, 1 }
 0x826   : > { %v3862_v40 = vsel %vm11247_vm12, 0.0, %v3858_v0  ;;  %vm11268_vm12 = vcmp.eq.s32.totalorder %v8107_v60, %v8395_v28 }
 0x827   : > { %v9678_v32 = vsel %vm1258_vm9, %v3772_v26, %v3862_v40  ;;  %v3759_v26 = vpop.f32.mrf.mxu1  ;;  %vm11258_vm9 = vcmp.eq.s32.totalorder %v8107_v60, %v11045_v2 }
 0x829   : > { %3815 = vrot.lane.b32.xlu2 %v3753_v57, %s6237_s8  ;;  %v9709_v57 = vsel %vm1237_vm11, -1e+09, %v3267_v15  ;;  %v11255_v15 = vld [vmem:[#allocation127_spill] sm:$0xff]  ;;  %s5209_s8 = sshll.u32 %s6358_s25, 7 }
 0x82a   : > { %11249 = vst [vmem:[#allocation88_spill] sm:$0xff] %v9709_v57 }
 0x82c   : > { %3795 = vrot.lane.b32.xlu0 %v3738_v46, %s6242_s18  ;;  %v3861_v46 = vsel %vm1289_vm4, 0.0, %v3859_v37  ;;  %s4714_s18 = scalar_lea.hbm %s11370_s29, %s5209_s8 }
 0x82d   : > { %s4717_s7 = sshll.u32 %s4714_s18, 4  ;;  %s4718_s7 = int_to_ptr.hbm [resolvable:$true] %s4717_s7 }
 0x836   : > { %3791 = vrot.lane.b32.xlu1 %v3735_v3, %s6246_s1  ;;  %v3877_v3 = vsel %vm1257_vm6, %v9683_v11, %v3861_v46  ;;  %vm11256_vm6 = vcmp.le.s32.totalorder %v8107_v60, %v11255_v15  ;;  %s6150_s1 = sshra.s32 %s4718_s7, 4  ;;  %s6151_s1 = int_to_ptr.hbm [resolvable:$true] %s6150_s1 }
 0x837   : > { %p6157_p10 = scmp.lt.s32.totalorder %s6151_s1, %s11370_s29 }
 0x83e   : > { %3803 = vrot.lane.b32.xlu1 %v3744_v43, %s6248_s14  ;;  %v4038_v43 = vpop.f32.mrf.mxu2 }
 0x83f   : > { %v4039_v0 = vadd.f32 %v4038_v43, %v3877_v3  ;;  %v11251_v3 = vrot.slane %v9482_v35, 1 }
 0x841   : > { %v9702_v40 = vsel %vm1237_vm11, -1e+09, %v4039_v0  ;;  %v3064_v43 = vsel %vm1547_vm1, %v11251_v3, %v3051_v47  ;;  %v9733_v0 = vpop.permute.xlu1 %3040  ;;  %v3063_v3 = vsel %vm1547_vm1, %v3051_v47, %v11257_v44 }
 0x842   : > { %11254 = vst [vmem:[#allocation67_spill] sm:$0xff] %v9733_v0 }
 0x846   : > { %3819 = vrot.lane.b32.xlu1 %v3756_v13, %s6234_s21  ;;  %v4041_v19 = vpop.f32.mrf.mxu2  ;;  %v3273_v13 = vadd.f32 %v9486_v21, %v9505_v6  ;;  %v9728_v6 = vpop.permute.xlu2 %3783  ;;  %v11252_v21 = vld [vmem:[#allocation128_spill] sm:$0xff]  ;;  %s11356_s21 = sld [smem:[#allocation145_spill]] }
 0x847   : > { %vm11253_vm4 = vcmp.eq.s32.totalorder %v8107_v60, %v11252_v21  ;;  %v4042_v31 = vadd.f32 %v4041_v19, %v9678_v32 }
 0x848   : > { %v9716_v37 = vsel %vm1237_vm11, -1e+09, %v3273_v13 }
 0x849   : > { %11250 = vst [vmem:[#allocation87_spill] sm:$0xff] %v9716_v37  ;;  %v3316_v56 = vpop.xlane.xlu1 %3315 }
 0x84d   : > { %v9777_v1 = vpop.xlane.xlu0 %3319 }
 0x84e   : > { %3823 = vrot.lane.b32.xlu1 %v3759_v26, %s10999_s19  ;;  %v9719_v46 = vpop.f32.mrf.mxu2  ;;  %v3082_v26 = vsel %vm11253_vm4, 0.0, %v3064_v43  ;;  %v9747_v11 = vpop.permute.xlu2 %3799  ;;  %v3083_v43 = vsel %vm11258_vm9, 0.0, %v3063_v3  ;;  %vm11269_vm4 = vcmp.le.s32.totalorder %v8107_v60, %v11244_v63  ;;  %vm11271_vm9 = vcmp.le.s32.totalorder %v8107_v60, %v8387_v12  ;;  %s6152_s19 = scalar_lea.hbm %s6151_s1, 128 }
 0x84f   : > { %v3098_v13 = vsel %vm11256_vm6, %v9482_v35, %v3082_v26  ;;  %vm11270_vm6 = vcmp.le.s32.totalorder %v8107_v60, %v11237_v38  ;;  %p6153_p1 = scmp.ne.s32.totalorder %s6151_s1, %s6152_s19  ;;  %p6158_p13 = scmp.lt.s32.totalorder %s6156_s4, %s6152_s19 }
 0x850   : > { %v3276_v14 = vadd.f32 %v9509_v62, %v3098_v13 }
 0x851   : > { %p6154_p11 = pnand %p6153_p1, %p6429_p7  ;;  %p6159_p8 = por %p6158_p13, %p6157_p10 }
 0x852   : > { %4102 = vmax.xlane.f32.xlu2 %v9702_v40  ;;  %v9754_v35 = vsel %vm1237_vm11, -1e+09, %v3276_v14 }
 0x853   : > { %11259 = vst [vmem:[#allocation60_spill] sm:$0xff] %v9754_v35  ;;  %p6155_p2 = pneg %p6154_p11 }
 0x855   : > { %p6160_p9 = pnand %p6159_p8, %p6155_p2 }
 0x856   : > { %3325 = vmax.xlane.f32.xlu0 %v9709_v57  ;;  %v4047_v58 = vpop.f32.mrf.mxu2 }
 0x85d   : > { %v3780_v14 = vpop.permute.xlu1 %3779 }
 0x85e   : > { %3329 = vmax.xlane.f32.xlu0 %v9716_v37  ;;  %v9816_v37 = vsel %vm1237_vm11, -1e+09, %v4042_v31 }
 0x86a   : > { %5509 = vrot.lane.b32.xlu2 %v9157_v27, %s11006_s27  ;;  %v9744_v27 = vpop.f32.mrf.mxu2 }
 0x872   : > { %3807 = vrot.lane.b32.xlu0 %v3747_v36, %s6245_s16  ;;  %v3099_v36 = vsel %vm11260_vm3, %v9545_v20, %v3083_v43  ;;  %v9764_v47 = vpop.f32.mrf.mxu2  ;;  %v3832_v43 = vrot.slane %v3780_v14, 1  ;;  %vm11273_vm3 = vcmp.eq.s32.totalorder %v8107_v60, %v11252_v21  ;;  %s4703_s16 = scalar_lea.sflag [#allocation4], %s6553_s30 }
 0x873   : > { %v3279_v62 = vadd.f32 %v9517_v5, %v3099_v36  ;;  %v3833_v36 = vrot.slane %v9728_v6, 1 }
 0x875   : > { %v9768_v26 = vsel %vm1237_vm11, -1e+09, %v3279_v62  ;;  %v3856_v57 = vsel %vm1547_vm1, %v3832_v43, %v3833_v36 }
 0x876   : > { %11262 = vst [vmem:[#allocation107_spill] sm:$0xff] %v9768_v26 }
 0x878   : > { %3331 = vmax.xlane.f32.xlu1 %v9754_v35 }
 0x87a   : > { %v9773_v3 = vpop.f32.mrf.mxu2 }
 0x87c   : > { %v9762_v44 = vpop.xlane.xlu2 %3327 }
 0x87d   : > { %11261 = vst [vmem:[#allocation86_spill] sm:$0xff] %v9762_v44 }
 0x880   : > { %3333 = vmax.xlane.f32.xlu1 %v9768_v26 }
 0x884   : > { %v9771_v13 = vpop.permute.xlu2 %3811 }
 0x885   : > { %v10690_v62 = vrot.slane %v9771_v13, 1 }
 0x888   : > { %v3318_v35 = vpop.xlane.xlu1 %3317 }
 0x889   : > { %v3348_v20 = vsub.f32 %v9647_v50, %v3318_v35 }
 0x88b   : > { %v3365_v5 = vmul.f32 1.442695, %v3348_v20  ;;  %v9794_v20 = vpop.f32.mrf.mxu2 }
 0x88c   : > { %v9779_v22 = vpop.permute.xlu2 %3815 }
 0x88d   : > { %5738 = vpow2.f32 %v3365_v5  ;;  %v10691_v26 = vrot.slane %v9779_v22, 1  ;;  %v3864_v5 = vsel %vm1292_vm2, 0.0, %v3856_v57  ;;  %vm11265_vm2 = vcmp.eq.s32.totalorder %v8107_v60, %v11230_v54 }
 0x88f   : > { %v3848_v50 = vsel %vm1547_vm1, %v10690_v62, %v10691_v26  ;;  %v3347_v62 = vsub.f32 %v9596_v59, %v3316_v56  ;;  %v3788_v26 = vpop.permute.xlu0 %3787 }
 0x890   : > { %v3872_v35 = vsel %vm1300_vm13, 0.0, %v3848_v50  ;;  %v3322_v44 = vpop.xlane.xlu1 %3321  ;;  %v3880_v50 = vsel %vm1260_vm14, %v3780_v14, %v3864_v5  ;;  %vm11266_vm14 = vcmp.le.s32.totalorder %v8107_v60, %v11232_v34 }
 0x891   : > { %v9803_v51 = vsel %vm1268_vm5, %v9771_v13, %v3872_v35  ;;  %v3350_v42 = vsub.f32 %v9661_v48, %v3322_v44  ;;  %v4048_v57 = vadd.f32 %v4047_v58, %v3880_v50  ;;  %v3363_v0 = vmul.f32 1.442695, %v3347_v62 }
 0x892   : > { %11263 = vst [vmem:[#allocation106_spill] sm:$0xff] %v9803_v51  ;;  %v11264_v48 = vrot.slane %v9665_v29, 1  ;;  %v3834_v58 = vrot.slane %v3788_v26, 1  ;;  %v3837_v50 = vrot.slane %v9747_v11, 1 }
 0x893   : > { %v9805_v24 = vpop.eup %5738  ;;  %v3369_v35 = vmul.f32 1.442695, %v3350_v42  ;;  %v4062_v51 = vpop.f32.mrf.mxu2  ;;  %v9820_v59 = vsel %vm1237_vm11, -1e+09, %v4048_v57  ;;  %5740 = vpow2.f32 %v3363_v0 }
 0x894   : > { %3397 = vadd.xlane.f32.xlu2 %v9805_v24  ;;  %v3857_v32 = vsel %vm1547_vm1, %v11264_v48, %v3832_v43  ;;  %v3855_v54 = vsel %vm1547_vm1, %v3833_v36, %v3834_v58 }
 0x895   : > { %5742 = vpow2.f32 %v3369_v35  ;;  %v3863_v31 = vsel %vm11265_vm2, 0.0, %v3857_v32  ;;  %v3865_v57 = vsel %vm11243_vm15, 0.0, %v3855_v54  ;;  %vm11274_vm2 = vcmp.le.s32.totalorder %v8107_v60, %v11255_v15 }
 0x896   : > { %v3879_v44 = vsel %vm11266_vm14, %v9665_v29, %v3863_v31  ;;  %v3881_v48 = vsel %vm11269_vm4, %v9728_v6, %v3865_v57  ;;  %vm11276_vm14 = vcmp.eq.s32.totalorder %v8107_v60, %v11057_v55  ;;  %vm11277_vm15 = vcmp.le.s32.totalorder %v8107_v60, %v11059_v30 }
 0x897   : > { %v3324_v7 = vpop.xlane.xlu0 %3323  ;;  %v4045_v62 = vadd.f32 %v9719_v46, %v3879_v44  ;;  %v4051_v63 = vadd.f32 %v9744_v27, %v3881_v48 }
 0x898   : > { %v3351_v27 = vsub.f32 %v9652_v9, %v3324_v7 }
 0x899   : > { %v9831_v19 = vpop.eup %5740  ;;  %v9858_v46 = vsel %vm1237_vm11, -1e+09, %v4045_v62 }
 0x89a   : > { %v3371_v7 = vmul.f32 1.442695, %v3351_v27 }
 0x89b   : > { %v9833_v56 = vpop.eup %5742  ;;  %v9841_v14 = vpop.f32.mrf.mxu2 }
 0x89c   : > { %4104 = vmax.xlane.f32.xlu0 %v9816_v37  ;;  %4108 = vmax.xlane.f32.xlu2 %v9820_v59  ;;  %5744 = vpow2.f32 %v3371_v7 }
 0x89f   : > { %v3796_v0 = vpop.permute.xlu0 %3795 }
 0x8a0   : > { %v3836_v43 = vrot.slane %v3796_v0, 1 }
 0x8a2   : > { %v3852_v34 = vsel %vm1547_vm1, %v3836_v43, %v3837_v50 }
 0x8a3   : > { %v3868_v31 = vsel %vm1296_vm10, 0.0, %v3852_v34  ;;  %v9882_v44 = vpop.f32.mrf.mxu2  ;;  %vm11272_vm10 = vcmp.le.s32.totalorder %v8107_v60, %v8435_v41 }
 0x8a4   : > { %3395 = vadd.xlane.f32.xlu0 %v9831_v19  ;;  %3401 = vadd.xlane.f32.xlu2 %v9833_v56  ;;  %v3884_v16 = vsel %vm11272_vm10, %v3796_v0, %v3868_v31 }
 0x8a5   : > { %v4060_v54 = vadd.f32 %v9794_v20, %v3884_v16 }
 0x8a7   : > { %v9916_v62 = vsel %vm1237_vm11, -1e+09, %v4060_v54  ;;  %v11282_v54 = vrot.slane %v9521_v23, 1 }
 0x8a8   : > { %v3792_v5 = vpop.permute.xlu1 %3791 }
 0x8a9   : > { %v3835_v42 = vrot.slane %v3792_v5, 1 }
 0x8ab   : > { %v3853_v29 = vsel %vm1547_vm1, %v3835_v42, %v3836_v43  ;;  %v3854_v36 = vsel %vm1547_vm1, %v3834_v58, %v3835_v42 }
 0x8ac   : > { %v3867_v35 = vsel %vm11267_vm8, 0.0, %v3853_v29  ;;  %4106 = vmax.xlane.f32.xlu0 %v9858_v46  ;;  %v3866_v39 = vsel %vm11268_vm12, 0.0, %v3854_v36  ;;  %v3762_v36 = vpop.f32.mrf.mxu1  ;;  %vm11279_vm8 = vcmp.eq.s32.totalorder %v8107_v60, %v11045_v2  ;;  %vm11280_vm12 = vcmp.le.s32.totalorder %v8107_v60, %v11047_v18 }
 0x8ad   : > { %v3883_v32 = vsel %vm11270_vm6, %v3792_v5, %v3867_v35  ;;  %v3882_v25 = vsel %vm11271_vm9, %v3788_v26, %v3866_v39  ;;  %v9922_v5 = vpop.f32.mrf.mxu2 }
 0x8ae   : > { %v4057_v28 = vadd.f32 %v9773_v3, %v3883_v32  ;;  %v4054_v58 = vadd.f32 %v9764_v47, %v3882_v25  ;;  %v9903_v3 = vsel %vm1237_vm11, -1e+09, %v4051_v63 }
 0x8b0   : > { %v3804_v6 = vpop.permute.xlu1 %3803  ;;  %v9887_v38 = vsel %vm1237_vm11, -1e+09, %v4054_v58  ;;  %v9891_v12 = vsel %vm1237_vm11, -1e+09, %v4057_v28  ;;  %v11278_v58 = vrot.slane %v9771_v13, 1  ;;  %v11281_v13 = vrot.slane %v9548_v61, 1 }
 0x8b1   : > { %v3838_v26 = vrot.slane %v3804_v6, 1  ;;  %4112 = vmax.xlane.f32.xlu1 %v9887_v38  ;;  %4114 = vmax.xlane.f32.xlu2 %v9891_v12 }
 0x8b3   : > { %v3851_v47 = vsel %vm1547_vm1, %v3837_v50, %v3838_v26  ;;  %v9933_v50 = vpop.eup %5744 }
 0x8b4   : > { %4110 = vmax.xlane.f32.xlu0 %v9903_v3  ;;  %v3869_v41 = vsel %vm11273_vm3, 0.0, %v3851_v47 }
 0x8b5   : > { %v3885_v9 = vsel %vm11274_vm2, %v9747_v11, %v3869_v41  ;;  %v11275_v11 = vrot.slane %v9779_v22, 1  ;;  %v4074_v57 = vpop.f32.mrf.mxu2 }
 0x8b6   : > { %v4063_v0 = vadd.f32 %v4062_v51, %v3885_v9 }
 0x8b8   : > { %v3820_v43 = vpop.permute.xlu1 %3819  ;;  %v9920_v20 = vsel %vm1237_vm11, -1e+09, %v4063_v0  ;;  %v3284_v0 = vpop.f32.mrf.mxu3 }
 0x8b9   : > { %v3842_v21 = vrot.slane %v3820_v43, 1  ;;  %4116 = vmax.xlane.f32.xlu2 %v9916_v62  ;;  %4118 = vmax.xlane.f32.xlu1 %v9920_v20 }
 0x8bb   : > { %v3847_v51 = vsel %vm1547_vm1, %v11275_v11, %v3842_v21 }
 0x8bc   : > { %v3873_v15 = vsel %vm11276_vm14, 0.0, %v3847_v51 }
 0x8bd   : > { %v3889_v42 = vsel %vm11277_vm15, %v9779_v22, %v3873_v15  ;;  %v3349_v22 = vsub.f32 %v9606_v17, %v9777_v1  ;;  %v4077_v51 = vpop.f32.mrf.mxu2 }
 0x8be   : > { %v4075_v34 = vadd.f32 %v4074_v57, %v3889_v42 }
 0x8bf   : > { %v3367_v28 = vmul.f32 1.442695, %v3349_v22 }
 0x8c0   : > { %v9943_v35 = vsel %vm1237_vm11, -1e+09, %v4075_v34  ;;  %v9978_v18 = vpop.permute.xlu1 %3823 }
 0x8c1   : > { %3403 = vadd.xlane.f32.xlu2 %v9933_v50  ;;  %5746 = vpow2.f32 %v3367_v28 }
 0x8c5   : > { %v4103_v29 = vpop.xlane.xlu2 %4102 }
 0x8c7   : > { %v9990_v9 = vpop.eup %5746 }
 0x8c8   : > { %3827 = vrot.lane.b32.xlu0 %v3762_v36, %s6243_s13  ;;  %s4715_s13 = sshll.u32 %s10371_s26, 4  ;;  %s4716_s13 = int_to_ptr.vmem [resolvable:$true] %s4715_s13 }
 0x8c9   : > { %4126 = vmax.xlane.f32.xlu2 %v9943_v35  ;;  %v9946_v32 = vpop.xlane.xlu0 %3325 }
 0x8cd   : > { %v5510_v55 = vpop.permute.xlu2 %5509 }
 0x8ce   : > { %v5511_v39 = vunpack.i.l.bf16 %v5510_v55  ;;  %v5512_v48 = vunpack.i.h.bf16 %v5510_v55 }
 0x8d0   : > { %3521 = vmatpush.msrb.mxu0 %v5511_v39 }
 0x8d1   : > { %v9948_v30 = vpop.xlane.xlu0 %3329 }
 0x8d2   : > { %3522 = vmatpush.msrb.mxu0 %v5512_v48 }
 0x8e4   : > { %v3808_v25 = vpop.permute.xlu0 %3807 }
 0x8e5   : > { %v3839_v31 = vrot.slane %v3808_v25, 1 }
 0x8e7   : > { %v3849_v63 = vsel %vm1547_vm1, %v3839_v31, %v11278_v58  ;;  %v3850_v16 = vsel %vm1547_vm1, %v3838_v26, %v3839_v31  ;;  %v3061_v26 = vsel %vm1547_vm1, %v11282_v54, %v11281_v13 }
 0x8e8   : > { %v3870_v27 = vsel %vm11279_vm8, 0.0, %v3850_v16  ;;  %v3871_v1 = vsel %vm1299_vm7, 0.0, %v3849_v63  ;;  %v3085_v61 = vsel %vm1300_vm13, 0.0, %v3061_v26  ;;  %vm11332_vm8 = vcmask 261120  }
 0x8e9   : > { %v3886_v47 = vsel %vm11280_vm12, %v3804_v6, %v3870_v27  ;;  %v3887_v8 = vsel %vm1267_vm0, %v3808_v25, %v3871_v1  ;;  %v3843_v6 = vrot.slane %v9978_v18, 1  ;;  %v3101_v52 = vsel %vm1268_vm5, %v9521_v23, %v3085_v61  ;;  %vm11334_vm12 = vmmov %vm11332_vm8 }
 0x8ea   : > { %v4066_v17 = vadd.f32 %v9841_v14, %v3886_v47  ;;  %v4134_v14 = vsub.f32 %v9702_v40, %v4103_v29  ;;  %v4069_v41 = vadd.f32 %v9882_v44, %v3887_v8  ;;  %v3285_v44 = vadd.f32 %v3284_v0, %v3101_v52  ;;  %v3287_v8 = vpop.f32.mrf.mxu3  ;;  %v11286_v0 = vld [vmem:[#allocation67_spill] sm:$0xff] }
 0x8eb   : > { %v3846_v45 = vsel %vm1547_vm1, %v3842_v21, %v3843_v6  ;;  %vm11283_vm0 = vcmp.eq.s32.totalorder %v8107_v60, %v11037_v49  ;;  %vm11284_vm5 = vcmp.le.s32.totalorder %v8107_v60, %v11042_v53  ;;  %v10027_v48 = vpop.xlane.xlu1 %3331 }
 0x8ec   : > { %v9976_v2 = vsel %vm1237_vm11, -1e+09, %v4066_v17  ;;  %v4150_v7 = vmul.f32 1.442695, %v4134_v14  ;;  %v10003_v40 = vsel %vm1237_vm11, -1e+09, %v4069_v41  ;;  %vm11299_vm4 = vmmov %vm11283_vm0 }
 0x8ed   : > { %4120 = vmax.xlane.f32.xlu1 %v9976_v2  ;;  %v3874_v11 = vsel %vm11283_vm0, 0.0, %v3846_v45  ;;  %v10011_v10 = vsel %vm1237_vm11, -1e+09, %v3285_v44  ;;  %v11287_v44 = vld [vmem:[#allocation134_spill] sm:$0xff]  ;;  %vm11300_vm6 = vmmov %vm11284_vm5 }
 0x8ee   : > { %5748 = vpow2.f32 %v4150_v7  ;;  %v3890_v23 = vsel %vm11284_vm5, %v3820_v43, %v3874_v11  ;;  %v3056_v11 = vrot.slane %v11287_v44, 1  ;;  %vm11336_vm0 = vmmov %vm11332_vm8 }
 0x8ef   : > { %v4078_v15 = vadd.f32 %v4077_v51, %v3890_v23  ;;  %v11288_v51 = vld [vmem:[#allocation37_spill] sm:$0xff]  ;;  %vm11338_vm5 = vmmov %vm11336_vm0 }
 0x8f1   : > { %v10022_v42 = vsel %vm1237_vm11, -1e+09, %v4078_v15  ;;  %v10064_v15 = vsel %vm1237_vm11, -1e+09, %v11288_v51 }
 0x8f2   : > { %3399 = vadd.xlane.f32.xlu0 %v9990_v9 }
 0x8f3   : > { %v10039_v16 = vpop.xlane.xlu1 %3333 }
 0x8f4   : > { %v10017_v21 = vpop.eup %5748 }
 0x8f5   : > { %4122 = vmax.xlane.f32.xlu1 %v10003_v40 }
 0x8fa   : > { %3337 = vmax.xlane.f32.xlu0 %v10011_v10 }
 0x8fd   : > { %4182 = vadd.xlane.f32.xlu1 %v10017_v21 }
 0x902   : > { %4128 = vmax.xlane.f32.xlu0 %v10022_v42 }
 0x907   : > { %v3398_v57 = vpop.xlane.xlu2 %3397 }
 0x90f   : > { %v4105_v34 = vpop.xlane.xlu0 %4104  ;;  %v4109_v29 = vpop.xlane.xlu2 %4108 }
 0x910   : > { %v4135_v36 = vsub.f32 %v9816_v37, %v4105_v34  ;;  %v4137_v55 = vsub.f32 %v9820_v59, %v4109_v29  ;;  %v11290_v34 = vld [vmem:[#allocation133_spill] sm:$0xff] }
 0x912   : > { %v4152_v43 = vmul.f32 1.442695, %v4135_v36  ;;  %v4156_v39 = vmul.f32 1.442695, %v4137_v55  ;;  %v11291_v36 = vld [vmem:[#allocation88_spill] sm:$0xff] }
 0x913   : > { %v3352_v55 = vsub.f32 %v11291_v36, %v9946_v32 }
 0x914   : > { %5750 = vpow2.f32 %v4152_v43  ;;  %v11292_v43 = vld [vmem:[#allocation45_spill] sm:$0xff] }
 0x915   : > { %5752 = vpow2.f32 %v4156_v39  ;;  %vm11293_vm7 = vcmp.eq.s32.totalorder %v8107_v60, %v11292_v43 }
 0x916   : > { %vm11306_vm10 = vmmov %vm11293_vm7 }
 0x917   : > { %v3396_v22 = vpop.xlane.xlu0 %3395  ;;  %v10034_v28 = vpop.xlane.xlu2 %3401 }
 0x918   : > { %5754 = vrcp.f32 %v3396_v22  ;;  %v11294_v22 = vld [vmem:[#allocation106_spill] sm:$0xff] }
 0x919   : > { %5756 = vrcp.f32 %v3398_v57  ;;  %v11289_v57 = vld [vmem:[#allocation86_spill] sm:$0xff] }
 0x91a   : > { %v10029_v25 = vpop.eup %5750  ;;  %v3353_v29 = vsub.f32 %v11290_v34, %v11289_v57 }
 0x91b   : > { %v10031_v31 = vpop.eup %5752  ;;  %4184 = vadd.xlane.f32.xlu1 %v10029_v25 }
 0x91c   : > { %4188 = vadd.xlane.f32.xlu2 %v10031_v31 }
 0x91e   : > { %v5755_v37 = vpop.eup %5754 }
 0x91f   : > { %v3443_v59 = vmul.f32 %v5755_v37, %v9831_v19  ;;  %v4107_v58 = vpop.xlane.xlu0 %4106  ;;  %v5757_v47 = vpop.eup %5756  ;;  %v11285_v19 = vld [vmem:[#allocation87_spill] sm:$0xff]  ;;  %v4072_v37 = vadd.f32 %v9922_v5, %v11294_v22 }
 0x920   : > { %v4136_v63 = vsub.f32 %v9858_v46, %v4107_v58  ;;  %v3444_v26 = vmul.f32 %v5757_v47, %v9805_v24  ;;  %v3354_v61 = vsub.f32 %v11285_v19, %v9948_v30  ;;  %v3057_v24 = vrot.slane %v11286_v0, 1 }
 0x921   : > { %3523 = vmatmul.f32.vlgmr.msrb.gmra.mxu0 %v3443_v59  ;;  %v3375_v58 = vmul.f32 1.442695, %v3353_v29 }
 0x922   : > { %v4154_v27 = vmul.f32 1.442695, %v4136_v63  ;;  %v3377_v52 = vmul.f32 1.442695, %v3354_v61  ;;  %v3373_v63 = vmul.f32 1.442695, %v3352_v55  ;;  %v4080_v55 = vpop.f32.mrf.mxu2 }
 0x924   : > { %5758 = vpow2.f32 %v4154_v27  ;;  %v4115_v1 = vpop.xlane.xlu2 %4114  ;;  %v4113_v46 = vpop.xlane.xlu1 %4112  ;;  %v11295_v27 = vld [vmem:[#allocation100_spill] sm:$0xff] }
 0x925   : > { %v4140_v17 = vsub.f32 %v9891_v12, %v4115_v1  ;;  %v4139_v12 = vsub.f32 %v9887_v38, %v4113_v46  ;;  %v3058_v38 = vsel %vm1547_vm1, %v3056_v11, %v3057_v24  ;;  %vm11296_vm13 = vcmp.le.s32.totalorder %v8107_v60, %v11295_v27 }
 0x926   : > { %v3088_v39 = vsel %vm11293_vm7, 0.0, %v3058_v38  ;;  %vm11310_vm2 = vmmov %vm11296_vm13 }
 0x927   : > { %v4162_v13 = vmul.f32 1.442695, %v4140_v17  ;;  %v4111_v54 = vpop.xlane.xlu0 %4110  ;;  %v4160_v30 = vmul.f32 1.442695, %v4139_v12  ;;  %v3104_v47 = vsel %vm11296_vm13, %v11287_v44, %v3088_v39  ;;  %v10088_v17 = vsel %vm1237_vm11, -1e+09, %v4072_v37  ;;  %vm11340_vm7 = vmmov %vm11336_vm0 }
 0x928   : > { %v4138_v14 = vsub.f32 %v9903_v3, %v4111_v54  ;;  %v3290_v3 = vpop.f32.mrf.mxu3  ;;  %v11304_v39 = vld [vmem:[#allocation68_spill] sm:$0xff]  ;;  %vm11342_vm13 = vmmov %vm11336_vm0 }
 0x929   : > { %5760 = vpow2.f32 %v4162_v13  ;;  %3526 = vmatmul.f32.gmra.mxu0 %v3444_v26  ;;  %v11297_v13 = vld [vmem:[#allocation36_spill] sm:$0xff]  ;;  %vm11305_vm9 = vcmp.eq.s32.totalorder %v8107_v60, %v11304_v39 }
 0x92a   : > { %v10046_v41 = vpop.eup %5758  ;;  %v4158_v7 = vmul.f32 1.442695, %v4138_v14  ;;  %v11298_v54 = vrot.slane %v11297_v13, 1  ;;  %vm11314_vm14 = vmmov %vm11305_vm9 }
 0x92b   : > { %4186 = vadd.xlane.f32.xlu1 %v10046_v41 }
 0x92c   : > { %5762 = vpow2.f32 %v4158_v7  ;;  %v3059_v26 = vsel %vm1547_vm1, %v11298_v54, %v3056_v11  ;;  %v4117_v19 = vpop.xlane.xlu2 %4116  ;;  %v4119_v7 = vpop.xlane.xlu1 %4118 }
 0x92d   : > { %5764 = vpow2.f32 %v3377_v52  ;;  %v3087_v61 = vsel %vm11299_vm4, 0.0, %v3059_v26  ;;  %v4141_v52 = vsub.f32 %v9916_v62, %v4117_v19  ;;  %v4142_v11 = vsub.f32 %v9920_v20, %v4119_v7  ;;  %v11302_v20 = vld [vmem:[#allocation43_spill] sm:$0xff]  ;;  %v4083_v26 = vpop.f32.mrf.mxu2  ;;  %vm11347_vm4 = vmmov %vm11336_vm0 }
 0x92e   : > { %5766 = vpow2.f32 %v4160_v30  ;;  %v3103_v44 = vsel %vm11300_vm6, %v11297_v13, %v3087_v61  ;;  %v11301_v30 = vld [vmem:[#allocation132_spill] sm:$0xff]  ;;  %v11311_v13 = vld [vmem:[#allocation107_spill] sm:$0xff]  ;;  %vm11350_vm6 = vmmov %vm11336_vm0 }
 0x92f   : > { %v10051_v45 = vpop.eup %5760  ;;  %5768 = vpow2.f32 %v3375_v58  ;;  %v3288_v38 = vadd.f32 %v3287_v8, %v11301_v30  ;;  %v3291_v51 = vadd.f32 %v3290_v3, %v3103_v44  ;;  %v4164_v57 = vmul.f32 1.442695, %v4141_v52 }
 0x930   : > { %4194 = vadd.xlane.f32.xlu0 %v10051_v45  ;;  %v3293_v1 = vpop.f32.mrf.mxu3  ;;  %5770 = vpow2.f32 %v3373_v63  ;;  %v4166_v34 = vmul.f32 1.442695, %v4142_v11  ;;  %v11303_v8 = vrot.slane %v11302_v20, 1  ;;  %v3356_v54 = vsub.f32 %v11311_v13, %v10039_v16 }
 0x931   : > { %v3294_v5 = vadd.f32 %v3293_v1, %v3104_v47  ;;  %v10119_v62 = vsel %vm1237_vm11, -1e+09, %v3288_v38  ;;  %v10123_v36 = vsel %vm1237_vm11, -1e+09, %v3291_v51  ;;  %5772 = vpow2.f32 %v4164_v57  ;;  %v11307_v47 = vld [vmem:[#allocation60_spill] sm:$0xff] }
 0x932   : > { %v10055_v23 = vpop.eup %5762  ;;  %5774 = vpow2.f32 %v4166_v34  ;;  %v11308_v1 = vld [vmem:[#allocation64_spill] sm:$0xff]  ;;  %v3381_v7 = vmul.f32 1.442695, %v3356_v54 }
 0x933   : > { %3335 = vmax.xlane.f32.xlu1 %v10064_v15  ;;  %4190 = vadd.xlane.f32.xlu2 %v10055_v23  ;;  %v10077_v59 = vpop.eup %5764  ;;  %v10098_v14 = vsel %vm1237_vm11, -1e+09, %v3294_v5  ;;  %vm11309_vm3 = vcmp.le.s32.totalorder %v8107_v60, %v11308_v1 }
 0x934   : > { %v10084_v32 = vpop.eup %5766  ;;  %vm11315_vm15 = vmmov %vm11309_vm3  ;;  %v3404_v39 = vpop.xlane.xlu2 %3403 }
 0x935   : > { %v10104_v46 = vpop.eup %5768 }
 0x936   : > { %v10106_v12 = vpop.eup %5770 }
 0x937   : > { %v10141_v58 = vpop.eup %5772 }
 0x938   : > { %3409 = vadd.xlane.f32.xlu0 %v10077_v59  ;;  %v10143_v63 = vpop.eup %5774  ;;  %v3296_v4 = vpop.f32.mrf.mxu3 }
 0x93a   : > { %v3828_v49 = vpop.permute.xlu0 %3827 }
 0x93b   : > { %4124 = vmax.xlane.f32.xlu1 %v10088_v17  ;;  %4192 = vadd.xlane.f32.xlu2 %v10084_v32  ;;  %v3844_v29 = vrot.slane %v3828_v49, 1 }
 0x93d   : > { %v3845_v53 = vsel %vm1547_vm1, %v3843_v6, %v3844_v29  ;;  %v3860_v3 = vsel %vm1547_vm1, %v3844_v29, %v11303_v8  ;;  %v3355_v6 = vsub.f32 %v11307_v47, %v10027_v48 }
 0x93e   : > { %v3876_v22 = vsel %vm11305_vm9, 0.0, %v3860_v3  ;;  %v3875_v37 = vsel %vm11306_vm10, 0.0, %v3845_v53  ;;  %vm11353_vm9 = vmmov %vm11336_vm0 }
 0x93f   : > { %v3892_v5 = vsel %vm11309_vm3, %v3828_v49, %v3876_v22  ;;  %v3891_v43 = vsel %vm11310_vm2, %v9978_v18, %v3875_v37  ;;  %v3379_v48 = vmul.f32 1.442695, %v3355_v6  ;;  %v11312_v18 = vld [vmem:[#allocation131_spill] sm:$0xff]  ;;  %vm11355_vm10 = vmmov %vm11336_vm0 }
 0x940   : > { %3343 = vmax.xlane.f32.xlu0 %v10098_v14  ;;  %v4084_v19 = vadd.f32 %v4083_v26, %v3892_v5  ;;  %v4081_v61 = vadd.f32 %v4080_v55, %v3891_v43  ;;  %v11313_v16 = vrot.slane %v11312_v18, 1  ;;  %vm11358_vm3 = vmmov %vm11336_vm0 }
 0x941   : > { %5776 = vpow2.f32 %v3379_v48  ;;  %vm11360_vm2 = vmmov %vm11336_vm0 }
 0x942   : > { %v10160_v52 = vsel %vm1237_vm11, -1e+09, %v4081_v61  ;;  %v10164_v44 = vsel %vm1237_vm11, -1e+09, %v4084_v19  ;;  %5778 = vpow2.f32 %v3381_v7  ;;  %v3073_v27 = vsel %vm1547_vm1, %v3057_v24, %v11313_v16  ;;  %v4127_v19 = vpop.xlane.xlu2 %4126 }
 0x943   : > { %3405 = vadd.xlane.f32.xlu1 %v10106_v12  ;;  %3407 = vadd.xlane.f32.xlu2 %v10104_v46  ;;  %v3089_v11 = vsel %vm11314_vm14, 0.0, %v3073_v27  ;;  %vm4567_vm1 = vcmask 523264   ;;  %vm11362_vm14 = vmmov %vm11336_vm0 }
 0x944   : > { %v3105_v57 = vsel %vm11315_vm15, %v11286_v0, %v3089_v11  ;;  %vm11364_vm15 = vmmov %vm11336_vm0 }
 0x945   : > { %v3297_v29 = vadd.f32 %v3296_v4, %v3105_v57 }
 0x947   : > { %v10177_v30 = vpop.eup %5776  ;;  %v10191_v53 = vsel %vm1237_vm11, -1e+09, %v3297_v29  ;;  %vm4584_vm11 = vcmask 785408  }
 0x948   : > { %v10180_v51 = vpop.eup %5778 }
 0x94b   : > { %3339 = vmax.xlane.f32.xlu1 %v10119_v62  ;;  %3341 = vmax.xlane.f32.xlu2 %v10123_v36 }
 0x953   : > { %4196 = vadd.xlane.f32.xlu1 %v10141_v58  ;;  %4198 = vadd.xlane.f32.xlu2 %v10143_v63 }
 0x95b   : > { %4130 = vmax.xlane.f32.xlu1 %v10160_v52  ;;  %4132 = vmax.xlane.f32.xlu2 %v10164_v44 }
 0x960   : > { %v4121_v49 = vpop.xlane.xlu1 %4120 }
 0x961   : > { %v4143_v38 = vsub.f32 %v9976_v2, %v4121_v49 }
 0x963   : > { %v4168_v34 = vmul.f32 1.442695, %v4143_v38  ;;  %3411 = vadd.xlane.f32.xlu1 %v10177_v30  ;;  %3413 = vadd.xlane.f32.xlu2 %v10180_v51  ;;  %v4146_v38 = vsub.f32 %v9943_v35, %v4127_v19 }
 0x965   : > { %5780 = vpow2.f32 %v4168_v34  ;;  %v3400_v24 = vpop.xlane.xlu0 %3399  ;;  %v4174_v34 = vmul.f32 1.442695, %v4146_v38 }
 0x966   : > { %5782 = vrcp.f32 %v3400_v24 }
 0x967   : > { %5784 = vrcp.f32 %v10034_v28 }
 0x968   : > { %v4123_v55 = vpop.xlane.xlu1 %4122 }
 0x969   : > { %v4144_v2 = vsub.f32 %v10003_v40, %v4123_v55 }
 0x96b   : > { %v10193_v20 = vpop.eup %5780  ;;  %v4170_v60 = vmul.f32 1.442695, %v4144_v2  ;;  %3345 = vmax.xlane.f32.xlu1 %v10191_v53 }
 0x96c   : > { %v5783_v0 = vpop.eup %5782  ;;  %4200 = vadd.xlane.f32.xlu0 %v10193_v20 }
 0x96d   : > { %5786 = vpow2.f32 %v4170_v60  ;;  %v3338_v8 = vpop.xlane.xlu0 %3337  ;;  %v3445_v3 = vmul.f32 %v5783_v0, %v9990_v9  ;;  %v5785_v37 = vpop.eup %5784 }
 0x96e   : > { %v3358_v40 = vsub.f32 %v10011_v10, %v3338_v8  ;;  %v3446_v6 = vmul.f32 %v5785_v37, %v9833_v56 }
 0x96f   : > { %3529 = vmatmul.f32.gmra.mxu0 %v3445_v3 }
 0x970   : > { %v4183_v33 = vpop.xlane.xlu1 %4182  ;;  %v3385_v22 = vmul.f32 1.442695, %v3358_v40 }
 0x971   : > { %5788 = vrcp.f32 %v4183_v33 }
 0x972   : > { %5790 = vrcp.f32 %v3404_v39 }
 0x973   : > { %v10200_v47 = vpop.eup %5786  ;;  %5792 = vpow2.f32 %v3385_v22 }
 0x974   : > { %4202 = vadd.xlane.f32.xlu0 %v10200_v47 }
 0x975   : > { %v4129_v28 = vpop.xlane.xlu0 %4128 }
 0x976   : > { %v4147_v1 = vsub.f32 %v10022_v42, %v4129_v28 }
 0x977   : > { %v5789_v9 = vpop.eup %5788  ;;  %3532 = vmatmul.f32.gmra.mxu0 %v3446_v6 }
 0x978   : > { %v4230_v10 = vmul.f32 %v5789_v9, %v10017_v21  ;;  %v4176_v5 = vmul.f32 1.442695, %v4147_v1  ;;  %v5791_v43 = vpop.eup %5790 }
 0x979   : > { %v10206_v13 = vpop.eup %5792  ;;  %v3447_v54 = vmul.f32 %v5791_v43, %v9933_v50 }
 0x97a   : > { %4310 = vmatmul.f32.vlgmr.msra.gmra.mxu3 %v4230_v10  ;;  %5794 = vpow2.f32 %v4176_v5 }
 0x97c   : > { %3417 = vadd.xlane.f32.xlu0 %v10206_v13 }
 0x97f   : > { %3535 = vmatmul.f32.gmra.mxu0 %v3447_v54 }
 0x980   : > { %v10210_v26 = vpop.eup %5794 }
 0x984   : > { %4208 = vadd.xlane.f32.xlu0 %v10210_v26 }
 0x98e   : > { %v4185_v56 = vpop.xlane.xlu1 %4184 }
 0x98f   : > { %5796 = vrcp.f32 %v4185_v56  ;;  %v4189_v61 = vpop.xlane.xlu2 %4188 }
 0x995   : > { %v5797_v42 = vpop.eup %5796 }
 0x996   : > { %v4231_v21 = vmul.f32 %v5797_v42, %v10029_v25 }
 0x998   : > { %4313 = vmatmul.f32.gmra.mxu3 %v4231_v21 }
 0x99e   : > { %v4187_v48 = vpop.xlane.xlu1 %4186 }
 0x99f   : > { %5798 = vrcp.f32 %v4187_v48 }
 0x9a0   : > { %5800 = vrcp.f32 %v4189_v61 }
 0x9a3   : > { %v4195_v7 = vpop.xlane.xlu0 %4194 }
 0x9a5   : > { %v5799_v18 = vpop.eup %5798 }
 0x9a6   : > { %v4191_v16 = vpop.xlane.xlu2 %4190  ;;  %v3336_v50 = vpop.xlane.xlu1 %3335  ;;  %v4232_v27 = vmul.f32 %v5799_v18, %v10046_v41  ;;  %v11316_v18 = vld [vmem:[#allocation129_spill] sm:$0xff] }
 0x9a7   : > { %v3357_v11 = vsub.f32 %v10064_v15, %v3336_v50  ;;  %v5801_v57 = vpop.eup %5800 }
 0x9a8   : > { %4316 = vmatmul.f32.gmra.mxu3 %v4232_v27  ;;  %v4233_v29 = vmul.f32 %v5801_v57, %v10031_v31 }
 0x9a9   : > { %v3383_v49 = vmul.f32 1.442695, %v3357_v11 }
 0x9ab   : > { %5802 = vpow2.f32 %v3383_v49  ;;  %v3410_v25 = vpop.xlane.xlu0 %3409 }
 0x9ac   : > { %5804 = vrcp.f32 %v4191_v16  ;;  %v11317_v16 = vld [vmem:[#allocation70_spill] sm:$0xff] }
 0x9ad   : > { %5806 = vpow2.f32 %v4174_v34  ;;  %v5513_v50 = vpack.i.bf16 %v11317_v16, %v11316_v18  ;;  %v3524_v34 = vpop.f32.mrf.mxu0 }
 0x9ae   : > { %v4193_v4 = vpop.xlane.xlu2 %4192  ;;  %v4125_v24 = vpop.xlane.xlu1 %4124 }
 0x9af   : > { %v4145_v55 = vsub.f32 %v10088_v17, %v4125_v24 }
 0x9b0   : > { %4319 = vmatmul.f32.gmra.mxu3 %v4233_v29 }
 0x9b1   : > { %v10219_v2 = vpop.eup %5802  ;;  %v4172_v41 = vmul.f32 1.442695, %v4145_v55 }
 0x9b2   : > { %3415 = vadd.xlane.f32.xlu1 %v10219_v2  ;;  %v5805_v15 = vpop.eup %5804 }
 0x9b3   : > { %5808 = vpow2.f32 %v4172_v41  ;;  %v3344_v35 = vpop.xlane.xlu0 %3343  ;;  %v4234_v31 = vmul.f32 %v5805_v15, %v10055_v23  ;;  %v10224_v40 = vpop.eup %5806  ;;  %v11320_v15 = vld [vmem:[#allocation34_spill] sm:$0xff] }
 0x9b4   : > { %v3361_v60 = vsub.f32 %v10098_v14, %v3344_v35  ;;  %5810 = vrcp.f32 %v4193_v4  ;;  %v11321_v35 = vld [vmem:[#allocation119_spill] sm:$0xff] }
 0x9b6   : > { %v3391_v0 = vmul.f32 1.442695, %v3361_v60  ;;  %v3408_v8 = vpop.xlane.xlu2 %3407  ;;  %v3406_v3 = vpop.xlane.xlu1 %3405  ;;  %v5543_v60 = vpack.i.bf16 %v11321_v35, %v11320_v15 }
 0x9b8   : > { %5812 = vpow2.f32 %v3391_v0  ;;  %4322 = vmatmul.f32.gmra.mxu3 %v4234_v31 }
 0x9b9   : > { %v10226_v17 = vpop.eup %5808  ;;  %5814 = vrcp.f32 %v3406_v3  ;;  %v3527_v3 = vpop.f32.mrf.mxu0 }
 0x9ba   : > { %4206 = vadd.xlane.f32.xlu1 %v10224_v40  ;;  %4204 = vadd.xlane.f32.xlu2 %v10226_v17  ;;  %v5811_v33 = vpop.eup %5810  ;;  %5816 = vrcp.f32 %v4195_v7 }
 0x9bb   : > { %v4235_v37 = vmul.f32 %v5811_v33, %v10084_v32  ;;  %5818 = vrcp.f32 %v3408_v8 }
 0x9be   : > { %v10230_v14 = vpop.eup %5812  ;;  %v3342_v39 = vpop.xlane.xlu2 %3341 }
 0x9bf   : > { %v3340_v22 = vpop.xlane.xlu1 %3339  ;;  %v5815_v23 = vpop.eup %5814  ;;  %v3360_v28 = vsub.f32 %v10123_v36, %v3342_v39  ;;  %3423 = vadd.xlane.f32.xlu0 %v10230_v14 }
 0x9c0   : > { %v3359_v6 = vsub.f32 %v10119_v62, %v3340_v22  ;;  %v3448_v1 = vmul.f32 %v5815_v23, %v10106_v12  ;;  %4325 = vmatmul.f32.gmra.mxu3 %v4235_v37  ;;  %v5817_v5 = vpop.eup %5816  ;;  %v11323_v37 = vld [vmem:[#allocation31_spill] sm:$0xff] }
 0x9c1   : > { %v3389_v9 = vmul.f32 1.442695, %v3360_v28  ;;  %v5819_v43 = vpop.eup %5818  ;;  %v4236_v56 = vmul.f32 %v5817_v5, %v10051_v45 }
 0x9c2   : > { %v3387_v10 = vmul.f32 1.442695, %v3359_v6  ;;  %3538 = vmatmul.f32.gmra.mxu0 %v3448_v1  ;;  %v3449_v62 = vmul.f32 %v5819_v43, %v10104_v46 }
 0x9c3   : > { %5820 = vpow2.f32 %v3389_v9  ;;  %v5518_v9 = vpack.i.bf16 %v3527_v3, %v3524_v34  ;;  %v4616_v34 = vld [vmem:[#allocation16 + $0x78] sm:$0xff]  ;;  %v4611_v3 = vld [vmem:[#allocation16 + $0x50] sm:$0xff] }
 0x9c4   : > { %5822 = vpow2.f32 %v3387_v10  ;;  %4621 = vmatpush.msra.mxu0 %v4616_v34 }
 0x9c5   : > { %5824 = vrcp.f32 %v3410_v25 }
 0x9c6   : > { %v4199_v54 = vpop.xlane.xlu2 %4198 }
 0x9c7   : > { %v4197_v32 = vpop.xlane.xlu1 %4196 }
 0x9c8   : > { %5826 = vrcp.f32 %v4197_v32  ;;  %4328 = vmatmul.f32.gmra.mxu3 %v4236_v56  ;;  %v11328_v32 = vld [vmem:[#allocation94_spill] sm:$0xff] }
 0x9c9   : > { %v10239_v36 = vpop.eup %5820  ;;  %5828 = vrcp.f32 %v4199_v54  ;;  %v11327_v54 = vld [vmem:[#allocation93_spill] sm:$0xff] }
 0x9ca   : > { %v10241_v12 = vpop.eup %5822  ;;  %3541 = vmatmul.f32.gmra.mxu0 %v3449_v62  ;;  %3421 = vadd.xlane.f32.xlu1 %v10239_v36  ;;  %v11329_v56 = vpack.i.bf16 %v11327_v54, %v11328_v32 }
 0x9cb   : > { %3419 = vadd.xlane.f32.xlu2 %v10241_v12  ;;  %v5825_v42 = vpop.eup %5824 }
 0x9cc   : > { %v3450_v7 = vmul.f32 %v5825_v42, %v10077_v59  ;;  %v11319_v59 = vld [vmem:[#allocation113_spill] sm:$0xff] }
 0x9ce   : > { %v5827_v19 = vpop.eup %5826  ;;  %v4133_v21 = vpop.xlane.xlu2 %4132 }
 0x9cf   : > { %v4131_v61 = vpop.xlane.xlu1 %4130  ;;  %v4149_v45 = vsub.f32 %v10164_v44, %v4133_v21  ;;  %v4237_v46 = vmul.f32 %v5827_v19, %v10141_v58  ;;  %v5829_v49 = vpop.eup %5828  ;;  %v11318_v58 = vld [vmem:[#allocation30_spill] sm:$0xff] }
 0x9d0   : > { %v4148_v48 = vsub.f32 %v10160_v52, %v4131_v61  ;;  %v4238_v44 = vmul.f32 %v5829_v49, %v10143_v63  ;;  %v5528_v57 = vpack.i.bf16 %v11319_v59, %v11318_v58 }
 0x9d1   : > { %v4180_v27 = vmul.f32 1.442695, %v4149_v45  ;;  %4331 = vmatmul.f32.gmra.mxu3 %v4237_v46 }
 0x9d2   : > { %v4178_v11 = vmul.f32 1.442695, %v4148_v48  ;;  %3544 = vmatmul.f32.gmra.mxu0 %v3450_v7 }
 0x9d3   : > { %5830 = vpow2.f32 %v4180_v27  ;;  %5514 = vrot.lane.b32.xlu0 %v5513_v50, %s6233_s17 }
 0x9d4   : > { %5832 = vpow2.f32 %v4178_v11 }
 0x9d6   : > { %v3414_v4 = vpop.xlane.xlu2 %3413 }
 0x9d7   : > { %v3412_v38 = vpop.xlane.xlu1 %3411 }
 0x9d8   : > { %5834 = vrcp.f32 %v3412_v38 }
 0x9d9   : > { %v10253_v52 = vpop.eup %5830  ;;  %4334 = vmatmul.f32.gmra.mxu3 %v4238_v44  ;;  %5836 = vrcp.f32 %v3414_v4 }
 0x9da   : > { %v10257_v25 = vpop.eup %5832  ;;  %4212 = vadd.xlane.f32.xlu1 %v10253_v52 }
 0x9db   : > { %4210 = vadd.xlane.f32.xlu2 %v10257_v25  ;;  %5529 = vrot.lane.b32.xlu0 %v5528_v57, %s6233_s17 }
 0x9de   : > { %v5835_v24 = vpop.eup %5834 }
 0x9df   : > { %v3346_v63 = vpop.xlane.xlu1 %3345  ;;  %v4201_v55 = vpop.xlane.xlu0 %4200  ;;  %v3451_v41 = vmul.f32 %v5835_v24, %v10177_v30  ;;  %v11322_v30 = vld [vmem:[#allocation79_spill] sm:$0xff]  ;;  %v4615_v24 = vld [vmem:[#allocation16 + $0x70] sm:$0xff] }
 0x9e0   : > { %v3362_v29 = vsub.f32 %v10191_v53, %v3346_v63  ;;  %5838 = vrcp.f32 %v4201_v55  ;;  %v5837_v8 = vpop.eup %5836  ;;  %v5558_v23 = vpack.i.bf16 %v11323_v37, %v11322_v30  ;;  %4622 = vmatpush.msra.mxu0 %v4615_v24  ;;  %v4613_v55 = vld [vmem:[#allocation16 + $0x60] sm:$0xff] }
 0x9e1   : > { %3547 = vmatmul.f32.gmra.mxu0 %v3451_v41  ;;  %v3452_v39 = vmul.f32 %v5837_v8, %v10180_v51  ;;  %v11324_v51 = vld [vmem:[#allocation109_spill] sm:$0xff] }
 0x9e2   : > { %v3393_v0 = vmul.f32 1.442695, %v3362_v29 }
 0x9e3   : > { %5544 = vrot.lane.b32.xlu0 %v5543_v60, %s6233_s17 }
 0x9e4   : > { %5840 = vpow2.f32 %v3393_v0  ;;  %v4612_v0 = vld [vmem:[#allocation16 + $0x58] sm:$0xff] }
 0x9e6   : > { %v5839_v31 = vpop.eup %5838 }
 0x9e7   : > { %v4203_v33 = vpop.xlane.xlu0 %4202  ;;  %v4239_v53 = vmul.f32 %v5839_v31, %v10193_v20  ;;  %v11325_v20 = vld [vmem:[#allocation110_spill] sm:$0xff]  ;;  %v4610_v31 = vld [vmem:[#allocation16 + $0x48] sm:$0xff] }
 0x9e8   : > { %5842 = vrcp.f32 %v4203_v33  ;;  %v11326_v10 = vpack.i.bf16 %v11324_v51, %v11325_v20  ;;  %v4605_v51 = vld [vmem:[#allocation16 + $0x20] sm:$0xff] }
 0x9e9   : > { %3550 = vmatmul.f32.gmra.mxu0 %v3452_v39  ;;  %4337 = vmatmul.f32.gmra.mxu3 %v4239_v53  ;;  %v4609_v39 = vld [vmem:[#allocation16 + $0x40] sm:$0xff] }
 0x9ea   : > { %v10269_v22 = vpop.eup %5840 }
 0x9eb   : > { %3425 = vadd.xlane.f32.xlu2 %v10269_v22  ;;  %5559 = vrot.lane.b32.xlu0 %v5558_v23, %s6233_s17  ;;  %v4608_v23 = vld [vmem:[#allocation16 + $0x38] sm:$0xff] }
 0x9ec   : > { %v3530_v28 = vpop.f32.mrf.mxu0 }
 0x9ee   : > { %v5843_v6 = vpop.eup %5842 }
 0x9ef   : > { %v4240_v1 = vmul.f32 %v5843_v6, %v10200_v47  ;;  %v3418_v21 = vpop.xlane.xlu0 %3417 }
 0x9f1   : > { %4340 = vmatmul.f32.gmra.mxu3 %v4240_v1  ;;  %v4606_v1 = vld [vmem:[#allocation16 + $0x28] sm:$0xff] }
 0x9f3   : > { %5574 = vrot.lane.b32.xlu0 %v11326_v10, %s6233_s17  ;;  %5519 = vrot.lane.b32.xlu1 %v5518_v9, %s11006_s27 }
 0x9f4   : > { %v3533_v5 = vpop.f32.mrf.mxu0 }
 0x9f5   : > { %v5533_v43 = vpack.i.bf16 %v3533_v5, %v3530_v28  ;;  %v4604_v5 = vld [vmem:[#allocation16 + $0x18] sm:$0xff] }
 0x9f7   : > { %v4209_v44 = vpop.xlane.xlu0 %4208 }
 0x9fb   : > { %5589 = vrot.lane.b32.xlu0 %v11329_v56, %s6233_s17  ;;  %5534 = vrot.lane.b32.xlu1 %v5533_v43, %s11006_s27  ;;  %v4603_v56 = vld [vmem:[#allocation16 + $0x10] sm:$0xff] }
 0x9fc   : > { %v3536_v38 = vpop.f32.mrf.mxu0 }
 0x9fd   : > { %v4311_v62 = vpop.f32.mrf.mxu3 }
 0xa1b   : > { %v4314_v47 = vpop.f32.mrf.mxu3 }
 0xa1c   : > { %v5523_v42 = vpack.i.bf16 %v4314_v47, %v4311_v62  ;;  %v4602_v62 = vld [vmem:[#allocation16 + $0x8] sm:$0xff]  ;;  %v4601_v47 = vld [vmem:[#allocation16] sm:$0xff] }
 0xa1e   : > { %5524 = vrot.lane.b32.xlu2 %v5523_v42, %s11330_s0 }
 0xa25   : > { %v3416_v19 = vpop.xlane.xlu1 %3415 }
 0xa26   : > { %5844 = vrcp.f32 %v3416_v19 }
 0xa27   : > { %5846 = vrcp.f32 %v3418_v21 }
 0xa2b   : > { %v4317_v61 = vpop.f32.mrf.mxu3 }
 0xa2c   : > { %v5845_v45 = vpop.eup %5844 }
 0xa2d   : > { %v4205_v48 = vpop.xlane.xlu2 %4204  ;;  %v3453_v46 = vmul.f32 %v5845_v45, %v10219_v2  ;;  %v4207_v7 = vpop.xlane.xlu1 %4206 }
 0xa2e   : > { %5848 = vrcp.f32 %v4205_v48  ;;  %v5847_v18 = vpop.eup %5846 }
 0xa2f   : > { %3553 = vmatmul.f32.gmra.mxu0 %v3453_v46  ;;  %5850 = vrcp.f32 %v4207_v7  ;;  %v3454_v11 = vmul.f32 %v5847_v18, %v10206_v13 }
 0xa30   : > { %5852 = vrcp.f32 %v4209_v44 }
 0xa32   : > { %v3424_v33 = vpop.xlane.xlu0 %3423 }
 0xa33   : > { %v4320_v16 = vpop.f32.mrf.mxu3 }
 0xa34   : > { %v5849_v50 = vpop.eup %5848  ;;  %v5538_v27 = vpack.i.bf16 %v4320_v16, %v4317_v61 }
 0xa35   : > { %v4241_v49 = vmul.f32 %v5849_v50, %v10226_v17  ;;  %v5851_v58 = vpop.eup %5850  ;;  %v4614_v17 = vld [vmem:[#allocation16 + $0x68] sm:$0xff] }
 0xa36   : > { %5539 = vrot.lane.b32.xlu2 %v5538_v27, %s11330_s0  ;;  %v4242_v59 = vmul.f32 %v5851_v58, %v10224_v40  ;;  %v5853_v63 = vpop.eup %5852  ;;  %4623 = vmatpush.msra.mxu0 %v4614_v17 }
 0xa37   : > { %3556 = vmatmul.f32.gmra.mxu0 %v3454_v11  ;;  %4343 = vmatmul.f32.gmra.mxu3 %v4241_v49  ;;  %v4243_v40 = vmul.f32 %v5853_v63, %v10210_v26 }
 0xa38   : > { %4624 = vmatpush.msra.mxu0 %v4613_v55 }
 0xa3a   : > { %4625 = vmatpush.msra.mxu0 %v4612_v0 }
 0xa3b   : > { %v4323_v2 = vpop.f32.mrf.mxu3 }
 0xa3c   : > { %4626 = vmatpush.msra.mxu0 %v4611_v3 }
 0xa3d   : > { %v3422_v29 = vpop.xlane.xlu1 %3421 }
 0xa3e   : > { %v3420_v57 = vpop.xlane.xlu2 %3419  ;;  %4627 = vmatpush.msra.mxu0 %v4610_v31 }
 0xa3f   : > { %5854 = vrcp.f32 %v3420_v57  ;;  %v3539_v4 = vpop.f32.mrf.mxu0  ;;  %4346 = vmatmul.f32.gmra.mxu3 %v4242_v59 }
 0xa40   : > { %v5548_v13 = vpack.i.bf16 %v3539_v4, %v3536_v38  ;;  %5856 = vrcp.f32 %v3422_v29  ;;  %4628 = vmatpush.msra.mxu0 %v4609_v39  ;;  %v11333_v4 = vld [vmem:[#allocation105_spill] sm:$0xff]  ;;  %v11337_v39 = vld [vmem:[#allocation63_spill] sm:$0xff] }
 0xa41   : > { %5858 = vrcp.f32 %v3424_v33 }
 0xa42   : > { %5549 = vrot.lane.b32.xlu1 %v5548_v13, %s11006_s27  ;;  %4629 = vmatpush.msra.mxu0 %v4608_v23 }
 0xa43   : > { %v4326_v41 = vpop.f32.mrf.mxu3 }
 0xa44   : > { %v5553_v15 = vpack.i.bf16 %v4326_v41, %v4323_v2 }
 0xa45   : > { %v5855_v35 = vpop.eup %5854  ;;  %v5515_v16 = vpop.permute.xlu0 %5514 }
 0xa46   : > { %5554 = vrot.lane.b32.xlu2 %v5553_v15, %s11330_s0  ;;  %v3455_v60 = vmul.f32 %v5855_v35, %v10241_v12  ;;  %v5857_v53 = vpop.eup %5856  ;;  %v4607_v12 = vld [vmem:[#allocation16 + $0x30] sm:$0xff]  ;;  %v5516_v27 = vunpack.i.l.bf16 %v5515_v16  ;;  %v5517_v59 = vunpack.i.h.bf16 %v5515_v16 }
 0xa47   : > { %v3542_v8 = vpop.f32.mrf.mxu0  ;;  %4349 = vmatmul.f32.gmra.mxu3 %v4243_v40  ;;  %v3456_v37 = vmul.f32 %v5857_v53, %v10239_v36  ;;  %4630 = vmatpush.msra.mxu0 %v4607_v12  ;;  %v5859_v20 = vpop.eup %5858  ;;  %v11335_v40 = vld [vmem:[#allocation98_spill] sm:$0xff] }
 0xa48   : > { %3559 = vmatmul.f32.gmra.mxu0 %v3455_v60  ;;  %v3457_v54 = vmul.f32 %v5859_v20, %v10230_v14  ;;  %v4552_v13 = vsel %vm11334_vm12, %v11333_v4, %v5517_v59  ;;  %vm11368_vm12 = vmmov %vm11336_vm0 }
 0xa49   : > { %4631 = vmatpush.msra.mxu0 %v4606_v1 }
 0xa4b   : > { %v4329_v30 = vpop.f32.mrf.mxu3  ;;  %4632 = vmatpush.msra.mxu0 %v4605_v51 }
 0xa4d   : > { %v4213_v9 = vpop.xlane.xlu1 %4212  ;;  %4633 = vmatpush.msra.mxu0 %v4604_v5  ;;  %v5530_v63 = vpop.permute.xlu0 %5529 }
 0xa4e   : > { %v4211_v26 = vpop.xlane.xlu2 %4210  ;;  %v5531_v55 = vunpack.i.l.bf16 %v5530_v63  ;;  %v5532_v3 = vunpack.i.h.bf16 %v5530_v63 }
 0xa4f   : > { %5860 = vrcp.f32 %v4211_v26  ;;  %v3545_v28 = vpop.f32.mrf.mxu0  ;;  %4634 = vmatpush.msra.mxu0 %v4603_v56 }
 0xa50   : > { %v5563_v6 = vpack.i.bf16 %v3545_v28, %v3542_v8  ;;  %3562 = vmatmul.f32.gmra.mxu0 %v3456_v37  ;;  %5862 = vrcp.f32 %v4213_v9  ;;  %v4553_v60 = vsel %vm11336_vm0, %v11335_v40, %v5531_v55  ;;  %v4554_v53 = vsel %vm11338_vm5, %v11337_v39, %v5532_v3 }
 0xa51   : > { %4635 = vmatpush.msra.mxu0 %v4602_v62  ;;  %v11341_v62 = vld [vmem:[#allocation99_spill] sm:$0xff] }
 0xa52   : > { %5564 = vrot.lane.b32.xlu1 %v5563_v6, %s11006_s27 }
 0xa53   : > { %4636 = vmatpush.msra.mxu0 %v4601_v47 }
 0xa54   : > { %v4332_v10 = vpop.f32.mrf.mxu3 }
 0xa55   : > { %v5861_v43 = vpop.eup %5860  ;;  %v5568_v36 = vpack.i.bf16 %v4332_v10, %v4329_v30  ;;  %v5545_v23 = vpop.permute.xlu0 %5544  ;;  %v11339_v10 = vld [vmem:[#allocation126_spill] sm:$0xff] }
 0xa56   : > { %v4244_v32 = vmul.f32 %v5861_v43, %v10257_v25  ;;  %v5863_v42 = vpop.eup %5862  ;;  %v5546_v12 = vunpack.i.l.bf16 %v5545_v23 }
 0xa57   : > { %5569 = vrot.lane.b32.xlu2 %v5568_v36, %s11330_s0  ;;  %v4245_v61 = vmul.f32 %v5863_v42, %v10253_v52  ;;  %v5547_v36 = vunpack.i.h.bf16 %v5545_v23 }
 0xa58   : > { %3565 = vmatmul.f32.gmra.mxu0 %v3457_v54  ;;  %4352 = vmatmul.f32.gmra.mxu3 %v4244_v32  ;;  %v4555_v5 = vsel %vm11340_vm7, %v11339_v10, %v5546_v12 }
 0xa59   : > { %v4556_v47 = vsel %vm11342_vm13, %v11341_v62, %v5547_v36 }
 0xa5c   : > { %v4335_v25 = vpop.f32.mrf.mxu3 }
 0xa5e   : > { %v3426_v19 = vpop.xlane.xlu2 %3425  ;;  %v3548_v21 = vpop.f32.mrf.mxu0 }
 0xa5f   : > { %5864 = vrcp.f32 %v3426_v19 }
 0xa60   : > { %4355 = vmatmul.f32.gmra.mxu3 %v4245_v61  ;;  %v11343_v61 = vld [vmem:[#allocation58_spill] sm:$0xff] }
 0xa65   : > { %v5865_v14 = vpop.eup %5864  ;;  %v5520_v50 = vpop.permute.xlu1 %5519 }
 0xa66   : > { %v3458_v45 = vmul.f32 %v5865_v14, %v10269_v22  ;;  %v3551_v48 = vpop.f32.mrf.mxu0  ;;  %v5521_v11 = vunpack.i.l.bf16 %v5520_v50  ;;  %v11331_v22 = vld [vmem:[#allocation47_spill] sm:$0xff]  ;;  %v5522_v57 = vunpack.i.h.bf16 %v5520_v50 }
 0xa67   : > { %v5578_v46 = vpack.i.bf16 %v3551_v48, %v3548_v21  ;;  %v4551_v38 = vsel %vm11332_vm8, %v11331_v22, %v5516_v27  ;;  %v5560_v21 = vpop.permute.xlu0 %5559  ;;  %v11344_v14 = vld [vmem:[#allocation59_spill] sm:$0xff]  ;;  %vm11366_vm8 = vmmov %vm11336_vm0 }
 0xa68   : > { %3568 = vmatmul.f32.gmra.mxu0 %v3458_v45  ;;  %v4568_v58 = vsel %vm4567_vm1, %v4551_v38, %v5521_v11  ;;  %v4569_v24 = vsel %vm4567_vm1, %v4552_v13, %v5522_v57  ;;  %v5561_v48 = vunpack.i.l.bf16 %v5560_v21  ;;  %v11346_v11 = vld [vmem:[#allocation76_spill] sm:$0xff]  ;;  %v5562_v22 = vunpack.i.h.bf16 %v5560_v21 }
 0xa69   : > { %5579 = vrot.lane.b32.xlu1 %v5578_v46, %s11006_s27 }
 0xa6c   : > { %v4338_v7 = vpop.f32.mrf.mxu3 }
 0xa6d   : > { %v5583_v18 = vpack.i.bf16 %v4338_v7, %v4335_v25  ;;  %v5535_v29 = vpop.permute.xlu1 %5534  ;;  %v11345_v25 = vpack.i.bf16 %v11343_v61, %v11344_v14 }
 0xa6e   : > { %v5536_v41 = vunpack.i.l.bf16 %v5535_v29  ;;  %v5537_v31 = vunpack.i.h.bf16 %v5535_v29 }
 0xa6f   : > { %5584 = vrot.lane.b32.xlu2 %v5583_v18, %s11330_s0  ;;  %v5575_v29 = vpop.permute.xlu0 %5574 }
 0xa70   : > { %v4570_v0 = vsel %vm4567_vm1, %v4553_v60, %v5536_v41  ;;  %v4571_v30 = vsel %vm4567_vm1, %v4554_v53, %v5537_v31  ;;  %v5576_v55 = vunpack.i.l.bf16 %v5575_v29  ;;  %v5577_v31 = vunpack.i.h.bf16 %v5575_v29 }
 0xa74   : > { %v4341_v49 = vpop.f32.mrf.mxu3 }
 0xa77   : > { %4523 = vrot.lane.b32.xlu2 %v4341_v49, %s11330_s0  ;;  %v4557_v49 = vsel %vm11347_vm4, %v11346_v11, %v5561_v48 }
 0xa78   : > { %v5525_v52 = vpop.permute.xlu2 %5524 }
 0xa79   : > { %v5526_v44 = vunpack.i.l.bf16 %v5525_v52  ;;  %v5527_v34 = vunpack.i.h.bf16 %v5525_v52 }
 0xa7b   : > { %v4585_v2 = vsel %vm4584_vm11, %v4568_v58, %v5526_v44  ;;  %v4586_v17 = vsel %vm4584_vm11, %v4569_v24, %v5527_v34  ;;  %v11348_v58 = vld [vmem:[#allocation51_spill] sm:$0xff] }
 0xa7c   : > { %4637 = vmatmul.f32.vlgmr.msra.gmra.mxu0 %v4585_v2  ;;  %v11349_v2 = vld [vmem:[#allocation52_spill] sm:$0xff] }
 0xa7d   : > { %v4558_v59 = vsel %vm11350_vm6, %v11349_v2, %v5562_v22 }
 0xa84   : > { %4640 = vmatmul.f32.gmra.mxu0 %v4586_v17  ;;  %v11351_v17 = vld [vmem:[#allocation50_spill] sm:$0xff] }
 0xa90   : > { %v5540_v15 = vpop.permute.xlu2 %5539 }
 0xa91   : > { %v5541_v35 = vunpack.i.l.bf16 %v5540_v15  ;;  %v5542_v33 = vunpack.i.h.bf16 %v5540_v15 }
 0xa93   : > { %v4587_v8 = vsel %vm4584_vm11, %v4570_v0, %v5541_v35  ;;  %v4588_v26 = vsel %vm4584_vm11, %v4571_v30, %v5542_v33  ;;  %v11352_v0 = vld [vmem:[#allocation118_spill] sm:$0xff]  ;;  %v11354_v30 = vld [vmem:[#allocation49_spill] sm:$0xff] }
 0xa94   : > { %4643 = vmatmul.f32.gmra.mxu0 %v4587_v8  ;;  %v4559_v8 = vsel %vm11353_vm9, %v11352_v0, %v5576_v55 }
 0xa9c   : > { %4646 = vmatmul.f32.gmra.mxu0 %v4588_v26  ;;  %v4560_v26 = vsel %vm11355_vm10, %v11354_v30, %v5577_v31 }
 0xaa0   : > { %v5555_v28 = vpop.permute.xlu2 %5554 }
 0xaa1   : > { %v5556_v20 = vunpack.i.l.bf16 %v5555_v28  ;;  %v5557_v19 = vunpack.i.h.bf16 %v5555_v28 }
 0xaac   : > { %v3554_v37 = vpop.f32.mrf.mxu0 }
 0xab1   : > { %v5570_v7 = vpop.permute.xlu2 %5569 }
 0xab2   : > { %v5571_v27 = vunpack.i.l.bf16 %v5570_v7  ;;  %v5572_v13 = vunpack.i.h.bf16 %v5570_v7 }
 0xab4   : > { %v5550_v6 = vpop.permute.xlu1 %5549  ;;  %v3557_v1 = vpop.f32.mrf.mxu0 }
 0xab5   : > { %v5551_v9 = vunpack.i.l.bf16 %v5550_v6  ;;  %v5593_v51 = vpack.i.bf16 %v3557_v1, %v3554_v37  ;;  %v5552_v32 = vunpack.i.h.bf16 %v5550_v6  ;;  %v10367_v6 = vld [vmem:[%s11356_s21] ss:$0 sm:$0xff] }
 0xab7   : > { %5594 = vrot.lane.b32.xlu1 %v5593_v51, %s11006_s27  ;;  %v4572_v43 = vsel %vm4567_vm1, %v4555_v5, %v5551_v9  ;;  %v4573_v42 = vsel %vm4567_vm1, %v4556_v47, %v5552_v32  ;;  %v11357_v47 = vld [vmem:[#allocation111_spill] sm:$0xff] }
 0xab8   : > { %v4589_v54 = vsel %vm4584_vm11, %v4572_v43, %v5556_v20  ;;  %v4590_v45 = vsel %vm4584_vm11, %v4573_v42, %v5557_v19 }
 0xab9   : > { %4649 = vmatmul.f32.gmra.mxu0 %v4589_v54  ;;  %v5590_v54 = vpop.permute.xlu0 %5589 }
 0xaba   : > { %v4344_v56 = vpop.f32.mrf.mxu3  ;;  %v5591_v32 = vunpack.i.l.bf16 %v5590_v54  ;;  %v5592_v61 = vunpack.i.h.bf16 %v5590_v54 }
 0xabb   : > { %4525 = vrot.lane.b32.xlu0 %v4344_v56, %s11330_s0 }
 0xabc   : > { %v4561_v42 = vsel %vm11358_vm3, %v11357_v47, %v5591_v32 }
 0xabf   : > { %5599 = vrot.lane.b32.xlu1 %v11345_v25, %s6233_s17 }
 0xac1   : > { %4652 = vmatmul.f32.gmra.mxu0 %v4590_v45 }
 0xac2   : > { %v4347_v46 = vpop.f32.mrf.mxu3 }
 0xac3   : > { %4527 = vrot.lane.b32.xlu0 %v4347_v46, %s11330_s0  ;;  %v11359_v46 = vld [vmem:[#allocation69_spill] sm:$0xff] }
 0xac4   : > { %v5565_v18 = vpop.permute.xlu1 %5564  ;;  %v4562_v7 = vsel %vm11360_vm2, %v11359_v46, %v5592_v61 }
 0xac5   : > { %v5566_v16 = vunpack.i.l.bf16 %v5565_v18  ;;  %v3560_v50 = vpop.f32.mrf.mxu0  ;;  %v5567_v44 = vunpack.i.h.bf16 %v5565_v18 }
 0xac6   : > { %4463 = vrot.lane.b32.xlu2 %v3560_v50, %s11006_s27 }
 0xac7   : > { %v4574_v52 = vsel %vm4567_vm1, %v4557_v49, %v5566_v16  ;;  %v4575_v4 = vsel %vm4567_vm1, %v4558_v59, %v5567_v44  ;;  %v11361_v49 = vld [vmem:[#allocation121_spill] sm:$0xff] }
 0xac8   : > { %v4591_v38 = vsel %vm4584_vm11, %v4574_v52, %v5571_v27  ;;  %v4592_v24 = vsel %vm4584_vm11, %v4575_v4, %v5572_v13  ;;  %v11363_v4 = vld [vmem:[#allocation125_spill] sm:$0xff] }
 0xac9   : > { %4655 = vmatmul.f32.gmra.mxu0 %v4591_v38  ;;  %v5585_v41 = vpop.permute.xlu2 %5584 }
 0xaca   : > { %v4350_v57 = vpop.f32.mrf.mxu3  ;;  %v5586_v60 = vunpack.i.l.bf16 %v5585_v41  ;;  %v5587_v12 = vunpack.i.h.bf16 %v5585_v41 }
 0xacb   : > { %4403 = vrot.lane.b32.xlu0 %v11348_v58, %s6233_s17 }
 0xacd   : > { %v3563_v34 = vpop.f32.mrf.mxu0 }
 0xace   : > { %4465 = vrot.lane.b32.xlu1 %v3563_v34, %s11006_s27  ;;  %4529 = vrot.lane.b32.xlu2 %v4350_v57, %s11330_s0 }
 0xad1   : > { %4658 = vmatmul.f32.gmra.mxu0 %v4592_v24  ;;  %v4524_v19 = vpop.permute.xlu2 %4523 }
 0xad3   : > { %4405 = vrot.lane.b32.xlu0 %v11351_v17, %s6233_s17 }
 0xad5   : > { %v3566_v63 = vpop.f32.mrf.mxu0 }
 0xad6   : > { %4467 = vrot.lane.b32.xlu1 %v3566_v63, %s11006_s27 }
 0xadb   : > { %v5580_v15 = vpop.permute.xlu1 %5579  ;;  %v4353_v35 = vpop.f32.mrf.mxu3 }
 0xadc   : > { %v5581_v40 = vunpack.i.l.bf16 %v5580_v15  ;;  %4531 = vrot.lane.b32.xlu2 %v4353_v35, %s11330_s0  ;;  %v5582_v39 = vunpack.i.h.bf16 %v5580_v15  ;;  %v11365_v35 = vld [vmem:[#allocation89_spill] sm:$0xff] }
 0xade   : > { %v4576_v3 = vsel %vm4567_vm1, %v4559_v8, %v5581_v40  ;;  %v4577_v23 = vsel %vm4567_vm1, %v4560_v26, %v5582_v39  ;;  %v11367_v39 = vld [vmem:[#allocation73_spill] sm:$0xff] }
 0xadf   : > { %v4593_v33 = vsel %vm4584_vm11, %v4576_v3, %v5586_v60  ;;  %v4594_v28 = vsel %vm4584_vm11, %v4577_v23, %v5587_v12 }
 0xae0   : > { %4661 = vmatmul.f32.gmra.mxu0 %v4593_v33 }
 0xae3   : > { %v4356_v53 = vpop.f32.mrf.mxu3 }
 0xae4   : > { %4533 = vrot.lane.b32.xlu2 %v4356_v53, %s11330_s0 }
 0xae5   : > { %v3569_v37 = vpop.f32.mrf.mxu0 }
 0xae6   : > { %4469 = vrot.lane.b32.xlu1 %v3569_v37, %s11006_s27 }
 0xae8   : > { %4664 = vmatmul.f32.gmra.mxu0 %v4594_v28 }
 0xaf9   : > { %v4638_v1 = vpop.f32.mrf.mxu0 }
 0xafa   : > { %v4639_v9 = vadd.f32 %v10367_v6, %v4638_v1 }
 0xafc   : > { %4686 = vst [vmem:[%s10371_s26] sm:$0xff] %v4639_v9 }
 0xb01   : > { %v4641_v51 = vpop.f32.mrf.mxu0 }
 0xb02   : > { %v4642_v20 = vadd.f32 %v10367_v6, %v4641_v51 }
 0xb04   : > { %4687 = vst [vmem:[%s10371_s26 + $0x8] sm:$0xff] %v4642_v20 }
 0xb11   : > { %v4644_v10 = vpop.f32.mrf.mxu0 }
 0xb12   : > { %v4645_v5 = vadd.f32 %v10367_v6, %v4644_v10 }
 0xb14   : > { %4688 = vst [vmem:[%s10371_s26 + $0x10] sm:$0xff] %v4645_v5 }
 0xb19   : > { %v4647_v43 = vpop.f32.mrf.mxu0 }
 0xb1a   : > { %v4648_v36 = vadd.f32 %v10367_v6, %v4647_v43 }
 0xb1c   : > { %4689 = vst [vmem:[%s10371_s26 + $0x18] sm:$0xff] %v4648_v36 }
 0xb20   : > { %v4464_v22 = vpop.permute.xlu2 %4463 }
 0xb28   : > { %v4530_v17 = vpop.permute.xlu2 %4529 }
 0xb29   : > { %v5595_v56 = vpop.permute.xlu1 %5594 }
 0xb2a   : > { %v5596_v62 = vunpack.i.l.bf16 %v5595_v56  ;;  %v5597_v25 = vunpack.i.h.bf16 %v5595_v56 }
 0xb2c   : > { %v4578_v21 = vsel %vm4567_vm1, %v4561_v42, %v5596_v62  ;;  %v4579_v18 = vsel %vm4567_vm1, %v4562_v7, %v5597_v25 }
 0xb2d   : > { %v4595_v14 = vsel %vm4584_vm11, %v4578_v21, %v4524_v19  ;;  %v4526_v45 = vpop.permute.xlu0 %4525 }
 0xb2e   : > { %4667 = vmatmul.f32.gmra.mxu0 %v4595_v14  ;;  %v4596_v50 = vsel %vm4584_vm11, %v4579_v18, %v4526_v45 }
 0xb31   : > { %v5600_v48 = vpop.permute.xlu1 %5599 }
 0xb32   : > { %v5601_v16 = vunpack.i.l.bf16 %v5600_v48  ;;  %v5602_v58 = vunpack.i.h.bf16 %v5600_v48 }
 0xb34   : > { %v4563_v52 = vsel %vm11362_vm14, %v11361_v49, %v5601_v16  ;;  %v4564_v13 = vsel %vm11364_vm15, %v11363_v4, %v5602_v58 }
 0xb35   : > { %v4528_v38 = vpop.permute.xlu0 %4527  ;;  %v4580_v44 = vsel %vm4567_vm1, %v4563_v52, %v4464_v22 }
 0xb36   : > { %v4650_v27 = vpop.f32.mrf.mxu0  ;;  %4670 = vmatmul.f32.gmra.mxu0 %v4596_v50  ;;  %v4597_v2 = vsel %vm4584_vm11, %v4580_v44, %v4528_v38  ;;  %v4532_v0 = vpop.permute.xlu2 %4531 }
 0xb37   : > { %v4651_v11 = vadd.f32 %v10367_v6, %v4650_v27 }
 0xb39   : > { %4690 = vst [vmem:[%s10371_s26 + $0x20] sm:$0xff] %v4651_v11 }
 0xb3d   : > { %v4404_v29 = vpop.permute.xlu0 %4403 }
 0xb3e   : > { %v4653_v59 = vpop.f32.mrf.mxu0  ;;  %4673 = vmatmul.f32.gmra.mxu0 %v4597_v2  ;;  %v4565_v40 = vsel %vm11366_vm8, %v11365_v35, %v4404_v29  ;;  %v4534_v26 = vpop.permute.xlu2 %4533 }
 0xb3f   : > { %v4654_v57 = vadd.f32 %v10367_v6, %v4653_v59 }
 0xb40   : > { %v4466_v34 = vpop.permute.xlu1 %4465 }
 0xb41   : > { %4691 = vst [vmem:[%s10371_s26 + $0x28] sm:$0xff] %v4654_v57  ;;  %v4581_v24 = vsel %vm4567_vm1, %v4564_v13, %v4466_v34 }
 0xb42   : > { %v4598_v63 = vsel %vm4584_vm11, %v4581_v24, %v4530_v17 }
 0xb45   : > { %v4406_v33 = vpop.permute.xlu0 %4405 }
 0xb46   : > { %v4656_v55 = vpop.f32.mrf.mxu0  ;;  %4676 = vmatmul.f32.gmra.mxu0 %v4598_v63  ;;  %v4566_v53 = vsel %vm11368_vm12, %v11367_v39, %v4406_v33 }
 0xb47   : > { %v4657_v41 = vadd.f32 %v10367_v6, %v4656_v55 }
 0xb48   : > { %v4468_v15 = vpop.permute.xlu1 %4467 }
 0xb49   : > { %4692 = vst [vmem:[%s10371_s26 + $0x30] sm:$0xff] %v4657_v41  ;;  %v4582_v60 = vsel %vm4567_vm1, %v4565_v40, %v4468_v15 }
 0xb4a   : > { %v4599_v8 = vsel %vm4584_vm11, %v4582_v60, %v4532_v0 }
 0xb4e   : > { %v4659_v3 = vpop.f32.mrf.mxu0  ;;  %4679 = vmatmul.f32.gmra.mxu0 %v4599_v8 }
 0xb4f   : > { %v4660_v31 = vadd.f32 %v10367_v6, %v4659_v3 }
 0xb51   : > { %4693 = vst [vmem:[%s10371_s26 + $0x38] sm:$0xff] %v4660_v31 }
 0xb58   : > { %v4470_v30 = vpop.permute.xlu1 %4469 }
 0xb59   : > { %v4583_v37 = vsel %vm4567_vm1, %v4566_v53, %v4470_v30 }
 0xb5a   : > { %v4600_v23 = vsel %vm4584_vm11, %v4583_v37, %v4534_v26 }
 0xb5b   : > { %4682 = vmatmul.f32.gmra.mxu0 %v4600_v23 }
 0xb5d   : > { %v4662_v12 = vpop.f32.mrf.mxu0 }
 0xb5e   : > { %v4663_v28 = vadd.f32 %v10367_v6, %v4662_v12 }
 0xb60   : > { %4694 = vst [vmem:[%s10371_s26 + $0x40] sm:$0xff] %v4663_v28 }
 0xb65   : > { %v4665_v1 = vpop.f32.mrf.mxu0 }
 0xb66   : > { %v4666_v9 = vadd.f32 %v10367_v6, %v4665_v1 }
 0xb68   : > { %4695 = vst [vmem:[%s10371_s26 + $0x48] sm:$0xff] %v4666_v9 }
 0xbab   : > { %v4668_v51 = vpop.f32.mrf.mxu0 }
 0xbac   : > { %v4669_v20 = vadd.f32 %v10367_v6, %v4668_v51 }
 0xbae   : > { %4696 = vst [vmem:[%s10371_s26 + $0x50] sm:$0xff] %v4669_v20 }
 0xbb3   : > { %v4671_v10 = vpop.f32.mrf.mxu0 }
 0xbb4   : > { %v4672_v5 = vadd.f32 %v10367_v6, %v4671_v10 }
 0xbb6   : > { %4697 = vst [vmem:[%s10371_s26 + $0x58] sm:$0xff] %v4672_v5 }
 0xbbb   : > { %v4674_v43 = vpop.f32.mrf.mxu0 }
 0xbbc   : > { %v4675_v36 = vadd.f32 %v10367_v6, %v4674_v43 }
 0xbbe   : > { %4698 = vst [vmem:[%s10371_s26 + $0x60] sm:$0xff] %v4675_v36 }
 0xbc3   : > { %v4677_v54 = vpop.f32.mrf.mxu0 }
 0xbc4   : > { %v4678_v32 = vadd.f32 %v10367_v6, %v4677_v54 }
 0xbc6   : > { %4699 = vst [vmem:[%s10371_s26 + $0x68] sm:$0xff] %v4678_v32 }
 0xbcb   : > { %v4680_v56 = vpop.f32.mrf.mxu0 }
 0xbcc   : > { %v4681_v62 = vadd.f32 %v10367_v6, %v4680_v56 }
 0xbce   : > { %4700 = vst [vmem:[%s10371_s26 + $0x70] sm:$0xff] %v4681_v62 }
 0xbd8   : > { %v4683_v47 = vpop.f32.mrf.mxu0 }
 0xbd9   : > { %v4684_v42 = vadd.f32 %v10367_v6, %v4683_v47 }
 0xbdb   : > { %4701 = vst [vmem:[%s10371_s26 + $0x78] sm:$0xff] %v4684_v42 }
 0xbdc   : > { %6163 = shalt.err (!%p6160_p9)
}
 0xbdd   : > { %s6250_s30 = smov 128   ;;  %s6251_s20 = smov 8  }
 0xbde   : > { %5286 = dma.vmem_to_hbm [thread:$0]  (%p6429_p7), %s4716_s13, 2048, %s4718_s7, %s4703_s16, %s6250_s30, %s6250_s30, %s6251_s20  }
 0xbdf PF: > { %s11371_s17 = sld [smem:[#allocation25_spill]]  ;;  %p11373_p12 = scmp.ge.s32.totalorder %s6222_s24, 2 }
 0xbe1   : > { %p5318_p0 = pnand %p11373_p12, %p6372_p6 }
 0xbe3   : > { %p5319_p3 = pneg %p5318_p0 }
 0xbe5   : > { %s4732_s26 = sand.u32 1, %s11371_s17  }
 0xbe6   : > { %s4733_s8 = scalar_lea.sflag [#allocation4], %s4732_s26 }
 0xbe7   : > { %6205 = dma.done.wait (%p5319_p3), %s4733_s8, 2048  }
 0xbe8   : > { %6207 = vsyncadd (%p5319_p3), %s4733_s8, 4294965248  ;;  %s11374_s24 = sld [smem:[#allocation27_spill]]  ;;  %s11376_s21 = smov %s6214_s22 }
 0xbe9   : > { %s11375_s14 = sld [smem:[#allocation28_spill]]  ;;  %s11377_s22 = smov %s6218_s23 }
 0xbee   : > { %p37_p5 = scmp.ge.s32.totalorder %s11374_s24, 4  }
 0xbef   : > { %s11378_s23 = smov %s11375_s14 }
 0xbf0   :  { %39 = sbr.rel (!%p37_p5) target bundleno = 24 (0x18), region = 189 }
 0xbf5   :  { %4739 = vsyncpa [#allocation3], 1 }
 0xbf6   :  { %4741 = vsyncpa [#allocation3 + $0x1], 1 }
 0xbf7   :  { %4742 = vsyncpa [#allocation6], 1 }
 0xbf8   :  { %4744 = vsyncpa [#allocation6 + $0x1], 1 }
 0xbf9   :  { %4745 = vsyncpa [#allocation9], 1 }
 0xbfa   :  { %4747 = vsyncpa [#allocation9 + $0x1], 1 }
 0xbfb   :  { %4748 = vsyncpa [#allocation12], 1 }
 0xbfc   :  { %4749 = vsyncpa [#allocation15], 1 }
 0xbfd   :  { %4750 = vsyncpa [#allocation4], 1 }
 0xbfe   :  { %4752 = vsyncpa [#allocation4 + $0x1], 1 }

</bundles_post_ra>
